<compile_context>
chip_gen: v5e
topology: v5e:2x2
jax: 0.10.0
libtpu: 0.0.40
codegen_flags: <defaults>
</compile_context>

<pallas_src>
import jax
import jax.numpy as jnp
from jax.experimental import pallas as pl
from jax.experimental.pallas import tpu as pltpu

NEG_SLOPE = 0.01       # torch.nn.functional.leaky_relu default
_NEG_BIG = -1.0e30     # "minus infinity" that stays NaN-safe inside matmuls


def _pose_gnn_kernel(
    src_col_ref, src_row_ref, tgt_col_ref, tgt_row_ref, x_ref,
    w1_ref, wi1_ref, b1_ref,
    w2_ref, wi2_ref, b2_ref,
    w3_ref, wi3_ref, b3_ref,
    wh_ref, wih_ref, bh_ref,
    out_ref,
):
  e = src_col_ref.shape[0]
  n = x_ref.shape[0]

  src_col = src_col_ref[...]          # [E,1] int32  (source node of each edge)
  src_row = src_row_ref[...]          # [1,E] int32
  tgt_col = tgt_col_ref[...]          # [E,1] int32  (target node of each edge)
  tgt_row = tgt_row_ref[...]          # [1,E] int32

  # ---- edge masks built in-kernel (no O(N*E) HBM traffic) ------------------
  iota_en = jax.lax.broadcasted_iota(jnp.int32, (e, n), 1)    # node id along lanes
  iota_ne = jax.lax.broadcasted_iota(jnp.int32, (n, e), 0)    # node id along sublanes

  s_src_bf = jnp.where(iota_en == src_col, 1.0, 0.0).astype(jnp.bfloat16)  # [E,N] gather
  s_tgt_f = jnp.where(iota_en == tgt_col, 1.0, 0.0)                        # [E,N] f32
  t_bool = iota_ne == tgt_row                                              # [N,E]
  t_f = jnp.where(t_bool, 1.0, 0.0)                                        # [N,E] f32
  t_bf = t_f.astype(jnp.bfloat16)

  node_idx = jax.lax.broadcasted_iota(jnp.int32, (n, 1), 0).astype(jnp.float32)  # [N,1]
  src_f_col = src_col.astype(jnp.float32)                                  # [E,1]
  src_f_row = src_row.astype(jnp.float32)                                  # [1,E]

  # ---- index-channel segment softmax (exact, f32, graph-only -> shared) ----
  # message value of the index channel for edge (j -> i) is simply j = src[e].
  segmax_i = jnp.max(jnp.where(t_bool, src_f_row, _NEG_BIG),
                     axis=1, keepdims=True)                                # [N,1]
  gmax_i = jnp.dot(s_tgt_f, segmax_i, preferred_element_type=jnp.float32)  # [E,1]
  p_i = jnp.exp(src_f_col - gmax_i)                                        # [E,1] <= 1
  nd_i = jnp.dot(t_f, jnp.concatenate([p_i * src_f_col, p_i], axis=1),
                 preferred_element_type=jnp.float32)                       # [N,2]
  den_i = nd_i[:, 1:2]
  agg_i = nd_i[:, 0:1] / jnp.where(den_i > 0.0, den_i, 1.0)                # [N,1]

  # ---- one GraphConv(aggr='softmax') layer + fused leaky_relu --------------
  def conv(h, w_cat_ref, w_idx_ref, b_ref):
    c = h.shape[1]
    h_bf = h.astype(jnp.bfloat16)

    # gather messages m[e] = h[src[e]] (one-hot matmul; exact row selection of
    # bf16-rounded features, f32 accumulation)
    m = jnp.dot(s_src_bf, h_bf, preferred_element_type=jnp.float32)        # [E,C]

    # Exact per-target-segment, per-channel max, scattered straight back to
    # per-edge layout.  n is a small static trace-time constant -> fully
    # unrolled straight-line vector ops (no scratch, no dynamic stores).
    # Every edge's target is in [0, n), so each row is written exactly once.
    gmax_e = jnp.zeros_like(m)                                             # [E,C]
    for i in range(n):
      mask = tgt_col == i                                                  # [E,1]
      row = jnp.max(jnp.where(mask, m, _NEG_BIG), axis=0, keepdims=True)   # [1,C]
      gmax_e = jnp.where(mask, row, gmax_e)

    # (m - gmax_e) <= 0 exactly: no overflow, max edge contributes exp(0)=1.
    p = jnp.exp(m - gmax_e)                                                # [E,C]

    # one fused scatter matmul for numerator and denominator
    nd = jnp.dot(t_bf,
                 jnp.concatenate([p * m, p], axis=1).astype(jnp.bfloat16),
                 preferred_element_type=jnp.float32)                       # [N,2C]
    num = nd[:, :c]
    den = nd[:, c:]
    agg = num * pl.reciprocal(jnp.where(den > 0.0, den, 1.0), approx=True)  # [N,C]

    # fused lin_rel(agg) + lin_root(h): one matmul, K = 2C (lane aligned).
    # Index channel enters as two exact f32 rank-1 terms.
    ah = jnp.concatenate([agg, h], axis=1).astype(jnp.bfloat16)            # [N,2C]
    out = jnp.dot(ah, w_cat_ref[...], preferred_element_type=jnp.float32)  # [N,Cout]
    out = (out + b_ref[...]
           + agg_i * w_idx_ref[0:1, :]          # softmax-aggregated index -> lin_rel
           + node_idx * w_idx_ref[1:2, :])      # own index                -> lin_root
    return jnp.where(out >= 0.0, out, NEG_SLOPE * out)                     # leaky_relu

  h = x_ref[...]                                                           # [N,2048]
  h = conv(h, w1_ref, wi1_ref, b1_ref)   # [N,256]; Dropout = identity (eval)
  h = conv(h, w2_ref, wi2_ref, b2_ref)   # [N,128]
  h = conv(h, w3_ref, wi3_ref, b3_ref)   # [N,64]

  # ---- fused heads: position (3) + L2-normalized rotation quaternion (4) ---
  y = (jnp.dot(h, wh_ref[...], preferred_element_type=jnp.float32)
       + bh_ref[...] + node_idx * wih_ref[...])                            # [N,7]
  col = jax.lax.broadcasted_iota(jnp.int32, (n, 7), 1)
  is_rot = col >= 3
  rsq = jnp.sum(jnp.where(is_rot, y * y, 0.0), axis=1, keepdims=True)      # [N,1]
  inv = jax.lax.rsqrt(jnp.maximum(rsq, 1e-24))    # == 1 / max(||q||, 1e-12) (F.normalize)
  out_ref[...] = jnp.where(is_rot, y * inv, y)


# -----------------------------------------------------------------------------
# Wrapper
# -----------------------------------------------------------------------------
def pose_gnn_forward(packed, x, edge_index):
  n = x.shape[0]
  e = edge_index.shape[1]
  src = edge_index[0].astype(jnp.int32)
  tgt = edge_index[1].astype(jnp.int32)

  inputs = (
      src.reshape(e, 1), src.reshape(1, e),
      tgt.reshape(e, 1), tgt.reshape(1, e),
      x,
      *packed["gc1"], *packed["gc2"], *packed["gc3"],
      packed["wh"], packed["wih"], packed["bh"],
  )

  return pl.pallas_call(
      _pose_gnn_kernel,
      out_shape=jax.ShapeDtypeStruct((n, 7), jnp.float32),
      in_specs=[pl.BlockSpec(memory_space=pltpu.MemorySpace.VMEM)] * len(inputs),
      out_specs=pl.BlockSpec(memory_space=pltpu.MemorySpace.VMEM),
      compiler_params=pltpu.CompilerParams(vmem_limit_bytes=32 * 1024 * 1024),
  )(*inputs)


# -----------------------------------------------------------------------------
# Parameters (shapes mirror PoseGNN.__init__); packed for the fused kernel
# -----------------------------------------------------------------------------
def init_params(key):
  def lin_w(k, cin, cout):
    # weights stored pre-transposed as [Cin, Cout]
    return jax.random.normal(k, (cin, cout), jnp.float32) / jnp.sqrt(jnp.float32(cin))

  def gc(k, cin, cout):
    k1, k2, k3 = jax.random.split(k, 3)
    return dict(
        w_rel=lin_w(k1, cin, cout),                                    # [C+1, Cout]
        b_rel=jax.random.normal(k2, (1, cout), jnp.float32) * 0.01,
        w_root=lin_w(k3, cin, cout),                                   # [C+1, Cout], no bias
    )

  k1, k2, k3, k4, k5, k6, k7 = jax.random.split(key, 7)
  return dict(
      gc1=gc(k1, 2049, 256),
      gc2=gc(k2, 257, 128),
      gc3=gc(k3, 129, 64),
      w_pos=lin_w(k4, 65, 3),
      b_pos=jax.random.normal(k5, (1, 3), jnp.float32) * 0.01,
      w_rot=lin_w(k6, 65, 4),
      b_rot=jax.random.normal(k7, (1, 4), jnp.float32) * 0.01,
  )


def pack_params(p):
  def pack_gc(g):
    c = g["w_rel"].shape[0] - 1
    # feature rows of lin_rel / lin_root stacked along K -> one fused matmul (bf16 MXU)
    w_cat = jnp.concatenate([g["w_rel"][:c], g["w_root"][:c]], axis=0).astype(jnp.bfloat16)
    # index-channel rows kept in f32 (row 0: lin_rel, row 1: lin_root)
    w_idx = jnp.concatenate([g["w_rel"][c:], g["w_root"][c:]], axis=0)
    return (w_cat, w_idx, g["b_rel"])

  wh = jnp.concatenate([p["w_pos"][:64], p["w_rot"][:64]], axis=1)     # [64, 7]
  wih = jnp.concatenate([p["w_pos"][64:], p["w_rot"][64:]], axis=1)    # [1, 7]
  bh = jnp.concatenate([p["b_pos"], p["b_rot"]], axis=1)               # [1, 7]
  return dict(gc1=pack_gc(p["gc1"]), gc2=pack_gc(p["gc2"]), gc3=pack_gc(p["gc3"]),
              wh=wh, wih=wih, bh=bh)


if __name__ == "__main__":
  key = jax.random.PRNGKey(0)
  kx, ke, kp = jax.random.split(key, 3)

  N, E = 8, 16
  x = jax.random.normal(kx, (N, 2048), jnp.float32)                    # node features
  edge_index = jax.random.randint(ke, (2, E), 0, N, dtype=jnp.int32)   # [src; tgt]
  params = init_params(kp)
  packed = pack_params(params)                                         # done once, off hot path

  fwd = jax.jit(pose_gnn_forward)
  out = jax.block_until_ready(fwd(packed, x, edge_index))

  assert out.shape == (N, 7), out.shape
  assert bool(jnp.all(jnp.isfinite(out)))
  # rotation quaternion columns are unit-norm
  assert jnp.allclose(jnp.linalg.norm(out[:, 3:7], axis=1), 1.0, atol=1e-3)
  print("KERNEL_OK")
</pallas_src>

<mosaic_0001>
module attributes {stable_mosaic.version = 11 : i64} {
  func.func @_pose_gnn_kernel(%arg0: memref<16x1xi32, #tpu.memory_space<vmem>>, %arg1: memref<1x16xi32, #tpu.memory_space<vmem>>, %arg2: memref<16x1xi32, #tpu.memory_space<vmem>>, %arg3: memref<1x16xi32, #tpu.memory_space<vmem>>, %arg4: memref<8x2048xf32, #tpu.memory_space<vmem>>, %arg5: memref<4096x256xbf16, #tpu.memory_space<vmem>>, %arg6: memref<2x256xf32, #tpu.memory_space<vmem>>, %arg7: memref<1x256xf32, #tpu.memory_space<vmem>>, %arg8: memref<512x128xbf16, #tpu.memory_space<vmem>>, %arg9: memref<2x128xf32, #tpu.memory_space<vmem>>, %arg10: memref<1x128xf32, #tpu.memory_space<vmem>>, %arg11: memref<256x64xbf16, #tpu.memory_space<vmem>>, %arg12: memref<2x64xf32, #tpu.memory_space<vmem>>, %arg13: memref<1x64xf32, #tpu.memory_space<vmem>>, %arg14: memref<64x7xf32, #tpu.memory_space<vmem>>, %arg15: memref<1x7xf32, #tpu.memory_space<vmem>>, %arg16: memref<1x7xf32, #tpu.memory_space<vmem>>, %arg17: memref<8x7xf32, #tpu.memory_space<vmem>>) attributes {dimension_semantics = [], scalar_prefetch = 0 : i64, scratch_operands = 0 : i64, tpu.core_type = #tpu.core_type<tc>} {
    %c0 = arith.constant 0 : index
    %c0_0 = arith.constant 0 : index
    %0 = vector.load %arg0[%c0, %c0_0] : memref<16x1xi32, #tpu.memory_space<vmem>>, vector<16x1xi32>
    %c0_1 = arith.constant 0 : index
    %c0_2 = arith.constant 0 : index
    %1 = vector.load %arg1[%c0_1, %c0_2] : memref<1x16xi32, #tpu.memory_space<vmem>>, vector<1x16xi32>
    %c0_3 = arith.constant 0 : index
    %c0_4 = arith.constant 0 : index
    %2 = vector.load %arg2[%c0_3, %c0_4] : memref<16x1xi32, #tpu.memory_space<vmem>>, vector<16x1xi32>
    %c0_5 = arith.constant 0 : index
    %c0_6 = arith.constant 0 : index
    %3 = vector.load %arg3[%c0_5, %c0_6] : memref<1x16xi32, #tpu.memory_space<vmem>>, vector<1x16xi32>
    %4 = tpu.iota {dimensions = array<i32: 1>} : vector<16x8xi32>
    %5 = tpu.iota {dimensions = array<i32: 0>} : vector<8x16xi32>
    %6 = vector.broadcast %0 : vector<16x1xi32> to vector<16x8xi32>
    %7 = arith.cmpi eq, %4, %6 : vector<16x8xi32>
    %cst = arith.constant 1.000000e+00 : f32
    %cst_7 = arith.constant 0.000000e+00 : f32
    %8 = vector.broadcast %cst : f32 to vector<16x8xf32>
    %9 = vector.broadcast %cst_7 : f32 to vector<16x8xf32>
    %10 = arith.select %7, %8, %9 : vector<16x8xi1>, vector<16x8xf32>
    %11 = arith.truncf %10 : vector<16x8xf32> to vector<16x8xbf16>
    %12 = vector.broadcast %2 : vector<16x1xi32> to vector<16x8xi32>
    %13 = arith.cmpi eq, %4, %12 : vector<16x8xi32>
    %cst_8 = arith.constant 1.000000e+00 : f32
    %cst_9 = arith.constant 0.000000e+00 : f32
    %14 = vector.broadcast %cst_8 : f32 to vector<16x8xf32>
    %15 = vector.broadcast %cst_9 : f32 to vector<16x8xf32>
    %16 = arith.select %13, %14, %15 : vector<16x8xi1>, vector<16x8xf32>
    %17 = vector.broadcast %3 : vector<1x16xi32> to vector<8x16xi32>
    %18 = arith.cmpi eq, %5, %17 : vector<8x16xi32>
    %cst_10 = arith.constant 1.000000e+00 : f32
    %cst_11 = arith.constant 0.000000e+00 : f32
    %19 = vector.broadcast %cst_10 : f32 to vector<8x16xf32>
    %20 = vector.broadcast %cst_11 : f32 to vector<8x16xf32>
    %21 = arith.select %18, %19, %20 : vector<8x16xi1>, vector<8x16xf32>
    %22 = arith.truncf %21 : vector<8x16xf32> to vector<8x16xbf16>
    %23 = tpu.iota {dimensions = array<i32: 0>} : vector<8x1xi32>
    %24 = arith.sitofp %23 : vector<8x1xi32> to vector<8x1xf32>
    %25 = arith.sitofp %0 : vector<16x1xi32> to vector<16x1xf32>
    %26 = arith.sitofp %1 : vector<1x16xi32> to vector<1x16xf32>
    %cst_12 = arith.constant -1.000000e+30 : f32
    %27 = vector.shape_cast %26 : vector<1x16xf32> to vector<1x16xf32>
    %28 = vector.broadcast %27 : vector<1x16xf32> to vector<8x16xf32>
    %29 = vector.broadcast %cst_12 : f32 to vector<8x16xf32>
    %30 = arith.select %18, %28, %29 : vector<8x16xi1>, vector<8x16xf32>
    %cst_13 = arith.constant dense<0xFF800000> : vector<8xf32>
    %31 = vector.multi_reduction <maximumf>, %30, %cst_13 [1] : vector<8x16xf32> to vector<8xf32>
    %32 = vector.shape_cast %31 : vector<8xf32> to vector<8x1xf32>
    %cst_14 = arith.constant dense<0.000000e+00> : vector<16x1xf32>
    %33 = tpu.matmul %16, %32, %cst_14 {dimension_numbers = #tpu.dot_dimension_numbers<[1], [0], [0], [1], [0, 0, 1, 1], [], []>} : vector<16x8xf32>, vector<8x1xf32>, vector<16x1xf32> -> vector<16x1xf32>
    %34 = arith.subf %25, %33 : vector<16x1xf32>
    %35 = math.exp %34 : vector<16x1xf32>
    %36 = arith.mulf %35, %25 : vector<16x1xf32>
    %37 = tpu.concatenate %36, %35 in 1 : vector<16x1xf32>, vector<16x1xf32> -> vector<16x2xf32>
    %cst_15 = arith.constant dense<0.000000e+00> : vector<8x2xf32>
    %38 = tpu.matmul %21, %37, %cst_15 {dimension_numbers = #tpu.dot_dimension_numbers<[1], [0], [0], [1], [0, 0, 1, 1], [], []>} : vector<8x16xf32>, vector<16x2xf32>, vector<8x2xf32> -> vector<8x2xf32>
    %39 = vector.extract_strided_slice %38 {offsets = [0, 1], sizes = [8, 1], strides = [1, 1]} : vector<8x2xf32> to vector<8x1xf32>
    %40 = vector.extract_strided_slice %38 {offsets = [0, 0], sizes = [8, 1], strides = [1, 1]} : vector<8x2xf32> to vector<8x1xf32>
    %cst_16 = arith.constant 0.000000e+00 : f32
    %41 = vector.broadcast %cst_16 : f32 to vector<8x1xf32>
    %42 = arith.cmpf ogt, %39, %41 : vector<8x1xf32>
    %cst_17 = arith.constant 1.000000e+00 : f32
    %43 = vector.broadcast %cst_17 : f32 to vector<8x1xf32>
    %44 = arith.select %42, %39, %43 : vector<8x1xi1>, vector<8x1xf32>
    %45 = arith.divf %40, %44 : vector<8x1xf32>
    %c0_18 = arith.constant 0 : index
    %c0_19 = arith.constant 0 : index
    %46 = vector.load %arg4[%c0_18, %c0_19] : memref<8x2048xf32, #tpu.memory_space<vmem>>, vector<8x2048xf32>
    %47 = arith.truncf %46 : vector<8x2048xf32> to vector<8x2048xbf16>
    %cst_20 = arith.constant dense<0.000000e+00> : vector<16x2048xf32>
    %48 = tpu.matmul %11, %47, %cst_20 {dimension_numbers = #tpu.dot_dimension_numbers<[1], [0], [0], [1], [0, 0, 1, 1], [], []>} : vector<16x8xbf16>, vector<8x2048xbf16>, vector<16x2048xf32> -> vector<16x2048xf32>
    %cst_21 = arith.constant 0.000000e+00 : f32
    %49 = vector.broadcast %cst_21 : f32 to vector<16x2048xf32>
    %c0_i32 = arith.constant 0 : i32
    %50 = vector.broadcast %c0_i32 : i32 to vector<16x1xi32>
    %51 = arith.cmpi eq, %2, %50 : vector<16x1xi32>
    %cst_22 = arith.constant -1.000000e+30 : f32
    %52 = vector.shape_cast %51 : vector<16x1xi1> to vector<16x1xi1>
    %53 = vector.broadcast %52 : vector<16x1xi1> to vector<16x2048xi1>
    %54 = vector.broadcast %cst_22 : f32 to vector<16x2048xf32>
    %55 = arith.select %53, %48, %54 : vector<16x2048xi1>, vector<16x2048xf32>
    %cst_23 = arith.constant dense<0xFF800000> : vector<2048xf32>
    %56 = vector.multi_reduction <maximumf>, %55, %cst_23 [0] : vector<16x2048xf32> to vector<2048xf32>
    %57 = vector.shape_cast %56 : vector<2048xf32> to vector<1x2048xf32>
    %58 = vector.shape_cast %51 : vector<16x1xi1> to vector<16x1xi1>
    %59 = vector.broadcast %58 : vector<16x1xi1> to vector<16x2048xi1>
    %60 = vector.shape_cast %57 : vector<1x2048xf32> to vector<1x2048xf32>
    %61 = vector.broadcast %60 : vector<1x2048xf32> to vector<16x2048xf32>
    %62 = arith.select %59, %61, %49 : vector<16x2048xi1>, vector<16x2048xf32>
    %c1_i32 = arith.constant 1 : i32
    %63 = vector.broadcast %c1_i32 : i32 to vector<16x1xi32>
    %64 = arith.cmpi eq, %2, %63 : vector<16x1xi32>
    %cst_24 = arith.constant -1.000000e+30 : f32
    %65 = vector.shape_cast %64 : vector<16x1xi1> to vector<16x1xi1>
    %66 = vector.broadcast %65 : vector<16x1xi1> to vector<16x2048xi1>
    %67 = vector.broadcast %cst_24 : f32 to vector<16x2048xf32>
    %68 = arith.select %66, %48, %67 : vector<16x2048xi1>, vector<16x2048xf32>
    %cst_25 = arith.constant dense<0xFF800000> : vector<2048xf32>
    %69 = vector.multi_reduction <maximumf>, %68, %cst_25 [0] : vector<16x2048xf32> to vector<2048xf32>
    %70 = vector.shape_cast %69 : vector<2048xf32> to vector<1x2048xf32>
    %71 = vector.shape_cast %64 : vector<16x1xi1> to vector<16x1xi1>
    %72 = vector.broadcast %71 : vector<16x1xi1> to vector<16x2048xi1>
    %73 = vector.shape_cast %70 : vector<1x2048xf32> to vector<1x2048xf32>
    %74 = vector.broadcast %73 : vector<1x2048xf32> to vector<16x2048xf32>
    %75 = arith.select %72, %74, %62 : vector<16x2048xi1>, vector<16x2048xf32>
    %c2_i32 = arith.constant 2 : i32
    %76 = vector.broadcast %c2_i32 : i32 to vector<16x1xi32>
    %77 = arith.cmpi eq, %2, %76 : vector<16x1xi32>
    %cst_26 = arith.constant -1.000000e+30 : f32
    %78 = vector.shape_cast %77 : vector<16x1xi1> to vector<16x1xi1>
    %79 = vector.broadcast %78 : vector<16x1xi1> to vector<16x2048xi1>
    %80 = vector.broadcast %cst_26 : f32 to vector<16x2048xf32>
    %81 = arith.select %79, %48, %80 : vector<16x2048xi1>, vector<16x2048xf32>
    %cst_27 = arith.constant dense<0xFF800000> : vector<2048xf32>
    %82 = vector.multi_reduction <maximumf>, %81, %cst_27 [0] : vector<16x2048xf32> to vector<2048xf32>
    %83 = vector.shape_cast %82 : vector<2048xf32> to vector<1x2048xf32>
    %84 = vector.shape_cast %77 : vector<16x1xi1> to vector<16x1xi1>
    %85 = vector.broadcast %84 : vector<16x1xi1> to vector<16x2048xi1>
    %86 = vector.shape_cast %83 : vector<1x2048xf32> to vector<1x2048xf32>
    %87 = vector.broadcast %86 : vector<1x2048xf32> to vector<16x2048xf32>
    %88 = arith.select %85, %87, %75 : vector<16x2048xi1>, vector<16x2048xf32>
    %c3_i32 = arith.constant 3 : i32
    %89 = vector.broadcast %c3_i32 : i32 to vector<16x1xi32>
    %90 = arith.cmpi eq, %2, %89 : vector<16x1xi32>
    %cst_28 = arith.constant -1.000000e+30 : f32
    %91 = vector.shape_cast %90 : vector<16x1xi1> to vector<16x1xi1>
    %92 = vector.broadcast %91 : vector<16x1xi1> to vector<16x2048xi1>
    %93 = vector.broadcast %cst_28 : f32 to vector<16x2048xf32>
    %94 = arith.select %92, %48, %93 : vector<16x2048xi1>, vector<16x2048xf32>
    %cst_29 = arith.constant dense<0xFF800000> : vector<2048xf32>
    %95 = vector.multi_reduction <maximumf>, %94, %cst_29 [0] : vector<16x2048xf32> to vector<2048xf32>
    %96 = vector.shape_cast %95 : vector<2048xf32> to vector<1x2048xf32>
    %97 = vector.shape_cast %90 : vector<16x1xi1> to vector<16x1xi1>
    %98 = vector.broadcast %97 : vector<16x1xi1> to vector<16x2048xi1>
    %99 = vector.shape_cast %96 : vector<1x2048xf32> to vector<1x2048xf32>
    %100 = vector.broadcast %99 : vector<1x2048xf32> to vector<16x2048xf32>
    %101 = arith.select %98, %100, %88 : vector<16x2048xi1>, vector<16x2048xf32>
    %c4_i32 = arith.constant 4 : i32
    %102 = vector.broadcast %c4_i32 : i32 to vector<16x1xi32>
    %103 = arith.cmpi eq, %2, %102 : vector<16x1xi32>
    %cst_30 = arith.constant -1.000000e+30 : f32
    %104 = vector.shape_cast %103 : vector<16x1xi1> to vector<16x1xi1>
    %105 = vector.broadcast %104 : vector<16x1xi1> to vector<16x2048xi1>
    %106 = vector.broadcast %cst_30 : f32 to vector<16x2048xf32>
    %107 = arith.select %105, %48, %106 : vector<16x2048xi1>, vector<16x2048xf32>
    %cst_31 = arith.constant dense<0xFF800000> : vector<2048xf32>
    %108 = vector.multi_reduction <maximumf>, %107, %cst_31 [0] : vector<16x2048xf32> to vector<2048xf32>
    %109 = vector.shape_cast %108 : vector<2048xf32> to vector<1x2048xf32>
    %110 = vector.shape_cast %103 : vector<16x1xi1> to vector<16x1xi1>
    %111 = vector.broadcast %110 : vector<16x1xi1> to vector<16x2048xi1>
    %112 = vector.shape_cast %109 : vector<1x2048xf32> to vector<1x2048xf32>
    %113 = vector.broadcast %112 : vector<1x2048xf32> to vector<16x2048xf32>
    %114 = arith.select %111, %113, %101 : vector<16x2048xi1>, vector<16x2048xf32>
    %c5_i32 = arith.constant 5 : i32
    %115 = vector.broadcast %c5_i32 : i32 to vector<16x1xi32>
    %116 = arith.cmpi eq, %2, %115 : vector<16x1xi32>
    %cst_32 = arith.constant -1.000000e+30 : f32
    %117 = vector.shape_cast %116 : vector<16x1xi1> to vector<16x1xi1>
    %118 = vector.broadcast %117 : vector<16x1xi1> to vector<16x2048xi1>
    %119 = vector.broadcast %cst_32 : f32 to vector<16x2048xf32>
    %120 = arith.select %118, %48, %119 : vector<16x2048xi1>, vector<16x2048xf32>
    %cst_33 = arith.constant dense<0xFF800000> : vector<2048xf32>
    %121 = vector.multi_reduction <maximumf>, %120, %cst_33 [0] : vector<16x2048xf32> to vector<2048xf32>
    %122 = vector.shape_cast %121 : vector<2048xf32> to vector<1x2048xf32>
    %123 = vector.shape_cast %116 : vector<16x1xi1> to vector<16x1xi1>
    %124 = vector.broadcast %123 : vector<16x1xi1> to vector<16x2048xi1>
    %125 = vector.shape_cast %122 : vector<1x2048xf32> to vector<1x2048xf32>
    %126 = vector.broadcast %125 : vector<1x2048xf32> to vector<16x2048xf32>
    %127 = arith.select %124, %126, %114 : vector<16x2048xi1>, vector<16x2048xf32>
    %c6_i32 = arith.constant 6 : i32
    %128 = vector.broadcast %c6_i32 : i32 to vector<16x1xi32>
    %129 = arith.cmpi eq, %2, %128 : vector<16x1xi32>
    %cst_34 = arith.constant -1.000000e+30 : f32
    %130 = vector.shape_cast %129 : vector<16x1xi1> to vector<16x1xi1>
    %131 = vector.broadcast %130 : vector<16x1xi1> to vector<16x2048xi1>
    %132 = vector.broadcast %cst_34 : f32 to vector<16x2048xf32>
    %133 = arith.select %131, %48, %132 : vector<16x2048xi1>, vector<16x2048xf32>
    %cst_35 = arith.constant dense<0xFF800000> : vector<2048xf32>
    %134 = vector.multi_reduction <maximumf>, %133, %cst_35 [0] : vector<16x2048xf32> to vector<2048xf32>
    %135 = vector.shape_cast %134 : vector<2048xf32> to vector<1x2048xf32>
    %136 = vector.shape_cast %129 : vector<16x1xi1> to vector<16x1xi1>
    %137 = vector.broadcast %136 : vector<16x1xi1> to vector<16x2048xi1>
    %138 = vector.shape_cast %135 : vector<1x2048xf32> to vector<1x2048xf32>
    %139 = vector.broadcast %138 : vector<1x2048xf32> to vector<16x2048xf32>
    %140 = arith.select %137, %139, %127 : vector<16x2048xi1>, vector<16x2048xf32>
    %c7_i32 = arith.constant 7 : i32
    %141 = vector.broadcast %c7_i32 : i32 to vector<16x1xi32>
    %142 = arith.cmpi eq, %2, %141 : vector<16x1xi32>
    %cst_36 = arith.constant -1.000000e+30 : f32
    %143 = vector.shape_cast %142 : vector<16x1xi1> to vector<16x1xi1>
    %144 = vector.broadcast %143 : vector<16x1xi1> to vector<16x2048xi1>
    %145 = vector.broadcast %cst_36 : f32 to vector<16x2048xf32>
    %146 = arith.select %144, %48, %145 : vector<16x2048xi1>, vector<16x2048xf32>
    %cst_37 = arith.constant dense<0xFF800000> : vector<2048xf32>
    %147 = vector.multi_reduction <maximumf>, %146, %cst_37 [0] : vector<16x2048xf32> to vector<2048xf32>
    %148 = vector.shape_cast %147 : vector<2048xf32> to vector<1x2048xf32>
    %149 = vector.shape_cast %142 : vector<16x1xi1> to vector<16x1xi1>
    %150 = vector.broadcast %149 : vector<16x1xi1> to vector<16x2048xi1>
    %151 = vector.shape_cast %148 : vector<1x2048xf32> to vector<1x2048xf32>
    %152 = vector.broadcast %151 : vector<1x2048xf32> to vector<16x2048xf32>
    %153 = arith.select %150, %152, %140 : vector<16x2048xi1>, vector<16x2048xf32>
    %154 = arith.subf %48, %153 : vector<16x2048xf32>
    %155 = math.exp %154 : vector<16x2048xf32>
    %156 = arith.mulf %155, %48 : vector<16x2048xf32>
    %157 = tpu.concatenate %156, %155 in 1 : vector<16x2048xf32>, vector<16x2048xf32> -> vector<16x4096xf32>
    %158 = arith.truncf %157 : vector<16x4096xf32> to vector<16x4096xbf16>
    %cst_38 = arith.constant dense<0.000000e+00> : vector<8x4096xf32>
    %159 = tpu.matmul %22, %158, %cst_38 {dimension_numbers = #tpu.dot_dimension_numbers<[1], [0], [0], [1], [0, 0, 1, 1], [], []>} : vector<8x16xbf16>, vector<16x4096xbf16>, vector<8x4096xf32> -> vector<8x4096xf32>
    %160 = vector.extract_strided_slice %159 {offsets = [0, 0], sizes = [8, 2048], strides = [1, 1]} : vector<8x4096xf32> to vector<8x2048xf32>
    %161 = vector.extract_strided_slice %159 {offsets = [0, 2048], sizes = [8, 2048], strides = [1, 1]} : vector<8x4096xf32> to vector<8x2048xf32>
    %cst_39 = arith.constant 0.000000e+00 : f32
    %162 = vector.broadcast %cst_39 : f32 to vector<8x2048xf32>
    %163 = arith.cmpf ogt, %161, %162 : vector<8x2048xf32>
    %cst_40 = arith.constant 1.000000e+00 : f32
    %164 = vector.broadcast %cst_40 : f32 to vector<8x2048xf32>
    %165 = arith.select %163, %161, %164 : vector<8x2048xi1>, vector<8x2048xf32>
    %166 = tpu.reciprocal %165 {approx = true} : vector<8x2048xf32> -> vector<8x2048xf32>
    %167 = arith.mulf %160, %166 : vector<8x2048xf32>
    %168 = tpu.concatenate %167, %46 in 1 : vector<8x2048xf32>, vector<8x2048xf32> -> vector<8x4096xf32>
    %169 = arith.truncf %168 : vector<8x4096xf32> to vector<8x4096xbf16>
    %c0_41 = arith.constant 0 : index
    %c0_42 = arith.constant 0 : index
    %170 = vector.load %arg5[%c0_41, %c0_42] : memref<4096x256xbf16, #tpu.memory_space<vmem>>, vector<4096x256xbf16>
    %cst_43 = arith.constant dense<0.000000e+00> : vector<8x256xf32>
    %171 = tpu.matmul %169, %170, %cst_43 {dimension_numbers = #tpu.dot_dimension_numbers<[1], [0], [0], [1], [0, 0, 1, 1], [], []>} : vector<8x4096xbf16>, vector<4096x256xbf16>, vector<8x256xf32> -> vector<8x256xf32>
    %c0_44 = arith.constant 0 : index
    %c0_45 = arith.constant 0 : index
    %172 = vector.load %arg7[%c0_44, %c0_45] : memref<1x256xf32, #tpu.memory_space<vmem>>, vector<1x256xf32>
    %173 = vector.broadcast %172 : vector<1x256xf32> to vector<8x256xf32>
    %174 = arith.addf %171, %173 : vector<8x256xf32>
    %c0_46 = arith.constant 0 : index
    %c0_47 = arith.constant 0 : index
    %175 = vector.load %arg6[%c0_46, %c0_47] : memref<2x256xf32, #tpu.memory_space<vmem>>, vector<1x256xf32>
    %176 = vector.broadcast %45 : vector<8x1xf32> to vector<8x256xf32>
    %177 = vector.broadcast %175 : vector<1x256xf32> to vector<8x256xf32>
    %178 = arith.mulf %176, %177 : vector<8x256xf32>
    %179 = arith.addf %174, %178 : vector<8x256xf32>
    %c1 = arith.constant 1 : index
    %c0_48 = arith.constant 0 : index
    %180 = vector.load %arg6[%c1, %c0_48] : memref<2x256xf32, #tpu.memory_space<vmem>>, vector<1x256xf32>
    %181 = vector.broadcast %24 : vector<8x1xf32> to vector<8x256xf32>
    %182 = vector.broadcast %180 : vector<1x256xf32> to vector<8x256xf32>
    %183 = arith.mulf %181, %182 : vector<8x256xf32>
    %184 = arith.addf %179, %183 : vector<8x256xf32>
    %cst_49 = arith.constant 0.000000e+00 : f32
    %185 = vector.broadcast %cst_49 : f32 to vector<8x256xf32>
    %186 = arith.cmpf oge, %184, %185 : vector<8x256xf32>
    %cst_50 = arith.constant 0.00999999977 : f32
    %187 = vector.broadcast %cst_50 : f32 to vector<8x256xf32>
    %188 = arith.mulf %187, %184 : vector<8x256xf32>
    %189 = arith.select %186, %184, %188 : vector<8x256xi1>, vector<8x256xf32>
    %190 = arith.truncf %189 : vector<8x256xf32> to vector<8x256xbf16>
    %cst_51 = arith.constant dense<0.000000e+00> : vector<16x256xf32>
    %191 = tpu.matmul %11, %190, %cst_51 {dimension_numbers = #tpu.dot_dimension_numbers<[1], [0], [0], [1], [0, 0, 1, 1], [], []>} : vector<16x8xbf16>, vector<8x256xbf16>, vector<16x256xf32> -> vector<16x256xf32>
    %cst_52 = arith.constant 0.000000e+00 : f32
    %192 = vector.broadcast %cst_52 : f32 to vector<16x256xf32>
    %c0_i32_53 = arith.constant 0 : i32
    %193 = vector.broadcast %c0_i32_53 : i32 to vector<16x1xi32>
    %194 = arith.cmpi eq, %2, %193 : vector<16x1xi32>
    %cst_54 = arith.constant -1.000000e+30 : f32
    %195 = vector.shape_cast %194 : vector<16x1xi1> to vector<16x1xi1>
    %196 = vector.broadcast %195 : vector<16x1xi1> to vector<16x256xi1>
    %197 = vector.broadcast %cst_54 : f32 to vector<16x256xf32>
    %198 = arith.select %196, %191, %197 : vector<16x256xi1>, vector<16x256xf32>
    %cst_55 = arith.constant dense<0xFF800000> : vector<256xf32>
    %199 = vector.multi_reduction <maximumf>, %198, %cst_55 [0] : vector<16x256xf32> to vector<256xf32>
    %200 = vector.shape_cast %199 : vector<256xf32> to vector<1x256xf32>
    %201 = vector.shape_cast %194 : vector<16x1xi1> to vector<16x1xi1>
    %202 = vector.broadcast %201 : vector<16x1xi1> to vector<16x256xi1>
    %203 = vector.shape_cast %200 : vector<1x256xf32> to vector<1x256xf32>
    %204 = vector.broadcast %203 : vector<1x256xf32> to vector<16x256xf32>
    %205 = arith.select %202, %204, %192 : vector<16x256xi1>, vector<16x256xf32>
    %c1_i32_56 = arith.constant 1 : i32
    %206 = vector.broadcast %c1_i32_56 : i32 to vector<16x1xi32>
    %207 = arith.cmpi eq, %2, %206 : vector<16x1xi32>
    %cst_57 = arith.constant -1.000000e+30 : f32
    %208 = vector.shape_cast %207 : vector<16x1xi1> to vector<16x1xi1>
    %209 = vector.broadcast %208 : vector<16x1xi1> to vector<16x256xi1>
    %210 = vector.broadcast %cst_57 : f32 to vector<16x256xf32>
    %211 = arith.select %209, %191, %210 : vector<16x256xi1>, vector<16x256xf32>
    %cst_58 = arith.constant dense<0xFF800000> : vector<256xf32>
    %212 = vector.multi_reduction <maximumf>, %211, %cst_58 [0] : vector<16x256xf32> to vector<256xf32>
    %213 = vector.shape_cast %212 : vector<256xf32> to vector<1x256xf32>
    %214 = vector.shape_cast %207 : vector<16x1xi1> to vector<16x1xi1>
    %215 = vector.broadcast %214 : vector<16x1xi1> to vector<16x256xi1>
    %216 = vector.shape_cast %213 : vector<1x256xf32> to vector<1x256xf32>
    %217 = vector.broadcast %216 : vector<1x256xf32> to vector<16x256xf32>
    %218 = arith.select %215, %217, %205 : vector<16x256xi1>, vector<16x256xf32>
    %c2_i32_59 = arith.constant 2 : i32
    %219 = vector.broadcast %c2_i32_59 : i32 to vector<16x1xi32>
    %220 = arith.cmpi eq, %2, %219 : vector<16x1xi32>
    %cst_60 = arith.constant -1.000000e+30 : f32
    %221 = vector.shape_cast %220 : vector<16x1xi1> to vector<16x1xi1>
    %222 = vector.broadcast %221 : vector<16x1xi1> to vector<16x256xi1>
    %223 = vector.broadcast %cst_60 : f32 to vector<16x256xf32>
    %224 = arith.select %222, %191, %223 : vector<16x256xi1>, vector<16x256xf32>
    %cst_61 = arith.constant dense<0xFF800000> : vector<256xf32>
    %225 = vector.multi_reduction <maximumf>, %224, %cst_61 [0] : vector<16x256xf32> to vector<256xf32>
    %226 = vector.shape_cast %225 : vector<256xf32> to vector<1x256xf32>
    %227 = vector.shape_cast %220 : vector<16x1xi1> to vector<16x1xi1>
    %228 = vector.broadcast %227 : vector<16x1xi1> to vector<16x256xi1>
    %229 = vector.shape_cast %226 : vector<1x256xf32> to vector<1x256xf32>
    %230 = vector.broadcast %229 : vector<1x256xf32> to vector<16x256xf32>
    %231 = arith.select %228, %230, %218 : vector<16x256xi1>, vector<16x256xf32>
    %c3_i32_62 = arith.constant 3 : i32
    %232 = vector.broadcast %c3_i32_62 : i32 to vector<16x1xi32>
    %233 = arith.cmpi eq, %2, %232 : vector<16x1xi32>
    %cst_63 = arith.constant -1.000000e+30 : f32
    %234 = vector.shape_cast %233 : vector<16x1xi1> to vector<16x1xi1>
    %235 = vector.broadcast %234 : vector<16x1xi1> to vector<16x256xi1>
    %236 = vector.broadcast %cst_63 : f32 to vector<16x256xf32>
    %237 = arith.select %235, %191, %236 : vector<16x256xi1>, vector<16x256xf32>
    %cst_64 = arith.constant dense<0xFF800000> : vector<256xf32>
    %238 = vector.multi_reduction <maximumf>, %237, %cst_64 [0] : vector<16x256xf32> to vector<256xf32>
    %239 = vector.shape_cast %238 : vector<256xf32> to vector<1x256xf32>
    %240 = vector.shape_cast %233 : vector<16x1xi1> to vector<16x1xi1>
    %241 = vector.broadcast %240 : vector<16x1xi1> to vector<16x256xi1>
    %242 = vector.shape_cast %239 : vector<1x256xf32> to vector<1x256xf32>
    %243 = vector.broadcast %242 : vector<1x256xf32> to vector<16x256xf32>
    %244 = arith.select %241, %243, %231 : vector<16x256xi1>, vector<16x256xf32>
    %c4_i32_65 = arith.constant 4 : i32
    %245 = vector.broadcast %c4_i32_65 : i32 to vector<16x1xi32>
    %246 = arith.cmpi eq, %2, %245 : vector<16x1xi32>
    %cst_66 = arith.constant -1.000000e+30 : f32
    %247 = vector.shape_cast %246 : vector<16x1xi1> to vector<16x1xi1>
    %248 = vector.broadcast %247 : vector<16x1xi1> to vector<16x256xi1>
    %249 = vector.broadcast %cst_66 : f32 to vector<16x256xf32>
    %250 = arith.select %248, %191, %249 : vector<16x256xi1>, vector<16x256xf32>
    %cst_67 = arith.constant dense<0xFF800000> : vector<256xf32>
    %251 = vector.multi_reduction <maximumf>, %250, %cst_67 [0] : vector<16x256xf32> to vector<256xf32>
    %252 = vector.shape_cast %251 : vector<256xf32> to vector<1x256xf32>
    %253 = vector.shape_cast %246 : vector<16x1xi1> to vector<16x1xi1>
    %254 = vector.broadcast %253 : vector<16x1xi1> to vector<16x256xi1>
    %255 = vector.shape_cast %252 : vector<1x256xf32> to vector<1x256xf32>
    %256 = vector.broadcast %255 : vector<1x256xf32> to vector<16x256xf32>
    %257 = arith.select %254, %256, %244 : vector<16x256xi1>, vector<16x256xf32>
    %c5_i32_68 = arith.constant 5 : i32
    %258 = vector.broadcast %c5_i32_68 : i32 to vector<16x1xi32>
    %259 = arith.cmpi eq, %2, %258 : vector<16x1xi32>
    %cst_69 = arith.constant -1.000000e+30 : f32
    %260 = vector.shape_cast %259 : vector<16x1xi1> to vector<16x1xi1>
    %261 = vector.broadcast %260 : vector<16x1xi1> to vector<16x256xi1>
    %262 = vector.broadcast %cst_69 : f32 to vector<16x256xf32>
    %263 = arith.select %261, %191, %262 : vector<16x256xi1>, vector<16x256xf32>
    %cst_70 = arith.constant dense<0xFF800000> : vector<256xf32>
    %264 = vector.multi_reduction <maximumf>, %263, %cst_70 [0] : vector<16x256xf32> to vector<256xf32>
    %265 = vector.shape_cast %264 : vector<256xf32> to vector<1x256xf32>
    %266 = vector.shape_cast %259 : vector<16x1xi1> to vector<16x1xi1>
    %267 = vector.broadcast %266 : vector<16x1xi1> to vector<16x256xi1>
    %268 = vector.shape_cast %265 : vector<1x256xf32> to vector<1x256xf32>
    %269 = vector.broadcast %268 : vector<1x256xf32> to vector<16x256xf32>
    %270 = arith.select %267, %269, %257 : vector<16x256xi1>, vector<16x256xf32>
    %c6_i32_71 = arith.constant 6 : i32
    %271 = vector.broadcast %c6_i32_71 : i32 to vector<16x1xi32>
    %272 = arith.cmpi eq, %2, %271 : vector<16x1xi32>
    %cst_72 = arith.constant -1.000000e+30 : f32
    %273 = vector.shape_cast %272 : vector<16x1xi1> to vector<16x1xi1>
    %274 = vector.broadcast %273 : vector<16x1xi1> to vector<16x256xi1>
    %275 = vector.broadcast %cst_72 : f32 to vector<16x256xf32>
    %276 = arith.select %274, %191, %275 : vector<16x256xi1>, vector<16x256xf32>
    %cst_73 = arith.constant dense<0xFF800000> : vector<256xf32>
    %277 = vector.multi_reduction <maximumf>, %276, %cst_73 [0] : vector<16x256xf32> to vector<256xf32>
    %278 = vector.shape_cast %277 : vector<256xf32> to vector<1x256xf32>
    %279 = vector.shape_cast %272 : vector<16x1xi1> to vector<16x1xi1>
    %280 = vector.broadcast %279 : vector<16x1xi1> to vector<16x256xi1>
    %281 = vector.shape_cast %278 : vector<1x256xf32> to vector<1x256xf32>
    %282 = vector.broadcast %281 : vector<1x256xf32> to vector<16x256xf32>
    %283 = arith.select %280, %282, %270 : vector<16x256xi1>, vector<16x256xf32>
    %c7_i32_74 = arith.constant 7 : i32
    %284 = vector.broadcast %c7_i32_74 : i32 to vector<16x1xi32>
    %285 = arith.cmpi eq, %2, %284 : vector<16x1xi32>
    %cst_75 = arith.constant -1.000000e+30 : f32
    %286 = vector.shape_cast %285 : vector<16x1xi1> to vector<16x1xi1>
    %287 = vector.broadcast %286 : vector<16x1xi1> to vector<16x256xi1>
    %288 = vector.broadcast %cst_75 : f32 to vector<16x256xf32>
    %289 = arith.select %287, %191, %288 : vector<16x256xi1>, vector<16x256xf32>
    %cst_76 = arith.constant dense<0xFF800000> : vector<256xf32>
    %290 = vector.multi_reduction <maximumf>, %289, %cst_76 [0] : vector<16x256xf32> to vector<256xf32>
    %291 = vector.shape_cast %290 : vector<256xf32> to vector<1x256xf32>
    %292 = vector.shape_cast %285 : vector<16x1xi1> to vector<16x1xi1>
    %293 = vector.broadcast %292 : vector<16x1xi1> to vector<16x256xi1>
    %294 = vector.shape_cast %291 : vector<1x256xf32> to vector<1x256xf32>
    %295 = vector.broadcast %294 : vector<1x256xf32> to vector<16x256xf32>
    %296 = arith.select %293, %295, %283 : vector<16x256xi1>, vector<16x256xf32>
    %297 = arith.subf %191, %296 : vector<16x256xf32>
    %298 = math.exp %297 : vector<16x256xf32>
    %299 = arith.mulf %298, %191 : vector<16x256xf32>
    %300 = tpu.concatenate %299, %298 in 1 : vector<16x256xf32>, vector<16x256xf32> -> vector<16x512xf32>
    %301 = arith.truncf %300 : vector<16x512xf32> to vector<16x512xbf16>
    %cst_77 = arith.constant dense<0.000000e+00> : vector<8x512xf32>
    %302 = tpu.matmul %22, %301, %cst_77 {dimension_numbers = #tpu.dot_dimension_numbers<[1], [0], [0], [1], [0, 0, 1, 1], [], []>} : vector<8x16xbf16>, vector<16x512xbf16>, vector<8x512xf32> -> vector<8x512xf32>
    %303 = vector.extract_strided_slice %302 {offsets = [0, 0], sizes = [8, 256], strides = [1, 1]} : vector<8x512xf32> to vector<8x256xf32>
    %304 = vector.extract_strided_slice %302 {offsets = [0, 256], sizes = [8, 256], strides = [1, 1]} : vector<8x512xf32> to vector<8x256xf32>
    %cst_78 = arith.constant 0.000000e+00 : f32
    %305 = vector.broadcast %cst_78 : f32 to vector<8x256xf32>
    %306 = arith.cmpf ogt, %304, %305 : vector<8x256xf32>
    %cst_79 = arith.constant 1.000000e+00 : f32
    %307 = vector.broadcast %cst_79 : f32 to vector<8x256xf32>
    %308 = arith.select %306, %304, %307 : vector<8x256xi1>, vector<8x256xf32>
    %309 = tpu.reciprocal %308 {approx = true} : vector<8x256xf32> -> vector<8x256xf32>
    %310 = arith.mulf %303, %309 : vector<8x256xf32>
    %311 = tpu.concatenate %310, %189 in 1 : vector<8x256xf32>, vector<8x256xf32> -> vector<8x512xf32>
    %312 = arith.truncf %311 : vector<8x512xf32> to vector<8x512xbf16>
    %c0_80 = arith.constant 0 : index
    %c0_81 = arith.constant 0 : index
    %313 = vector.load %arg8[%c0_80, %c0_81] : memref<512x128xbf16, #tpu.memory_space<vmem>>, vector<512x128xbf16>
    %cst_82 = arith.constant dense<0.000000e+00> : vector<8x128xf32>
    %314 = tpu.matmul %312, %313, %cst_82 {dimension_numbers = #tpu.dot_dimension_numbers<[1], [0], [0], [1], [0, 0, 1, 1], [], []>} : vector<8x512xbf16>, vector<512x128xbf16>, vector<8x128xf32> -> vector<8x128xf32>
    %c0_83 = arith.constant 0 : index
    %c0_84 = arith.constant 0 : index
    %315 = vector.load %arg10[%c0_83, %c0_84] : memref<1x128xf32, #tpu.memory_space<vmem>>, vector<1x128xf32>
    %316 = vector.broadcast %315 : vector<1x128xf32> to vector<8x128xf32>
    %317 = arith.addf %314, %316 : vector<8x128xf32>
    %c0_85 = arith.constant 0 : index
    %c0_86 = arith.constant 0 : index
    %318 = vector.load %arg9[%c0_85, %c0_86] : memref<2x128xf32, #tpu.memory_space<vmem>>, vector<1x128xf32>
    %319 = vector.broadcast %45 : vector<8x1xf32> to vector<8x128xf32>
    %320 = vector.broadcast %318 : vector<1x128xf32> to vector<8x128xf32>
    %321 = arith.mulf %319, %320 : vector<8x128xf32>
    %322 = arith.addf %317, %321 : vector<8x128xf32>
    %c1_87 = arith.constant 1 : index
    %c0_88 = arith.constant 0 : index
    %323 = vector.load %arg9[%c1_87, %c0_88] : memref<2x128xf32, #tpu.memory_space<vmem>>, vector<1x128xf32>
    %324 = vector.broadcast %24 : vector<8x1xf32> to vector<8x128xf32>
    %325 = vector.broadcast %323 : vector<1x128xf32> to vector<8x128xf32>
    %326 = arith.mulf %324, %325 : vector<8x128xf32>
    %327 = arith.addf %322, %326 : vector<8x128xf32>
    %cst_89 = arith.constant 0.000000e+00 : f32
    %328 = vector.broadcast %cst_89 : f32 to vector<8x128xf32>
    %329 = arith.cmpf oge, %327, %328 : vector<8x128xf32>
    %cst_90 = arith.constant 0.00999999977 : f32
    %330 = vector.broadcast %cst_90 : f32 to vector<8x128xf32>
    %331 = arith.mulf %330, %327 : vector<8x128xf32>
    %332 = arith.select %329, %327, %331 : vector<8x128xi1>, vector<8x128xf32>
    %333 = arith.truncf %332 : vector<8x128xf32> to vector<8x128xbf16>
    %cst_91 = arith.constant dense<0.000000e+00> : vector<16x128xf32>
    %334 = tpu.matmul %11, %333, %cst_91 {dimension_numbers = #tpu.dot_dimension_numbers<[1], [0], [0], [1], [0, 0, 1, 1], [], []>} : vector<16x8xbf16>, vector<8x128xbf16>, vector<16x128xf32> -> vector<16x128xf32>
    %cst_92 = arith.constant 0.000000e+00 : f32
    %335 = vector.broadcast %cst_92 : f32 to vector<16x128xf32>
    %c0_i32_93 = arith.constant 0 : i32
    %336 = vector.broadcast %c0_i32_93 : i32 to vector<16x1xi32>
    %337 = arith.cmpi eq, %2, %336 : vector<16x1xi32>
    %cst_94 = arith.constant -1.000000e+30 : f32
    %338 = vector.shape_cast %337 : vector<16x1xi1> to vector<16x1xi1>
    %339 = vector.broadcast %338 : vector<16x1xi1> to vector<16x128xi1>
    %340 = vector.broadcast %cst_94 : f32 to vector<16x128xf32>
    %341 = arith.select %339, %334, %340 : vector<16x128xi1>, vector<16x128xf32>
    %cst_95 = arith.constant dense<0xFF800000> : vector<128xf32>
    %342 = vector.multi_reduction <maximumf>, %341, %cst_95 [0] : vector<16x128xf32> to vector<128xf32>
    %343 = vector.shape_cast %342 : vector<128xf32> to vector<1x128xf32>
    %344 = vector.shape_cast %337 : vector<16x1xi1> to vector<16x1xi1>
    %345 = vector.broadcast %344 : vector<16x1xi1> to vector<16x128xi1>
    %346 = vector.shape_cast %343 : vector<1x128xf32> to vector<1x128xf32>
    %347 = vector.broadcast %346 : vector<1x128xf32> to vector<16x128xf32>
    %348 = arith.select %345, %347, %335 : vector<16x128xi1>, vector<16x128xf32>
    %c1_i32_96 = arith.constant 1 : i32
    %349 = vector.broadcast %c1_i32_96 : i32 to vector<16x1xi32>
    %350 = arith.cmpi eq, %2, %349 : vector<16x1xi32>
    %cst_97 = arith.constant -1.000000e+30 : f32
    %351 = vector.shape_cast %350 : vector<16x1xi1> to vector<16x1xi1>
    %352 = vector.broadcast %351 : vector<16x1xi1> to vector<16x128xi1>
    %353 = vector.broadcast %cst_97 : f32 to vector<16x128xf32>
    %354 = arith.select %352, %334, %353 : vector<16x128xi1>, vector<16x128xf32>
    %cst_98 = arith.constant dense<0xFF800000> : vector<128xf32>
    %355 = vector.multi_reduction <maximumf>, %354, %cst_98 [0] : vector<16x128xf32> to vector<128xf32>
    %356 = vector.shape_cast %355 : vector<128xf32> to vector<1x128xf32>
    %357 = vector.shape_cast %350 : vector<16x1xi1> to vector<16x1xi1>
    %358 = vector.broadcast %357 : vector<16x1xi1> to vector<16x128xi1>
    %359 = vector.shape_cast %356 : vector<1x128xf32> to vector<1x128xf32>
    %360 = vector.broadcast %359 : vector<1x128xf32> to vector<16x128xf32>
    %361 = arith.select %358, %360, %348 : vector<16x128xi1>, vector<16x128xf32>
    %c2_i32_99 = arith.constant 2 : i32
    %362 = vector.broadcast %c2_i32_99 : i32 to vector<16x1xi32>
    %363 = arith.cmpi eq, %2, %362 : vector<16x1xi32>
    %cst_100 = arith.constant -1.000000e+30 : f32
    %364 = vector.shape_cast %363 : vector<16x1xi1> to vector<16x1xi1>
    %365 = vector.broadcast %364 : vector<16x1xi1> to vector<16x128xi1>
    %366 = vector.broadcast %cst_100 : f32 to vector<16x128xf32>
    %367 = arith.select %365, %334, %366 : vector<16x128xi1>, vector<16x128xf32>
    %cst_101 = arith.constant dense<0xFF800000> : vector<128xf32>
    %368 = vector.multi_reduction <maximumf>, %367, %cst_101 [0] : vector<16x128xf32> to vector<128xf32>
    %369 = vector.shape_cast %368 : vector<128xf32> to vector<1x128xf32>
    %370 = vector.shape_cast %363 : vector<16x1xi1> to vector<16x1xi1>
    %371 = vector.broadcast %370 : vector<16x1xi1> to vector<16x128xi1>
    %372 = vector.shape_cast %369 : vector<1x128xf32> to vector<1x128xf32>
    %373 = vector.broadcast %372 : vector<1x128xf32> to vector<16x128xf32>
    %374 = arith.select %371, %373, %361 : vector<16x128xi1>, vector<16x128xf32>
    %c3_i32_102 = arith.constant 3 : i32
    %375 = vector.broadcast %c3_i32_102 : i32 to vector<16x1xi32>
    %376 = arith.cmpi eq, %2, %375 : vector<16x1xi32>
    %cst_103 = arith.constant -1.000000e+30 : f32
    %377 = vector.shape_cast %376 : vector<16x1xi1> to vector<16x1xi1>
    %378 = vector.broadcast %377 : vector<16x1xi1> to vector<16x128xi1>
    %379 = vector.broadcast %cst_103 : f32 to vector<16x128xf32>
    %380 = arith.select %378, %334, %379 : vector<16x128xi1>, vector<16x128xf32>
    %cst_104 = arith.constant dense<0xFF800000> : vector<128xf32>
    %381 = vector.multi_reduction <maximumf>, %380, %cst_104 [0] : vector<16x128xf32> to vector<128xf32>
    %382 = vector.shape_cast %381 : vector<128xf32> to vector<1x128xf32>
    %383 = vector.shape_cast %376 : vector<16x1xi1> to vector<16x1xi1>
    %384 = vector.broadcast %383 : vector<16x1xi1> to vector<16x128xi1>
    %385 = vector.shape_cast %382 : vector<1x128xf32> to vector<1x128xf32>
    %386 = vector.broadcast %385 : vector<1x128xf32> to vector<16x128xf32>
    %387 = arith.select %384, %386, %374 : vector<16x128xi1>, vector<16x128xf32>
    %c4_i32_105 = arith.constant 4 : i32
    %388 = vector.broadcast %c4_i32_105 : i32 to vector<16x1xi32>
    %389 = arith.cmpi eq, %2, %388 : vector<16x1xi32>
    %cst_106 = arith.constant -1.000000e+30 : f32
    %390 = vector.shape_cast %389 : vector<16x1xi1> to vector<16x1xi1>
    %391 = vector.broadcast %390 : vector<16x1xi1> to vector<16x128xi1>
    %392 = vector.broadcast %cst_106 : f32 to vector<16x128xf32>
    %393 = arith.select %391, %334, %392 : vector<16x128xi1>, vector<16x128xf32>
    %cst_107 = arith.constant dense<0xFF800000> : vector<128xf32>
    %394 = vector.multi_reduction <maximumf>, %393, %cst_107 [0] : vector<16x128xf32> to vector<128xf32>
    %395 = vector.shape_cast %394 : vector<128xf32> to vector<1x128xf32>
    %396 = vector.shape_cast %389 : vector<16x1xi1> to vector<16x1xi1>
    %397 = vector.broadcast %396 : vector<16x1xi1> to vector<16x128xi1>
    %398 = vector.shape_cast %395 : vector<1x128xf32> to vector<1x128xf32>
    %399 = vector.broadcast %398 : vector<1x128xf32> to vector<16x128xf32>
    %400 = arith.select %397, %399, %387 : vector<16x128xi1>, vector<16x128xf32>
    %c5_i32_108 = arith.constant 5 : i32
    %401 = vector.broadcast %c5_i32_108 : i32 to vector<16x1xi32>
    %402 = arith.cmpi eq, %2, %401 : vector<16x1xi32>
    %cst_109 = arith.constant -1.000000e+30 : f32
    %403 = vector.shape_cast %402 : vector<16x1xi1> to vector<16x1xi1>
    %404 = vector.broadcast %403 : vector<16x1xi1> to vector<16x128xi1>
    %405 = vector.broadcast %cst_109 : f32 to vector<16x128xf32>
    %406 = arith.select %404, %334, %405 : vector<16x128xi1>, vector<16x128xf32>
    %cst_110 = arith.constant dense<0xFF800000> : vector<128xf32>
    %407 = vector.multi_reduction <maximumf>, %406, %cst_110 [0] : vector<16x128xf32> to vector<128xf32>
    %408 = vector.shape_cast %407 : vector<128xf32> to vector<1x128xf32>
    %409 = vector.shape_cast %402 : vector<16x1xi1> to vector<16x1xi1>
    %410 = vector.broadcast %409 : vector<16x1xi1> to vector<16x128xi1>
    %411 = vector.shape_cast %408 : vector<1x128xf32> to vector<1x128xf32>
    %412 = vector.broadcast %411 : vector<1x128xf32> to vector<16x128xf32>
    %413 = arith.select %410, %412, %400 : vector<16x128xi1>, vector<16x128xf32>
    %c6_i32_111 = arith.constant 6 : i32
    %414 = vector.broadcast %c6_i32_111 : i32 to vector<16x1xi32>
    %415 = arith.cmpi eq, %2, %414 : vector<16x1xi32>
    %cst_112 = arith.constant -1.000000e+30 : f32
    %416 = vector.shape_cast %415 : vector<16x1xi1> to vector<16x1xi1>
    %417 = vector.broadcast %416 : vector<16x1xi1> to vector<16x128xi1>
    %418 = vector.broadcast %cst_112 : f32 to vector<16x128xf32>
    %419 = arith.select %417, %334, %418 : vector<16x128xi1>, vector<16x128xf32>
    %cst_113 = arith.constant dense<0xFF800000> : vector<128xf32>
    %420 = vector.multi_reduction <maximumf>, %419, %cst_113 [0] : vector<16x128xf32> to vector<128xf32>
    %421 = vector.shape_cast %420 : vector<128xf32> to vector<1x128xf32>
    %422 = vector.shape_cast %415 : vector<16x1xi1> to vector<16x1xi1>
    %423 = vector.broadcast %422 : vector<16x1xi1> to vector<16x128xi1>
    %424 = vector.shape_cast %421 : vector<1x128xf32> to vector<1x128xf32>
    %425 = vector.broadcast %424 : vector<1x128xf32> to vector<16x128xf32>
    %426 = arith.select %423, %425, %413 : vector<16x128xi1>, vector<16x128xf32>
    %c7_i32_114 = arith.constant 7 : i32
    %427 = vector.broadcast %c7_i32_114 : i32 to vector<16x1xi32>
    %428 = arith.cmpi eq, %2, %427 : vector<16x1xi32>
    %cst_115 = arith.constant -1.000000e+30 : f32
    %429 = vector.shape_cast %428 : vector<16x1xi1> to vector<16x1xi1>
    %430 = vector.broadcast %429 : vector<16x1xi1> to vector<16x128xi1>
    %431 = vector.broadcast %cst_115 : f32 to vector<16x128xf32>
    %432 = arith.select %430, %334, %431 : vector<16x128xi1>, vector<16x128xf32>
    %cst_116 = arith.constant dense<0xFF800000> : vector<128xf32>
    %433 = vector.multi_reduction <maximumf>, %432, %cst_116 [0] : vector<16x128xf32> to vector<128xf32>
    %434 = vector.shape_cast %433 : vector<128xf32> to vector<1x128xf32>
    %435 = vector.shape_cast %428 : vector<16x1xi1> to vector<16x1xi1>
    %436 = vector.broadcast %435 : vector<16x1xi1> to vector<16x128xi1>
    %437 = vector.shape_cast %434 : vector<1x128xf32> to vector<1x128xf32>
    %438 = vector.broadcast %437 : vector<1x128xf32> to vector<16x128xf32>
    %439 = arith.select %436, %438, %426 : vector<16x128xi1>, vector<16x128xf32>
    %440 = arith.subf %334, %439 : vector<16x128xf32>
    %441 = math.exp %440 : vector<16x128xf32>
    %442 = arith.mulf %441, %334 : vector<16x128xf32>
    %443 = tpu.concatenate %442, %441 in 1 : vector<16x128xf32>, vector<16x128xf32> -> vector<16x256xf32>
    %444 = arith.truncf %443 : vector<16x256xf32> to vector<16x256xbf16>
    %cst_117 = arith.constant dense<0.000000e+00> : vector<8x256xf32>
    %445 = tpu.matmul %22, %444, %cst_117 {dimension_numbers = #tpu.dot_dimension_numbers<[1], [0], [0], [1], [0, 0, 1, 1], [], []>} : vector<8x16xbf16>, vector<16x256xbf16>, vector<8x256xf32> -> vector<8x256xf32>
    %446 = vector.extract_strided_slice %445 {offsets = [0, 0], sizes = [8, 128], strides = [1, 1]} : vector<8x256xf32> to vector<8x128xf32>
    %447 = vector.extract_strided_slice %445 {offsets = [0, 128], sizes = [8, 128], strides = [1, 1]} : vector<8x256xf32> to vector<8x128xf32>
    %cst_118 = arith.constant 0.000000e+00 : f32
    %448 = vector.broadcast %cst_118 : f32 to vector<8x128xf32>
    %449 = arith.cmpf ogt, %447, %448 : vector<8x128xf32>
    %cst_119 = arith.constant 1.000000e+00 : f32
    %450 = vector.broadcast %cst_119 : f32 to vector<8x128xf32>
    %451 = arith.select %449, %447, %450 : vector<8x128xi1>, vector<8x128xf32>
    %452 = tpu.reciprocal %451 {approx = true} : vector<8x128xf32> -> vector<8x128xf32>
    %453 = arith.mulf %446, %452 : vector<8x128xf32>
    %454 = tpu.concatenate %453, %332 in 1 : vector<8x128xf32>, vector<8x128xf32> -> vector<8x256xf32>
    %455 = arith.truncf %454 : vector<8x256xf32> to vector<8x256xbf16>
    %c0_120 = arith.constant 0 : index
    %c0_121 = arith.constant 0 : index
    %456 = vector.load %arg11[%c0_120, %c0_121] : memref<256x64xbf16, #tpu.memory_space<vmem>>, vector<256x64xbf16>
    %cst_122 = arith.constant dense<0.000000e+00> : vector<8x64xf32>
    %457 = tpu.matmul %455, %456, %cst_122 {dimension_numbers = #tpu.dot_dimension_numbers<[1], [0], [0], [1], [0, 0, 1, 1], [], []>} : vector<8x256xbf16>, vector<256x64xbf16>, vector<8x64xf32> -> vector<8x64xf32>
    %c0_123 = arith.constant 0 : index
    %c0_124 = arith.constant 0 : index
    %458 = vector.load %arg13[%c0_123, %c0_124] : memref<1x64xf32, #tpu.memory_space<vmem>>, vector<1x64xf32>
    %459 = vector.broadcast %458 : vector<1x64xf32> to vector<8x64xf32>
    %460 = arith.addf %457, %459 : vector<8x64xf32>
    %c0_125 = arith.constant 0 : index
    %c0_126 = arith.constant 0 : index
    %461 = vector.load %arg12[%c0_125, %c0_126] : memref<2x64xf32, #tpu.memory_space<vmem>>, vector<1x64xf32>
    %462 = vector.broadcast %45 : vector<8x1xf32> to vector<8x64xf32>
    %463 = vector.broadcast %461 : vector<1x64xf32> to vector<8x64xf32>
    %464 = arith.mulf %462, %463 : vector<8x64xf32>
    %465 = arith.addf %460, %464 : vector<8x64xf32>
    %c1_127 = arith.constant 1 : index
    %c0_128 = arith.constant 0 : index
    %466 = vector.load %arg12[%c1_127, %c0_128] : memref<2x64xf32, #tpu.memory_space<vmem>>, vector<1x64xf32>
    %467 = vector.broadcast %24 : vector<8x1xf32> to vector<8x64xf32>
    %468 = vector.broadcast %466 : vector<1x64xf32> to vector<8x64xf32>
    %469 = arith.mulf %467, %468 : vector<8x64xf32>
    %470 = arith.addf %465, %469 : vector<8x64xf32>
    %cst_129 = arith.constant 0.000000e+00 : f32
    %471 = vector.broadcast %cst_129 : f32 to vector<8x64xf32>
    %472 = arith.cmpf oge, %470, %471 : vector<8x64xf32>
    %cst_130 = arith.constant 0.00999999977 : f32
    %473 = vector.broadcast %cst_130 : f32 to vector<8x64xf32>
    %474 = arith.mulf %473, %470 : vector<8x64xf32>
    %475 = arith.select %472, %470, %474 : vector<8x64xi1>, vector<8x64xf32>
    %c0_131 = arith.constant 0 : index
    %c0_132 = arith.constant 0 : index
    %476 = vector.load %arg14[%c0_131, %c0_132] : memref<64x7xf32, #tpu.memory_space<vmem>>, vector<64x7xf32>
    %cst_133 = arith.constant dense<0.000000e+00> : vector<8x7xf32>
    %477 = tpu.matmul %475, %476, %cst_133 {dimension_numbers = #tpu.dot_dimension_numbers<[1], [0], [0], [1], [0, 0, 1, 1], [], []>} : vector<8x64xf32>, vector<64x7xf32>, vector<8x7xf32> -> vector<8x7xf32>
    %c0_134 = arith.constant 0 : index
    %c0_135 = arith.constant 0 : index
    %478 = vector.load %arg16[%c0_134, %c0_135] : memref<1x7xf32, #tpu.memory_space<vmem>>, vector<1x7xf32>
    %479 = vector.broadcast %478 : vector<1x7xf32> to vector<8x7xf32>
    %480 = arith.addf %477, %479 : vector<8x7xf32>
    %c0_136 = arith.constant 0 : index
    %c0_137 = arith.constant 0 : index
    %481 = vector.load %arg15[%c0_136, %c0_137] : memref<1x7xf32, #tpu.memory_space<vmem>>, vector<1x7xf32>
    %482 = vector.broadcast %24 : vector<8x1xf32> to vector<8x7xf32>
    %483 = vector.broadcast %481 : vector<1x7xf32> to vector<8x7xf32>
    %484 = arith.mulf %482, %483 : vector<8x7xf32>
    %485 = arith.addf %480, %484 : vector<8x7xf32>
    %486 = tpu.iota {dimensions = array<i32: 1>} : vector<8x7xi32>
    %c3_i32_138 = arith.constant 3 : i32
    %487 = vector.broadcast %c3_i32_138 : i32 to vector<8x7xi32>
    %488 = arith.cmpi sge, %486, %487 : vector<8x7xi32>
    %489 = arith.mulf %485, %485 : vector<8x7xf32>
    %cst_139 = arith.constant 0.000000e+00 : f32
    %490 = vector.broadcast %cst_139 : f32 to vector<8x7xf32>
    %491 = arith.select %488, %489, %490 : vector<8x7xi1>, vector<8x7xf32>
    %cst_140 = arith.constant dense<0.000000e+00> : vector<8xf32>
    %492 = vector.multi_reduction <add>, %491, %cst_140 [1] : vector<8x7xf32> to vector<8xf32>
    %493 = vector.shape_cast %492 : vector<8xf32> to vector<8x1xf32>
    %cst_141 = arith.constant 1.000000e-24 : f32
    %494 = vector.broadcast %cst_141 : f32 to vector<8x1xf32>
    %495 = arith.maximumf %493, %494 : vector<8x1xf32>
    %496 = math.rsqrt %495 : vector<8x1xf32>
    %497 = vector.broadcast %496 : vector<8x1xf32> to vector<8x7xf32>
    %498 = arith.mulf %485, %497 : vector<8x7xf32>
    %499 = arith.select %488, %498, %485 : vector<8x7xi1>, vector<8x7xf32>
    %c0_142 = arith.constant 0 : index
    %c0_143 = arith.constant 0 : index
    %500 = vector.load %arg17[%c0_142, %c0_143] : memref<8x7xf32, #tpu.memory_space<vmem>>, vector<8x7xf32>
    tpu.vector_store %arg17[%c0_142, %c0_143], %499 {strides = array<i32>} : memref<8x7xf32, #tpu.memory_space<vmem>>, vector<8x7xf32>,
    return
  }
}

</mosaic_0001>

<bundles_post_ra>
// kernel: pose_gnn_forward.1
= control target key start
LH: loop header
LB: loop body
LE: loop exit
PB: predicated region body
PF: predicated region fallthrough
CT: control target
= control target key end

     0   :  { %s14433_s0 = inlined_call_operand.vmem [shape: s32[16,1], index: 0, kind: input, shape index: {}]   ;;  %s14434_s1 = inlined_call_operand.vmem [shape: s32[1,16], index: 1, kind: input, shape index: {}]   ;;  %s14435_s2 = inlined_call_operand.vmem [shape: s32[16,1], index: 2, kind: input, shape index: {}]   ;;  %s14436_s3 = inlined_call_operand.vmem [shape: s32[1,16], index: 3, kind: input, shape index: {}]   ;;  %s14437_s4 = inlined_call_operand.hbm [shape: f32[8,2048], index: 4, kind: input, shape index: {}]   ;;  %s14438_s5 = inlined_call_operand.hbm [shape: bf16[4096,256], index: 5, kind: input, shape index: {}]   ;;  %s14439_s6 = inlined_call_operand.hbm [shape: f32[2,256], index: 6, kind: input, shape index: {}]   ;;  %s14440_s7 = inlined_call_operand.hbm [shape: f32[1,256], index: 7, kind: input, shape index: {}]   ;;  %s14441_s8 = inlined_call_operand.hbm [shape: bf16[512,128], index: 8, kind: input, shape index: {}]   ;;  %s14442_s9 = inlined_call_operand.hbm [shape: f32[2,128], index: 9, kind: input, shape index: {}]   ;;  %s14443_s10 = inlined_call_operand.hbm [shape: f32[1,128], index: 10, kind: input, shape index: {}]   ;;  %s14444_s11 = inlined_call_operand.vmem [shape: bf16[256,64], index: 11, kind: input, shape index: {}]   ;;  %s14445_s12 = inlined_call_operand.hbm [shape: f32[2,64], index: 12, kind: input, shape index: {}]   ;;  %s14446_s13 = inlined_call_operand.hbm [shape: f32[1,64], index: 13, kind: input, shape index: {}]   ;;  %s14447_s14 = inlined_call_operand.vmem [shape: f32[64,7], index: 14, kind: input, shape index: {}]   ;;  %s14448_s15 = inlined_call_operand.hbm [shape: f32[1,7], index: 15, kind: input, shape index: {}]   ;;  %s14449_s16 = inlined_call_operand.hbm [shape: f32[1,7], index: 16, kind: input, shape index: {}]   ;;  %s14450_s17 = inlined_call_operand.hbm [shape: f32[8,7], index: 17, kind: output, shape index: {}]  }
   0x1   :  { %14639 = sst [smem:[#allocation163_spill]] %s14433_s0 }
   0x2   :  { %14640 = sst [smem:[#allocation164_spill]] %s14434_s1 }
   0x3   :  { %22 = vsyncpa [#allocation3], 0 }
   0x4   :  { %23 = vsyncpa [#allocation6], 0 }
   0x5   :  { %24 = vsyncpa [#allocation9], 0 }
   0x6   :  { %25 = vsyncpa [#allocation12], 0 }
   0x7   :  { %26 = vsyncpa [#allocation15], 0 }
   0x8   :  { %27 = vsyncpa [#allocation18], 0  ;;  %s52_s26 = sshll.u32 %s14438_s5, 4  ;;  %s53_s26 = int_to_ptr.hbm [resolvable:$true] %s52_s26 }
   0x9   :  { %28 = vsyncpa [#allocation4], 0  ;;  %s11106_s27 = smov [#allocation5]   ;;  %s77_s30 = sshll.u32 %s14440_s7, 4  ;;  %s78_s30 = int_to_ptr.hbm [resolvable:$true] %s77_s30 }
   0xa   :  { %s54_s28 = sshll.u32 %s11106_s27, 4  ;;  %s11107_s18 = smov 128   ;;  %s55_s28 = int_to_ptr.vmem [resolvable:$true] %s54_s28 }
   0xb   :  { %s11108_s19 = smov 8   ;;  %s11109_s1 = smov [#allocation8]  }
   0xc   :  { %60 = dma.hbm_to_vmem [thread:$0]  %s53_s26, 65536, %s55_s28, [#allocation6], %s11107_s18, %s11107_s18, %s11108_s19  }
   0xd   :  { %s79_s20 = sshll.u32 %s11109_s1, 4  ;;  %s101_s23 = sshll.u32 %s14442_s9, 4  ;;  %s80_s20 = int_to_ptr.vmem [resolvable:$true] %s79_s20  ;;  %s102_s23 = int_to_ptr.hbm [resolvable:$true] %s101_s23 }
   0xe   :  { %82 = dma.hbm_to_vmem [thread:$0]  %s78_s30, 32, %s80_s20, [#allocation9]  }
   0xf   :  { %s125_s25 = sshll.u32 %s14445_s12, 4  ;;  %s11110_s27 = smov [#allocation11]   ;;  %s126_s25 = int_to_ptr.hbm [resolvable:$true] %s125_s25 }
  0x10   :  { %s103_s29 = sshll.u32 %s11110_s27, 4  ;;  %s11111_s7 = smov [#allocation14]   ;;  %s104_s29 = int_to_ptr.vmem [resolvable:$true] %s103_s29 }
  0x11   :  { %106 = dma.hbm_to_vmem [thread:$0]  %s102_s23, 32, %s104_s29, [#allocation12]  }
  0x12   :  { %s127_s26 = sshll.u32 %s11111_s7, 4  ;;  %s149_s18 = sshll.u32 %s14448_s15, 4  ;;  %s128_s26 = int_to_ptr.vmem [resolvable:$true] %s127_s26  ;;  %s150_s18 = int_to_ptr.hbm [resolvable:$true] %s149_s18 }
  0x13   :  { %130 = dma.hbm_to_vmem [thread:$0]  %s126_s25, 32, %s128_s26, [#allocation15]  }
  0x14   :  { %s42_s19 = sshll.u32 %s14437_s4, 4  ;;  %s11112_s1 = smov [#allocation17]   ;;  %s43_s19 = int_to_ptr.hbm [resolvable:$true] %s42_s19 }
  0x15   :  { %s151_s12 = sshll.u32 %s11112_s1, 4  ;;  %s11113_s20 = smov [#allocation2]   ;;  %s152_s12 = int_to_ptr.vmem [resolvable:$true] %s151_s12 }
  0x16   :  { %154 = dma.hbm_to_vmem [thread:$0]  %s150_s18, 16, %s152_s12, [#allocation18]  }
  0x17   :  { %s44_s21 = sshll.u32 %s11113_s20, 4  ;;  %s66_s5 = sshll.u32 %s14439_s6, 4  ;;  %s45_s21 = int_to_ptr.vmem [resolvable:$true] %s44_s21  ;;  %s67_s5 = int_to_ptr.hbm [resolvable:$true] %s66_s5 }
  0x18   :  { %47 = dma.hbm_to_vmem [thread:$0]  %s43_s19, 2048, %s45_s21, [#allocation3]  }
  0x19   :  { %s87_s25 = sshll.u32 %s14441_s8, 4  ;;  %s11114_s27 = smov [#allocation7]   ;;  %s88_s25 = int_to_ptr.hbm [resolvable:$true] %s87_s25 }
  0x1a   :  { %s68_s4 = sshll.u32 %s11114_s27, 4  ;;  %s11115_s29 = smov [#allocation10]   ;;  %s69_s4 = int_to_ptr.vmem [resolvable:$true] %s68_s4 }
  0x1b   :  { %71 = dma.hbm_to_vmem [thread:$0]  %s67_s5, 64, %s69_s4, [#allocation6]  }
  0x1c   :  { %s89_s7 = sshll.u32 %s11115_s29, 4  ;;  %s11116_s26 = smov 64   ;;  %s90_s7 = int_to_ptr.vmem [resolvable:$true] %s89_s7 }
  0x1d   :  { %s11117_s28 = smov 4   ;;  %s112_s18 = sshll.u32 %s14443_s10, 4  ;;  %s113_s18 = int_to_ptr.hbm [resolvable:$true] %s112_s18 }
  0x1e   :  { %95 = dma.hbm_to_vmem [thread:$0]  %s88_s25, 4096, %s90_s7, [#allocation9], %s11116_s26, %s11116_s26, %s11117_s28  }
  0x1f   :  { %s11118_s9 = smov [#allocation13]   ;;  %s136_s1 = sshll.u32 %s14446_s13, 4  ;;  %s137_s1 = int_to_ptr.hbm [resolvable:$true] %s136_s1 }
  0x20   :  { %s114_s30 = sshll.u32 %s11118_s9, 4  ;;  %s11119_s12 = smov [#allocation16]   ;;  %s115_s30 = int_to_ptr.vmem [resolvable:$true] %s114_s30 }
  0x21   :  { %117 = dma.hbm_to_vmem [thread:$0]  %s113_s18, 16, %s115_s30, [#allocation12]  }
  0x22   :  { %s138_s20 = sshll.u32 %s11119_s12, 4  ;;  %s160_s23 = sshll.u32 %s14449_s16, 4  ;;  %s139_s20 = int_to_ptr.vmem [resolvable:$true] %s138_s20  ;;  %s161_s23 = int_to_ptr.hbm [resolvable:$true] %s160_s23 }
  0x23   :  { %141 = dma.hbm_to_vmem [thread:$0]  %s137_s1, 16, %s139_s20, [#allocation15]  }
  0x24   :  { %s11120_s10 = smov [#allocation19]  }
  0x25   :  { %s162_s5 = sshll.u32 %s11120_s10, 4  ;;  %s163_s5 = int_to_ptr.vmem [resolvable:$true] %s162_s5 }
  0x26   :  { %165 = dma.hbm_to_vmem [thread:$0]  %s161_s23, 16, %s163_s5, [#allocation18]  }
  0x27   :  { %11092 = dma.done.wait [#allocation3], 2048  }
  0x28   :  { %11093 = vsyncadd [#allocation3], 4294965248 }
  0x29   :  { %11094 = dma.done.wait [#allocation6], 65600  }
  0x2a   :  { %11095 = vsyncadd [#allocation6], 4294901696 }
  0x2b   :  { %11096 = dma.done.wait [#allocation9], 4128  }
  0x2c   :  { %11097 = vsyncadd [#allocation9], 4294963168 }
  0x2d   :  { %11098 = dma.done.wait [#allocation12], 48  }
  0x2e   :  { %11099 = vsyncadd [#allocation12], 4294967248 }
  0x2f   :  { %11100 = dma.done.wait [#allocation15], 48  }
  0x30   :  { %11101 = vsyncadd [#allocation15], 4294967248 }
  0x31   :  { %11102 = dma.done.wait [#allocation18], 32  }
  0x32   :  { %11103 = vsyncadd [#allocation18], 4294967264  ;;  %v11121_v0 = vmov 0   ;;  %v11255_v1 = vld [vmem:[%s14435_s2] sm:$0xff]  ;;  %s14641_s25 = sld [smem:[#allocation163_spill]]  ;;  %v11273_v4 = vld [vmem:[%s14435_s2 + $0x8] sm:$0xff]  ;;  %v217_v6 = vlaneseq }
  0x33   :  { %10670 = vset.pattern.permute.xlu2 %v11121_v0  ;;  %10663 = vset.pattern.permute.xlu0 %v11121_v0  ;;  %s14642_s0 = sld [smem:[#allocation164_spill]]  ;;  %v11284_v9 = vld [vmem:[%s14436_s3] ss:$0 sm:$0xff]  ;;  %vm14552_vm1 = vcmask 130048   ;;  %vm1599_vm2 = vcmp.eq.s32.totalorder %v11255_v1, 5  ;;  %vm660_vm3 = vcmp.eq.s32.totalorder %v11273_v4, 0 }
  0x34   :  { %10664 = vset.pattern.permute.xlu1 %v11121_v0  ;;  %233 = vperm.xlu0 %10663, %v11255_v1   ;;  %v11279_v8 = vshrl.u32 %v217_v6, 7  ;;  %v1601_v13 = vsel %vm1599_vm2, 1, %v11121_v0  ;;  %v662_v14 = vsel %vm660_vm3, 1, %v11121_v0  ;;  %vm1976_vm4 = vcmp.eq.s32.totalorder %v11273_v4, 7  ;;  %v352_v15 = vld [vmem:[#allocation2 + $0x8] sm:$0xff]  ;;  %v353_v16 = vld [vmem:[#allocation2 + $0x10] sm:$0xff] }
  0x35   :  { %236 = vperm.xlu1 %10664, %v11273_v4   ;;  %v11297_v17 = vpack.c.bf16 %v352_v15, %v352_v15  ;;  %v11299_v18 = vpack.c.bf16 %v353_v16, %v353_v16  ;;  %vm14563_vm5 = vcmask 1043456   ;;  %v1978_v19 = vsel %vm1976_vm4, 1, %v11121_v0  ;;  %v356_v24 = vld [vmem:[#allocation2 + $0x28] sm:$0xff]  ;;  %v357_v25 = vld [vmem:[#allocation2 + $0x30] sm:$0xff]  ;;  %v354_v54 = vld [vmem:[#allocation2 + $0x18] sm:$0xff]  ;;  %s11123_s2 = smov 1  }
  0x36   :  { %14643 = vst [vmem:[#allocation28_spill] sm:$0xff] %v11279_v8  ;;  %vm243_vm0 = vcmp.eq.s32.totalorder %v11279_v8, %v11284_v9  ;;  %vm848_vm6 = vcmp.eq.s32.totalorder %v11273_v4, 1  ;;  %vm1036_vm7 = vcmp.eq.s32.totalorder %v11273_v4, 2  ;;  %v11310_v26 = vpack.c.bf16 %v356_v24, %v356_v24  ;;  %v360_v34 = vld [vmem:[#allocation2 + $0x48] sm:$0xff]  ;;  %v361_v35 = vld [vmem:[#allocation2 + $0x50] sm:$0xff]  ;;  %v358_v55 = vld [vmem:[#allocation2 + $0x38] sm:$0xff] }
  0x37   :  { %14644 = vst [vmem:[#allocation29_spill] sm:$0xff] %v11297_v17  ;;  %v391_v20 = vsel %vm14563_vm5, %v11297_v17, 0  ;;  %v394_v21 = vsel %vm14563_vm5, %v11299_v18, 0  ;;  %v850_v22 = vsel %vm848_vm6, 1, %v11121_v0  ;;  %v1038_v23 = vsel %vm1036_vm7, 1, %v11121_v0  ;;  %v364_v47 = vld [vmem:[#allocation2 + $0x68] sm:$0xff] }
  0x38   :  { %v11260_v2 = vld [vmem:[%s14641_s25] sm:$0xff]  ;;  %v11267_v3 = vld [vmem:[%s14641_s25 + $0x8] sm:$0xff]  ;;  %14645 = vst [vmem:[#allocation30_spill] sm:$0xff] %v11299_v18  ;;  %456 = vmatpush.bf16.msra.mxu3 %v391_v20  ;;  %470 = vmatpush.bf16.msra.mxu1 %v394_v21  ;;  %v11312_v27 = vpack.c.bf16 %v357_v25, %v357_v25  ;;  %v403_v28 = vsel %vm14563_vm5, %v11310_v26, 0  ;;  %vm1224_vm8 = vcmp.eq.s32.totalorder %v11273_v4, 3  ;;  %v11320_v32 = vand.u32 127, %v217_v6 }
  0x39   :  { %222 = vperm.xlu2 %10670, %v11260_v2   ;;  %v213_v5 = vld [vmem:[%s14642_s0] sm:$0x1]  ;;  %14646 = vst [vmem:[#allocation31_spill] sm:$0xff] %v11310_v26  ;;  %v1226_v30 = vsel %vm1224_vm8, 1, %v11121_v0  ;;  %vm1412_vm9 = vcmp.eq.s32.totalorder %v11273_v4, 4  ;;  %v11325_v36 = vpack.c.bf16 %v360_v34, %v360_v34  ;;  %v11327_v37 = vpack.c.bf16 %v361_v35, %v361_v35  ;;  %v365_v48 = vld [vmem:[#allocation2 + $0x70] sm:$0xff] }
  0x3a   :  { %v249_v7 = vcvt.s32.f32 %v213_v5  ;;  %14647 = vst [vmem:[#allocation32_spill] sm:$0xff] %v11312_v27  ;;  %v406_v29 = vsel %vm14563_vm5, %v11312_v27, 0  ;;  %v1414_v33 = vsel %vm1412_vm9, 1, %v11121_v0  ;;  %v14452_v38 = vmov 0.0   ;;  %v362_v5 = vld [vmem:[#allocation2 + $0x58] sm:$0xff]  ;;  %s11124_s3 = smov 127  }
  0x3b   :  { %14648 = vst [vmem:[#allocation33_spill] sm:$0xff] %v11320_v32  ;;  %vm14598_vm12 = vcmask 64512   ;;  %v415_v43 = vsel %vm14563_vm5, %v11325_v36, 0  ;;  %v418_v44 = vsel %vm14563_vm5, %v11327_v37, 0  ;;  %vm1787_vm13 = vcmp.eq.s32.totalorder %v11255_v1, 6  ;;  %s7767_s28 = sshll.u32 %s14450_s17, 4  ;;  %s7768_s28 = int_to_ptr.hbm [resolvable:$true] %s7767_s28 }
  0x3c   :  { %v251_v10 = vperm.slane %v249_v7, 0  ;;  %512 = vmatpush.bf16.msrb.mxu3 %v403_v28  ;;  %526 = vmatpush.bf16.msrb.mxu1 %v406_v29  ;;  %14649 = vst [vmem:[#allocation34_spill] sm:$0xff] %v11325_v36  ;;  %v1789_v45 = vsel %vm1787_vm13, 1, %v11121_v0  ;;  %vm1975_vm14 = vcmp.eq.s32.totalorder %v11255_v1, 7  ;;  %v11346_v49 = vpack.c.bf16 %v364_v47, %v364_v47 }
  0x3d   :  { %14650 = vst [vmem:[#allocation35_spill] sm:$0xff] %v11327_v37  ;;  %v1977_v46 = vsel %vm1975_vm14, 1, %v11121_v0  ;;  %v11348_v50 = vpack.c.bf16 %v365_v48, %v365_v48  ;;  %v11366_v56 = vpack.c.bf16 %v354_v54, %v354_v54  ;;  %v11368_v57 = vpack.c.bf16 %v358_v55, %v358_v55 }
  0x3e   :  { %v253_v11 = vsel %vm243_vm0, %v251_v10, -1e+30  ;;  %14652 = vst [vmem:[#allocation37_spill] sm:$0xff] %v11346_v49  ;;  %v427_v51 = vsel %vm14563_vm5, %v11346_v49, 0  ;;  %v11380_v6 = vpack.c.bf16 %v362_v5, %v362_v5  ;;  %v366_v10 = vld [vmem:[#allocation2 + $0x78] sm:$0xff]  ;;  %vm659_vm3 = vcmp.eq.s32.totalorder %v11255_v1, 0 }
  0x3f   :  { %v255_v12 = vsel %vm14552_vm1, %v253_v11, -inf  ;;  %14653 = vst [vmem:[#allocation38_spill] sm:$0xff] %v11348_v50  ;;  %v430_v52 = vsel %vm14563_vm5, %v11348_v50, 0  ;;  %v397_v59 = vsel %vm14563_vm5, %v11366_v56, 0  ;;  %v409_v62 = vsel %vm14563_vm5, %v11368_v57, 0 }
  0x40   :  { %14654 = vst [vmem:[#allocation39_spill] sm:$0xff] %v11366_v56  ;;  %v421_v7 = vsel %vm14563_vm5, %v11380_v6, 0  ;;  %v11386_v11 = vpack.c.bf16 %v366_v10, %v366_v10  ;;  %vm847_vm4 = vcmp.eq.s32.totalorder %v11255_v1, 1  ;;  %vm1035_vm6 = vcmp.eq.s32.totalorder %v11255_v1, 2 }
  0x41   :  { %225 = vperm.xlu2 %10670, %v11267_v3   ;;  %14655 = vst [vmem:[#allocation40_spill] sm:$0xff] %v11368_v57  ;;  %vm1223_vm7 = vcmp.eq.s32.totalorder %v11255_v1, 3  ;;  %vm1411_vm8 = vcmp.eq.s32.totalorder %v11255_v1, 4  ;;  %vm1600_vm9 = vcmp.eq.s32.totalorder %v11273_v4, 5 }
  0x42   :  { %14656 = vst [vmem:[#allocation41_spill] sm:$0xff] %v11380_v6  ;;  %v1225_v35 = vsel %vm1223_vm7, 1, %v11121_v0 }
  0x43   :  { %14657 = vst [vmem:[#allocation42_spill] sm:$0xff] %v11386_v11 }
  0x49   :  { %667 = vperm.xlu2 %10670, %v662_v14  }
  0x51   :  { %855 = vperm.xlu2 %10670, %v850_v22  }
  0x59   :  { %1043 = vperm.xlu2 %10670, %v1038_v23  }
  0x5e   :  { %256 = vmax.xlane.f32.xlu0 %v255_v12  ;;  %v433_v12 = vsel %vm14563_vm5, %v11386_v11, 0 }
  0x61   :  { %1231 = vperm.xlu2 %10670, %v1226_v30   ;;  %v849_v30 = vsel %vm847_vm4, 1, %v11121_v0 }
  0x69   :  { %1419 = vperm.xlu2 %10670, %v1414_v33   ;;  %v1037_v33 = vsel %vm1035_vm6, 1, %v11121_v0 }
  0x71   :  { %1792 = vperm.xlu2 %10670, %v1789_v45  }
  0x72   :  { %1604 = vperm.xlu0 %10663, %v1601_v13   ;;  %v247_v13 = vcvt.s32.f32 %v11260_v2  ;;  %v661_v2 = vsel %vm659_vm3, 1, %v11121_v0 }
  0x79   :  { %1980 = vperm.xlu2 %10670, %v1977_v46   ;;  %v1602_v46 = vsel %vm1600_vm9, 1, %v11121_v0 }
  0x7a   :  { %1983 = vperm.xlu0 %10663, %v1978_v19   ;;  %v248_v19 = vcvt.s32.f32 %v11267_v3 }
  0x93   :  { %v223_v31 = vpop.permute.xlu2 %222 }
  0x94   :  { %vm227_vm10 = vcmp.eq.s32.totalorder %v11320_v32, %v223_v31 }
  0x95   :  { %v229_v39 = vsel %vm227_vm10, 1.0, %v14452_v38  ;;  %vm1788_vm10 = vcmp.eq.s32.totalorder %v11273_v4, 6 }
  0x9b   :  { %v226_v40 = vpop.permute.xlu2 %225 }
  0x9c   :  { %vm228_vm11 = vcmp.eq.s32.totalorder %v11320_v32, %v226_v40 }
  0x9d   :  { %v230_v41 = vsel %vm228_vm11, 1.0, %v14452_v38 }
  0x9e   :  { %v11332_v42 = vpack.c.bf16 %v230_v41, %v229_v39  ;;  %v1413_v41 = vsel %vm1411_vm8, 1, %v11121_v0  ;;  %vm304_vm8 = vcmask 7168  }
  0xa0   :  { %14651 = vst [vmem:[#allocation36_spill] sm:$0xff] %v11332_v42  ;;  %7786 = vmatmul.msk.bf16.vlgmr.msra.gmra.mxu3 %vm14598_vm12, %v11332_v42  ;;  %7787 = vmatmul.msk.bf16.vlgmr.msra.gmra.mxu1 %vm14598_vm12, %v11332_v42 }
  0xa1   :  { %568 = vmatpush.bf16.msra.mxu3 %v415_v43  ;;  %582 = vmatpush.bf16.msra.mxu1 %v418_v44 }
  0xa3   :  { %v11404_v3 = vpop.permute.xlu2 %667 }
  0xa4   :  { %14658 = vst [vmem:[#allocation43_spill] sm:$0xff] %v11404_v3 }
  0xa6   :  { %v234_v53 = vpop.permute.xlu0 %233 }
  0xa7   :  { %vm238_vm15 = vcmp.eq.s32.totalorder %v11320_v32, %v234_v53  ;;  %v237_v61 = vpop.permute.xlu1 %236 }
  0xa8   :  { %v240_v60 = vsel %vm238_vm15, 1.0, %v14452_v38  ;;  %vm239_vm2 = vcmp.eq.s32.totalorder %v11320_v32, %v237_v61  ;;  %vm670_vm15 = vcmp.eq.s32.totalorder %v11404_v3, 1 }
  0xa9   :  { %v241_v63 = vsel %vm239_vm2, 1.0, %v14452_v38 }
  0xab   :  { %v11409_v31 = vpop.permute.xlu2 %855 }
  0xac   :  { %14659 = vst [vmem:[#allocation44_spill] sm:$0xff] %v11409_v31  ;;  %vm858_vm2 = vcmp.eq.s32.totalorder %v11409_v31, 1 }
  0xb0   :  { %7790 = vmatmul.msk.bf16.vlgmr.msrb.gmra.mxu3 %vm14598_vm12, %v11332_v42  ;;  %7791 = vmatmul.msk.bf16.vlgmr.msrb.gmra.mxu1 %vm14598_vm12, %v11332_v42 }
  0xb1   :  { %624 = vmatpush.bf16.msrb.mxu3 %v427_v51  ;;  %638 = vmatpush.bf16.msrb.mxu1 %v430_v52  ;;  %v1790_v51 = vsel %vm1788_vm10, 1, %v11121_v0 }
  0xb3   :  { %v11413_v34 = vpop.permute.xlu2 %1043 }
  0xb4   :  { %14660 = vst [vmem:[#allocation45_spill] sm:$0xff] %v11413_v34  ;;  %vm1046_vm4 = vcmp.eq.s32.totalorder %v11413_v34, 1 }
  0xbb   :  { %v11422_v43 = vpop.permute.xlu2 %1231 }
  0xbc   :  { %14661 = vst [vmem:[#allocation46_spill] sm:$0xff] %v11422_v43  ;;  %vm1234_vm6 = vcmp.eq.s32.totalorder %v11422_v43, 1 }
  0xc0   :  { %7794 = vmatmul.msk.bf16.vlgmr.msra.gmra.mxu3 %vm14598_vm12, %v11332_v42  ;;  %7795 = vmatmul.msk.bf16.vlgmr.msra.gmra.mxu1 %vm14598_vm12, %v11332_v42 }
  0xc3   :  { %v11430_v47 = vpop.permute.xlu2 %1419 }
  0xc4   :  { %14664 = vst [vmem:[#allocation49_spill] sm:$0xff] %v11430_v47  ;;  %vm1422_vm7 = vcmp.eq.s32.totalorder %v11430_v47, 1 }
  0xcb   :  { %v11442_v54 = vpop.permute.xlu2 %1792 }
  0xcc   :  { %14667 = vst [vmem:[#allocation52_spill] sm:$0xff] %v11442_v54  ;;  %vm1797_vm14 = vcmp.eq.s32.totalorder %v11442_v54, 1 }
  0xd0   :  { %7798 = vmatmul.msk.bf16.vlgmr.msrb.gmra.mxu3 %vm14598_vm12, %v11332_v42  ;;  %7799 = vmatmul.msk.bf16.vlgmr.msrb.gmra.mxu1 %vm14598_vm12, %v11332_v42 }
  0xd1   :  { %v257_v58 = vpop.xlane.xlu0 %256 }
  0xd2   :  { %280 = vmatpush.msra.mxu0 %v257_v58 }
  0xd3   :  { %7782 = vmatmul.msk.f32.vlgmr.msra.gmra.mxu0 %vm14598_vm12, %v240_v60  ;;  %v11452_v60 = vpop.permute.xlu2 %1980 }
  0xd4   :  { %484 = vmatpush.bf16.msrb.mxu0 %v397_v59  ;;  %14672 = vst [vmem:[#allocation57_spill] sm:$0xff] %v11452_v60  ;;  %vm1985_vm13 = vcmp.eq.s32.totalorder %v11452_v60, 1 }
  0xd8   :  { %540 = vmatpush.bf16.msra.mxu0 %v409_v62 }
  0xdb   :  { %7783 = vmatmul.msk.f32.gmra.mxu0 %vm14598_vm12, %v241_v63 }
  0xe3   :  { %7788 = vmatmul.msk.bf16.vlgmr.msrb.gmra.mxu0 %vm14598_vm12, %v11332_v42 }
  0xe4   :  { %596 = vmatpush.bf16.msrb.mxu0 %v421_v7  ;;  %v11440_v53 = vpop.permute.xlu0 %1604 }
  0xe5   :  { %14666 = vst [vmem:[#allocation51_spill] sm:$0xff] %v11440_v53  ;;  %vm1609_vm3 = vcmp.eq.s32.totalorder %v11440_v53, 1 }
  0xec   :  { %v11450_v4 = vpop.permute.xlu0 %1983 }
  0xed   :  { %14671 = vst [vmem:[#allocation56_spill] sm:$0xff] %v11450_v4  ;;  %vm14559_vm11 = vcmp.eq.s32.totalorder %v11450_v4, 1 }
  0xf3   :  { %7792 = vmatmul.msk.bf16.vlgmr.msra.gmra.mxu0 %vm14598_vm12, %v11332_v42 }
  0xf4   :  { %652 = vmatpush.bf16.msra.mxu0 %v433_v12 }
 0x103   :  { %7796 = vmatmul.msk.bf16.vlgmr.msrb.gmra.mxu0 %vm14598_vm12, %v11332_v42 }
 0x113   :  { %7800 = vmatmul.msk.bf16.vlgmr.msra.gmra.mxu0 %vm14598_vm12, %v11332_v42 }
 0x11d   :  { %v11416_v39 = vpop.f32.mrf.mxu1 }
 0x11e   :  { %v1989_v10 = vsel %vm1985_vm13, %v11416_v39, -1e+30 }
 0x123   :  { %v11419_v40 = vpop.f32.mrf.mxu3 }
 0x124   :  { %v1988_v0 = vsel %vm1985_vm13, %v11419_v40, -1e+30 }
 0x125   :  { %v11425_v44 = vpop.f32.mrf.mxu1 }
 0x126   :  { %14662 = vst [vmem:[#allocation47_spill] sm:$0xff] %v11425_v44  ;;  %v2005_v12 = vsel %vm14559_vm11, %v11425_v44, -1e+30 }
 0x12b   :  { %v11427_v45 = vpop.f32.mrf.mxu3 }
 0x12c   :  { %14663 = vst [vmem:[#allocation48_spill] sm:$0xff] %v11427_v45  ;;  %v2004_v63 = vsel %vm14559_vm11, %v11427_v45, -1e+30 }
 0x12d   :  { %v11433_v1 = vpop.f32.mrf.mxu1  ;;  %v2026_v7 = vmax.f32 %v1988_v0, %v2004_v63  ;;  %v11545_v0 = vsel %vm1046_vm4, %v11427_v45, -1e+30  ;;  %v11550_v63 = vsel %vm1234_vm6, %v11427_v45, -1e+30 }
 0x12e   :  { %14665 = vst [vmem:[#allocation50_spill] sm:$0xff] %v11433_v1  ;;  %v1993_v32 = vsel %vm1985_vm13, %v11433_v1, -1e+30 }
 0x12f   :  { %14685 = vst [vmem:[#allocation70_spill] sm:$0xff] %v11545_v0 }
 0x130   :  { %14686 = vst [vmem:[#allocation71_spill] sm:$0xff] %v11550_v63 }
 0x133   :  { %v11438_v52 = vpop.f32.mrf.mxu3 }
 0x134   :  { %v1992_v49 = vsel %vm1985_vm13, %v11438_v52, -1e+30  ;;  %v11579_v50 = vsel %vm1609_vm3, %v11438_v52, -1e+30 }
 0x135   :  { %v11444_v55 = vpop.f32.mrf.mxu1  ;;  %14690 = vst [vmem:[#allocation75_spill] sm:$0xff] %v11579_v50 }
 0x136   :  { %14668 = vst [vmem:[#allocation53_spill] sm:$0xff] %v11444_v55  ;;  %v11594_v36 = vsel %vm858_vm2, %v11444_v55, -1e+30  ;;  %v11599_v6 = vsel %vm1046_vm4, %v11444_v55, -1e+30 }
 0x137   :  { %14692 = vst [vmem:[#allocation77_spill] sm:$0xff] %v11599_v6  ;;  %v11604_v37 = vsel %vm1234_vm6, %v11444_v55, -1e+30  ;;  %v11609_v26 = vsel %vm1422_vm7, %v11444_v55, -1e+30 }
 0x138   :  { %14693 = vst [vmem:[#allocation78_spill] sm:$0xff] %v11604_v37 }
 0x139   :  { %14694 = vst [vmem:[#allocation79_spill] sm:$0xff] %v11609_v26 }
 0x13b   :  { %v11448_v59 = vpop.f32.mrf.mxu3 }
 0x13c   :  { %14670 = vst [vmem:[#allocation55_spill] sm:$0xff] %v11448_v59  ;;  %v2008_v11 = vsel %vm14559_vm11, %v11448_v59, -1e+30  ;;  %v11616_v17 = vsel %vm670_vm15, %v11448_v59, -1e+30 }
 0x13d   :  { %v11459_v61 = vpop.f32.mrf.mxu1  ;;  %v2054_v56 = vmax.f32 %v1992_v49, %v2008_v11  ;;  %v11621_v18 = vsel %vm858_vm2, %v11448_v59, -1e+30  ;;  %v11635_v49 = vsel %vm1234_vm6, %v11448_v59, -1e+30  ;;  %v11640_v11 = vsel %vm1422_vm7, %v11448_v59, -1e+30 }
 0x13e   :  { %14673 = vst [vmem:[#allocation58_spill] sm:$0xff] %v11459_v61  ;;  %v11650_v26 = vsel %vm1797_vm14, %v11459_v61, -1e+30 }
 0x13f   :  { %14698 = vst [vmem:[#allocation83_spill] sm:$0xff] %v11635_v49 }
 0x140   :  { %14699 = vst [vmem:[#allocation84_spill] sm:$0xff] %v11640_v11 }
 0x141   :  { %14701 = vst [vmem:[#allocation86_spill] sm:$0xff] %v11650_v26 }
 0x143   :  { %v11466_v5 = vpop.f32.mrf.mxu3 }
 0x144   :  { %v11663_v11 = vsel %vm1609_vm3, %v11466_v5, -1e+30 }
 0x145   :  { %14703 = vst [vmem:[#allocation88_spill] sm:$0xff] %v11663_v11 }
 0x150   :  { %v282_v14 = vpop.f32.mrf.mxu0 }
 0x151   :  { %v288_v15 = vsub.f32 %v247_v13, %v282_v14  ;;  %v2033_v14 = vmax.f32 %v1989_v10, %v2005_v12  ;;  %v11560_v10 = vsel %vm1609_vm3, %v11433_v1, -1e+30  ;;  %v11565_v12 = vsel %vm1797_vm14, %v11433_v1, -1e+30 }
 0x152   :  { %14688 = vst [vmem:[#allocation73_spill] sm:$0xff] %v11560_v10 }
 0x153   :  { %v290_v16 = vmul.f32 1.442695, %v288_v15  ;;  %v11484_v15 = vsel %vm1609_vm3, %v11416_v39, -1e+30  ;;  %14689 = vst [vmem:[#allocation74_spill] sm:$0xff] %v11565_v12 }
 0x154   :  { %14675 = vst [vmem:[#allocation60_spill] sm:$0xff] %v11484_v15  ;;  %v11626_v12 = vsel %vm1046_vm4, %v11448_v59, -1e+30  ;;  %v2009_v59 = vsel %vm14559_vm11, %v11444_v55, -1e+30 }
 0x155   :  { %10680 = vpow2.f32 %v290_v16  ;;  %v11489_v16 = vsel %vm1797_vm14, %v11416_v39, -1e+30  ;;  %14695 = vst [vmem:[#allocation80_spill] sm:$0xff] %v11626_v12  ;;  %v1996_v15 = vsel %vm1985_vm13, %v11466_v5, -1e+30 }
 0x156   :  { %14676 = vst [vmem:[#allocation61_spill] sm:$0xff] %v11489_v16  ;;  %v2055_v16 = vrot.slane %v2054_v56, 4 }
 0x158   :  { %v285_v20 = vpop.f32.mrf.mxu0 }
 0x159   :  { %v289_v21 = vsub.f32 %v248_v19, %v285_v20  ;;  %v11496_v20 = vpop.f32.mrf.mxu1 }
 0x15a   :  { %14678 = vst [vmem:[#allocation63_spill] sm:$0xff] %v11496_v20 }
 0x15b   :  { %v10681_v22 = vpop.eup %10680  ;;  %v292_v23 = vmul.f32 1.442695, %v289_v21 }
 0x15c   :  { %v11398_v24 = vmul.f32 %v10681_v22, %v247_v13  ;;  %v2027_v13 = vrot.slane %v2026_v7, 4 }
 0x15d   :  { %10682 = vpow2.f32 %v292_v23  ;;  %v11508_v23 = vsel %vm670_vm15, %v11425_v44, -1e+30 }
 0x160   :  { %v11435_v48 = vpop.f32.mrf.mxu0 }
 0x161   :  { %v11628_v10 = vpop.f32.mrf.mxu1  ;;  %v11833_v4 = vsel %vm1609_vm3, %v11435_v48, -1e+30 }
 0x162   :  { %14696 = vst [vmem:[#allocation81_spill] sm:$0xff] %v11628_v10  ;;  %v11733_v49 = vsel %vm1609_vm3, %v11628_v10, -1e+30 }
 0x163   :  { %v10683_v25 = vpop.eup %10682  ;;  %14713 = vst [vmem:[#allocation98_spill] sm:$0xff] %v11733_v49 }
 0x164   :  { %v10665_v28 = vpack.i.bf16 %v10681_v22, %v10683_v25  ;;  %v11400_v29 = vmul.f32 %v10683_v25, %v248_v19  ;;  %v11494_v19 = vsel %vm1609_vm3, %v11419_v40, -1e+30  ;;  %v11503_v22 = vsel %vm1797_vm14, %v11419_v40, -1e+30  ;;  %14730 = vst [vmem:[#allocation115_spill] sm:$0xff] %v11833_v4 }
 0x165   :  { %14677 = vst [vmem:[#allocation62_spill] sm:$0xff] %v11494_v19  ;;  %v2028_v25 = vmax.f32 %v2026_v7, %v2027_v13  ;;  %v11555_v7 = vsel %vm1422_vm7, %v11427_v45, -1e+30  ;;  %v11703_v19 = vsel %vm1422_vm7, %v11496_v20, -1e+30 }
 0x166   :  { %10666 = vrot.lane.b32.xlu1 %v10665_v28, %s11123_s2  ;;  %14680 = vst [vmem:[#allocation65_spill] sm:$0xff] %v11503_v22  ;;  %v2034_v28 = vrot.slane %v2033_v14, 4  ;;  %v11693_v22 = vsel %vm1046_vm4, %v11496_v20, -1e+30 }
 0x167   :  { %14687 = vst [vmem:[#allocation72_spill] sm:$0xff] %v11555_v7  ;;  %v2029_v13 = vrot.slane %v2028_v25, 2 }
 0x168   :  { %v11446_v58 = vpop.f32.mrf.mxu0  ;;  %v2035_v38 = vmax.f32 %v2033_v14, %v2034_v28  ;;  %v11584_v14 = vsel %vm1797_vm14, %v11438_v52, -1e+30  ;;  %v11589_v28 = vsel %vm670_vm15, %v11444_v55, -1e+30  ;;  %v1990_v55 = vsel %vm1985_vm13, %v11435_v48, -1e+30 }
 0x169   :  { %14669 = vst [vmem:[#allocation54_spill] sm:$0xff] %v11446_v58  ;;  %v11611_v57 = vmax.f32 %v2028_v25, %v2029_v13  ;;  %v11645_v13 = vsel %vm1609_vm3, %v11459_v61, -1e+30  ;;  %v2006_v11 = vsel %vm14559_vm11, %v11446_v58, -1e+30 }
 0x16a   :  { %14691 = vst [vmem:[#allocation76_spill] sm:$0xff] %v11584_v14  ;;  %v2036_v27 = vrot.slane %v2035_v38, 2  ;;  %v1997_v14 = vsel %vm1985_vm13, %v11459_v61, -1e+30 }
 0x16b   :  { %14700 = vst [vmem:[#allocation85_spill] sm:$0xff] %v11645_v13  ;;  %v11668_v13 = vsel %vm1797_vm14, %v11466_v5, -1e+30  ;;  %v2031_v26 = vrot.slane %v11611_v57, 1 }
 0x16c   :  { %14704 = vst [vmem:[#allocation89_spill] sm:$0xff] %v11668_v13  ;;  %v11683_v13 = vsel %vm670_vm15, %v11496_v20, -1e+30 }
 0x16d   :  { %14706 = vst [vmem:[#allocation91_spill] sm:$0xff] %v11693_v22 }
 0x16e   :  { %664 = vperm.xlu1 %10664, %v661_v2   ;;  %v11513_v2 = vsel %vm858_vm2, %v11425_v44, -1e+30  ;;  %14708 = vst [vmem:[#allocation93_spill] sm:$0xff] %v11703_v19 }
 0x170   :  { %v11461_v62 = vpop.f32.mrf.mxu0 }
 0x171   :  { %14674 = vst [vmem:[#allocation59_spill] sm:$0xff] %v11461_v62 }
 0x176   :  { %852 = vperm.xlu1 %10664, %v849_v30   ;;  %v11518_v30 = vsel %vm1046_vm4, %v11425_v44, -1e+30 }
 0x177   :  { %14681 = vst [vmem:[#allocation66_spill] sm:$0xff] %v11518_v30 }
 0x178   :  { %v11498_v21 = vpop.f32.mrf.mxu0 }
 0x179   :  { %14679 = vst [vmem:[#allocation64_spill] sm:$0xff] %v11498_v21 }
 0x17e   :  { %1040 = vperm.xlu1 %10664, %v1037_v33   ;;  %v11523_v33 = vsel %vm1234_vm6, %v11425_v44, -1e+30 }
 0x17f   :  { %14682 = vst [vmem:[#allocation67_spill] sm:$0xff] %v11523_v33 }
 0x180   :  { %v11630_v25 = vpop.f32.mrf.mxu0 }
 0x181   :  { %14697 = vst [vmem:[#allocation82_spill] sm:$0xff] %v11630_v25 }
 0x186   :  { %1228 = vperm.xlu1 %10664, %v1225_v35   ;;  %v11525_v35 = vpop.f32.mrf.mxu3 }
 0x187   :  { %14683 = vst [vmem:[#allocation68_spill] sm:$0xff] %v11525_v35  ;;  %v11713_v7 = vsel %vm858_vm2, %v11525_v35, -1e+30  ;;  %v11723_v19 = vsel %vm1234_vm6, %v11525_v35, -1e+30 }
 0x188   :  { %14709 = vst [vmem:[#allocation94_spill] sm:$0xff] %v11713_v7  ;;  %v11728_v37 = vsel %vm1422_vm7, %v11525_v35, -1e+30  ;;  %v11760_v33 = vpop.f32.mrf.mxu0  ;;  %v11910_v7 = vsel %vm1422_vm7, %v11498_v21, -1e+30 }
 0x189   :  { %14711 = vst [vmem:[#allocation96_spill] sm:$0xff] %v11723_v19  ;;  %v11758_v19 = vpop.f32.mrf.mxu1 }
 0x18a   :  { %14712 = vst [vmem:[#allocation97_spill] sm:$0xff] %v11728_v37  ;;  %v11746_v37 = vsel %vm1985_vm13, %v11628_v10, -1e+30  ;;  %v11780_v22 = vsel %vm1046_vm4, %v11758_v19, -1e+30 }
 0x18b   :  { %14715 = vst [vmem:[#allocation100_spill] sm:$0xff] %v11746_v37  ;;  %v11770_v37 = vsel %vm670_vm15, %v11758_v19, -1e+30  ;;  %v11792_v12 = vsel %vm1422_vm7, %v11758_v19, -1e+30 }
 0x18c   :  { %14718 = vst [vmem:[#allocation103_spill] sm:$0xff] %v11758_v19 }
 0x18d   :  { %14719 = vst [vmem:[#allocation104_spill] sm:$0xff] %v11760_v33 }
 0x18e   :  { %1416 = vperm.xlu1 %10664, %v1413_v41   ;;  %v11530_v41 = vsel %vm1422_vm7, %v11425_v44, -1e+30  ;;  %v11655_v50 = vpop.f32.mrf.mxu3  ;;  %v2037_v44 = vmax.f32 %v2035_v38, %v2036_v27  ;;  %v2061_v27 = vmax.f32 %v1993_v32, %v2009_v59  ;;  %v11698_v38 = vsel %vm1234_vm6, %v11496_v20, -1e+30  ;;  %14722 = vst [vmem:[#allocation107_spill] sm:$0xff] %v11780_v22 }
 0x18f   :  { %14684 = vst [vmem:[#allocation69_spill] sm:$0xff] %v11530_v41  ;;  %v11688_v41 = vsel %vm858_vm2, %v11496_v20, -1e+30  ;;  %v11718_v32 = vsel %vm1046_vm4, %v11525_v35, -1e+30  ;;  %v2040_v59 = vmax.f32 %v1990_v55, %v2006_v11 }
 0x190   :  { %14702 = vst [vmem:[#allocation87_spill] sm:$0xff] %v11655_v50  ;;  %v11738_v55 = vsel %vm1797_vm14, %v11628_v10, -1e+30  ;;  %v2012_v11 = vsel %vm14559_vm11, %v11525_v35, -1e+30 }
 0x191   :  { %14705 = vst [vmem:[#allocation90_spill] sm:$0xff] %v11688_v41  ;;  %v11751_v49 = vsel %vm1609_vm3, %v11655_v50, -1e+30  ;;  %v2082_v6 = vmax.f32 %v1996_v15, %v2012_v11  ;;  %v2013_v22 = vsel %vm14559_vm11, %v11496_v20, -1e+30 }
 0x192   :  { %14707 = vst [vmem:[#allocation92_spill] sm:$0xff] %v11698_v38  ;;  %v2056_v38 = vmax.f32 %v2054_v56, %v2055_v16  ;;  %v2038_v56 = vrot.slane %v2037_v44, 1  ;;  %v2062_v16 = vrot.slane %v2061_v27, 4  ;;  %v1994_v15 = vsel %vm1985_vm13, %v11461_v62, -1e+30 }
 0x193   :  { %14710 = vst [vmem:[#allocation95_spill] sm:$0xff] %v11718_v32  ;;  %v2010_v11 = vsel %vm14559_vm11, %v11498_v21, -1e+30 }
 0x194   :  { %14714 = vst [vmem:[#allocation99_spill] sm:$0xff] %v11738_v55  ;;  %v11756_v55 = vsel %vm1797_vm14, %v11655_v50, -1e+30  ;;  %v2057_v63 = vrot.slane %v2056_v38, 2  ;;  %v2063_v0 = vmax.f32 %v2061_v27, %v2062_v16 }
 0x195   :  { %14716 = vst [vmem:[#allocation101_spill] sm:$0xff] %v11751_v49  ;;  %v2041_v49 = vrot.slane %v2040_v59, 4 }
 0x196   :  { %1607 = vperm.xlu1 %10664, %v1602_v46   ;;  %v11535_v46 = vsel %vm670_vm15, %v11427_v45, -1e+30  ;;  %14717 = vst [vmem:[#allocation102_spill] sm:$0xff] %v11756_v55  ;;  %v11775_v55 = vsel %vm858_vm2, %v11758_v19, -1e+30  ;;  %v11787_v32 = vpop.f32.mrf.mxu3 }
 0x197   :  { %14721 = vst [vmem:[#allocation106_spill] sm:$0xff] %v11775_v55  ;;  %v11797_v30 = vsel %vm670_vm15, %v11787_v32, -1e+30  ;;  %v11816_v27 = vsel %vm1046_vm4, %v11787_v32, -1e+30  ;;  %v2083_v55 = vrot.slane %v2082_v6, 4 }
 0x198   :  { %14724 = vst [vmem:[#allocation109_spill] sm:$0xff] %v11787_v32  ;;  %v11821_v16 = vsel %vm1234_vm6, %v11787_v32, -1e+30  ;;  %v11828_v20 = vsel %vm1422_vm7, %v11787_v32, -1e+30 }
 0x199   :  { %14725 = vst [vmem:[#allocation110_spill] sm:$0xff] %v11792_v12  ;;  %v11823_v12 = vmax.f32 %v2056_v38, %v2057_v63  ;;  %v11843_v63 = vsel %vm670_vm15, %v11446_v58, -1e+30  ;;  %v2068_v38 = vmax.f32 %v1994_v15, %v2010_v11  ;;  %v11866_v15 = vsel %vm1422_vm7, %v11446_v58, -1e+30  ;;  %v351_v11 = vld [vmem:[#allocation2] sm:$0xff] }
 0x19a   :  { %14727 = vst [vmem:[#allocation112_spill] sm:$0xff] %v11816_v27  ;;  %v2089_v27 = vmax.f32 %v1997_v14, %v2013_v22  ;;  %v11853_v22 = vsel %vm1046_vm4, %v11446_v58, -1e+30  ;;  %v11858_v14 = vsel %vm1234_vm6, %v11446_v58, -1e+30  ;;  %v11893_v41 = vpack.c.bf16 %v351_v11, %v351_v11 }
 0x19b   :  { %14728 = vst [vmem:[#allocation113_spill] sm:$0xff] %v11821_v16  ;;  %v2059_v4 = vrot.slane %v11823_v12, 1  ;;  %v11874_v16 = vsel %vm1609_vm3, %v11461_v62, -1e+30 }
 0x19c   :  { %14729 = vst [vmem:[#allocation114_spill] sm:$0xff] %v11828_v20  ;;  %v11868_v20 = vmax.f32 %v2037_v44, %v2038_v56  ;;  %v11886_v44 = vsel %vm670_vm15, %v11498_v21, -1e+30  ;;  %v388_v9 = vsel %vm14563_vm5, %v11893_v41, 0 }
 0x19d   :  { %14732 = vst [vmem:[#allocation117_spill] sm:$0xff] %v11853_v22 }
 0x19e   :  { %1795 = vperm.xlu1 %10664, %v1790_v51   ;;  %v11540_v51 = vsel %vm858_vm2, %v11427_v45, -1e+30  ;;  %v11708_v45 = vsel %vm670_vm15, %v11525_v35, -1e+30  ;;  %v11765_v35 = vsel %vm1985_vm13, %v11655_v50, -1e+30 }
 0x19f   :  { %14720 = vst [vmem:[#allocation105_spill] sm:$0xff] %v11765_v35  ;;  %v11785_v35 = vsel %vm1234_vm6, %v11758_v19, -1e+30  ;;  %v2042_v19 = vmax.f32 %v2040_v59, %v2041_v49  ;;  %v2064_v49 = vrot.slane %v2063_v0, 2  ;;  %v11848_v59 = vsel %vm858_vm2, %v11446_v58, -1e+30 }
 0x1a0   :  { %14723 = vst [vmem:[#allocation108_spill] sm:$0xff] %v11785_v35  ;;  %v11805_v35 = vsel %vm858_vm2, %v11787_v32, -1e+30  ;;  %v11861_v32 = vmax.f32 %v11611_v57, %v2031_v26  ;;  %v11879_v26 = vsel %vm1797_vm14, %v11461_v62, -1e+30  ;;  %v11881_v57 = vpop.f32.mrf.mxu0  ;;  %v2084_v58 = vmax.f32 %v2082_v6, %v2083_v55 }
 0x1a1   :  { %14726 = vst [vmem:[#allocation111_spill] sm:$0xff] %v11805_v35  ;;  %v11838_v35 = vsel %vm1797_vm14, %v11435_v48, -1e+30  ;;  %v11898_v6 = vsel %vm1046_vm4, %v11498_v21, -1e+30 }
 0x1a2   :  { %14731 = vst [vmem:[#allocation116_spill] sm:$0xff] %v11838_v35  ;;  %v2043_v35 = vrot.slane %v2042_v19, 2  ;;  %v11903_v55 = vsel %vm1234_vm6, %v11498_v21, -1e+30 }
 0x1a3   :  { %14733 = vst [vmem:[#allocation118_spill] sm:$0xff] %v11858_v14  ;;  %v2069_v14 = vrot.slane %v2068_v38, 4 }
 0x1a4   :  { %14734 = vst [vmem:[#allocation119_spill] sm:$0xff] %v11861_v32  ;;  %v2065_v32 = vmax.f32 %v2063_v0, %v2064_v49  ;;  %v2044_v49 = vmax.f32 %v2042_v19, %v2043_v35 }
 0x1a5   :  { %14735 = vst [vmem:[#allocation120_spill] sm:$0xff] %v11866_v15  ;;  %v2090_v15 = vrot.slane %v2089_v27, 4  ;;  %v2070_v35 = vmax.f32 %v2068_v38, %v2069_v14  ;;  %v698_v38 = vsel %vm670_vm15, %v11760_v33, -1e+30  ;;  %v11945_v14 = vsel %vm858_vm2, %v11760_v33, -1e+30 }
 0x1a6   :  { %14736 = vst [vmem:[#allocation121_spill] sm:$0xff] %v11868_v20  ;;  %v355_v20 = vld [vmem:[#allocation2 + $0x20] sm:$0xff] }
 0x1a7   :  { %14737 = vst [vmem:[#allocation122_spill] sm:$0xff] %v11874_v16  ;;  %v11891_v16 = vsel %vm858_vm2, %v11498_v21, -1e+30  ;;  %v11905_v0 = vpack.c.bf16 %v355_v20, %v355_v20  ;;  %v2066_v20 = vrot.slane %v2065_v32, 1 }
 0x1a8   :  { %14738 = vst [vmem:[#allocation123_spill] sm:$0xff] %v11879_v26 }
 0x1a9   :  { %14739 = vst [vmem:[#allocation124_spill] sm:$0xff] %v11881_v57 }
 0x1aa   :  { %14740 = vst [vmem:[#allocation125_spill] sm:$0xff] %v11891_v16  ;;  %v2091_v16 = vmax.f32 %v2089_v27, %v2090_v15  ;;  %v11933_v27 = vsel %vm1985_vm13, %v11630_v25, -1e+30  ;;  %v400_v15 = vsel %vm14563_vm5, %v11905_v0, 0 }
 0x1ab   :  { %14741 = vst [vmem:[#allocation126_spill] sm:$0xff] %v11893_v41 }
 0x1ac   :  { %14742 = vst [vmem:[#allocation127_spill] sm:$0xff] %v11898_v6  ;;  %v11917_v6 = vsel %vm1609_vm3, %v11630_v25, -1e+30  ;;  %v2092_v8 = vrot.slane %v2091_v16, 2 }
 0x1ad   :  { %14743 = vst [vmem:[#allocation128_spill] sm:$0xff] %v11903_v55  ;;  %v14747_v55 = vmov 0.0  }
 0x1ae   :  { %14744 = vst [vmem:[#allocation129_spill] sm:$0xff] %v11905_v0  ;;  %v11923_v19 = vsel %vm243_vm0, 1.0, %v14747_v55  ;;  %v2045_v55 = vrot.slane %v2044_v49, 1  ;;  %v11969_v0 = vsel %vm1609_vm3, %v11881_v57, -1e+30 }
 0x1af   :  { %14745 = vst [vmem:[#allocation130_spill] sm:$0xff] %v11910_v7 }
 0x1b0   :  { %14746 = vst [vmem:[#allocation131_spill] sm:$0xff] %v11917_v6  ;;  %v11986_v6 = vpop.f32.mrf.mxu0 }
 0x1b1   :  { %14749 = vst [vmem:[#allocation133_spill] sm:$0xff] %v11933_v27  ;;  %v11974_v27 = vmax.f32 %v11823_v12, %v2059_v4  ;;  %v702_v4 = vsel %vm670_vm15, %v11986_v6, -1e+30  ;;  %v11997_v12 = vsel %vm858_vm2, %v11986_v6, -1e+30 }
 0x1b2   :  { %14751 = vst [vmem:[#allocation135_spill] sm:$0xff] %v11969_v0  ;;  %v2093_v0 = vmax.f32 %v2091_v16, %v2092_v8  ;;  %v12052_v60 = vsel %vm1234_vm6, %v11986_v6, -1e+30 }
 0x1b3   :  { %14753 = vst [vmem:[#allocation137_spill] sm:$0xff] %v11974_v27 }
 0x1b4   :  { %14756 = vst [vmem:[#allocation140_spill] sm:$0xff] %v11986_v6 }
 0x1b5   :  { %14760 = vst [vmem:[#allocation144_spill] sm:$0xff] %v12052_v60 }
 0x1d8   :  { %v10667_v56 = vpop.permute.xlu1 %10666 }
 0x1d9   :  { %v10669_v26 = vunpack.i.h.bf16 %v10667_v56  ;;  %v10668_v22 = vunpack.i.l.bf16 %v10667_v56  ;;  %v2085_v56 = vrot.slane %v2084_v58, 2 }
 0x1db   :  { %v306_v11 = vsel %vm304_vm8, %v11400_v29, %v10668_v22  ;;  %v11928_v29 = vsel %vm1797_vm14, %v11630_v25, -1e+30  ;;  %v305_v22 = vsel %vm304_vm8, %v11398_v24, %v10669_v26  ;;  %v11952_v24 = vsel %vm1046_vm4, %v11760_v33, -1e+30 }
 0x1dc   :  { %324 = vmatpush.msra.mxu2 %v306_v11  ;;  %14748 = vst [vmem:[#allocation132_spill] sm:$0xff] %v11928_v29  ;;  %v11957_v26 = vsel %vm1234_vm6, %v11760_v33, -1e+30  ;;  %v2086_v11 = vmax.f32 %v2084_v58, %v2085_v56  ;;  %v2071_v29 = vrot.slane %v2070_v35, 2  ;;  %v11979_v58 = vsel %vm1797_vm14, %v11881_v57, -1e+30 }
 0x1dd   :  { %14754 = vst [vmem:[#allocation138_spill] sm:$0xff] %v11979_v58  ;;  %v11984_v56 = vsel %vm1985_vm13, %v11881_v57, -1e+30  ;;  %v12002_v58 = vmax.f32 %v2044_v49, %v2045_v55 }
 0x1de   :  { %325 = vmatpush.msra.mxu2 %v305_v22  ;;  %v11964_v22 = vsel %vm1422_vm7, %v11760_v33, -1e+30  ;;  %14755 = vst [vmem:[#allocation139_spill] sm:$0xff] %v11984_v56 }
 0x1df   :  { %7784 = vmatmul.msk.f32.vlgmr.msra.gmra.mxu2 %vm14552_vm1, %v11923_v19  ;;  %14750 = vst [vmem:[#allocation134_spill] sm:$0xff] %v11964_v22  ;;  %v2072_v22 = vmax.f32 %v2070_v35, %v2071_v29 }
 0x1e0   :  { %v11971_v41 = vpop.permute.xlu1 %664  ;;  %442 = vmatpush.bf16.msrb.mxu2 %v388_v9  ;;  %v11989_v9 = vmax.f32 %v2065_v32, %v2066_v20  ;;  %14758 = vst [vmem:[#allocation142_spill] sm:$0xff] %v12002_v58  ;;  %v12007_v32 = vsel %vm1046_vm4, %v11986_v6, -1e+30  ;;  %v2094_v6 = vrot.slane %v2093_v0, 1 }
 0x1e1   :  { %14752 = vst [vmem:[#allocation136_spill] sm:$0xff] %v11971_v41  ;;  %vm669_vm0 = vcmp.eq.s32.totalorder %v11971_v41, 1  ;;  %v2073_v47 = vrot.slane %v2072_v22, 1  ;;  %v10109_v41 = vld [vmem:[#allocation5 + $0xd4] sm:$0xf] }
 0x1e2   :  { %14757 = vst [vmem:[#allocation141_spill] sm:$0xff] %v11989_v9  ;;  %v672_v56 = vsel %vm669_vm0, %v11419_v40, -1e+30  ;;  %v673_v20 = vsel %vm669_vm0, %v11416_v39, -1e+30 }
 0x1e3   :  { %14759 = vst [vmem:[#allocation143_spill] sm:$0xff] %v12007_v32  ;;  %v674_v33 = vsel %vm669_vm0, %v11435_v48, -1e+30  ;;  %v676_v49 = vsel %vm669_vm0, %v11438_v52, -1e+30  ;;  %v710_v9 = vmax.f32 %v672_v56, %v11535_v46  ;;  %v717_v7 = vmax.f32 %v673_v20, %v11508_v23 }
 0x1e4   :  { %498 = vmatpush.bf16.msra.mxu2 %v400_v15  ;;  %v2087_v15 = vrot.slane %v2086_v11, 1  ;;  %v677_v55 = vsel %vm669_vm0, %v11433_v1, -1e+30  ;;  %v678_v32 = vsel %vm669_vm0, %v11461_v62, -1e+30  ;;  %v724_v46 = vmax.f32 %v674_v33, %v11843_v63 }
 0x1e5   :  { %v680_v8 = vsel %vm669_vm0, %v11466_v5, -1e+30  ;;  %v681_v16 = vsel %vm669_vm0, %v11459_v61, -1e+30  ;;  %v682_v21 = vsel %vm669_vm0, %v11630_v25, -1e+30  ;;  %v738_v56 = vmax.f32 %v676_v49, %v11616_v17 }
 0x1e6   :  { %v684_v35 = vsel %vm669_vm0, %v11655_v50, -1e+30  ;;  %v685_v29 = vsel %vm669_vm0, %v11628_v10, -1e+30  ;;  %v686_v27 = vsel %vm669_vm0, %v11881_v57, -1e+30  ;;  %v745_v58 = vmax.f32 %v677_v55, %v11589_v28 }
 0x1e7   :  { %7785 = vmatmul.msk.bf16.vlgmr.msrb.gmra.mxu2 %vm14598_vm12, %v11332_v42  ;;  %v752_v23 = vmax.f32 %v678_v32, %v11886_v44  ;;  %v766_v20 = vmax.f32 %v680_v8, %v11708_v45  ;;  %v773_v54 = vmax.f32 %v681_v16, %v11683_v13  ;;  %v780_v33 = vmax.f32 %v682_v21, %v698_v38 }
 0x1e8   :  { %v12057_v53 = vpop.permute.xlu1 %852  ;;  %v794_v17 = vmax.f32 %v684_v35, %v11797_v30  ;;  %v801_v28 = vmax.f32 %v685_v29, %v11770_v37  ;;  %v12061_v63 = vmax.f32 %v2086_v11, %v2087_v15  ;;  %v808_v49 = vmax.f32 %v686_v27, %v702_v4 }
 0x1e9   :  { %14761 = vst [vmem:[#allocation145_spill] sm:$0xff] %v12057_v53  ;;  %v711_v55 = vrot.slane %v710_v9, 4  ;;  %v718_v60 = vrot.slane %v717_v7, 4  ;;  %v725_v43 = vrot.slane %v724_v46, 4  ;;  %v739_v44 = vrot.slane %v738_v56, 4 }
 0x1ea   :  { %14762 = vst [vmem:[#allocation146_spill] sm:$0xff] %v12061_v63  ;;  %v746_v32 = vrot.slane %v745_v58, 4  ;;  %v12065_v45 = vpack.c.bf16 %v11923_v19, %v11923_v19  ;;  %v753_v13 = vrot.slane %v752_v23, 4  ;;  %v767_v21 = vrot.slane %v766_v20, 4 }
 0x1eb   :  { %v774_v38 = vrot.slane %v773_v54, 4  ;;  %v781_v30 = vrot.slane %v780_v33, 4  ;;  %v795_v8 = vrot.slane %v794_v17, 4  ;;  %v802_v37 = vrot.slane %v801_v28, 4 }
 0x1ec   :  { %14763 = vst [vmem:[#allocation147_spill] sm:$0xff] %v12065_v45  ;;  %vm14587_vm9 = vcmp.eq.s32.totalorder %v12057_v53, 1  ;;  %v809_v27 = vrot.slane %v808_v49, 4  ;;  %v12068_v11 = vmax.f32 %v710_v9, %v711_v55  ;;  %v12070_v4 = vmax.f32 %v2072_v22, %v2073_v47  ;;  %v14797_v53 = vld [vmem:[#allocation112_spill] sm:$0xff] }
 0x1ed   :  { %v12072_v15 = vmax.f32 %v2093_v0, %v2094_v6  ;;  %v12074_v16 = vmax.f32 %v717_v7, %v718_v60  ;;  %v12076_v35 = vmax.f32 %v724_v46, %v725_v43  ;;  %v12078_v19 = vmax.f32 %v738_v56, %v739_v44 }
 0x1ee   :  { %14764 = vst [vmem:[#allocation148_spill] sm:$0xff] %v12070_v4  ;;  %v12080_v29 = vmax.f32 %v745_v58, %v746_v32  ;;  %v12082_v63 = vmax.f32 %v752_v23, %v753_v13  ;;  %v12084_v45 = vmax.f32 %v766_v20, %v767_v21  ;;  %v12086_v34 = vmax.f32 %v773_v54, %v774_v38  ;;  %v14777_v13 = vld [vmem:[#allocation125_spill] sm:$0xff]  ;;  %v14778_v38 = vld [vmem:[#allocation94_spill] sm:$0xff] }
 0x1ef   :  { %14765 = vst [vmem:[#allocation149_spill] sm:$0xff] %v12072_v15  ;;  %v860_v47 = vsel %vm14587_vm9, %v11419_v40, -1e+30  ;;  %v12093_v60 = vmax.f32 %v780_v33, %v781_v30  ;;  %v12095_v43 = vmax.f32 %v794_v17, %v795_v8  ;;  %v12097_v7 = vmax.f32 %v801_v28, %v802_v37  ;;  %v14779_v8 = vld [vmem:[#allocation90_spill] sm:$0xff] }
 0x1f0   :  { %14766 = vst [vmem:[#allocation150_spill] sm:$0xff] %v12076_v35  ;;  %v12091_v6 = vpop.permute.xlu1 %1040  ;;  %v861_v0 = vsel %vm14587_vm9, %v11416_v39, -1e+30  ;;  %v12102_v22 = vmax.f32 %v808_v49, %v809_v27  ;;  %v862_v54 = vsel %vm14587_vm9, %v11435_v48, -1e+30  ;;  %v898_v23 = vmax.f32 %v860_v47, %v11540_v51  ;;  %v14780_v47 = vld [vmem:[#allocation111_spill] sm:$0xff] }
 0x1f1   :  { %14767 = vst [vmem:[#allocation151_spill] sm:$0xff] %v12078_v19  ;;  %v864_v58 = vsel %vm14587_vm9, %v11438_v52, -1e+30  ;;  %v865_v9 = vsel %vm14587_vm9, %v11433_v1, -1e+30  ;;  %vm1045_vm10 = vcmp.eq.s32.totalorder %v12091_v6, 1  ;;  %v905_v28 = vmax.f32 %v861_v0, %v11513_v2 }
 0x1f2   :  { %14768 = vst [vmem:[#allocation152_spill] sm:$0xff] %v12080_v29  ;;  %v866_v46 = vsel %vm14587_vm9, %v11461_v62, -1e+30  ;;  %v868_v56 = vsel %vm14587_vm9, %v11466_v5, -1e+30  ;;  %v912_v55 = vmax.f32 %v862_v54, %v11848_v59  ;;  %v926_v44 = vmax.f32 %v864_v58, %v11621_v18  ;;  %v14789_v29 = vld [vmem:[#allocation77_spill] sm:$0xff] }
 0x1f3   :  { %14769 = vst [vmem:[#allocation153_spill] sm:$0xff] %v12082_v63  ;;  %v869_v20 = vsel %vm14587_vm9, %v11459_v61, -1e+30  ;;  %v870_v33 = vsel %vm14587_vm9, %v11630_v25, -1e+30  ;;  %v933_v32 = vmax.f32 %v865_v9, %v11594_v36  ;;  %v940_v21 = vmax.f32 %v866_v46, %v14777_v13  ;;  %v14781_v36 = vld [vmem:[#allocation106_spill] sm:$0xff] }
 0x1f4   :  { %14770 = vst [vmem:[#allocation154_spill] sm:$0xff] %v12084_v45  ;;  %v872_v17 = vsel %vm14587_vm9, %v11655_v50, -1e+30  ;;  %v873_v49 = vsel %vm14587_vm9, %v11628_v10, -1e+30  ;;  %v954_v30 = vmax.f32 %v868_v56, %v14778_v38  ;;  %v961_v37 = vmax.f32 %v869_v20, %v14779_v8  ;;  %v14784_v20 = vld [vmem:[#allocation70_spill] sm:$0xff] }
 0x1f5   :  { %14771 = vst [vmem:[#allocation155_spill] sm:$0xff] %v12086_v34  ;;  %v874_v51 = vsel %vm14587_vm9, %v11881_v57, -1e+30  ;;  %v1048_v2 = vsel %vm1045_vm10, %v11419_v40, -1e+30  ;;  %v968_v27 = vmax.f32 %v870_v33, %v11945_v14  ;;  %v982_v0 = vmax.f32 %v872_v17, %v14780_v47  ;;  %v14785_v13 = vld [vmem:[#allocation66_spill] sm:$0xff] }
 0x1f6   :  { %14772 = vst [vmem:[#allocation156_spill] sm:$0xff] %v12091_v6  ;;  %v1049_v18 = vsel %vm1045_vm10, %v11416_v39, -1e+30  ;;  %v989_v59 = vmax.f32 %v873_v49, %v14781_v36  ;;  %v12155_v54 = vmax.f32 %v874_v51, %v11997_v12  ;;  %v1050_v58 = vsel %vm1045_vm10, %v11435_v48, -1e+30  ;;  %v14787_v36 = vld [vmem:[#allocation117_spill] sm:$0xff] }
 0x1f7   :  { %14773 = vst [vmem:[#allocation157_spill] sm:$0xff] %v12093_v60  ;;  %7789 = vmatmul.msk.bf16.vlgmr.msra.gmra.mxu2 %vm14598_vm12, %v11332_v42  ;;  %v1052_v14 = vsel %vm1045_vm10, %v11438_v52, -1e+30  ;;  %v1053_v46 = vsel %vm1045_vm10, %v11433_v1, -1e+30  ;;  %v12175_v33 = vmax.f32 %v1048_v2, %v14784_v20  ;;  %v12187_v38 = vmax.f32 %v1049_v18, %v14785_v13  ;;  %v14788_v45 = vld [vmem:[#allocation80_spill] sm:$0xff] }
 0x1f8   :  { %14774 = vst [vmem:[#allocation158_spill] sm:$0xff] %v12095_v43  ;;  %v12163_v9 = vpop.permute.xlu1 %1228  ;;  %v1054_v56 = vsel %vm1045_vm10, %v11461_v62, -1e+30  ;;  %v1056_v12 = vsel %vm1045_vm10, %v11466_v5, -1e+30  ;;  %v899_v47 = vrot.slane %v898_v23, 4  ;;  %v12198_v20 = vmax.f32 %v1050_v58, %v14787_v36 }
 0x1f9   :  { %14775 = vst [vmem:[#allocation159_spill] sm:$0xff] %v12097_v7  ;;  %v1057_v17 = vsel %vm1045_vm10, %v11459_v61, -1e+30  ;;  %v1058_v49 = vsel %vm1045_vm10, %v11630_v25, -1e+30  ;;  %v927_v7 = vrot.slane %v926_v44, 4  ;;  %v12201_v63 = vmax.f32 %v1052_v14, %v14788_v45 }
 0x1fa   :  { %14776 = vst [vmem:[#allocation160_spill] sm:$0xff] %v12102_v22  ;;  %v1060_v51 = vsel %vm1045_vm10, %v11655_v50, -1e+30  ;;  %v1061_v2 = vsel %vm1045_vm10, %v11628_v10, -1e+30  ;;  %v906_v22 = vrot.slane %v905_v28, 4  ;;  %v12216_v31 = vmax.f32 %v1058_v49, %v11952_v24 }
 0x1fb   :  { %14782 = vst [vmem:[#allocation125_spill] sm:$0xff] %v12155_v54  ;;  %v12195_v8 = vsel %vm1045_vm10, %v11881_v57, -1e+30  ;;  %v913_v54 = vrot.slane %v912_v55, 4  ;;  %v934_v43 = vrot.slane %v933_v32, 4  ;;  %v941_v15 = vrot.slane %v940_v21, 4 }
 0x1fc   :  { %14783 = vst [vmem:[#allocation94_spill] sm:$0xff] %v12163_v9  ;;  %v955_v18 = vrot.slane %v954_v30, 4  ;;  %v962_v13 = vrot.slane %v961_v37, 4  ;;  %v969_v60 = vrot.slane %v968_v27, 4  ;;  %v983_v34 = vrot.slane %v982_v0, 4  ;;  %v14792_v58 = vld [vmem:[#allocation95_spill] sm:$0xff] }
 0x1fd   :  { %14786 = vst [vmem:[#allocation90_spill] sm:$0xff] %v12195_v8  ;;  %v990_v4 = vrot.slane %v989_v59, 4  ;;  %v12204_v57 = vmax.f32 %v1053_v46, %v14789_v29  ;;  %v14790_v8 = vld [vmem:[#allocation127_spill] sm:$0xff]  ;;  %v12210_v36 = vmax.f32 %v1056_v12, %v14792_v58  ;;  %v12219_v3 = vmax.f32 %v1060_v51, %v14797_v53 }
 0x1fe   :  { %v12207_v19 = vmax.f32 %v1054_v56, %v14790_v8  ;;  %v14794_v35 = vld [vmem:[#allocation91_spill] sm:$0xff]  ;;  %14796 = vst [vmem:[#allocation66_spill] sm:$0xff] %v12216_v31  ;;  %v12224_v29 = vmax.f32 %v898_v23, %v899_v47  ;;  %v12226_v46 = vmax.f32 %v905_v28, %v906_v22  ;;  %v12230_v12 = vmax.f32 %v912_v55, %v913_v54 }
 0x1ff   :  { %14793 = vst [vmem:[#allocation106_spill] sm:$0xff] %v12210_v36  ;;  %v12213_v6 = vmax.f32 %v1057_v17, %v14794_v35  ;;  %v14799_v45 = vld [vmem:[#allocation107_spill] sm:$0xff]  ;;  %v12232_v8 = vmax.f32 %v926_v44, %v927_v7  ;;  %v12234_v35 = vmax.f32 %v933_v32, %v934_v43  ;;  %v12236_v24 = vmax.f32 %v940_v21, %v941_v15  ;;  %v14812_v44 = vld [vmem:[#allocation118_spill] sm:$0xff] }
 0x200   :  { %14791 = vst [vmem:[#allocation111_spill] sm:$0xff] %v12207_v19  ;;  %v12222_v14 = vmax.f32 %v1061_v2, %v14799_v45  ;;  %v12228_v56 = vpop.permute.xlu1 %1416  ;;  %v12238_v17 = vmax.f32 %v954_v30, %v955_v18  ;;  %v12240_v53 = vmax.f32 %v961_v37, %v962_v13  ;;  %v12242_v49 = vmax.f32 %v968_v27, %v969_v60  ;;  %v359_v60 = vld [vmem:[#allocation2 + $0x40] sm:$0xff]  ;;  %v14809_v13 = vld [vmem:[#allocation71_spill] sm:$0xff]  ;;  %v14814_v15 = vld [vmem:[#allocation78_spill] sm:$0xff] }
 0x201   :  { %14795 = vst [vmem:[#allocation70_spill] sm:$0xff] %v12213_v6  ;;  %v12244_v23 = vmax.f32 %v982_v0, %v983_v34  ;;  %v12246_v22 = vmax.f32 %v989_v59, %v990_v4  ;;  %v1087_v28 = vrot.slane %v12175_v33, 4  ;;  %vm1233_vm8 = vcmp.eq.s32.totalorder %v12163_v9, 1  ;;  %v363_v37 = vld [vmem:[#allocation2 + $0x60] sm:$0xff]  ;;  %v14811_v4 = vld [vmem:[#allocation67_spill] sm:$0xff] }
 0x202   :  { %14798 = vst [vmem:[#allocation117_spill] sm:$0xff] %v12219_v3  ;;  %v1236_v21 = vsel %vm1233_vm8, %v11419_v40, -1e+30  ;;  %v1237_v27 = vsel %vm1233_vm8, %v11416_v39, -1e+30  ;;  %v12278_v2 = vpack.c.bf16 %v359_v60, %v359_v60  ;;  %vm1421_vm1 = vcmp.eq.s32.totalorder %v12228_v56, 1 }
 0x203   :  { %14800 = vst [vmem:[#allocation80_spill] sm:$0xff] %v12222_v14  ;;  %v1238_v0 = vsel %vm1233_vm8, %v11435_v48, -1e+30  ;;  %v1240_v59 = vsel %vm1233_vm8, %v11438_v52, -1e+30  ;;  %v1274_v58 = vmax.f32 %v1236_v21, %v14809_v13  ;;  %v12300_v34 = vmax.f32 %v1237_v27, %v14811_v4  ;;  %v14813_v13 = vld [vmem:[#allocation83_spill] sm:$0xff] }
 0x204   :  { %14801 = vst [vmem:[#allocation77_spill] sm:$0xff] %v12228_v56  ;;  %v1241_v54 = vsel %vm1233_vm8, %v11433_v1, -1e+30  ;;  %v1242_v51 = vsel %vm1233_vm8, %v11461_v62, -1e+30  ;;  %v12303_v21 = vmax.f32 %v1238_v0, %v14812_v44  ;;  %v12306_v7 = vmax.f32 %v1240_v59, %v14813_v13  ;;  %v14815_v14 = vld [vmem:[#allocation128_spill] sm:$0xff] }
 0x205   :  { %14802 = vst [vmem:[#allocation127_spill] sm:$0xff] %v12236_v24  ;;  %v1244_v47 = vsel %vm1233_vm8, %v11466_v5, -1e+30  ;;  %v1245_v18 = vsel %vm1233_vm8, %v11459_v61, -1e+30  ;;  %v12309_v43 = vmax.f32 %v1241_v54, %v14814_v15  ;;  %v14817_v3 = vld [vmem:[#allocation96_spill] sm:$0xff]  ;;  %v12323_v44 = vpack.c.bf16 %v363_v37, %v363_v37 }
 0x206   :  { %14803 = vst [vmem:[#allocation95_spill] sm:$0xff] %v12238_v17  ;;  %v1246_v60 = vsel %vm1233_vm8, %v11630_v25, -1e+30  ;;  %v1248_v30 = vsel %vm1233_vm8, %v11655_v50, -1e+30  ;;  %v14819_v4 = vld [vmem:[#allocation92_spill] sm:$0xff] }
 0x207   :  { %14804 = vst [vmem:[#allocation91_spill] sm:$0xff] %v12240_v53  ;;  %v1249_v32 = vsel %vm1233_vm8, %v11628_v10, -1e+30  ;;  %v1424_v55 = vsel %vm1421_vm1, %v11419_v40, -1e+30  ;;  %v12321_v27 = vmax.f32 %v1245_v18, %v14819_v4  ;;  %v12326_v0 = vmax.f32 %v1246_v60, %v11957_v26  ;;  %v14823_v15 = vld [vmem:[#allocation113_spill] sm:$0xff] }
 0x208   :  { %14805 = vst [vmem:[#allocation112_spill] sm:$0xff] %v12242_v49  ;;  %v12288_v45 = vpop.permute.xlu1 %1607  ;;  %v12329_v59 = vmax.f32 %v1248_v30, %v14823_v15  ;;  %v14825_v54 = vld [vmem:[#allocation108_spill] sm:$0xff]  ;;  %v12343_v37 = vsel %vm1421_vm1, %v11435_v48, -1e+30  ;;  %v12348_v26 = vsel %vm1421_vm1, %v11438_v52, -1e+30 }
 0x209   :  { %14806 = vst [vmem:[#allocation107_spill] sm:$0xff] %v12244_v23  ;;  %v12318_v23 = vmax.f32 %v1244_v47, %v14817_v3  ;;  %v12332_v13 = vmax.f32 %v1249_v32, %v14825_v54  ;;  %v12338_v3 = vsel %vm1421_vm1, %v11416_v39, -1e+30  ;;  %v14827_v30 = vld [vmem:[#allocation72_spill] sm:$0xff]  ;;  %vm14608_vm11 = vcmp.eq.s32.totalorder %v12288_v45, 1  ;;  %v14830_v50 = vld [vmem:[#allocation62_spill] sm:$0xff] }
 0x20a   :  { %14807 = vst [vmem:[#allocation161_spill] sm:$0xff] %v12246_v22  ;;  %v12315_v22 = vmax.f32 %v1242_v51, %v14815_v14  ;;  %v1088_v14 = vmax.f32 %v12175_v33, %v1087_v28  ;;  %v1462_v32 = vmax.f32 %v1424_v55, %v14827_v30  ;;  %v12354_v33 = vsel %vm1421_vm1, %v11433_v1, -1e+30  ;;  %v14829_v54 = vld [vmem:[#allocation48_spill] sm:$0xff]  ;;  %v14831_v53 = vld [vmem:[#allocation65_spill] sm:$0xff] }
 0x20b   :  { %14808 = vst [vmem:[#allocation162_spill] sm:$0xff] %v12278_v2  ;;  %v412_v28 = vsel %vm14563_vm5, %v12278_v2, 0  ;;  %v424_v51 = vsel %vm14563_vm5, %v12323_v44, 0  ;;  %v713_v47 = vrot.slane %v12068_v11, 2  ;;  %v901_v18 = vrot.slane %v12224_v29, 2  ;;  %v14833_v17 = vld [vmem:[#allocation145_spill] sm:$0xff] }
 0x20c   :  { %14810 = vst [vmem:[#allocation71_spill] sm:$0xff] %v12288_v45  ;;  %554 = vmatpush.bf16.msrb.mxu2 %v412_v28  ;;  %v1089_v60 = vrot.slane %v1088_v14, 2  ;;  %v1275_v55 = vrot.slane %v1274_v58, 4  ;;  %v1463_v15 = vrot.slane %v1462_v32, 4  ;;  %v1628_v30 = vsel %vm14608_vm11, %v14829_v54, -1e+30 }
 0x20d   :  { %14816 = vst [vmem:[#allocation67_spill] sm:$0xff] %v12315_v22  ;;  %v720_v2 = vrot.slane %v12074_v16, 2  ;;  %v714_v28 = vmax.f32 %v12068_v11, %v713_v47  ;;  %v9699_v9 = vld [vmem:[#allocation5 + $0xe90] sm:$0xf] }
 0x20e   :  { %14818 = vst [vmem:[#allocation118_spill] sm:$0xff] %v12318_v23  ;;  %v1464_v10 = vmax.f32 %v1462_v32, %v1463_v15 }
 0x20f   :  { %14820 = vst [vmem:[#allocation83_spill] sm:$0xff] %v12321_v27  ;;  %7793 = vmatmul.msk.bf16.vlgmr.msrb.gmra.mxu2 %vm14598_vm12, %v11332_v42  ;;  %v715_v49 = vrot.slane %v714_v28, 1 }
 0x210   :  { %14821 = vst [vmem:[#allocation78_spill] sm:$0xff] %v12323_v44  ;;  %v12363_v4 = vpop.permute.xlu1 %1795  ;;  %610 = vmatpush.bf16.msra.mxu2 %v424_v51  ;;  %v902_v44 = vmax.f32 %v12224_v29, %v901_v18  ;;  %v1276_v51 = vmax.f32 %v1274_v58, %v1275_v55  ;;  %v1465_v47 = vrot.slane %v1464_v10, 2 }
 0x211   :  { %14822 = vst [vmem:[#allocation128_spill] sm:$0xff] %v12326_v0  ;;  %vm14616_vm5 = vcmp.eq.s32.totalorder %v12363_v4, 1  ;;  %v1650_v0 = vmax.f32 %v14830_v50, %v1628_v30  ;;  %v716_v18 = vmax.f32 %v714_v28, %v715_v49 }
 0x212   :  { %14824 = vst [vmem:[#allocation96_spill] sm:$0xff] %v12329_v59  ;;  %v1090_v59 = vmax.f32 %v1088_v14, %v1089_v60  ;;  %v1816_v31 = vsel %vm14616_vm5, %v14829_v54, -1e+30  ;;  %v903_v27 = vrot.slane %v902_v44, 1  ;;  %v1277_v11 = vrot.slane %v1276_v51, 2 }
 0x213   :  { %14826 = vst [vmem:[#allocation92_spill] sm:$0xff] %v12332_v13  ;;  %v908_v13 = vrot.slane %v12226_v46, 2  ;;  %v1838_v25 = vmax.f32 %v14831_v53, %v1816_v31  ;;  %v1651_v29 = vrot.slane %v1650_v0, 4  ;;  %v721_v14 = vmax.f32 %v12074_v16, %v720_v2 }
 0x214   :  { %14828 = vst [vmem:[#allocation113_spill] sm:$0xff] %v12363_v4  ;;  %v1091_v6 = vrot.slane %v1090_v59, 1  ;;  %v904_v60 = vmax.f32 %v902_v44, %v903_v27  ;;  %v1278_v55 = vmax.f32 %v1276_v51, %v1277_v11  ;;  %v1466_v50 = vmax.f32 %v1464_v10, %v1465_v47  ;;  %v10574_v4 = vld [vmem:[#allocation5 + $0xf54] sm:$0xf0] }
 0x215   :  { %v1839_v32 = vrot.slane %v1838_v25, 4  ;;  %v1652_v15 = vmax.f32 %v1650_v0, %v1651_v29  ;;  %v722_v30 = vrot.slane %v721_v14, 1  ;;  %v816_v61 = vsel %vm669_vm0, %v716_v18, 0.0  ;;  %v10550_v10 = vld [vmem:[#allocation5 + $0xe94] sm:$0xf0] }
 0x216   :  { %v1092_v58 = vmax.f32 %v1090_v59, %v1091_v6  ;;  %v832_v36 = vsel %vm670_vm15, %v716_v18, 0.0  ;;  %v909_v53 = vmax.f32 %v12226_v46, %v908_v13  ;;  %v1004_v16 = vsel %vm14587_vm9, %v904_v60, %v816_v61 }
 0x217   :  { %v1840_v31 = vmax.f32 %v1838_v25, %v1839_v32  ;;  %v1020_v6 = vsel %vm858_vm2, %v904_v60, %v832_v36  ;;  %v1279_v2 = vrot.slane %v1278_v55, 1  ;;  %v1467_v27 = vrot.slane %v1466_v50, 1 }
 0x218   :  { %v1192_v44 = vsel %vm1045_vm10, %v1092_v58, %v1004_v16  ;;  %v1208_v59 = vsel %vm1046_vm4, %v1092_v58, %v1020_v6  ;;  %v1653_v28 = vrot.slane %v1652_v15, 2  ;;  %v723_v47 = vmax.f32 %v721_v14, %v722_v30 }
 0x219   :  { %v1841_v51 = vrot.slane %v1840_v31, 2  ;;  %v1280_v11 = vmax.f32 %v1278_v55, %v1279_v2  ;;  %v1468_v25 = vmax.f32 %v1466_v50, %v1467_v27  ;;  %v910_v46 = vrot.slane %v909_v53, 1  ;;  %v14840_v2 = vld [vmem:[#allocation69_spill] sm:$0xff] }
 0x21a   :  { %v1654_v13 = vmax.f32 %v1652_v15, %v1653_v28  ;;  %v14837_v61 = vrot.slane %v12187_v38, 4  ;;  %v1282_v18 = vrot.slane %v12300_v34, 4  ;;  %v12401_v60 = vsel %vm1421_vm1, %v11461_v62, -1e+30 }
 0x21b   :  { %v1842_v29 = vmax.f32 %v1840_v31, %v1841_v51  ;;  %14838 = vst [vmem:[#allocation108_spill] sm:$0xff] %v12401_v60  ;;  %v1380_v58 = vsel %vm1233_vm8, %v1280_v11, %v1192_v44  ;;  %v1396_v14 = vsel %vm1234_vm6, %v1280_v11, %v1208_v59  ;;  %v817_v55 = vsel %vm669_vm0, %v723_v47, 0.0  ;;  %v14842_v11 = vld [vmem:[#allocation47_spill] sm:$0xff]  ;;  %v10288_v44 = vld [vmem:[#allocation5 + $0x664] sm:$0xf0] }
 0x21c   :  { %v1095_v36 = vmax.f32 %v12187_v38, %v14837_v61  ;;  %v1568_v50 = vsel %vm1421_vm1, %v1468_v25, %v1380_v58  ;;  %v1655_v38 = vrot.slane %v1654_v13, 1  ;;  %v833_v30 = vsel %vm670_vm15, %v723_v47, 0.0 }
 0x21d   :  { %v1843_v15 = vrot.slane %v1842_v29, 1  ;;  %v911_v31 = vmax.f32 %v909_v53, %v910_v46  ;;  %v1283_v6 = vmax.f32 %v12300_v34, %v1282_v18  ;;  %v1469_v27 = vmax.f32 %v12338_v3, %v14840_v2  ;;  %v9731_v2 = vld [vmem:[#allocation5 + $0xed0] sm:$0xf] }
 0x21e   :  { %v1096_v16 = vrot.slane %v1095_v36, 2  ;;  %v1584_v59 = vsel %vm1422_vm7, %v1468_v25, %v1396_v14  ;;  %v1656_v28 = vmax.f32 %v1654_v13, %v1655_v38  ;;  %v1629_v61 = vsel %vm14608_vm11, %v14842_v11, -1e+30 }
 0x21f   :  { %v1844_v51 = vmax.f32 %v1842_v29, %v1843_v15  ;;  %v1005_v58 = vsel %vm14587_vm9, %v911_v31, %v817_v55  ;;  %v1284_v53 = vrot.slane %v1283_v6, 2  ;;  %v1817_v34 = vsel %vm14616_vm5, %v14842_v11, -1e+30  ;;  %v14844_v29 = vld [vmem:[#allocation60_spill] sm:$0xff]  ;;  %7797 = vmatmul.msk.bf16.vlgmr.msra.gmra.mxu2 %vm14598_vm12, %v11332_v42 }
 0x220   :  { %v1097_v47 = vmax.f32 %v1095_v36, %v1096_v16  ;;  %v1756_v3 = vsel %vm1609_vm3, %v1656_v28, %v1568_v50  ;;  %v1772_v25 = vsel %vm14608_vm11, %v1656_v28, %v1584_v59  ;;  %v1470_v13 = vrot.slane %v1469_v27, 4  ;;  %v14846_v16 = vld [vmem:[#allocation119_spill] sm:$0xff]  ;;  %v14848_v59 = vld [vmem:[#allocation56_spill] sm:$0xff] }
 0x221   :  { %v1657_v18 = vmax.f32 %v14844_v29, %v1629_v61  ;;  %v1944_v36 = vsel %vm1797_vm14, %v1844_v51, %v1756_v3  ;;  %v1960_v55 = vsel %vm14616_vm5, %v1844_v51, %v1772_v25  ;;  %v1285_v15 = vmax.f32 %v1283_v6, %v1284_v53  ;;  %v14850_v25 = vld [vmem:[#allocation61_spill] sm:$0xff]  ;;  %v14851_v53 = vld [vmem:[#allocation150_spill] sm:$0xff] }
 0x222   :  { %v1098_v38 = vrot.slane %v1097_v47, 1  ;;  %v2132_v50 = vsel %vm1985_vm13, %v14846_v16, %v1944_v36  ;;  %vm14849_vm9 = vcmp.eq.s32.totalorder %v14848_v59, 1  ;;  %v1471_v61 = vmax.f32 %v1469_v27, %v1470_v13 }
 0x223   :  { %v2148_v28 = vsel %vm14849_vm9, %v14846_v16, %v1960_v55  ;;  %v1658_v29 = vrot.slane %v1657_v18, 4  ;;  %v2164_v42 = vsub.f32 %v11419_v40, %v2132_v50  ;;  %v1286_v1 = vrot.slane %v1285_v15, 1 }
 0x224   :  { %v2180_v62 = vsub.f32 %v14829_v54, %v2148_v28  ;;  %v1099_v3 = vmax.f32 %v1097_v47, %v1098_v38  ;;  %v1472_v60 = vrot.slane %v1471_v61, 2  ;;  %v1845_v6 = vmax.f32 %v14850_v25, %v1817_v34 }
 0x225   :  { %v1659_v51 = vmax.f32 %v1657_v18, %v1658_v29  ;;  %v727_v22 = vrot.slane %v14851_v53, 2  ;;  %v2197_v19 = vmul.f32 1.442695, %v2164_v42  ;;  %v1021_v24 = vsel %vm858_vm2, %v911_v31, %v833_v30 }
 0x226   :  { %v2229_v36 = vmul.f32 1.442695, %v2180_v62  ;;  %v1193_v27 = vsel %vm1045_vm10, %v1099_v3, %v1005_v58  ;;  %v1287_v13 = vmax.f32 %v1285_v15, %v1286_v1  ;;  %v1473_v55 = vmax.f32 %v1471_v61, %v1472_v60 }
 0x227   :  { %v1660_v16 = vrot.slane %v1659_v51, 2  ;;  %v1846_v50 = vrot.slane %v1845_v6, 4  ;;  %10684 = vpow2.f32 %v2197_v19  ;;  %v728_v47 = vmax.f32 %v14851_v53, %v727_v22 }
 0x228   :  { %v915_v18 = vrot.slane %v12230_v12, 2  ;;  %v14852_v34 = vrot.slane %v12198_v20, 4  ;;  %10686 = vpow2.f32 %v2229_v36  ;;  %v1209_v62 = vsel %vm1046_vm4, %v1099_v3, %v1021_v24 }
 0x229   :  { %v1381_v30 = vsel %vm1233_vm8, %v1287_v13, %v1193_v27  ;;  %v1474_v1 = vrot.slane %v1473_v55, 1  ;;  %v1661_v60 = vmax.f32 %v1659_v51, %v1660_v16  ;;  %v1847_v31 = vmax.f32 %v1845_v6, %v1846_v50  ;;  %v14853_v6 = vld [vmem:[#allocation120_spill] sm:$0xff] }
 0x22a   :  { %v1102_v42 = vmax.f32 %v12198_v20, %v14852_v34  ;;  %v729_v58 = vrot.slane %v728_v47, 1  ;;  %v916_v19 = vmax.f32 %v12230_v12, %v915_v18  ;;  %v1397_v22 = vsel %vm1234_vm6, %v1287_v13, %v1209_v62 }
 0x22b   :  { %v1475_v38 = vmax.f32 %v1473_v55, %v1474_v1  ;;  %v1289_v20 = vrot.slane %v12303_v21, 4  ;;  %v1662_v28 = vrot.slane %v1661_v60, 1  ;;  %v1848_v61 = vrot.slane %v1847_v31, 2 }
 0x22c   :  { %v1103_v15 = vrot.slane %v1102_v42, 2  ;;  %v730_v29 = vmax.f32 %v728_v47, %v729_v58  ;;  %v917_v24 = vrot.slane %v916_v19, 1  ;;  %v1476_v12 = vmax.f32 %v12343_v37, %v14853_v6 }
 0x22d   :  { %v1569_v3 = vsel %vm1421_vm1, %v1475_v38, %v1381_v30  ;;  %v1290_v51 = vmax.f32 %v12303_v21, %v1289_v20  ;;  %v12469_v53 = vpop.eup %10684  ;;  %v1585_v36 = vsel %vm1422_vm7, %v1475_v38, %v1397_v22  ;;  %v1663_v27 = vmax.f32 %v1661_v60, %v1662_v28  ;;  %v14855_v22 = vld [vmem:[#allocation54_spill] sm:$0xff]  ;;  %v14856_v28 = vld [vmem:[#allocation115_spill] sm:$0xff] }
 0x22e   :  { %v1104_v25 = vmax.f32 %v1102_v42, %v1103_v15  ;;  %v1849_v13 = vmax.f32 %v1847_v31, %v1848_v61  ;;  %v818_v55 = vsel %vm669_vm0, %v730_v29, 0.0  ;;  %v12475_v16 = vpop.eup %10686  ;;  %v2260_v50 = vmul.f32 %v12469_v53, %v11419_v40 }
 0x22f   :  { %v918_v47 = vmax.f32 %v916_v19, %v917_v24  ;;  %v1291_v18 = vrot.slane %v1290_v51, 2  ;;  %v2276_v37 = vmul.f32 %v12475_v16, %v14829_v54  ;;  %v1757_v34 = vsel %vm1609_vm3, %v1663_v27, %v1569_v3 }
 0x230   :  { %v1105_v21 = vrot.slane %v1104_v25, 1  ;;  %v1850_v42 = vrot.slane %v1849_v13, 1  ;;  %v834_v62 = vsel %vm670_vm15, %v730_v29, 0.0  ;;  %v1773_v30 = vsel %vm14608_vm11, %v1663_v27, %v1585_v36 }
 0x231   :  { %vm14854_vm9 = vcmp.eq.s32.totalorder %v14833_v17, 1  ;;  %v1292_v60 = vmax.f32 %v1290_v51, %v1291_v18  ;;  %v2292_v31 = vpack.c.bf16 %v2276_v37, %v2260_v50  ;;  %v1477_v19 = vrot.slane %v1476_v12, 4  ;;  %v14857_v51 = vld [vmem:[#allocation121_spill] sm:$0xff] }
 0x232   :  { %v1006_v1 = vsel %vm14854_vm9, %v918_v47, %v818_v55  ;;  %v1106_v40 = vmax.f32 %v1104_v25, %v1105_v21  ;;  %v1851_v58 = vmax.f32 %v1849_v13, %v1850_v42  ;;  %v1630_v54 = vsel %vm14608_vm11, %v14855_v22, -1e+30  ;;  %v14860_v42 = vld [vmem:[#allocation151_spill] sm:$0xff] }
 0x233   :  { %v1022_v38 = vsel %vm858_vm2, %v918_v47, %v834_v62  ;;  %v1293_v20 = vrot.slane %v1292_v60, 1  ;;  %v1664_v61 = vmax.f32 %v14856_v28, %v1630_v54  ;;  %2346 = vmatpush.bf16.msra.mxu3 %v2292_v31  ;;  %v1478_v3 = vmax.f32 %v1476_v12, %v1477_v19  ;;  %v14859_v12 = vld [vmem:[#allocation116_spill] sm:$0xff] }
 0x234   :  { %v1194_v15 = vsel %vm1045_vm10, %v1106_v40, %v1006_v1  ;;  %v1945_v29 = vsel %vm1797_vm14, %v1851_v58, %v1757_v34  ;;  %v1961_v24 = vsel %vm14616_vm5, %v1851_v58, %v1773_v30  ;;  %v1818_v25 = vsel %vm14616_vm5, %v14855_v22, -1e+30  ;;  %v14861_v30 = vld [vmem:[#allocation147_spill] sm:$0xff] }
 0x235   :  { %v2133_v6 = vsel %vm1985_vm13, %v14857_v51, %v1945_v29  ;;  %vm14858_vm9 = vcmp.eq.s32.totalorder %v14848_v59, 1  ;;  %v1294_v27 = vmax.f32 %v1292_v60, %v1293_v20  ;;  %v1665_v13 = vrot.slane %v1664_v61, 4 }
 0x236   :  { %v2149_v36 = vsel %vm14858_vm9, %v14857_v51, %v1961_v24  ;;  %v2165_v55 = vsub.f32 %v11416_v39, %v2133_v6  ;;  %v1479_v47 = vrot.slane %v1478_v3, 2  ;;  %v1852_v21 = vmax.f32 %v14859_v12, %v1818_v25 }
 0x237   :  { %v2181_v50 = vsub.f32 %v14842_v11, %v2149_v36  ;;  %v1210_v18 = vsel %vm1046_vm4, %v1106_v40, %v1022_v38  ;;  %v1382_v37 = vsel %vm1233_vm8, %v1294_v27, %v1194_v15  ;;  %v1666_v34 = vmax.f32 %v1664_v61, %v1665_v13 }
 0x238   :  { %v741_v62 = vrot.slane %v14860_v42, 2  ;;  %vm14862_vm9 = vcmask 130048   ;;  %v2199_v1 = vmul.f32 1.442695, %v2165_v55  ;;  %v1480_v31 = vmax.f32 %v1478_v3, %v1479_v47  ;;  %v14864_v47 = vld [vmem:[#allocation84_spill] sm:$0xff] }
 0x239   :  { %7802 = vmatmul.msk.bf16.vlgmr.msra.gmra.mxu3 %vm14862_vm9, %v14861_v30  ;;  %v2231_v60 = vmul.f32 1.442695, %v2181_v50  ;;  %v1853_v58 = vrot.slane %v1852_v21, 4  ;;  %v1667_v19 = vrot.slane %v1666_v34, 2  ;;  %v929_v20 = vrot.slane %v12232_v8, 2 }
 0x23a   :  { %v742_v54 = vmax.f32 %v14860_v42, %v741_v62  ;;  %v14863_v40 = vrot.slane %v12201_v63, 4  ;;  %10688 = vpow2.f32 %v2199_v1  ;;  %v1481_v15 = vrot.slane %v1480_v31, 1 }
 0x23b   :  { %v1854_v28 = vmax.f32 %v1852_v21, %v1853_v58  ;;  %v1303_v61 = vrot.slane %v12306_v7, 4  ;;  %10690 = vpow2.f32 %v2231_v60  ;;  %v1668_v29 = vmax.f32 %v1666_v34, %v1667_v19 }
 0x23c   :  { %v1116_v38 = vmax.f32 %v12201_v63, %v14863_v40  ;;  %v743_v24 = vrot.slane %v742_v54, 1  ;;  %v930_v3 = vmax.f32 %v12232_v8, %v929_v20  ;;  %v1482_v25 = vmax.f32 %v1480_v31, %v1481_v15 }
 0x23d   :  { %v1855_v51 = vrot.slane %v1854_v28, 2  ;;  %v1304_v36 = vmax.f32 %v12306_v7, %v1303_v61  ;;  %v1669_v13 = vrot.slane %v1668_v29, 1  ;;  %v1490_v63 = vmax.f32 %v12348_v26, %v14864_v47 }
 0x23e   :  { %v1117_v6 = vrot.slane %v1116_v38, 2  ;;  %v744_v55 = vmax.f32 %v742_v54, %v743_v24  ;;  %v931_v50 = vrot.slane %v930_v3, 1  ;;  %v1398_v12 = vsel %vm1234_vm6, %v1294_v27, %v1210_v18  ;;  %v14867_v24 = vld [vmem:[#allocation55_spill] sm:$0xff] }
 0x23f   :  { %v1570_v21 = vsel %vm1421_vm1, %v1482_v25, %v1382_v37  ;;  %v1856_v34 = vmax.f32 %v1854_v28, %v1855_v51  ;;  %v1586_v8 = vsel %vm1422_vm7, %v1482_v25, %v1398_v12  ;;  %v1670_v62 = vmax.f32 %v1668_v29, %v1669_v13  ;;  %v14868_v13 = vld [vmem:[#allocation142_spill] sm:$0xff] }
 0x240   :  { %v1118_v42 = vmax.f32 %v1116_v38, %v1117_v6  ;;  %v820_v7 = vsel %vm669_vm0, %v744_v55, 0.0  ;;  %v932_v1 = vmax.f32 %v930_v3, %v931_v50  ;;  %v12538_v60 = vpop.eup %10688  ;;  %v1305_v58 = vrot.slane %v1304_v36, 2 }
 0x241   :  { %v1857_v31 = vrot.slane %v1856_v34, 1  ;;  %v1491_v19 = vrot.slane %v1490_v63, 4  ;;  %v12540_v27 = vpop.eup %10690  ;;  %v2261_v18 = vmul.f32 %v12538_v60, %v11416_v39  ;;  %v1758_v37 = vsel %vm1609_vm3, %v1670_v62, %v1570_v21 }
 0x242   :  { %v1119_v26 = vrot.slane %v1118_v42, 1  ;;  %14865 = vst [vmem:[#allocation72_spill] sm:$0xff] %v12540_v27  ;;  %v1774_v54 = vsel %vm14608_vm11, %v1670_v62, %v1586_v8  ;;  %v836_v20 = vsel %vm670_vm15, %v744_v55, 0.0  ;;  %v2277_v40 = vmul.f32 %v12540_v27, %v14842_v11  ;;  %v14871_v62 = vld [vmem:[#allocation76_spill] sm:$0xff] }
 0x243   :  { %v1858_v38 = vmax.f32 %v1856_v34, %v1857_v31  ;;  %vm14866_vm9 = vcmp.eq.s32.totalorder %v14833_v17, 1  ;;  %v1024_v39 = vsel %vm858_vm2, %v932_v1, %v836_v20  ;;  %v1306_v61 = vmax.f32 %v1304_v36, %v1305_v58  ;;  %v14870_v34 = vld [vmem:[#allocation75_spill] sm:$0xff] }
 0x244   :  { %v1008_v15 = vsel %vm14866_vm9, %v932_v1, %v820_v7  ;;  %v1120_v28 = vmax.f32 %v1118_v42, %v1119_v26  ;;  %v1492_v29 = vmax.f32 %v1490_v63, %v1491_v19  ;;  %v1632_v3 = vsel %vm14608_vm11, %v14867_v24, -1e+30  ;;  %v14872_v1 = vld [vmem:[#allocation152_spill] sm:$0xff] }
 0x245   :  { %v2293_v25 = vpack.c.bf16 %v2277_v40, %v2261_v18  ;;  %v1946_v51 = vsel %vm1797_vm14, %v1858_v38, %v1758_v37  ;;  %v1962_v11 = vsel %vm14616_vm5, %v1858_v38, %v1774_v54  ;;  %v1820_v6 = vsel %vm14616_vm5, %v14867_v24, -1e+30 }
 0x246   :  { %v2134_v36 = vsel %vm1985_vm13, %v14868_v13, %v1946_v51  ;;  %vm14869_vm9 = vcmp.eq.s32.totalorder %v14848_v59, 1  ;;  %v1196_v50 = vsel %vm1045_vm10, %v1120_v28, %v1008_v15  ;;  %v1307_v47 = vrot.slane %v1306_v61, 1 }
 0x247   :  { %v2150_v55 = vsel %vm14869_vm9, %v14868_v13, %v1962_v11  ;;  %2359 = vmatpush.bf16.msra.mxu1 %v2293_v25  ;;  %v2166_v63 = vsub.f32 %v11435_v48, %v2134_v36  ;;  %v1493_v21 = vrot.slane %v1492_v29, 2  ;;  %v1678_v42 = vmax.f32 %v14870_v34, %v1632_v3 }
 0x248   :  { %v2182_v12 = vsub.f32 %v14855_v22, %v2150_v55  ;;  %v1308_v8 = vmax.f32 %v1306_v61, %v1307_v47  ;;  %v1866_v7 = vmax.f32 %v14871_v62, %v1820_v6  ;;  %v748_v31 = vrot.slane %v14872_v1, 2  ;;  %v14875_v47 = vld [vmem:[#allocation79_spill] sm:$0xff] }
 0x249   :  { %v936_v26 = vrot.slane %v12234_v35, 2  ;;  %v2201_v58 = vmul.f32 1.442695, %v2166_v63  ;;  %v1494_v18 = vmax.f32 %v1492_v29, %v1493_v21  ;;  %v1679_v37 = vrot.slane %v1678_v42, 4 }
 0x24a   :  { %v2233_v19 = vmul.f32 1.442695, %v2182_v12  ;;  %v1212_v54 = vsel %vm1046_vm4, %v1120_v28, %v1024_v39  ;;  %v1384_v20 = vsel %vm1233_vm8, %v1308_v8, %v1196_v50  ;;  %v1867_v40 = vrot.slane %v1866_v7, 4 }
 0x24b   :  { %v749_v38 = vmax.f32 %v14872_v1, %v748_v31  ;;  %vm14873_vm9 = vcmask 130048   ;;  %10692 = vpow2.f32 %v2201_v58  ;;  %v1495_v15 = vrot.slane %v1494_v18, 1 }
 0x24c   :  { %7803 = vmatmul.msk.bf16.vlgmr.msra.gmra.mxu1 %vm14873_vm9, %v14861_v30  ;;  %v1680_v61 = vmax.f32 %v1678_v42, %v1679_v37  ;;  %v937_v3 = vmax.f32 %v12234_v35, %v936_v26  ;;  %10694 = vpow2.f32 %v2233_v19  ;;  %v1868_v29 = vmax.f32 %v1866_v7, %v1867_v40 }
 0x24d   :  { %v750_v25 = vrot.slane %v749_v38, 1  ;;  %v14874_v51 = vrot.slane %v12204_v57, 4  ;;  %v1496_v39 = vmax.f32 %v1494_v18, %v1495_v15  ;;  %v1310_v13 = vrot.slane %v12309_v43, 4  ;;  %v14878_v15 = vld [vmem:[#allocation53_spill] sm:$0xff] }
 0x24e   :  { %v1681_v11 = vrot.slane %v1680_v61, 2  ;;  %v938_v6 = vrot.slane %v937_v3, 1  ;;  %v1869_v36 = vrot.slane %v1868_v29, 2  ;;  %v1497_v63 = vmax.f32 %v12354_v33, %v14875_v47 }
 0x24f   :  { %v1123_v28 = vmax.f32 %v12204_v57, %v14874_v51  ;;  %v751_v55 = vmax.f32 %v749_v38, %v750_v25  ;;  %v12597_v35 = vsel %vm1421_vm1, %v11466_v5, -1e+30  ;;  %v1400_v12 = vsel %vm1234_vm6, %v1308_v8, %v1212_v54  ;;  %v14879_v25 = vld [vmem:[#allocation73_spill] sm:$0xff] }
 0x250   :  { %v1572_v57 = vsel %vm1421_vm1, %v1496_v39, %v1384_v20  ;;  %v1682_v21 = vmax.f32 %v1680_v61, %v1681_v11  ;;  %v1588_v34 = vsel %vm1422_vm7, %v1496_v39, %v1400_v12  ;;  %v1870_v42 = vmax.f32 %v1868_v29, %v1869_v36 }
 0x251   :  { %v1124_v50 = vrot.slane %v1123_v28, 2  ;;  %v939_v62 = vmax.f32 %v937_v3, %v938_v6  ;;  %v12605_v1 = vpop.eup %10692  ;;  %v821_v31 = vsel %vm669_vm0, %v751_v55, 0.0  ;;  %v837_v26 = vsel %vm670_vm15, %v751_v55, 0.0  ;;  %v14881_v55 = vld [vmem:[#allocation137_spill] sm:$0xff] }
 0x252   :  { %14876 = vst [vmem:[#allocation48_spill] sm:$0xff] %v12605_v1  ;;  %v1683_v33 = vrot.slane %v1682_v21, 1  ;;  %v1311_v8 = vmax.f32 %v12309_v43, %v1310_v13  ;;  %v12612_v58 = vpop.eup %10694  ;;  %v2262_v19 = vmul.f32 %v12605_v1, %v11435_v48  ;;  %v1871_v18 = vrot.slane %v1870_v42, 1 }
 0x253   :  { %v1125_v7 = vmax.f32 %v1123_v28, %v1124_v50  ;;  %14877 = vst [vmem:[#allocation62_spill] sm:$0xff] %v12612_v58  ;;  %v1498_v54 = vrot.slane %v1497_v63, 4  ;;  %v2278_v20 = vmul.f32 %v12612_v58, %v14855_v22  ;;  %v1633_v61 = vsel %vm14608_vm11, %v14878_v15, -1e+30 }
 0x254   :  { %v1684_v40 = vmax.f32 %v1682_v21, %v1683_v33  ;;  %v1312_v38 = vrot.slane %v1311_v8, 2  ;;  %v1872_v3 = vmax.f32 %v1870_v42, %v1871_v18  ;;  %v1685_v51 = vmax.f32 %v14879_v25, %v1633_v61  ;;  %v14883_v33 = vld [vmem:[#allocation74_spill] sm:$0xff] }
 0x255   :  { %v1126_v37 = vrot.slane %v1125_v7, 1  ;;  %v1499_v43 = vmax.f32 %v1497_v63, %v1498_v54  ;;  %v2294_v28 = vpack.c.bf16 %v2278_v20, %v2262_v19  ;;  %vm14880_vm9 = vcmp.eq.s32.totalorder %v14833_v17, 1  ;;  %v14885_v54 = vld [vmem:[#allocation127_spill] sm:$0xff] }
 0x256   :  { %v1760_v48 = vsel %vm1609_vm3, %v1684_v40, %v1572_v57  ;;  %v1776_v39 = vsel %vm14608_vm11, %v1684_v40, %v1588_v34  ;;  %v1313_v11 = vmax.f32 %v1311_v8, %v1312_v38  ;;  %v1009_v13 = vsel %vm14880_vm9, %v939_v62, %v821_v31 }
 0x257   :  { %v1127_v29 = vmax.f32 %v1125_v7, %v1126_v37  ;;  %v1948_v22 = vsel %vm1797_vm14, %v1872_v3, %v1760_v48  ;;  %v1964_v6 = vsel %vm14616_vm5, %v1872_v3, %v1776_v39  ;;  %v1025_v36 = vsel %vm858_vm2, %v939_v62, %v837_v26  ;;  %2372 = vmatpush.bf16.msrb.mxu0 %v2294_v28  ;;  %v14884_v26 = vld [vmem:[#allocation153_spill] sm:$0xff]  ;;  %v14887_v39 = vld [vmem:[#allocation111_spill] sm:$0xff] }
 0x258   :  { %v2136_v50 = vsel %vm1985_vm13, %v14881_v55, %v1948_v22  ;;  %vm14882_vm12 = vcmp.eq.s32.totalorder %v14848_v59, 1  ;;  %v1314_v63 = vrot.slane %v1313_v11, 1  ;;  %v1500_v12 = vrot.slane %v1499_v43, 2 }
 0x259   :  { %v2152_v47 = vsel %vm14882_vm12, %v14881_v55, %v1964_v6  ;;  %v2168_v57 = vsub.f32 %v11438_v52, %v2136_v50  ;;  %v1686_v34 = vrot.slane %v1685_v51, 4  ;;  %v1821_v42 = vsel %vm14616_vm5, %v14878_v15, -1e+30 }
 0x25a   :  { %v2184_v21 = vsub.f32 %v14867_v24, %v2152_v47  ;;  %v1197_v62 = vsel %vm1045_vm10, %v1127_v29, %v1009_v13  ;;  %v1501_v7 = vmax.f32 %v1499_v43, %v1500_v12  ;;  %v1873_v31 = vmax.f32 %v14883_v33, %v1821_v42 }
 0x25b   :  { %v755_v8 = vrot.slane %v14884_v26, 2  ;;  %v2205_v19 = vmul.f32 1.442695, %v2168_v57  ;;  %v1687_v37 = vmax.f32 %v1685_v51, %v1686_v34  ;;  %v943_v20 = vrot.slane %v14885_v54, 2 }
 0x25c   :  { %v2237_v18 = vmul.f32 1.442695, %v2184_v21  ;;  %vm14886_vm12 = vcmask 130048   ;;  %v1213_v40 = vsel %vm1046_vm4, %v1127_v29, %v1025_v36  ;;  %v1315_v38 = vmax.f32 %v1313_v11, %v1314_v63  ;;  %v14889_v29 = vld [vmem:[#allocation67_spill] sm:$0xff] }
 0x25d   :  { %7804 = vmatmul.msk.bf16.vlgmr.msrb.gmra.mxu0 %vm14886_vm12, %v14861_v30  ;;  %v1502_v61 = vrot.slane %v1501_v7, 1  ;;  %v1874_v3 = vrot.slane %v1873_v31, 4  ;;  %10696 = vpow2.f32 %v2205_v19  ;;  %v1688_v43 = vrot.slane %v1687_v37, 2 }
 0x25e   :  { %v756_v25 = vmax.f32 %v14884_v26, %v755_v8  ;;  %v944_v28 = vmax.f32 %v14885_v54, %v943_v20  ;;  %10698 = vpow2.f32 %v2237_v18  ;;  %v14888_v22 = vrot.slane %v14887_v39, 4  ;;  %v14890_v26 = vld [vmem:[#allocation130_spill] sm:$0xff]  ;;  %v14891_v8 = vld [vmem:[#allocation108_spill] sm:$0xff] }
 0x25f   :  { %v1503_v48 = vmax.f32 %v1501_v7, %v1502_v61  ;;  %v1875_v51 = vmax.f32 %v1873_v31, %v1874_v3  ;;  %v1689_v13 = vmax.f32 %v1687_v37, %v1688_v43  ;;  %v1317_v11 = vrot.slane %v14889_v29, 4  ;;  %v14892_v20 = vld [vmem:[#allocation64_spill] sm:$0xff] }
 0x260   :  { %v1130_v6 = vmax.f32 %v14887_v39, %v14888_v22  ;;  %v757_v55 = vrot.slane %v756_v25, 1  ;;  %v945_v50 = vrot.slane %v944_v28, 1  ;;  %v1385_v36 = vsel %vm1233_vm8, %v1315_v38, %v1197_v62 }
 0x261   :  { %v1401_v47 = vsel %vm1234_vm6, %v1315_v38, %v1213_v40  ;;  %v1876_v63 = vrot.slane %v1875_v51, 2  ;;  %v1573_v57 = vsel %vm1421_vm1, %v1503_v48, %v1385_v36  ;;  %v1690_v21 = vrot.slane %v1689_v13, 1  ;;  %v14894_v36 = vld [vmem:[#allocation154_spill] sm:$0xff] }
 0x262   :  { %v1131_v12 = vrot.slane %v1130_v6, 2  ;;  %v758_v34 = vmax.f32 %v756_v25, %v757_v55  ;;  %v1318_v42 = vmax.f32 %v14889_v29, %v1317_v11  ;;  %v1589_v7 = vsel %vm1422_vm7, %v1503_v48, %v1401_v47 }
 0x263   :  { %v1877_v33 = vmax.f32 %v1875_v51, %v1876_v63  ;;  %v1504_v62 = vmax.f32 %v14891_v8, %v14890_v26  ;;  %v12671_v19 = vpop.eup %10696  ;;  %v1691_v18 = vmax.f32 %v1689_v13, %v1690_v21  ;;  %v946_v37 = vmax.f32 %v944_v28, %v945_v50  ;;  %v14893_v13 = vld [vmem:[#allocation122_spill] sm:$0xff]  ;;  %v14895_v21 = vld [vmem:[#allocation141_spill] sm:$0xff] }
 0x264   :  { %v1132_v31 = vmax.f32 %v1130_v6, %v1131_v12  ;;  %v1319_v54 = vrot.slane %v1318_v42, 2  ;;  %v1634_v40 = vsel %vm14608_vm11, %v14892_v20, -1e+30  ;;  %v12676_v38 = vpop.eup %10698  ;;  %v2264_v61 = vmul.f32 %v12671_v19, %v11438_v52 }
 0x265   :  { %v1878_v3 = vrot.slane %v1877_v33, 1  ;;  %v822_v43 = vsel %vm669_vm0, %v758_v34, 0.0  ;;  %v838_v25 = vsel %vm670_vm15, %v758_v34, 0.0  ;;  %v2280_v28 = vmul.f32 %v12676_v38, %v14867_v24 }
 0x266   :  { %v1761_v48 = vsel %vm1609_vm3, %v1691_v18, %v1573_v57  ;;  %v1777_v51 = vsel %vm14608_vm11, %v1691_v18, %v1589_v7  ;;  %v1133_v39 = vrot.slane %v1132_v31, 1  ;;  %v1320_v6 = vmax.f32 %v1318_v42, %v1319_v54 }
 0x267   :  { %v1879_v22 = vmax.f32 %v1877_v33, %v1878_v3  ;;  %v1505_v52 = vrot.slane %v1504_v62, 4  ;;  %v1692_v55 = vmax.f32 %v14893_v13, %v1634_v40  ;;  %v2296_v50 = vpack.c.bf16 %v2280_v28, %v2264_v61  ;;  %v14899_v40 = vld [vmem:[#allocation123_spill] sm:$0xff] }
 0x268   :  { %v1134_v29 = vmax.f32 %v1132_v31, %v1133_v39  ;;  %v1822_v11 = vsel %vm14616_vm5, %v14892_v20, -1e+30  ;;  %v769_v24 = vrot.slane %v14894_v36, 2  ;;  %v1321_v12 = vrot.slane %v1320_v6, 1  ;;  %v14898_v31 = vld [vmem:[#allocation50_spill] sm:$0xff]  ;;  %v14900_v28 = vld [vmem:[#allocation95_spill] sm:$0xff] }
 0x269   :  { %v1949_v47 = vsel %vm1797_vm14, %v1879_v22, %v1761_v48  ;;  %v1965_v63 = vsel %vm14616_vm5, %v1879_v22, %v1777_v51  ;;  %v1506_v57 = vmax.f32 %v1504_v62, %v1505_v52  ;;  %2398 = vmatpush.bf16.msrb.mxu3 %v2296_v50  ;;  %vm14896_vm9 = vcmp.eq.s32.totalorder %v14848_v59, 1 }
 0x26a   :  { %v2137_v34 = vsel %vm1985_vm13, %v14895_v21, %v1949_v47  ;;  %v2153_v42 = vsel %vm14896_vm9, %v14895_v21, %v1965_v63  ;;  %vm14897_vm12 = vcmp.eq.s32.totalorder %v14833_v17, 1  ;;  %v1026_v33 = vsel %vm858_vm2, %v946_v37, %v838_v25  ;;  %v14904_v47 = vld [vmem:[#allocation118_spill] sm:$0xff] }
 0x26b   :  { %v1010_v7 = vsel %vm14897_vm12, %v946_v37, %v822_v43  ;;  %v2169_v26 = vsub.f32 %v14898_v31, %v2137_v34  ;;  %v2185_v8 = vsub.f32 %v14878_v15, %v2153_v42  ;;  %v1507_v18 = vrot.slane %v1506_v57, 2 }
 0x26c   :  { %v1198_v62 = vsel %vm1045_vm10, %v1134_v29, %v1010_v7  ;;  %v1693_v54 = vrot.slane %v1692_v55, 4  ;;  %v1880_v61 = vmax.f32 %v14899_v40, %v1822_v11  ;;  %v770_v3 = vmax.f32 %v14894_v36, %v769_v24  ;;  %v14902_v11 = vld [vmem:[#allocation106_spill] sm:$0xff] }
 0x26d   :  { %v957_v48 = vrot.slane %v14900_v28, 2  ;;  %v2207_v51 = vmul.f32 1.442695, %v2169_v26  ;;  %v2239_v43 = vmul.f32 1.442695, %v2185_v8  ;;  %v1214_v37 = vsel %vm1046_vm4, %v1134_v29, %v1026_v33  ;;  %v14905_v26 = vld [vmem:[#allocation97_spill] sm:$0xff] }
 0x26e   :  { %v1322_v25 = vmax.f32 %v1320_v6, %v1321_v12  ;;  %vm14901_vm9 = vcmask 130048   ;;  %v1508_v39 = vmax.f32 %v1506_v57, %v1507_v18  ;;  %v1694_v22 = vmax.f32 %v1692_v55, %v1693_v54  ;;  %v14906_v18 = vld [vmem:[#allocation58_spill] sm:$0xff] }
 0x26f   :  { %7806 = vmatmul.msk.bf16.vlgmr.msrb.gmra.mxu3 %vm14901_vm9, %v14861_v30  ;;  %v1881_v52 = vrot.slane %v1880_v61, 4  ;;  %v771_v13 = vrot.slane %v770_v3, 1  ;;  %10700 = vpow2.f32 %v2207_v51  ;;  %v958_v50 = vmax.f32 %v14900_v28, %v957_v48  ;;  %v14907_v40 = vld [vmem:[#allocation82_spill] sm:$0xff] }
 0x270   :  { %v14903_v36 = vrot.slane %v14902_v11, 4  ;;  %v1331_v63 = vrot.slane %v14904_v47, 4  ;;  %10702 = vpow2.f32 %v2239_v43  ;;  %v1509_v21 = vrot.slane %v1508_v39, 1 }
 0x271   :  { %v1695_v29 = vrot.slane %v1694_v22, 2  ;;  %v1882_v6 = vmax.f32 %v1880_v61, %v1881_v52  ;;  %v772_v12 = vmax.f32 %v770_v3, %v771_v13  ;;  %v959_v34 = vrot.slane %v958_v50, 1 }
 0x272   :  { %v1144_v24 = vmax.f32 %v14902_v11, %v14903_v36  ;;  %v1332_v55 = vmax.f32 %v14904_v47, %v1331_v63  ;;  %v1510_v57 = vmax.f32 %v1508_v39, %v1509_v21  ;;  %v1518_v8 = vmax.f32 %v12597_v35, %v14905_v26  ;;  %v14910_v21 = vld [vmem:[#allocation68_spill] sm:$0xff] }
 0x273   :  { %v1696_v7 = vmax.f32 %v1694_v22, %v1695_v29  ;;  %v1883_v33 = vrot.slane %v1882_v6, 2  ;;  %v12731_v54 = vsel %vm1421_vm1, %v14906_v18, -1e+30  ;;  %v12736_v61 = vsel %vm1421_vm1, %v14907_v40, -1e+30 }
 0x274   :  { %v1145_v42 = vrot.slane %v1144_v24, 2  ;;  %v1386_v3 = vsel %vm1233_vm8, %v1322_v25, %v1198_v62  ;;  %v1402_v28 = vsel %vm1234_vm6, %v1322_v25, %v1214_v37  ;;  %v960_v43 = vmax.f32 %v958_v50, %v959_v34 }
 0x275   :  { %v1697_v48 = vrot.slane %v1696_v7, 1  ;;  %v1884_v51 = vmax.f32 %v1882_v6, %v1883_v33  ;;  %v12742_v39 = vpop.eup %10700  ;;  %v1574_v22 = vsel %vm1421_vm1, %v1510_v57, %v1386_v3  ;;  %v824_v52 = vsel %vm669_vm0, %v772_v12, 0.0  ;;  %v14911_v3 = vld [vmem:[#allocation88_spill] sm:$0xff] }
 0x276   :  { %v1146_v35 = vmax.f32 %v1144_v24, %v1145_v42  ;;  %14908 = vst [vmem:[#allocation65_spill] sm:$0xff] %v12742_v39  ;;  %v840_v13 = vsel %vm670_vm15, %v772_v12, 0.0  ;;  %v1333_v11 = vrot.slane %v1332_v55, 2  ;;  %v12750_v62 = vpop.eup %10702  ;;  %v2265_v37 = vmul.f32 %v12742_v39, %v14898_v31  ;;  %v14953_v39 = vld [vmem:[#allocation96_spill] sm:$0xff] }
 0x277   :  { %14909 = vst [vmem:[#allocation69_spill] sm:$0xff] %v12750_v62  ;;  %v1698_v25 = vmax.f32 %v1696_v7, %v1697_v48  ;;  %v1885_v50 = vrot.slane %v1884_v51, 1  ;;  %v1519_v36 = vrot.slane %v1518_v8, 4  ;;  %v2281_v24 = vmul.f32 %v12750_v62, %v14878_v15  ;;  %v14912_v48 = vld [vmem:[#allocation148_spill] sm:$0xff] }
 0x278   :  { %v1590_v47 = vsel %vm1422_vm7, %v1510_v57, %v1402_v28  ;;  %v1334_v63 = vmax.f32 %v1332_v55, %v1333_v11  ;;  %v1636_v29 = vsel %vm14608_vm11, %v14910_v21, -1e+30  ;;  %v1012_v12 = vsel %vm14897_vm12, %v960_v43, %v824_v52  ;;  %v14914_v11 = vld [vmem:[#allocation59_spill] sm:$0xff] }
 0x279   :  { %v1886_v6 = vmax.f32 %v1884_v51, %v1885_v50  ;;  %v1147_v34 = vrot.slane %v1146_v35, 1  ;;  %v1520_v31 = vmax.f32 %v1518_v8, %v1519_v36  ;;  %v2297_v42 = vpack.c.bf16 %v2281_v24, %v2265_v37 }
 0x27a   :  { %v1762_v7 = vsel %vm1609_vm3, %v1698_v25, %v1574_v22  ;;  %v1778_v15 = vsel %vm14608_vm11, %v1698_v25, %v1590_v47  ;;  %v1335_v33 = vrot.slane %v1334_v63, 1  ;;  %v1706_v28 = vmax.f32 %v14911_v3, %v1636_v29  ;;  %v14915_v29 = vld [vmem:[#allocation89_spill] sm:$0xff] }
 0x27b   :  { %v1950_v55 = vsel %vm1797_vm14, %v1886_v6, %v1762_v7  ;;  %v1966_v57 = vsel %vm14616_vm5, %v1886_v6, %v1778_v15  ;;  %v1521_v26 = vrot.slane %v1520_v31, 2  ;;  %2411 = vmatpush.bf16.msrb.mxu1 %v2297_v42  ;;  %vm14913_vm9 = vcmp.eq.s32.totalorder %v14848_v59, 1  ;;  %v14916_v42 = vld [vmem:[#allocation155_spill] sm:$0xff] }
 0x27c   :  { %v2138_v8 = vsel %vm1985_vm13, %v14912_v48, %v1950_v55  ;;  %v2154_v51 = vsel %vm14913_vm9, %v14912_v48, %v1966_v57  ;;  %v1028_v22 = vsel %vm858_vm2, %v960_v43, %v840_v13  ;;  %v1824_v52 = vsel %vm14616_vm5, %v14910_v21, -1e+30  ;;  %v14918_v48 = vld [vmem:[#allocation91_spill] sm:$0xff] }
 0x27d   :  { %v2170_v37 = vsub.f32 %v14914_v11, %v2138_v8  ;;  %v2186_v25 = vsub.f32 %v14892_v20, %v2154_v51  ;;  %v1522_v50 = vmax.f32 %v1520_v31, %v1521_v26  ;;  %v1707_v36 = vrot.slane %v1706_v28, 4  ;;  %v14919_v31 = vld [vmem:[#allocation70_spill] sm:$0xff] }
 0x27e   :  { %v1148_v24 = vmax.f32 %v1146_v35, %v1147_v34  ;;  %v1336_v47 = vmax.f32 %v1334_v63, %v1335_v33  ;;  %v1894_v6 = vmax.f32 %v14915_v29, %v1824_v52  ;;  %v776_v7 = vrot.slane %v14916_v42, 2  ;;  %v14921_v33 = vld [vmem:[#allocation83_spill] sm:$0xff] }
 0x27f   :  { %v2209_v15 = vmul.f32 1.442695, %v2170_v37  ;;  %v2241_v55 = vmul.f32 1.442695, %v2186_v25  ;;  %v1523_v57 = vrot.slane %v1522_v50, 1  ;;  %v1708_v43 = vmax.f32 %v1706_v28, %v1707_v36 }
 0x280   :  { %vm14917_vm12 = vcmask 130048   ;;  %v1895_v13 = vrot.slane %v1894_v6, 4  ;;  %v777_v3 = vmax.f32 %v14916_v42, %v776_v7  ;;  %v964_v8 = vrot.slane %v14918_v48, 2 }
 0x281   :  { %7807 = vmatmul.msk.bf16.vlgmr.msrb.gmra.mxu1 %vm14917_vm12, %v14861_v30  ;;  %v14920_v26 = vrot.slane %v14919_v31, 4  ;;  %10704 = vpow2.f32 %v2209_v15  ;;  %v1524_v63 = vmax.f32 %v1522_v50, %v1523_v57  ;;  %v1709_v34 = vrot.slane %v1708_v43, 2 }
 0x282   :  { %v1338_v51 = vrot.slane %v14921_v33, 4  ;;  %10706 = vpow2.f32 %v2241_v55  ;;  %v1896_v52 = vmax.f32 %v1894_v6, %v1895_v13  ;;  %v778_v28 = vrot.slane %v777_v3, 1  ;;  %v14922_v13 = vld [vmem:[#allocation93_spill] sm:$0xff] }
 0x283   :  { %v1151_v35 = vmax.f32 %v14919_v31, %v14920_v26  ;;  %v965_v37 = vmax.f32 %v14918_v48, %v964_v8  ;;  %v1200_v25 = vsel %vm1045_vm10, %v1148_v24, %v1012_v12  ;;  %v1216_v36 = vsel %vm1046_vm4, %v1148_v24, %v1028_v22 }
 0x284   :  { %v1710_v29 = vmax.f32 %v1708_v43, %v1709_v34  ;;  %v1897_v7 = vrot.slane %v1896_v52, 2  ;;  %v779_v31 = vmax.f32 %v777_v3, %v778_v28  ;;  %v1339_v50 = vmax.f32 %v14921_v33, %v1338_v51  ;;  %v14924_v33 = vld [vmem:[#allocation63_spill] sm:$0xff] }
 0x285   :  { %v1152_v42 = vrot.slane %v1151_v35, 2  ;;  %v966_v15 = vrot.slane %v965_v37, 1  ;;  %v1388_v55 = vsel %vm1233_vm8, %v1336_v47, %v1200_v25  ;;  %v1525_v48 = vmax.f32 %v12731_v54, %v14922_v13 }
 0x286   :  { %v1711_v6 = vrot.slane %v1710_v29, 1  ;;  %v1404_v12 = vsel %vm1234_vm6, %v1336_v47, %v1216_v36  ;;  %v1576_v22 = vsel %vm1421_vm1, %v1524_v63, %v1388_v55  ;;  %v1898_v24 = vmax.f32 %v1896_v52, %v1897_v7 }
 0x287   :  { %v1153_v57 = vmax.f32 %v1151_v35, %v1152_v42  ;;  %v967_v43 = vmax.f32 %v965_v37, %v966_v15  ;;  %v12809_v3 = vpop.eup %10704  ;;  %v1340_v26 = vrot.slane %v1339_v50, 2  ;;  %v1526_v34 = vrot.slane %v1525_v48, 4  ;;  %v14927_v15 = vld [vmem:[#allocation85_spill] sm:$0xff] }
 0x288   :  { %14923 = vst [vmem:[#allocation47_spill] sm:$0xff] %v12809_v3  ;;  %v1712_v8 = vmax.f32 %v1710_v29, %v1711_v6  ;;  %v1637_v35 = vsel %vm14608_vm11, %v14924_v33, -1e+30  ;;  %v12814_v51 = vpop.eup %10706  ;;  %v2266_v54 = vmul.f32 %v12809_v3, %v14914_v11  ;;  %v1592_v47 = vsel %vm1422_vm7, %v1524_v63, %v1404_v12  ;;  %v14950_v3 = vld [vmem:[#allocation117_spill] sm:$0xff] }
 0x289   :  { %14925 = vst [vmem:[#allocation60_spill] sm:$0xff] %v12814_v51  ;;  %v1899_v28 = vrot.slane %v1898_v24, 1  ;;  %v825_v52 = vsel %vm669_vm0, %v779_v31, 0.0  ;;  %v2282_v37 = vmul.f32 %v12814_v51, %v14892_v20  ;;  %v841_v25 = vsel %vm670_vm15, %v779_v31, 0.0 }
 0x28a   :  { %vm14926_vm9 = vcmp.eq.s32.totalorder %v14833_v17, 1  ;;  %v1154_v29 = vrot.slane %v1153_v57, 1  ;;  %v1341_v7 = vmax.f32 %v1339_v50, %v1340_v26  ;;  %v1527_v11 = vmax.f32 %v1525_v48, %v1526_v34  ;;  %v14930_v34 = vld [vmem:[#allocation86_spill] sm:$0xff] }
 0x28b   :  { %v1013_v36 = vsel %vm14926_vm9, %v967_v43, %v825_v52  ;;  %v1900_v42 = vmax.f32 %v1898_v24, %v1899_v28  ;;  %v1713_v55 = vmax.f32 %v14927_v15, %v1637_v35  ;;  %v2298_v63 = vpack.c.bf16 %v2282_v37, %v2266_v54  ;;  %v14928_v24 = vld [vmem:[#allocation146_spill] sm:$0xff]  ;;  %v14931_v15 = vld [vmem:[#allocation157_spill] sm:$0xff] }
 0x28c   :  { %v1764_v6 = vsel %vm1609_vm3, %v1712_v8, %v1576_v22  ;;  %v1780_v13 = vsel %vm14608_vm11, %v1712_v8, %v1592_v47  ;;  %v1825_v20 = vsel %vm14616_vm5, %v14924_v33, -1e+30  ;;  %v1342_v48 = vrot.slane %v1341_v7, 1 }
 0x28d   :  { %v1952_v31 = vsel %vm1797_vm14, %v1900_v42, %v1764_v6  ;;  %v1968_v50 = vsel %vm14616_vm5, %v1900_v42, %v1780_v13  ;;  %v1528_v12 = vrot.slane %v1527_v11, 2  ;;  %2424 = vmatpush.bf16.msra.mxu0 %v2298_v63  ;;  %vm14929_vm12 = vcmp.eq.s32.totalorder %v14848_v59, 1  ;;  %v14932_v6 = vld [vmem:[#allocation112_spill] sm:$0xff] }
 0x28e   :  { %v2140_v22 = vsel %vm1985_vm13, %v14928_v24, %v1952_v31  ;;  %v2156_v8 = vsel %vm14929_vm12, %v14928_v24, %v1968_v50  ;;  %v1714_v26 = vrot.slane %v1713_v55, 4  ;;  %v1901_v35 = vmax.f32 %v14930_v34, %v1825_v20 }
 0x28f   :  { %v2172_v54 = vsub.f32 %v11466_v5, %v2140_v22  ;;  %v2188_v47 = vsub.f32 %v14910_v21, %v2156_v8  ;;  %v1155_v28 = vmax.f32 %v1153_v57, %v1154_v29  ;;  %v1529_v52 = vmax.f32 %v1527_v11, %v1528_v12  ;;  %v14934_v11 = vld [vmem:[#allocation66_spill] sm:$0xff] }
 0x290   :  { %v1715_v37 = vmax.f32 %v1713_v55, %v1714_v26  ;;  %v1902_v42 = vrot.slane %v1901_v35, 4  ;;  %v783_v63 = vrot.slane %v14931_v15, 2  ;;  %v971_v13 = vrot.slane %v14932_v6, 2  ;;  %v14936_v26 = vld [vmem:[#allocation128_spill] sm:$0xff] }
 0x291   :  { %v2213_v31 = vmul.f32 1.442695, %v2172_v54  ;;  %v2245_v51 = vmul.f32 1.442695, %v2188_v47  ;;  %v1029_v50 = vsel %vm858_vm2, %v967_v43, %v841_v25  ;;  %v1343_v24 = vmax.f32 %v1341_v7, %v1342_v48 }
 0x292   :  { %vm14933_vm9 = vcmask 130048   ;;  %v1530_v20 = vrot.slane %v1529_v52, 1  ;;  %v1716_v22 = vrot.slane %v1715_v37, 2  ;;  %v1903_v8 = vmax.f32 %v1901_v35, %v1902_v42 }
 0x293   :  { %7808 = vmatmul.msk.bf16.vlgmr.msra.gmra.mxu0 %vm14933_vm9, %v14861_v30  ;;  %v784_v57 = vmax.f32 %v14931_v15, %v783_v63  ;;  %10708 = vpow2.f32 %v2213_v31  ;;  %v972_v29 = vmax.f32 %v14932_v6, %v971_v13  ;;  %v14935_v55 = vrot.slane %v14934_v11, 4  ;;  %v14937_v13 = vld [vmem:[#allocation87_spill] sm:$0xff] }
 0x294   :  { %v1345_v34 = vrot.slane %v14936_v26, 4  ;;  %10710 = vpow2.f32 %v2245_v51  ;;  %v1201_v43 = vsel %vm1045_vm10, %v1155_v28, %v1013_v36  ;;  %v1717_v25 = vmax.f32 %v1715_v37, %v1716_v22 }
 0x295   :  { %v1158_v12 = vmax.f32 %v14934_v11, %v14935_v55  ;;  %v1904_v7 = vrot.slane %v1903_v8, 2  ;;  %v1531_v48 = vmax.f32 %v1529_v52, %v1530_v20  ;;  %v785_v54 = vrot.slane %v784_v57, 1  ;;  %v14938_v11 = vld [vmem:[#allocation134_spill] sm:$0xff] }
 0x296   :  { %v1346_v47 = vmax.f32 %v14936_v26, %v1345_v34  ;;  %v1217_v42 = vsel %vm1046_vm4, %v1155_v28, %v1029_v50  ;;  %v1718_v15 = vrot.slane %v1717_v25, 1  ;;  %v973_v6 = vrot.slane %v972_v29, 1 }
 0x297   :  { %v1159_v35 = vrot.slane %v1158_v12, 2  ;;  %v1905_v63 = vmax.f32 %v1903_v8, %v1904_v7  ;;  %v12869_v51 = vsel %vm1421_vm1, %v14937_v13, -1e+30  ;;  %v1389_v36 = vsel %vm1233_vm8, %v1343_v24, %v1201_v43  ;;  %v14940_v8 = vld [vmem:[#allocation81_spill] sm:$0xff]  ;;  %v14942_v7 = vld [vmem:[#allocation104_spill] sm:$0xff] }
 0x298   :  { %v1405_v52 = vsel %vm1234_vm6, %v1343_v24, %v1217_v42  ;;  %v1719_v31 = vmax.f32 %v1717_v25, %v1718_v15  ;;  %v1347_v22 = vrot.slane %v1346_v47, 2  ;;  %v1532_v28 = vmax.f32 %v12736_v61, %v14938_v11 }
 0x299   :  { %v1160_v37 = vmax.f32 %v1158_v12, %v1159_v35  ;;  %v1906_v20 = vrot.slane %v1905_v63, 1  ;;  %v12877_v50 = vpop.eup %10708  ;;  %v12882_v55 = vsel %vm1421_vm1, %v14940_v8, -1e+30  ;;  %v1577_v26 = vsel %vm1421_vm1, %v1531_v48, %v1389_v36  ;;  %v14943_v36 = vld [vmem:[#allocation149_spill] sm:$0xff] }
 0x29a   :  { %14939 = vst [vmem:[#allocation119_spill] sm:$0xff] %v12877_v50  ;;  %v1593_v24 = vsel %vm1422_vm7, %v1531_v48, %v1405_v52  ;;  %v786_v12 = vmax.f32 %v784_v57, %v785_v54  ;;  %v12888_v34 = vpop.eup %10710  ;;  %v2268_v43 = vmul.f32 %v12877_v50, %v11466_v5  ;;  %v974_v25 = vmax.f32 %v972_v29, %v973_v6 }
 0x29b   :  { %14941 = vst [vmem:[#allocation61_spill] sm:$0xff] %v12888_v34  ;;  %v1907_v61 = vmax.f32 %v1905_v63, %v1906_v20  ;;  %v1638_v35 = vsel %vm14608_vm11, %v14942_v7, -1e+30  ;;  %v2284_v42 = vmul.f32 %v12888_v34, %v14910_v21  ;;  %v1765_v15 = vsel %vm1609_vm3, %v1719_v31, %v1577_v26 }
 0x29c   :  { %v1781_v57 = vsel %vm14608_vm11, %v1719_v31, %v1593_v24  ;;  %v1161_v48 = vrot.slane %v1160_v37, 1  ;;  %v1348_v29 = vmax.f32 %v1346_v47, %v1347_v22  ;;  %v1533_v63 = vrot.slane %v1532_v28, 4  ;;  %v14945_v24 = vld [vmem:[#allocation131_spill] sm:$0xff] }
 0x29d   :  { %v1953_v54 = vsel %vm1797_vm14, %v1907_v61, %v1765_v15  ;;  %v1969_v5 = vsel %vm14616_vm5, %v1907_v61, %v1781_v57  ;;  %v2300_v6 = vpack.c.bf16 %v2284_v42, %v2268_v43  ;;  %v826_v31 = vsel %vm669_vm0, %v786_v12, 0.0 }
 0x29e   :  { %v2141_v21 = vsel %vm1985_vm13, %v14943_v36, %v1953_v54  ;;  %v2157_v52 = vsel %vm14929_vm12, %v14943_v36, %v1969_v5  ;;  %v842_v47 = vsel %vm670_vm15, %v786_v12, 0.0  ;;  %vm14944_vm9 = vcmp.eq.s32.totalorder %v14833_v17, 1 }
 0x29f   :  { %v2173_v20 = vsub.f32 %v14906_v18, %v2141_v21  ;;  %v2189_v11 = vsub.f32 %v14924_v33, %v2157_v52  ;;  %v1014_v22 = vsel %vm14944_vm9, %v974_v25, %v826_v31  ;;  %2450 = vmatpush.bf16.msra.mxu3 %v2300_v6  ;;  %v1534_v26 = vmax.f32 %v1532_v28, %v1533_v63  ;;  %v14946_v21 = vld [vmem:[#allocation132_spill] sm:$0xff]  ;;  %v14947_v6 = vld [vmem:[#allocation133_spill] sm:$0xff]  ;;  %v14949_v31 = vld [vmem:[#allocation107_spill] sm:$0xff] }
 0x2a0   :  { %v1720_v43 = vmax.f32 %v14945_v24, %v1638_v35  ;;  %v1826_v61 = vsel %vm14616_vm5, %v14942_v7, -1e+30  ;;  %v2014_v42 = vsel %vm14929_vm12, %v14942_v7, -1e+30  ;;  %v1162_v54 = vmax.f32 %v1160_v37, %v1161_v48  ;;  %v14948_v35 = vld [vmem:[#allocation158_spill] sm:$0xff] }
 0x2a1   :  { %v2215_v15 = vmul.f32 1.442695, %v2173_v20  ;;  %v2247_v57 = vmul.f32 1.442695, %v2189_v11  ;;  %v1349_v5 = vrot.slane %v1348_v29, 1  ;;  %v1535_v12 = vrot.slane %v1534_v26, 2 }
 0x2a2   :  { %v1721_v36 = vrot.slane %v1720_v43, 4  ;;  %v1908_v52 = vmax.f32 %v14946_v21, %v1826_v61  ;;  %v2096_v28 = vmax.f32 %v14947_v6, %v2014_v42  ;;  %v797_v63 = vrot.slane %v14948_v35, 2 }
 0x2a3   :  { %10712 = vpow2.f32 %v2215_v15  ;;  %v985_v24 = vrot.slane %v14949_v31, 2  ;;  %v14951_v58 = vrot.slane %v14950_v3, 4  ;;  %vm14952_vm9 = vcmask 130048  }
 0x2a4   :  { %7810 = vmatmul.msk.bf16.vlgmr.msra.gmra.mxu3 %vm14952_vm9, %v14861_v30  ;;  %10714 = vpow2.f32 %v2247_v57  ;;  %v1536_v37 = vmax.f32 %v1534_v26, %v1535_v12  ;;  %v1722_v48 = vmax.f32 %v1720_v43, %v1721_v36  ;;  %v1909_v20 = vrot.slane %v1908_v52, 4  ;;  %vm14956_vm9 = vmmov %vm14929_vm12 }
 0x2a5   :  { %v1172_v1 = vmax.f32 %v14950_v3, %v14951_v58  ;;  %v2097_v11 = vrot.slane %v2096_v28, 4  ;;  %v798_v61 = vmax.f32 %v14948_v35, %v797_v63  ;;  %v986_v42 = vmax.f32 %v14949_v31, %v985_v24 }
 0x2a6   :  { %v1030_v21 = vsel %vm858_vm2, %v974_v25, %v842_v47  ;;  %v1537_v6 = vrot.slane %v1536_v37, 1  ;;  %v1723_v34 = vrot.slane %v1722_v48, 2  ;;  %v1910_v50 = vmax.f32 %v1908_v52, %v1909_v20 }
 0x2a7   :  { %v1173_v15 = vrot.slane %v1172_v1, 2  ;;  %v2098_v58 = vmax.f32 %v2096_v28, %v2097_v11  ;;  %v799_v3 = vrot.slane %v798_v61, 1  ;;  %v1359_v57 = vrot.slane %v14953_v39, 4 }
 0x2a8   :  { %v1350_v26 = vmax.f32 %v1348_v29, %v1349_v5  ;;  %v1724_v43 = vmax.f32 %v1722_v48, %v1723_v34  ;;  %v1911_v12 = vrot.slane %v1910_v50, 2  ;;  %v987_v36 = vrot.slane %v986_v42, 1 }
 0x2a9   :  { %v1174_v62 = vmax.f32 %v1172_v1, %v1173_v15  ;;  %v12940_v27 = vpop.eup %10712  ;;  %v1202_v35 = vsel %vm1045_vm10, %v1162_v54, %v1014_v22  ;;  %v1218_v25 = vsel %vm1046_vm4, %v1162_v54, %v1030_v21  ;;  %v1538_v47 = vmax.f32 %v1536_v37, %v1537_v6 }
 0x2aa   :  { %v2099_v63 = vrot.slane %v2098_v58, 2  ;;  %v12946_v52 = vpop.eup %10714  ;;  %v2269_v1 = vmul.f32 %v12940_v27, %v14906_v18  ;;  %v1725_v28 = vrot.slane %v1724_v43, 1  ;;  %v800_v29 = vmax.f32 %v798_v61, %v799_v3  ;;  %v14954_v3 = vld [vmem:[#allocation114_spill] sm:$0xff] }
 0x2ab   :  { %v1175_v34 = vrot.slane %v1174_v62, 1  ;;  %v2285_v5 = vmul.f32 %v12946_v52, %v14924_v33  ;;  %v1912_v31 = vmax.f32 %v1910_v50, %v1911_v12  ;;  %v1360_v22 = vmax.f32 %v14953_v39, %v1359_v57 }
 0x2ac   :  { %v2100_v24 = vmax.f32 %v2098_v58, %v2099_v63  ;;  %v1390_v54 = vsel %vm1233_vm8, %v1350_v26, %v1202_v35  ;;  %v1406_v37 = vsel %vm1234_vm6, %v1350_v26, %v1218_v25  ;;  %v1726_v48 = vmax.f32 %v1724_v43, %v1725_v28  ;;  %v14955_v43 = vld [vmem:[#allocation109_spill] sm:$0xff] }
 0x2ad   :  { %v988_v20 = vmax.f32 %v986_v42, %v987_v36  ;;  %v2301_v11 = vpack.c.bf16 %v2285_v5, %v2269_v1  ;;  %v1578_v18 = vsel %vm1421_vm1, %v1538_v47, %v1390_v54  ;;  %v1913_v61 = vrot.slane %v1912_v31, 1  ;;  %v14957_v28 = vld [vmem:[#allocation101_spill] sm:$0xff]  ;;  %v14958_v5 = vld [vmem:[#allocation102_spill] sm:$0xff] }
 0x2ae   :  { %v2101_v15 = vrot.slane %v2100_v24, 1  ;;  %v1594_v33 = vsel %vm1422_vm7, %v1538_v47, %v1406_v37  ;;  %v1766_v39 = vsel %vm1609_vm3, %v1726_v48, %v1578_v18  ;;  %v828_v50 = vsel %vm669_vm0, %v800_v29, 0.0 }
 0x2af   :  { %v1176_v21 = vmax.f32 %v1174_v62, %v1175_v34  ;;  %2463 = vmatpush.bf16.msra.mxu1 %v2301_v11  ;;  %v1782_v42 = vsel %vm14608_vm11, %v1726_v48, %v1594_v33  ;;  %v1914_v6 = vmax.f32 %v1912_v31, %v1913_v61  ;;  %v1361_v58 = vrot.slane %v1360_v22, 2  ;;  %v14960_v61 = vld [vmem:[#allocation105_spill] sm:$0xff] }
 0x2b0   :  { %v1546_v57 = vmax.f32 %v12869_v51, %v14954_v3  ;;  %v2102_v26 = vmax.f32 %v2100_v24, %v2101_v15  ;;  %v1640_v12 = vsel %vm14608_vm11, %v14955_v43, -1e+30  ;;  %v1828_v36 = vsel %vm14616_vm5, %v14955_v43, -1e+30 }
 0x2b1   :  { %v2016_v62 = vsel %vm14929_vm12, %v14955_v43, -1e+30  ;;  %v1954_v35 = vsel %vm1797_vm14, %v1914_v6, %v1766_v39  ;;  %v1970_v25 = vsel %vm14616_vm5, %v1914_v6, %v1782_v42  ;;  %v1362_v51 = vmax.f32 %v1360_v22, %v1361_v58 }
 0x2b2   :  { %v1547_v47 = vrot.slane %v1546_v57, 4  ;;  %v2142_v63 = vsel %vm1985_vm13, %v2102_v26, %v1954_v35  ;;  %v2158_v1 = vsel %vm14956_vm9, %v2102_v26, %v1970_v25  ;;  %v1734_v34 = vmax.f32 %v14957_v28, %v1640_v12 }
 0x2b3   :  { %v1922_v31 = vmax.f32 %v14958_v5, %v1828_v36  ;;  %vm14959_vm12 = vcmask 130048   ;;  %v2174_v24 = vsub.f32 %v14907_v40, %v2142_v63  ;;  %v2190_v54 = vsub.f32 %v14942_v7, %v2158_v1  ;;  %v14962_v63 = vld [vmem:[#allocation159_spill] sm:$0xff]  ;;  %v14963_v1 = vld [vmem:[#allocation161_spill] sm:$0xff]  ;;  %v14964_v5 = vld [vmem:[#allocation80_spill] sm:$0xff] }
 0x2b4   :  { %7811 = vmatmul.msk.bf16.vlgmr.msra.gmra.mxu1 %vm14959_vm12, %v14861_v30  ;;  %v1363_v37 = vrot.slane %v1362_v51, 1  ;;  %v1548_v22 = vmax.f32 %v1546_v57, %v1547_v47  ;;  %v844_v48 = vsel %vm670_vm15, %v800_v29, 0.0  ;;  %v1735_v11 = vrot.slane %v1734_v34, 4 }
 0x2b5   :  { %v1923_v18 = vrot.slane %v1922_v31, 4  ;;  %v2110_v15 = vmax.f32 %v14960_v61, %v2016_v62  ;;  %v2217_v33 = vmul.f32 1.442695, %v2174_v24  ;;  %v2249_v39 = vmul.f32 1.442695, %v2190_v54 }
 0x2b6   :  { %vm14961_vm9 = vcmp.eq.s32.totalorder %v14833_v17, 1  ;;  %v1549_v6 = vrot.slane %v1548_v22, 2  ;;  %v1032_v58 = vsel %vm858_vm2, %v988_v20, %v844_v48  ;;  %v1736_v3 = vmax.f32 %v1734_v34, %v1735_v11  ;;  %v14966_v48 = vld [vmem:[#allocation92_spill] sm:$0xff] }
 0x2b7   :  { %v1016_v42 = vsel %vm14961_vm9, %v988_v20, %v828_v50  ;;  %v1924_v26 = vmax.f32 %v1922_v31, %v1923_v18  ;;  %v2111_v12 = vrot.slane %v2110_v15, 4  ;;  %10716 = vpow2.f32 %v2217_v33 }
 0x2b8   :  { %v1204_v29 = vsel %vm1045_vm10, %v1176_v21, %v1016_v42  ;;  %v1364_v57 = vmax.f32 %v1362_v51, %v1363_v37  ;;  %v1550_v36 = vmax.f32 %v1548_v22, %v1549_v6  ;;  %10718 = vpow2.f32 %v2249_v39 }
 0x2b9   :  { %v1737_v62 = vrot.slane %v1736_v3, 2  ;;  %v1925_v35 = vrot.slane %v1924_v26, 2  ;;  %v2112_v25 = vmax.f32 %v2110_v15, %v2111_v12  ;;  %v804_v50 = vrot.slane %v14962_v63, 2 }
 0x2ba   :  { %v1551_v47 = vrot.slane %v1550_v36, 1  ;;  %v992_v28 = vrot.slane %v14963_v1, 2  ;;  %v14965_v20 = vrot.slane %v14964_v5, 4  ;;  %v1366_v11 = vrot.slane %v14966_v48, 4 }
 0x2bb   :  { %v1738_v31 = vmax.f32 %v1736_v3, %v1737_v62  ;;  %v1926_v24 = vmax.f32 %v1924_v26, %v1925_v35  ;;  %v2113_v54 = vrot.slane %v2112_v25, 2  ;;  %v1220_v51 = vsel %vm1046_vm4, %v1176_v21, %v1032_v58 }
 0x2bc   :  { %v1179_v34 = vmax.f32 %v14964_v5, %v14965_v20  ;;  %v1392_v37 = vsel %vm1233_vm8, %v1364_v57, %v1204_v29  ;;  %v1552_v22 = vmax.f32 %v1550_v36, %v1551_v47  ;;  %v1367_v39 = vmax.f32 %v14966_v48, %v1366_v11  ;;  %v14968_v5 = vld [vmem:[#allocation125_spill] sm:$0xff] }
 0x2bd   :  { %v1739_v61 = vrot.slane %v1738_v31, 1  ;;  %v1927_v15 = vrot.slane %v1926_v24, 1  ;;  %v2114_v33 = vmax.f32 %v2112_v25, %v2113_v54  ;;  %v13012_v42 = vpop.eup %10716  ;;  %v1408_v6 = vsel %vm1234_vm6, %v1364_v57, %v1220_v51  ;;  %v14970_v51 = vld [vmem:[#allocation143_spill] sm:$0xff] }
 0x2be   :  { %v1180_v18 = vrot.slane %v1179_v34, 2  ;;  %v1580_v3 = vsel %vm1421_vm1, %v1552_v22, %v1392_v37  ;;  %v805_v21 = vmax.f32 %v14962_v63, %v804_v50  ;;  %v993_v58 = vmax.f32 %v14963_v1, %v992_v28  ;;  %v13020_v26 = vpop.eup %10718  ;;  %v14967_v28 = vld [vmem:[#allocation110_spill] sm:$0xff] }
 0x2bf   :  { %v2270_v12 = vmul.f32 %v13012_v42, %v14907_v40  ;;  %v1740_v29 = vmax.f32 %v1738_v31, %v1739_v61  ;;  %v1928_v36 = vmax.f32 %v1926_v24, %v1927_v15  ;;  %v2115_v62 = vrot.slane %v2114_v33, 1  ;;  %v14971_v37 = vld [vmem:[#allocation90_spill] sm:$0xff] }
 0x2c0   :  { %v2286_v35 = vmul.f32 %v13020_v26, %v14942_v7  ;;  %v1596_v57 = vsel %vm1422_vm7, %v1552_v22, %v1408_v6  ;;  %v1181_v25 = vmax.f32 %v1179_v34, %v1180_v18  ;;  %v1368_v47 = vrot.slane %v1367_v39, 2  ;;  %v14972_v22 = vld [vmem:[#allocation124_spill] sm:$0xff] }
 0x2c1   :  { %v1768_v63 = vsel %vm1609_vm3, %v1740_v29, %v1580_v3  ;;  %v1784_v50 = vsel %vm14608_vm11, %v1740_v29, %v1596_v57  ;;  %v2116_v1 = vmax.f32 %v2114_v33, %v2115_v62  ;;  %v1553_v40 = vmax.f32 %v12882_v55, %v14967_v28 }
 0x2c2   :  { %v997_v20 = vrot.slane %v14968_v5, 4  ;;  %v2302_v31 = vpack.c.bf16 %v2286_v35, %v2270_v12  ;;  %v1956_v7 = vsel %vm1797_vm14, %v1928_v36, %v1768_v63  ;;  %v1972_v34 = vsel %vm14616_vm5, %v1928_v36, %v1784_v50  ;;  %v14973_v12 = vld [vmem:[#allocation103_spill] sm:$0xff]  ;;  %v14974_v35 = vld [vmem:[#allocation98_spill] sm:$0xff] }
 0x2c3   :  { %v2144_v24 = vsel %vm1985_vm13, %v2116_v1, %v1956_v7  ;;  %vm14969_vm12 = vcmp.eq.s32.totalorder %v14848_v59, 1  ;;  %v806_v48 = vrot.slane %v805_v21, 1  ;;  %v994_v11 = vrot.slane %v993_v58, 1 }
 0x2c4   :  { %v2160_v54 = vsel %vm14969_vm12, %v2116_v1, %v1972_v34  ;;  %v1184_v55 = vmax.f32 %v14971_v37, %v14970_v51  ;;  %v1250_v18 = vsel %vm1233_vm8, %v14972_v22, -1e+30  ;;  %2476 = vmatpush.bf16.msrb.mxu0 %v2302_v31  ;;  %v2176_v61 = vsub.f32 %v14937_v13, %v2144_v24  ;;  %v14977_v24 = vld [vmem:[#allocation144_spill] sm:$0xff] }
 0x2c5   :  { %v2192_v15 = vsub.f32 %v14955_v43, %v2160_v54  ;;  %v1182_v33 = vrot.slane %v1181_v25, 1  ;;  %v1369_v6 = vmax.f32 %v1367_v39, %v1368_v47  ;;  %v1554_v3 = vrot.slane %v1553_v40, 4  ;;  %v14976_v47 = vld [vmem:[#allocation99_spill] sm:$0xff] }
 0x2c6   :  { %v1641_v29 = vsel %vm14608_vm11, %v14973_v12, -1e+30  ;;  %v2221_v36 = vmul.f32 1.442695, %v2176_v61  ;;  %v1829_v63 = vsel %vm14616_vm5, %v14973_v12, -1e+30  ;;  %v13058_v50 = vmax.f32 %v14968_v5, %v997_v20 }
 0x2c7   :  { %v2253_v62 = vmul.f32 1.442695, %v2192_v15  ;;  %v1741_v57 = vmax.f32 %v14974_v35, %v1641_v29  ;;  %v807_v1 = vmax.f32 %v805_v21, %v806_v48  ;;  %v995_v28 = vmax.f32 %v993_v58, %v994_v11 }
 0x2c8   :  { %v1555_v31 = vmax.f32 %v1553_v40, %v1554_v3  ;;  %vm14975_vm9 = vcmask 130048   ;;  %10720 = vpow2.f32 %v2221_v36  ;;  %v1929_v7 = vmax.f32 %v14976_v47, %v1829_v63  ;;  %v14978_v40 = vld [vmem:[#allocation100_spill] sm:$0xff] }
 0x2c9   :  { %7812 = vmatmul.msk.bf16.vlgmr.msrb.gmra.mxu0 %vm14975_vm9, %v14861_v30  ;;  %v1742_v39 = vrot.slane %v1741_v57, 4  ;;  %v2017_v34 = vsel %vm14969_vm12, %v14973_v12, -1e+30  ;;  %v1372_v54 = vmax.f32 %v1250_v18, %v14977_v24  ;;  %10722 = vpow2.f32 %v2253_v62  ;;  %v14980_v24 = vld [vmem:[#allocation160_spill] sm:$0xff] }
 0x2ca   :  { %v1370_v51 = vrot.slane %v1369_v6, 1  ;;  %v1556_v5 = vrot.slane %v1555_v31, 2  ;;  %v1183_v20 = vmax.f32 %v1181_v25, %v1182_v33  ;;  %v1930_v58 = vrot.slane %v1929_v7, 4 }
 0x2cb   :  { %v1743_v21 = vmax.f32 %v1741_v57, %v1742_v39  ;;  %v2117_v48 = vmax.f32 %v14978_v40, %v2017_v34  ;;  %v1185_v11 = vrot.slane %v1184_v55, 4  ;;  %v829_v37 = vsel %vm669_vm0, %v807_v1, 0.0 }
 0x2cc   :  { %v845_v61 = vsel %vm670_vm15, %v807_v1, 0.0  ;;  %v1557_v15 = vmax.f32 %v1555_v31, %v1556_v5  ;;  %vm14979_vm9 = vcmp.eq.s32.totalorder %v14833_v17, 1  ;;  %v1931_v29 = vmax.f32 %v1929_v7, %v1930_v58 }
 0x2cd   :  { %v1017_v3 = vsel %vm14979_vm9, %v995_v28, %v829_v37  ;;  %v1744_v18 = vrot.slane %v1743_v21, 2  ;;  %v2118_v36 = vrot.slane %v2117_v48, 4  ;;  %v1033_v25 = vsel %vm858_vm2, %v995_v28, %v845_v61 }
 0x2ce   :  { %v1371_v33 = vmax.f32 %v1369_v6, %v1370_v51  ;;  %v1558_v62 = vrot.slane %v1557_v15, 1  ;;  %v1373_v35 = vrot.slane %v1372_v54, 4  ;;  %v13076_v57 = vpop.eup %10720  ;;  %v1205_v63 = vsel %vm1045_vm10, %v1183_v20, %v1017_v3 }
 0x2cf   :  { %v1745_v39 = vmax.f32 %v1743_v21, %v1744_v18  ;;  %v1932_v1 = vrot.slane %v1931_v29, 2  ;;  %v2119_v31 = vmax.f32 %v2117_v48, %v2118_v36  ;;  %v13080_v47 = vpop.eup %10722  ;;  %v2272_v7 = vmul.f32 %v13076_v57, %v14937_v13 }
 0x2d0   :  { %v1559_v34 = vmax.f32 %v1557_v15, %v1558_v62  ;;  %v811_v5 = vrot.slane %v14980_v24, 2  ;;  %v1186_v28 = vmax.f32 %v1184_v55, %v1185_v11  ;;  %v2288_v6 = vmul.f32 %v13080_v47, %v14955_v43  ;;  %v14981_v62 = vld [vmem:[#allocation140_spill] sm:$0xff] }
 0x2d1   :  { %v1746_v51 = vrot.slane %v1745_v39, 1  ;;  %v1933_v58 = vmax.f32 %v1931_v29, %v1932_v1  ;;  %v2120_v40 = vrot.slane %v2119_v31, 2  ;;  %v1438_v21 = vsel %vm1421_vm1, %v14972_v22, -1e+30 }
 0x2d2   :  { %v1221_v48 = vsel %vm1046_vm4, %v1183_v20, %v1033_v25  ;;  %v1393_v13 = vsel %vm1233_vm8, %v1371_v33, %v1205_v63  ;;  %v1374_v37 = vmax.f32 %v1372_v54, %v1373_v35  ;;  %v2304_v61 = vpack.c.bf16 %v2288_v6, %v2272_v7 }
 0x2d3   :  { %v1747_v15 = vmax.f32 %v1745_v39, %v1746_v51  ;;  %v1934_v55 = vrot.slane %v1933_v58, 1  ;;  %v2121_v11 = vmax.f32 %v2119_v31, %v2120_v40  ;;  %v1409_v43 = vsel %vm1234_vm6, %v1371_v33, %v1221_v48 }
 0x2d4   :  { %v812_v3 = vmax.f32 %v14980_v24, %v811_v5  ;;  %v999_v18 = vrot.slane %v13058_v50, 2  ;;  %v1187_v29 = vrot.slane %v1186_v28, 2  ;;  %2502 = vmatpush.bf16.msrb.mxu3 %v2304_v61  ;;  %v1581_v20 = vsel %vm1421_vm1, %v1559_v34, %v1393_v13  ;;  %v14984_v13 = vld [vmem:[#allocation135_spill] sm:$0xff] }
 0x2d5   :  { %v1597_v36 = vsel %vm1422_vm7, %v1559_v34, %v1409_v43  ;;  %v1935_v54 = vmax.f32 %v1933_v58, %v1934_v55  ;;  %v2122_v25 = vrot.slane %v2121_v11, 1  ;;  %v1454_v35 = vsel %vm1422_vm7, %v14981_v62, -1e+30  ;;  %v14985_v43 = vld [vmem:[#allocation138_spill] sm:$0xff] }
 0x2d6   :  { %v1769_v33 = vsel %vm1609_vm3, %v1747_v15, %v1581_v20  ;;  %v1785_v63 = vsel %vm14608_vm11, %v1747_v15, %v1597_v36  ;;  %v1375_v39 = vrot.slane %v1374_v37, 2  ;;  %v1560_v34 = vmax.f32 %v1438_v21, %v1454_v35 }
 0x2d7   :  { %v1957_v1 = vsel %vm1797_vm14, %v1935_v54, %v1769_v33  ;;  %v1973_v31 = vsel %vm14616_vm5, %v1935_v54, %v1785_v63  ;;  %v2123_v7 = vmax.f32 %v2121_v11, %v2122_v25  ;;  %v813_v24 = vrot.slane %v812_v3, 1 }
 0x2d8   :  { %v1000_v5 = vmax.f32 %v13058_v50, %v999_v18  ;;  %v1188_v6 = vmax.f32 %v1186_v28, %v1187_v29  ;;  %v1642_v51 = vsel %vm14608_vm11, %v14981_v62, -1e+30  ;;  %vm14982_vm12 = vcmask 130048  }
 0x2d9   :  { %7814 = vmatmul.msk.bf16.vlgmr.msrb.gmra.mxu3 %vm14982_vm12, %v14861_v30  ;;  %v2145_v58 = vsel %vm1985_vm13, %v2123_v7, %v1957_v1  ;;  %vm14983_vm9 = vcmp.eq.s32.totalorder %v14848_v59, 1  ;;  %v1561_v48 = vrot.slane %v1560_v34, 4  ;;  %v1748_v21 = vmax.f32 %v14984_v13, %v1642_v51 }
 0x2da   :  { %v2161_v40 = vsel %vm14983_vm9, %v2123_v7, %v1973_v31  ;;  %v2177_v61 = vsub.f32 %v14940_v8, %v2145_v58  ;;  %v1376_v28 = vmax.f32 %v1374_v37, %v1375_v39  ;;  %v1830_v15 = vsel %vm14616_vm5, %v14981_v62, -1e+30  ;;  %vm14986_vm12 = vmmov %vm14983_vm9  ;;  %v14987_v37 = vld [vmem:[#allocation139_spill] sm:$0xff] }
 0x2db   :  { %v2193_v50 = vsub.f32 %v14973_v12, %v2161_v40  ;;  %v1562_v55 = vmax.f32 %v1560_v34, %v1561_v48  ;;  %v1749_v11 = vrot.slane %v1748_v21, 4  ;;  %v1936_v18 = vmax.f32 %v14985_v43, %v1830_v15  ;;  %v13136_v34 = vpop.f32.mrf.mxu2 }
 0x2dc   :  { %v2018_v29 = vsel %vm14986_vm12, %v14981_v62, -1e+30  ;;  %v2223_v20 = vmul.f32 1.442695, %v2177_v61  ;;  %v1001_v54 = vrot.slane %v1000_v5, 1  ;;  %v1189_v25 = vrot.slane %v1188_v6, 1 }
 0x2dd   :  { %v2255_v36 = vmul.f32 1.442695, %v2193_v50  ;;  %v1563_v35 = vrot.slane %v1562_v55, 2  ;;  %v1750_v33 = vmax.f32 %v1748_v21, %v1749_v11  ;;  %v1937_v63 = vrot.slane %v1936_v18, 4  ;;  %14988 = vst [vmem:[#allocation150_spill] sm:$0xff] %v13136_v34 }
 0x2de   :  { %v2124_v39 = vmax.f32 %v14987_v37, %v2018_v29  ;;  %10724 = vpow2.f32 %v2223_v20  ;;  %v814_v1 = vmax.f32 %v812_v3, %v813_v24  ;;  %v1377_v31 = vrot.slane %v1376_v28, 1 }
 0x2df   :  { %v2308_v7 = vpack.c.bf16 %v12475_v16, %v12469_v53  ;;  %10726 = vpow2.f32 %v2255_v36  ;;  %v1564_v51 = vmax.f32 %v1562_v55, %v1563_v35  ;;  %v1751_v58 = vrot.slane %v1750_v33, 2 }
 0x2e0   :  { %v1938_v40 = vmax.f32 %v1936_v18, %v1937_v63  ;;  %v1002_v48 = vmax.f32 %v1000_v5, %v1001_v54  ;;  %v1190_v13 = vmax.f32 %v1188_v6, %v1189_v25  ;;  %v2125_v61 = vrot.slane %v2124_v39, 4 }
 0x2e1   :  { %2554 = vmatpush.bf16.msra.mxu3 %v2308_v7  ;;  %v2312_v21 = vpack.c.bf16 %v12676_v38, %v12671_v19  ;;  %v1565_v50 = vrot.slane %v1564_v51, 1  ;;  %v1752_v15 = vmax.f32 %v1750_v33, %v1751_v58  ;;  %vm330_vm9 = vcmp.gt.f32.partialorder %v13136_v34, 0.0 }
 0x2e2   :  { %v1939_v3 = vrot.slane %v1938_v40, 2  ;;  %v830_v53 = vsel %vm669_vm0, %v814_v1, 0.0  ;;  %v1378_v16 = vmax.f32 %v1376_v28, %v1377_v31  ;;  %v2126_v24 = vmax.f32 %v2124_v39, %v2125_v61 }
 0x2e3   :  { %v331_v55 = vsel %vm330_vm9, %v13136_v34, 1.0  ;;  %v846_v5 = vsel %vm670_vm15, %v814_v1, 0.0  ;;  %v1566_v6 = vmax.f32 %v1564_v51, %v1565_v50  ;;  %v1753_v11 = vrot.slane %v1752_v15, 1  ;;  %v13164_v39 = vpop.f32.mrf.mxu2 }
 0x2e4   :  { %v1940_v43 = vmax.f32 %v1938_v40, %v1939_v3  ;;  %333 = vrot.lane.b32.xlu1 %v331_v55, %s11124_s3  ;;  %v13146_v19 = vpop.eup %10724  ;;  %vm14989_vm12 = vcmp.eq.s32.totalorder %v14833_v17, 1  ;;  %v1034_v28 = vsel %vm858_vm2, %v1002_v48, %v846_v5  ;;  %v2127_v18 = vrot.slane %v2126_v24, 2 }
 0x2e5   :  { %2606 = vmatpush.bf16.msrb.mxu3 %v2312_v21  ;;  %v1018_v38 = vsel %vm14989_vm12, %v1002_v48, %v830_v53  ;;  %v13152_v29 = vpop.eup %10726  ;;  %v2273_v20 = vmul.f32 %v13146_v19, %v14940_v8  ;;  %v1222_v54 = vsel %vm1046_vm4, %v1190_v13, %v1034_v28  ;;  %v1754_v25 = vmax.f32 %v1752_v15, %v1753_v11  ;;  %v14991_v48 = vld [vmem:[#allocation72_spill] sm:$0xff]  ;;  %v14993_v53 = vld [vmem:[#allocation65_spill] sm:$0xff] }
 0x2e6   :  { %v1206_v36 = vsel %vm1045_vm10, %v1190_v13, %v1018_v38  ;;  %v2289_v35 = vmul.f32 %v13152_v29, %v14973_v12  ;;  %v1941_v63 = vrot.slane %v1940_v43, 1  ;;  %v2128_v37 = vmax.f32 %v2126_v24, %v2127_v18  ;;  %v14996_v38 = vld [vmem:[#allocation61_spill] sm:$0xff] }
 0x2e7   :  { %v1394_v33 = vsel %vm1233_vm8, %v1378_v16, %v1206_v36  ;;  %v1410_v8 = vsel %vm1234_vm6, %v1378_v16, %v1222_v54  ;;  %vm14990_vm9 = vcmask 130048   ;;  %v2309_v13 = vpack.c.bf16 %v14991_v48, %v12538_v60  ;;  %v14994_v16 = vld [vmem:[#allocation69_spill] sm:$0xff] }
 0x2e8   :  { %v1582_v1 = vsel %vm1421_vm1, %v1566_v6, %v1394_v33  ;;  %v2305_v31 = vpack.c.bf16 %v2289_v35, %v2273_v20  ;;  %v1598_v7 = vsel %vm1422_vm7, %v1566_v6, %v1410_v8  ;;  %v1942_v51 = vmax.f32 %v1940_v43, %v1941_v63  ;;  %v14995_v43 = vld [vmem:[#allocation119_spill] sm:$0xff] }
 0x2e9   :  { %v2129_v58 = vrot.slane %v2128_v37, 1  ;;  %7818 = vmatmul.msk.bf16.vlgmr.msra.gmra.mxu3 %vm14990_vm9, %v14861_v30  ;;  %v1770_v12 = vsel %vm1609_vm3, %v1754_v25, %v1582_v1  ;;  %v1786_v40 = vsel %vm14608_vm11, %v1754_v25, %v1598_v7  ;;  %vm14992_vm12 = vcmp.eq.s32.totalorder %v14848_v59, 1 }
 0x2ea   :  { %2515 = vmatpush.bf16.msrb.mxu1 %v2305_v31  ;;  %v1958_v61 = vsel %vm1797_vm14, %v1942_v51, %v1770_v12  ;;  %v1974_v21 = vsel %vm14616_vm5, %v1942_v51, %v1786_v40  ;;  %v2313_v24 = vpack.c.bf16 %v14994_v16, %v14993_v53  ;;  %v2316_v28 = vpack.c.bf16 %v14996_v38, %v14995_v43 }
 0x2eb   :  { %v2130_v50 = vmax.f32 %v2128_v37, %v2129_v58  ;;  %v13194_v5 = vpop.f32.mrf.mxu2  ;;  %v671_v54 = vsel %vm669_vm0, %v13164_v39, -1e+30  ;;  %v1047_v51 = vsel %vm1045_vm10, %v13164_v39, -1e+30  ;;  %v1423_v53 = vsel %vm1421_vm1, %v13164_v39, -1e+30 }
 0x2ec   :  { %v687_v18 = vsel %vm670_vm15, %v13194_v5, -1e+30  ;;  %v875_v36 = vsel %vm858_vm2, %v13194_v5, -1e+30  ;;  %2658 = vmatpush.bf16.msra.mxu3 %v2316_v28  ;;  %v1063_v8 = vsel %vm1046_vm4, %v13194_v5, -1e+30 }
 0x2ed   :  { %v2146_v15 = vsel %vm1985_vm13, %v2130_v50, %v1958_v61  ;;  %v2162_v3 = vsel %vm14992_vm12, %v2130_v50, %v1974_v21  ;;  %7815 = vmatmul.msk.bf16.vlgmr.msrb.gmra.mxu1 %vm14990_vm9, %v14861_v30  ;;  %vm14997_vm12 = vcmp.eq.s32.totalorder %v14833_v17, 1  ;;  %v703_v35 = vmax.f32 %v671_v54, %v687_v18  ;;  %v15000_v61 = vld [vmem:[#allocation62_spill] sm:$0xff]  ;;  %v15001_v21 = vld [vmem:[#allocation47_spill] sm:$0xff]  ;;  %v15002_v50 = vld [vmem:[#allocation60_spill] sm:$0xff] }
 0x2ee   :  { %2567 = vmatpush.bf16.msra.mxu1 %v2309_v13  ;;  %v2178_v60 = vsub.f32 %v14972_v22, %v2146_v15  ;;  %v2194_v55 = vsub.f32 %v14981_v62, %v2162_v3  ;;  %v859_v25 = vsel %vm14997_vm12, %v13164_v39, -1e+30  ;;  %v1079_v12 = vmax.f32 %v1047_v51, %v1063_v8  ;;  %v14999_v13 = vld [vmem:[#allocation48_spill] sm:$0xff]  ;;  %vm15003_vm12 = vmmov %vm14990_vm9 }
 0x2ef   :  { %v891_v37 = vmax.f32 %v859_v25, %v875_v36  ;;  %v704_v58 = vrot.slane %v703_v35, 4  ;;  %v1251_v40 = vsel %vm1234_vm6, %v13194_v5, -1e+30  ;;  %v2314_v15 = vpack.c.bf16 %v15002_v50, %v15001_v21 }
 0x2f0   :  { %v2225_v6 = vmul.f32 1.442695, %v2178_v60  ;;  %v2257_v11 = vmul.f32 1.442695, %v2194_v55  ;;  %v1611_v16 = vsel %vm1609_vm3, %v13164_v39, -1e+30 }
 0x2f1   :  { %v892_v3 = vrot.slane %v891_v37, 4  ;;  %v13251_v60 = vsel %vm1797_vm14, %v13164_v39, -1e+30  ;;  %v13256_v55 = vsel %vm1985_vm13, %v13164_v39, -1e+30 }
 0x2f2   :  { %2619 = vmatpush.bf16.msrb.mxu1 %v2313_v24  ;;  %10728 = vpow2.f32 %v2225_v6  ;;  %v2317_v24 = vpack.c.bf16 %v12946_v52, %v12940_v27  ;;  %v705_v27 = vmax.f32 %v703_v35, %v704_v58  ;;  %v1080_v52 = vrot.slane %v1079_v12, 4 }
 0x2f3   :  { %10730 = vpow2.f32 %v2257_v11  ;;  %v13212_v33 = vpop.f32.mrf.mxu2  ;;  %v1439_v11 = vsel %vm1422_vm7, %v13194_v5, -1e+30  ;;  %v893_v18 = vmax.f32 %v891_v37, %v892_v3 }
 0x2f4   :  { %14998 = vst [vmem:[#allocation120_spill] sm:$0xff] %v13212_v33  ;;  %v675_v43 = vsel %vm669_vm0, %v13212_v33, -1e+30  ;;  %v1051_v35 = vsel %vm1045_vm10, %v13212_v33, -1e+30  ;;  %v706_v21 = vrot.slane %v705_v27, 2 }
 0x2f5   :  { %v1239_v37 = vsel %vm1233_vm8, %v13212_v33, -1e+30  ;;  %v13296_v51 = vsel %vm1609_vm3, %v13212_v33, -1e+30  ;;  %v894_v50 = vrot.slane %v893_v18, 2 }
 0x2f8   :  { %v13214_v63 = vpop.eup %10728 }
 0x2f9   :  { %v13219_v1 = vpop.eup %10730  ;;  %v2274_v31 = vmul.f32 %v13214_v63, %v14972_v22  ;;  %7822 = vmatmul.msk.bf16.vlgmr.msrb.gmra.mxu3 %vm14990_vm9, %v14861_v30  ;;  %v2310_v22 = vpack.c.bf16 %v15000_v61, %v14999_v13  ;;  %vm15004_vm9 = vcmp.eq.s32.totalorder %v14833_v17, 1  ;;  %v13311_v13 = vsel %vm1985_vm13, %v13212_v33, -1e+30 }
 0x2fa   :  { %v2290_v7 = vmul.f32 %v13219_v1, %v14981_v62  ;;  %v1235_v62 = vsel %vm1233_vm8, %v13164_v39, -1e+30  ;;  %v863_v38 = vsel %vm15004_vm9, %v13212_v33, -1e+30  ;;  %vm15006_vm9 = vcmp.eq.s32.totalorder %v14848_v59, 1 }
 0x2fb   :  { %v1267_v6 = vmax.f32 %v1235_v62, %v1251_v40  ;;  %v13269_v28 = vpop.f32.mrf.mxu2  ;;  %v2320_v40 = vpack.c.bf16 %v13080_v47, %v13076_v57  ;;  %v1455_v47 = vmax.f32 %v1423_v53, %v1439_v11 }
 0x2fc   :  { %v2306_v48 = vpack.c.bf16 %v2290_v7, %v2274_v31  ;;  %v691_v36 = vsel %vm670_vm15, %v13269_v28, -1e+30  ;;  %v879_v54 = vsel %vm858_vm2, %v13269_v28, -1e+30  ;;  %v1067_v25 = vsel %vm1046_vm4, %v13269_v28, -1e+30 }
 0x2fd   :  { %7819 = vmatmul.msk.bf16.vlgmr.msra.gmra.mxu1 %vm15003_vm12, %v14861_v30  ;;  %v731_v8 = vmax.f32 %v675_v43, %v691_v36  ;;  %v919_v31 = vmax.f32 %v863_v38, %v879_v54  ;;  %v13291_v7 = vsel %vm1421_vm1, %v13212_v33, -1e+30  ;;  %v1255_v58 = vsel %vm1234_vm6, %v13269_v28, -1e+30  ;;  %2710 = vmatpush.bf16.msrb.mxu3 %v2320_v40 }
 0x2fe   :  { %2528 = vmatpush.bf16.msra.mxu0 %v2306_v48  ;;  %2671 = vmatpush.bf16.msra.mxu1 %v2317_v24  ;;  %v13306_v48 = vsel %vm1797_vm14, %v13212_v33, -1e+30  ;;  %v1268_v3 = vrot.slane %v1267_v6, 4  ;;  %v13315_v57 = vmax.f32 %v1239_v37, %v1255_v58  ;;  %v1627_v24 = vsel %vm14608_vm11, %v13194_v5, -1e+30 }
 0x2ff   :  { %v732_v61 = vrot.slane %v731_v8, 4  ;;  %v920_v62 = vrot.slane %v919_v31, 4  ;;  %v13323_v43 = vsel %vm1422_vm7, %v13269_v28, -1e+30  ;;  %v707_v38 = vmax.f32 %v705_v27, %v706_v21 }
 0x300   :  { %v895_v36 = vmax.f32 %v893_v18, %v894_v50  ;;  %v1269_v53 = vmax.f32 %v1267_v6, %v1268_v3  ;;  %v1456_v11 = vrot.slane %v1455_v47, 4  ;;  %v1643_v40 = vmax.f32 %v1611_v16, %v1627_v24 }
 0x301   :  { %7816 = vmatmul.msk.bf16.vlgmr.msra.gmra.mxu0 %vm15003_vm12, %v14861_v30  ;;  %v13334_v20 = vmax.f32 %v919_v31, %v920_v62  ;;  %v1815_v18 = vsel %vm14616_vm5, %v13194_v5, -1e+30  ;;  %vm15007_vm11 = vcmp.eq.s32.totalorder %v14833_v17, 1  ;;  %v708_v6 = vrot.slane %v707_v38, 1 }
 0x302   :  { %2580 = vmatpush.bf16.msrb.mxu0 %v2310_v22  ;;  %v13313_v22 = vmax.f32 %v1051_v35, %v1067_v25  ;;  %v13330_v35 = vmax.f32 %v731_v8, %v732_v61  ;;  %v1457_v27 = vmax.f32 %v1455_v47, %v1456_v11  ;;  %v896_v8 = vrot.slane %v895_v36, 1 }
 0x303   :  { %v1270_v21 = vrot.slane %v1269_v53, 2  ;;  %v1644_v62 = vrot.slane %v1643_v40, 4  ;;  %v1831_v47 = vmax.f32 %v13251_v60, %v1815_v18 }
 0x304   :  { %v1458_v50 = vrot.slane %v1457_v27, 2  ;;  %v897_v3 = vmax.f32 %v895_v36, %v896_v8 }
 0x305   :  { %v1271_v11 = vmax.f32 %v1269_v53, %v1270_v21 }
 0x306   :  { %2632 = vmatpush.bf16.msra.mxu0 %v2314_v15  ;;  %v1081_v15 = vmax.f32 %v1079_v12, %v1080_v52  ;;  %v2321_v12 = vpack.c.bf16 %v13152_v29, %v13146_v19  ;;  %v13328_v52 = vpop.f32.mrf.mxu2  ;;  %v2003_v19 = vsel %vm15006_vm9, %v13194_v5, -1e+30  ;;  %v1459_v18 = vmax.f32 %v1457_v27, %v1458_v50 }
 0x307   :  { %15005 = vst [vmem:[#allocation54_spill] sm:$0xff] %v13328_v52  ;;  %v679_v29 = vsel %vm669_vm0, %v13328_v52, -1e+30  ;;  %v867_v16 = vsel %vm15007_vm11, %v13328_v52, -1e+30  ;;  %v2019_v37 = vmax.f32 %v13256_v55, %v2003_v19  ;;  %vm15008_vm11 = vmmov %vm15003_vm12  ;;  %vm15009_vm9 = vcmp.eq.s32.totalorder %v14833_v17, 1 }
 0x308   :  { %v1082_v54 = vrot.slane %v1081_v15, 2  ;;  %v1055_v31 = vsel %vm1045_vm10, %v13328_v52, -1e+30  ;;  %v1243_v24 = vsel %vm1233_vm8, %v13328_v52, -1e+30  ;;  %v1272_v53 = vrot.slane %v1271_v11, 1 }
 0x309   :  { %7826 = vmatmul.msk.bf16.vlgmr.msra.gmra.mxu3 %vm15003_vm12, %v14861_v30  ;;  %v1832_v19 = vrot.slane %v1831_v47, 4  ;;  %v1645_v27 = vmax.f32 %v1643_v40, %v1644_v62  ;;  %vm15010_vm12 = vmmov %vm15008_vm11  ;;  %v13394_v50 = vsel %vm1797_vm14, %v13328_v52, -1e+30  ;;  %v2020_v25 = vrot.slane %v2019_v37, 4 }
 0x30a   :  { %v1083_v58 = vmax.f32 %v1081_v15, %v1082_v54  ;;  %v709_v15 = vmax.f32 %v707_v38, %v708_v6  ;;  %v13360_v54 = vsel %vm1421_vm1, %v13328_v52, -1e+30  ;;  %15012 = vst [vmem:[#allocation121_spill] sm:$0xff] %v13394_v50 }
 0x30c   :  { %v1084_v61 = vrot.slane %v1083_v58, 1  ;;  %v815_v38 = vsel %vm669_vm0, %v709_v15, 0.0  ;;  %v831_v60 = vsel %vm670_vm15, %v709_v15, 0.0 }
 0x30d   :  { %7823 = vmatmul.msk.bf16.vlgmr.msrb.gmra.mxu1 %vm15008_vm11, %v14861_v30  ;;  %v1003_v8 = vsel %vm15009_vm9, %v897_v3, %v815_v38  ;;  %v1019_v55 = vsel %vm858_vm2, %v897_v3, %v831_v60  ;;  %v15013_v38 = vpack.c.bf16 %v13020_v26, %v13012_v42  ;;  %v13411_v42 = vsel %vm1985_vm13, %v13328_v52, -1e+30 }
 0x30e   :  { %v1085_v36 = vmax.f32 %v1083_v58, %v1084_v61  ;;  %2723 = vmatpush.bf16.msrb.mxu1 %v2321_v12  ;;  %v13369_v6 = vpop.f32.mrf.mxu2  ;;  %v13389_v61 = vsel %vm1609_vm3, %v13328_v52, -1e+30  ;;  %15014 = vst [vmem:[#allocation116_spill] sm:$0xff] %v13411_v42 }
 0x30f   :  { %v695_v21 = vsel %vm670_vm15, %v13369_v6, -1e+30  ;;  %v883_v58 = vsel %vm858_vm2, %v13369_v6, -1e+30  ;;  %v1071_v12 = vsel %vm1046_vm4, %v13369_v6, -1e+30 }
 0x310   :  { %15011 = vst [vmem:[#allocation115_spill] sm:$0xff] %v13389_v61  ;;  %v759_v15 = vmax.f32 %v679_v29, %v695_v21  ;;  %v947_v3 = vmax.f32 %v867_v16, %v883_v58  ;;  %v1259_v40 = vsel %vm1234_vm6, %v13369_v6, -1e+30  ;;  %v1191_v62 = vsel %vm1045_vm10, %v1085_v36, %v1003_v8 }
 0x311   :  { %7820 = vmatmul.msk.bf16.vlgmr.msrb.gmra.mxu0 %vm15010_vm12, %v14861_v30  ;;  %v1207_v60 = vsel %vm1046_vm4, %v1085_v36, %v1019_v55  ;;  %v13406_v61 = vmax.f32 %v1055_v31, %v1071_v12  ;;  %v1273_v29 = vmax.f32 %v1271_v11, %v1272_v53  ;;  %v1460_v16 = vrot.slane %v1459_v18, 1 }
 0x312   :  { %2684 = vmatpush.bf16.msrb.mxu0 %v15013_v38  ;;  %v760_v34 = vrot.slane %v759_v15, 4  ;;  %v948_v26 = vrot.slane %v947_v3, 4  ;;  %v1646_v21 = vrot.slane %v1645_v27, 2  ;;  %v1833_v58 = vmax.f32 %v1831_v47, %v1832_v19 }
 0x313   :  { %v13413_v38 = vmax.f32 %v1243_v24, %v1259_v40  ;;  %v13418_v36 = vsel %vm1422_vm7, %v13369_v6, -1e+30  ;;  %v1379_v31 = vsel %vm1233_vm8, %v1273_v29, %v1191_v62  ;;  %v1395_v11 = vsel %vm1234_vm6, %v1273_v29, %v1207_v60 }
 0x314   :  { %v1647_v8 = vmax.f32 %v1645_v27, %v1646_v21  ;;  %v1834_v55 = vrot.slane %v1833_v58, 2  ;;  %v2021_v53 = vmax.f32 %v2019_v37, %v2020_v25  ;;  %v734_v12 = vrot.slane %v13330_v35, 2 }
 0x315   :  { %v13425_v52 = vmax.f32 %v759_v15, %v760_v34  ;;  %v1136_v47 = vrot.slane %v13406_v61, 4  ;;  %v1461_v24 = vmax.f32 %v1459_v18, %v1460_v16  ;;  %v922_v40 = vrot.slane %v13334_v20, 2 }
 0x316   :  { %v13428_v19 = vpop.f32.mrf.mxu2  ;;  %v13431_v42 = vmax.f32 %v947_v3, %v948_v26  ;;  %v1648_v62 = vrot.slane %v1647_v8, 1  ;;  %v1835_v50 = vmax.f32 %v1833_v58, %v1834_v55  ;;  %v2022_v33 = vrot.slane %v2021_v53, 2 }
 0x317   :  { %v1567_v27 = vsel %vm1421_vm1, %v1461_v24, %v1379_v31  ;;  %v1583_v25 = vsel %vm1422_vm7, %v1461_v24, %v1395_v11  ;;  %v735_v34 = vmax.f32 %v13330_v35, %v734_v12  ;;  %v1296_v37 = vrot.slane %v13315_v57, 4 }
 0x318   :  { %v1649_v18 = vmax.f32 %v1647_v8, %v1648_v62  ;;  %v1836_v15 = vrot.slane %v1835_v50, 1  ;;  %v2023_v3 = vmax.f32 %v2021_v53, %v2022_v33  ;;  %v15015_v60 = vrot.slane %v13313_v22, 4 }
 0x319   :  { %7830 = vmatmul.msk.bf16.vlgmr.msrb.gmra.mxu3 %vm15008_vm11, %v14861_v30  ;;  %v683_v16 = vsel %vm669_vm0, %v13428_v19, -1e+30  ;;  %v871_v35 = vsel %vm15009_vm9, %v13428_v19, -1e+30  ;;  %v923_v26 = vmax.f32 %v13334_v20, %v922_v40  ;;  %v1483_v21 = vmax.f32 %v13291_v7, %v13323_v43 }
 0x31a   :  { %v1109_v29 = vmax.f32 %v13313_v22, %v15015_v60  ;;  %v1755_v33 = vsel %vm1609_vm3, %v1649_v18, %v1567_v27  ;;  %vm15016_vm12 = vcmp.eq.s32.totalorder %v12288_v45, 1  ;;  %v1837_v22 = vmax.f32 %v1835_v50, %v1836_v15 }
 0x31b   :  { %v1771_v58 = vsel %vm15016_vm12, %v1649_v18, %v1583_v25  ;;  %v2024_v31 = vrot.slane %v2023_v3, 1  ;;  %v1059_v11 = vsel %vm1045_vm10, %v13428_v19, -1e+30  ;;  %v736_v8 = vrot.slane %v735_v34, 1  ;;  %vm15018_vm12 = vmmov %vm15008_vm11 }
 0x31c   :  { %v924_v55 = vrot.slane %v923_v26, 1  ;;  %v1297_v53 = vmax.f32 %v13315_v57, %v1296_v37  ;;  %v1943_v20 = vsel %vm1797_vm14, %v1837_v22, %v1755_v33  ;;  %v1959_v7 = vsel %vm14616_vm5, %v1837_v22, %v1771_v58 }
 0x31d   :  { %v2025_v43 = vmax.f32 %v2023_v3, %v2024_v31  ;;  %v1110_v12 = vrot.slane %v1109_v29, 2  ;;  %7827 = vmatmul.msk.bf16.vlgmr.msra.gmra.mxu1 %vm15008_vm11, %v14861_v30  ;;  %v1247_v50 = vsel %vm1233_vm8, %v13428_v19, -1e+30  ;;  %v13473_v24 = vsel %vm1421_vm1, %v13428_v19, -1e+30 }
 0x31e   :  { %v13475_v57 = vpop.f32.mrf.mxu2  ;;  %v737_v40 = vmax.f32 %v735_v34, %v736_v8  ;;  %v1298_v62 = vrot.slane %v1297_v53, 2  ;;  %vm15017_vm9 = vcmp.eq.s32.totalorder %v14848_v59, 1  ;;  %v15019_v33 = vpack.c.bf16 %v13219_v1, %v13214_v63 }
 0x31f   :  { %v2131_v27 = vsel %vm1985_vm13, %v2025_v43, %v1943_v20  ;;  %v2147_v25 = vsel %vm15017_vm9, %v2025_v43, %v1959_v7  ;;  %v699_v37 = vsel %vm670_vm15, %v13475_v57, -1e+30  ;;  %v887_v18 = vsel %vm858_vm2, %v13475_v57, -1e+30 }
 0x320   :  { %v2163_v34 = vsub.f32 %v13164_v39, %v2131_v27  ;;  %v2179_v15 = vsub.f32 %v13194_v5, %v2147_v25  ;;  %v787_v3 = vmax.f32 %v683_v16, %v699_v37  ;;  %v13491_v60 = vmax.f32 %v871_v35, %v887_v18 }
 0x321   :  { %7824 = vmatmul.msk.bf16.vlgmr.msra.gmra.mxu0 %vm15018_vm12, %v14861_v30  ;;  %v1075_v58 = vsel %vm1046_vm4, %v13475_v57, -1e+30  ;;  %v1263_v22 = vsel %vm1234_vm6, %v13475_v57, -1e+30  ;;  %v925_v31 = vmax.f32 %v923_v26, %v924_v55  ;;  %v1111_v8 = vmax.f32 %v1109_v29, %v1110_v12 }
 0x322   :  { %2736 = vmatpush.bf16.msra.mxu0 %v15019_v33  ;;  %v2195_v20 = vmul.f32 1.442695, %v2163_v34  ;;  %v2227_v7 = vmul.f32 1.442695, %v2179_v15  ;;  %v1299_v43 = vmax.f32 %v1297_v53, %v1298_v62  ;;  %v1484_v16 = vrot.slane %v1483_v21, 4 }
 0x323   :  { %v13505_v35 = vsel %vm1609_vm3, %v13428_v19, -1e+30  ;;  %v788_v63 = vrot.slane %v787_v3, 4  ;;  %v819_v1 = vsel %vm669_vm0, %v737_v40, 0.0  ;;  %v835_v27 = vsel %vm670_vm15, %v737_v40, 0.0 }
 0x324   :  { %10732 = vpow2.f32 %v2195_v20  ;;  %v976_v26 = vrot.slane %v13491_v60, 4  ;;  %v13512_v29 = vmax.f32 %v1059_v11, %v1075_v58  ;;  %v13514_v55 = vmax.f32 %v1247_v50, %v1263_v22 }
 0x325   :  { %10734 = vpow2.f32 %v2227_v7  ;;  %vm15020_vm11 = vcmp.eq.s32.totalorder %v14833_v17, 1  ;;  %v1023_v12 = vsel %vm858_vm2, %v925_v31, %v835_v27  ;;  %v1112_v62 = vrot.slane %v1111_v8, 1 }
 0x326   :  { %v1007_v53 = vsel %vm15020_vm11, %v925_v31, %v819_v1  ;;  %v1300_v25 = vrot.slane %v1299_v43, 1  ;;  %v1485_v37 = vmax.f32 %v1483_v21, %v1484_v16  ;;  %vm15021_vm9 = vcmp.eq.s32.totalorder %v12288_v45, 1 }
 0x327   :  { %v1631_v40 = vsel %vm15021_vm9, %v13269_v28, -1e+30  ;;  %v1819_v11 = vsel %vm14616_vm5, %v13269_v28, -1e+30  ;;  %v1113_v50 = vmax.f32 %v1111_v8, %v1112_v62  ;;  %vm15022_vm12 = vcmp.eq.s32.totalorder %v14848_v59, 1 }
 0x328   :  { %v1671_v18 = vmax.f32 %v13296_v51, %v1631_v40  ;;  %v1859_v34 = vmax.f32 %v13306_v48, %v1819_v11  ;;  %v2007_v15 = vsel %vm15022_vm12, %v13269_v28, -1e+30  ;;  %v13531_v33 = vmax.f32 %v787_v3, %v788_v63 }
 0x329   :  { %v1301_v21 = vmax.f32 %v1299_v43, %v1300_v25  ;;  %v1486_v58 = vrot.slane %v1485_v37, 2  ;;  %v2047_v22 = vmax.f32 %v13311_v13, %v2007_v15  ;;  %v1195_v31 = vsel %vm1045_vm10, %v1113_v50, %v1007_v53  ;;  %v13548_v53 = vpop.f32.mrf.mxu1 }
 0x32a   :  { %v1211_v8 = vsel %vm1046_vm4, %v1113_v50, %v1023_v12  ;;  %v1672_v20 = vrot.slane %v1671_v18, 4  ;;  %v1860_v51 = vrot.slane %v1859_v34, 4  ;;  %v13538_v7 = vpop.eup %10732  ;;  %v13550_v12 = vpop.f32.mrf.mxu0  ;;  %v762_v62 = vrot.slane %v13425_v52, 2 }
 0x32b   :  { %v1383_v48 = vsel %vm1233_vm8, %v1301_v21, %v1195_v31  ;;  %v1399_v3 = vsel %vm1234_vm6, %v1301_v21, %v1211_v8  ;;  %v1487_v43 = vmax.f32 %v1485_v37, %v1486_v58  ;;  %v2048_v16 = vrot.slane %v2047_v22, 4  ;;  %v13544_v63 = vpop.eup %10734  ;;  %v13555_v37 = vpop.f32.mrf.mxu3 }
 0x32c   :  { %v2259_v13 = vmul.f32 %v13538_v7, %v13164_v39  ;;  %v1673_v1 = vmax.f32 %v1671_v18, %v1672_v20  ;;  %v1861_v27 = vmax.f32 %v1859_v34, %v1860_v51  ;;  %v2275_v25 = vmul.f32 %v13544_v63, %v13194_v5 }
 0x32d   :  { %v1488_v40 = vrot.slane %v1487_v43, 1  ;;  %v2049_v11 = vmax.f32 %v2047_v22, %v2048_v16  ;;  %v950_v50 = vrot.slane %v13431_v42, 2  ;;  %v763_v39 = vmax.f32 %v13425_v52, %v762_v62 }
 0x32e   :  { %v1674_v15 = vrot.slane %v1673_v1, 2  ;;  %v1862_v21 = vrot.slane %v1861_v27, 2  ;;  %v1137_v18 = vmax.f32 %v13406_v61, %v1136_v47  ;;  %vm15023_vm11 = vcmask 130048  }
 0x32f   :  { %7831 = vmatmul.msk.bf16.vlgmr.msrb.gmra.mxu1 %vm15023_vm11, %v14861_v30  ;;  %v2291_v34 = vpack.c.bf16 %v2275_v25, %v2259_v13  ;;  %v1489_v58 = vmax.f32 %v1487_v43, %v1488_v40  ;;  %v2050_v5 = vrot.slane %v2049_v11, 2  ;;  %v951_v22 = vmax.f32 %v13431_v42, %v950_v50  ;;  %vm15024_vm9 = vmmov %vm15023_vm11 }
 0x330   :  { %v1675_v31 = vmax.f32 %v1673_v1, %v1674_v15  ;;  %v1863_v8 = vmax.f32 %v1861_v27, %v1862_v21  ;;  %v764_v20 = vrot.slane %v763_v39, 1  ;;  %v1138_v51 = vrot.slane %v1137_v18, 2  ;;  %vm15025_vm12 = vmmov %vm15024_vm9 }
 0x331   :  { %2333 = vmatpush.bf16.msrb.mxu2 %v2291_v34  ;;  %v1571_v52 = vsel %vm1421_vm1, %v1489_v58, %v1383_v48  ;;  %v1587_v16 = vsel %vm1422_vm7, %v1489_v58, %v1399_v3  ;;  %v2051_v61 = vmax.f32 %v2049_v11, %v2050_v5  ;;  %7828 = vmatmul.msk.bf16.vlgmr.msrb.gmra.mxu0 %vm15024_vm9, %v14861_v30  ;;  %v952_v47 = vrot.slane %v951_v22, 1  ;;  %v2363_v15 = vpop.f32.mrf.mxu1 }
 0x332   :  { %v1676_v43 = vrot.slane %v1675_v31, 1  ;;  %v1864_v13 = vrot.slane %v1863_v8, 1  ;;  %v765_v62 = vmax.f32 %v763_v39, %v764_v20  ;;  %v1139_v42 = vmax.f32 %v1137_v18, %v1138_v51  ;;  %v2376_v21 = vpop.f32.mrf.mxu0 }
 0x333   :  { %v2052_v1 = vrot.slane %v2051_v61, 1  ;;  %v953_v27 = vmax.f32 %v951_v22, %v952_v47  ;;  %v1324_v25 = vrot.slane %v13413_v38, 4  ;;  %v1511_v40 = vmax.f32 %v13360_v54, %v13418_v36  ;;  %v2350_v34 = vpop.f32.mrf.mxu3 }
 0x334   :  { %7801 = vmatmul.msk.bf16.vlgmr.msrb.gmra.mxu2 %vm15025_vm12, %v14861_v30  ;;  %v13579_v48 = vmax.f32 %v13491_v60, %v976_v26  ;;  %v1164_v3 = vrot.slane %v13512_v29, 4  ;;  %v1677_v11 = vmax.f32 %v1675_v31, %v1676_v43  ;;  %v823_v50 = vsel %vm669_vm0, %v765_v62, 0.0 }
 0x335   :  { %v1865_v39 = vmax.f32 %v1863_v8, %v1864_v13  ;;  %v2053_v18 = vmax.f32 %v2051_v61, %v2052_v1  ;;  %v839_v54 = vsel %vm670_vm15, %v765_v62, 0.0  ;;  %v1140_v36 = vrot.slane %v1139_v42, 1  ;;  %v15030_v61 = vld [vmem:[#allocation120_spill] sm:$0xff] }
 0x336   :  { %v1759_v58 = vsel %vm1609_vm3, %v1677_v11, %v1571_v52  ;;  %vm15026_vm11 = vcmp.eq.s32.totalorder %v12288_v45, 1  ;;  %v1325_v26 = vmax.f32 %v13413_v38, %v1324_v25  ;;  %v1512_v5 = vrot.slane %v1511_v40, 4 }
 0x337   :  { %v1775_v60 = vsel %vm15026_vm11, %v1677_v11, %v1587_v16  ;;  %v1947_v22 = vsel %vm1797_vm14, %v1865_v39, %v1759_v58  ;;  %vm15027_vm9 = vcmp.eq.s32.totalorder %v14833_v17, 1  ;;  %vm15028_vm12 = vmmov %vm15026_vm11  ;;  %vm15029_vm11 = vcmp.eq.s32.totalorder %v14848_v59, 1  ;;  %v15031_v11 = vld [vmem:[#allocation115_spill] sm:$0xff] }
 0x338   :  { %v1963_v31 = vsel %vm14616_vm5, %v1865_v39, %v1775_v60  ;;  %v1011_v8 = vsel %vm15027_vm9, %v953_v27, %v823_v50  ;;  %v1635_v20 = vsel %vm15028_vm12, %v13369_v6, -1e+30  ;;  %v2135_v51 = vsel %vm1985_vm13, %v2053_v18, %v1947_v22  ;;  %vm15033_vm9 = vmmov %vm15029_vm11 }
 0x339   :  { %v2151_v38 = vsel %vm15029_vm11, %v2053_v18, %v1963_v31  ;;  %v1326_v52 = vrot.slane %v1325_v26, 2  ;;  %v1513_v16 = vmax.f32 %v1511_v40, %v1512_v5  ;;  %v2167_v47 = vsub.f32 %v15030_v61, %v2135_v51  ;;  %v15032_v18 = vld [vmem:[#allocation121_spill] sm:$0xff] }
 0x33a   :  { %v2183_v43 = vsub.f32 %v13269_v28, %v2151_v38  ;;  %v1027_v13 = vsel %vm858_vm2, %v953_v27, %v839_v54  ;;  %v1141_v62 = vmax.f32 %v1139_v42, %v1140_v36  ;;  %v1699_v50 = vmax.f32 %v15031_v11, %v1635_v20  ;;  %v15034_v42 = vld [vmem:[#allocation116_spill] sm:$0xff] }
 0x33b   :  { %v1327_v1 = vmax.f32 %v1325_v26, %v1326_v52  ;;  %v1514_v25 = vrot.slane %v1513_v16, 2  ;;  %v1823_v15 = vsel %vm14616_vm5, %v13369_v6, -1e+30  ;;  %v2203_v21 = vmul.f32 1.442695, %v2167_v47  ;;  %v13621_v52 = vpop.f32.mrf.mxu1 }
 0x33c   :  { %v2235_v39 = vmul.f32 1.442695, %v2183_v43  ;;  %v1887_v40 = vmax.f32 %v15032_v18, %v1823_v15  ;;  %v2011_v34 = vsel %vm15033_vm9, %v13369_v6, -1e+30  ;;  %v1700_v27 = vrot.slane %v1699_v50, 4 }
 0x33d   :  { %v1328_v58 = vrot.slane %v1327_v1, 1  ;;  %v1515_v60 = vmax.f32 %v1513_v16, %v1514_v25  ;;  %v2075_v54 = vmax.f32 %v15034_v42, %v2011_v34  ;;  %10736 = vpow2.f32 %v2203_v21  ;;  %v13623_v16 = vpop.f32.mrf.mxu0  ;;  %v8019_v47 = vld [vmem:[#allocation5 + $0x170] sm:$0xf]  ;;  %v10130_v43 = vld [vmem:[#allocation5 + $0x174] sm:$0xf0]  ;;  %v13631_v21 = vpop.f32.mrf.mxu3 }
 0x33e   :  { %v1199_v36 = vsel %vm1045_vm10, %v1141_v62, %v1011_v8  ;;  %v1215_v26 = vsel %vm1046_vm4, %v1141_v62, %v1027_v13  ;;  %v1888_v5 = vrot.slane %v1887_v40, 4  ;;  %10738 = vpow2.f32 %v2235_v39  ;;  %v10146_v15 = vld [vmem:[#allocation5 + $0x1f4] sm:$0xf0] }
 0x33f   :  { %v1329_v22 = vmax.f32 %v1327_v1, %v1328_v58  ;;  %v1516_v31 = vrot.slane %v1515_v60, 1  ;;  %v1701_v20 = vmax.f32 %v1699_v50, %v1700_v27  ;;  %v2076_v38 = vrot.slane %v2075_v54, 4  ;;  %v8083_v50 = vld [vmem:[#allocation5 + $0x1f0] sm:$0xf] }
 0x340   :  { %v1889_v51 = vmax.f32 %v1887_v40, %v1888_v5  ;;  %v790_v25 = vrot.slane %v13531_v33, 2  ;;  %v1165_v8 = vmax.f32 %v13512_v29, %v1164_v3  ;;  %v8020_v40 = vor.u32 %v10130_v43, %v8019_v47 }
 0x341   :  { %v1387_v13 = vsel %vm1233_vm8, %v1329_v22, %v1199_v36  ;;  %v1403_v62 = vsel %vm1234_vm6, %v1329_v22, %v1215_v26  ;;  %v1517_v1 = vmax.f32 %v1515_v60, %v1516_v31  ;;  %v1702_v11 = vrot.slane %v1701_v20, 2 }
 0x342   :  { %v1890_v39 = vrot.slane %v1889_v51, 2  ;;  %v2077_v18 = vmax.f32 %v2075_v54, %v2076_v38  ;;  %v8084_v34 = vor.u32 %v10146_v15, %v8083_v50  ;;  %vm15035_vm12 = vcmask 130048   ;;  %5926 = vmatpush.bf16.msra.mxu1 %v8020_v40 }
 0x343   :  { %7832 = vmatmul.msk.bf16.vlgmr.msra.gmra.mxu0 %vm15035_vm12, %v14861_v30  ;;  %v1575_v29 = vsel %vm1421_vm1, %v1517_v1, %v1387_v13  ;;  %v1591_v3 = vsel %vm1422_vm7, %v1517_v1, %v1403_v62  ;;  %v1703_v58 = vmax.f32 %v1701_v20, %v1702_v11  ;;  %v791_v60 = vmax.f32 %v13531_v33, %v790_v25  ;;  %v13640_v27 = vpop.eup %10736 }
 0x344   :  { %v1891_v42 = vmax.f32 %v1889_v51, %v1890_v39  ;;  %v2078_v36 = vrot.slane %v2077_v18, 2  ;;  %5939 = vmatpush.bf16.msrb.mxu0 %v8084_v34  ;;  %v978_v54 = vrot.slane %v13579_v48, 2  ;;  %v1166_v26 = vrot.slane %v1165_v8, 2  ;;  %v13643_v5 = vpop.eup %10738  ;;  %v2415_v39 = vpop.f32.mrf.mxu1 }
 0x345   :  { %v2263_v22 = vmul.f32 %v13640_v27, %v15030_v61  ;;  %v1704_v31 = vrot.slane %v1703_v58, 1  ;;  %v792_v38 = vrot.slane %v791_v60, 1  ;;  %v1352_v20 = vrot.slane %v13514_v55, 4  ;;  %v2428_v40 = vpop.f32.mrf.mxu0 }
 0x346   :  { %v2279_v33 = vmul.f32 %v13643_v5, %v13269_v28  ;;  %v1892_v47 = vrot.slane %v1891_v42, 1  ;;  %v2079_v51 = vmax.f32 %v2077_v18, %v2078_v36  ;;  %v979_v43 = vmax.f32 %v13579_v48, %v978_v54 }
 0x347   :  { %v1451_v25 = vsel %vm1422_vm7, %v13475_v57, -1e+30  ;;  %v1705_v13 = vmax.f32 %v1703_v58, %v1704_v31  ;;  %v793_v62 = vmax.f32 %v791_v60, %v792_v38  ;;  %v1353_v1 = vmax.f32 %v13514_v55, %v1352_v20  ;;  %v2402_v58 = vpop.f32.mrf.mxu3 }
 0x348   :  { %v2295_v61 = vpack.c.bf16 %v2279_v33, %v2263_v22  ;;  %v1893_v11 = vmax.f32 %v1891_v42, %v1892_v47  ;;  %v2080_v50 = vrot.slane %v2079_v51, 1  ;;  %v980_v15 = vrot.slane %v979_v43, 1 }
 0x349   :  { %v1811_v28 = vsel %vm1797_vm14, %v13428_v19, -1e+30  ;;  %v1763_v48 = vsel %vm1609_vm3, %v1705_v13, %v1575_v29  ;;  %vm15036_vm11 = vcmp.eq.s32.totalorder %v12288_v45, 1  ;;  %v1167_v34 = vmax.f32 %v1165_v8, %v1166_v26 }
 0x34a   :  { %v1779_v18 = vsel %vm15036_vm11, %v1705_v13, %v1591_v3  ;;  %v1999_v55 = vsel %vm1985_vm13, %v13428_v19, -1e+30  ;;  %2385 = vmatpush.bf16.msra.mxu2 %v2295_v61  ;;  %v1951_v60 = vsel %vm1797_vm14, %v1893_v11, %v1763_v48  ;;  %v2081_v36 = vmax.f32 %v2079_v51, %v2080_v50  ;;  %vm15037_vm9 = vmmov %vm15036_vm11 }
 0x34b   :  { %v1967_v42 = vsel %vm14616_vm5, %v1893_v11, %v1779_v18  ;;  %v981_v54 = vmax.f32 %v979_v43, %v980_v15  ;;  %v1354_v22 = vrot.slane %v1353_v1, 2  ;;  %v1539_v29 = vmax.f32 %v13473_v24, %v1451_v25  ;;  %v15040_v24 = vld [vmem:[#allocation54_spill] sm:$0xff] }
 0x34c   :  { %v1639_v8 = vsel %vm15037_vm9, %v13475_v57, -1e+30  ;;  %v2139_v3 = vsel %vm1985_vm13, %v2081_v36, %v1951_v60  ;;  %vm15038_vm12 = vcmp.eq.s32.totalorder %v14848_v59, 1  ;;  %v827_v31 = vsel %vm669_vm0, %v793_v62, 0.0 }
 0x34d   :  { %v2155_v26 = vsel %vm15038_vm12, %v2081_v36, %v1967_v42  ;;  %v843_v38 = vsel %vm670_vm15, %v793_v62, 0.0  ;;  %vm15039_vm11 = vcmask 130048   ;;  %v2171_v20 = vsub.f32 %v15040_v24, %v2139_v3  ;;  %vm15041_vm9 = vmmov %vm15038_vm12  ;;  %v8011_v36 = vld [vmem:[#allocation5 + $0x160] sm:$0xf] }
 0x34e   :  { %7805 = vmatmul.msk.bf16.vlgmr.msra.gmra.mxu2 %vm15039_vm11, %v14861_v30  ;;  %v2187_v33 = vsub.f32 %v13369_v6, %v2155_v26  ;;  %v1168_v47 = vrot.slane %v1167_v34, 1  ;;  %v1355_v51 = vmax.f32 %v1353_v1, %v1354_v22  ;;  %v1540_v43 = vrot.slane %v1539_v29, 4  ;;  %v10128_v22 = vld [vmem:[#allocation5 + $0x164] sm:$0xf0] }
 0x34f   :  { %v1727_v25 = vmax.f32 %v13505_v35, %v1639_v8  ;;  %v1827_v13 = vsel %vm14616_vm5, %v13475_v57, -1e+30  ;;  %v2015_v62 = vsel %vm15041_vm9, %v13475_v57, -1e+30  ;;  %v2211_v61 = vmul.f32 1.442695, %v2171_v20 }
 0x350   :  { %v2243_v11 = vmul.f32 1.442695, %v2187_v33  ;;  %vm15042_vm12 = vcmp.eq.s32.totalorder %v14833_v17, 1  ;;  %v1031_v15 = vsel %vm858_vm2, %v981_v54, %v843_v38  ;;  %v1356_v1 = vrot.slane %v1355_v51, 1  ;;  %v7955_v20 = vld [vmem:[#allocation5 + $0xf0] sm:$0xf] }
 0x351   :  { %v1015_v50 = vsel %vm15042_vm12, %v981_v54, %v827_v31  ;;  %v1541_v39 = vmax.f32 %v1539_v29, %v1540_v43  ;;  %v1728_v40 = vrot.slane %v1727_v25, 4  ;;  %v1915_v35 = vmax.f32 %v1811_v28, %v1827_v13  ;;  %v8075_v29 = vld [vmem:[#allocation5 + $0x1e0] sm:$0xf]  ;;  %v10144_v31 = vld [vmem:[#allocation5 + $0x1e4] sm:$0xf0] }
 0x352   :  { %10740 = vpow2.f32 %v2211_v61  ;;  %v1169_v48 = vmax.f32 %v1167_v34, %v1168_v47  ;;  %v2103_v18 = vmax.f32 %v1999_v55, %v2015_v62  ;;  %v8012_v26 = vor.u32 %v10128_v22, %v8011_v36  ;;  %v10114_v33 = vld [vmem:[#allocation5 + $0xf4] sm:$0xf0]  ;;  %v8003_v62 = vld [vmem:[#allocation5 + $0x150] sm:$0xf]  ;;  %v10127_v17 = vld [vmem:[#allocation5 + $0x164] sm:$0xf] }
 0x353   :  { %10742 = vpow2.f32 %v2243_v11  ;;  %v1542_v60 = vrot.slane %v1541_v39, 2  ;;  %v1729_v42 = vmax.f32 %v1727_v25, %v1728_v40  ;;  %v1916_v3 = vrot.slane %v1915_v35, 4  ;;  %v10126_v61 = vld [vmem:[#allocation5 + $0x154] sm:$0xf0]  ;;  %v8067_v11 = vld [vmem:[#allocation5 + $0x1d0] sm:$0xf]  ;;  %v13704_v40 = vpop.f32.mrf.mxu0 }
 0x354   :  { %v1203_v8 = vsel %vm1045_vm10, %v1169_v48, %v1015_v50  ;;  %v2104_v54 = vrot.slane %v2103_v18, 4  ;;  %v1219_v28 = vsel %vm1046_vm4, %v1169_v48, %v1031_v15  ;;  %v1357_v34 = vmax.f32 %v1355_v51, %v1356_v1  ;;  %5927 = vmatpush.bf16.msra.mxu1 %v8012_v26  ;;  %v13702_v50 = vpop.f32.mrf.mxu1  ;;  %v10142_v48 = vld [vmem:[#allocation5 + $0x1d4] sm:$0xf0]  ;;  %v10112_v26 = vld [vmem:[#allocation5 + $0xe4] sm:$0xf0] }
 0x355   :  { %v1543_v55 = vmax.f32 %v1541_v39, %v1542_v60  ;;  %v1730_v38 = vrot.slane %v1729_v42, 2  ;;  %v1917_v47 = vmax.f32 %v1915_v35, %v1916_v3  ;;  %v8076_v25 = vor.u32 %v10144_v31, %v8075_v29  ;;  %v7947_v60 = vld [vmem:[#allocation5 + $0xe0] sm:$0xf]  ;;  %v13708_v35 = vpop.f32.mrf.mxu3 }
 0x356   :  { %v2105_v43 = vmax.f32 %v2103_v18, %v2104_v54  ;;  %v7956_v13 = vor.u32 %v10114_v33, %v7955_v20  ;;  %v1391_v15 = vsel %vm1233_vm8, %v1357_v34, %v1203_v8  ;;  %v8004_v39 = vor.u32 %v10126_v61, %v8003_v62  ;;  %v7995_v29 = vld [vmem:[#allocation5 + $0x140] sm:$0xf]  ;;  %v10124_v33 = vld [vmem:[#allocation5 + $0x144] sm:$0xf0]  ;;  %v334_v32 = vpop.permute.xlu1 %333 }
 0x357   :  { %v1544_v51 = vrot.slane %v1543_v55, 1  ;;  %v1731_v1 = vmax.f32 %v1729_v42, %v1730_v38  ;;  %v1407_v36 = vsel %vm1234_vm6, %v1357_v34, %v1219_v28  ;;  %v1918_v22 = vrot.slane %v1917_v47, 2  ;;  %5940 = vmatpush.bf16.msrb.mxu0 %v8076_v25  ;;  %v8059_v62 = vld [vmem:[#allocation5 + $0x1c0] sm:$0xf] }
 0x358   :  { %v13710_v18 = vpop.eup %10740  ;;  %v2106_v3 = vrot.slane %v2105_v43, 2  ;;  %5913 = vmatpush.bf16.msra.mxu3 %v7956_v13  ;;  %v8068_v54 = vor.u32 %v10142_v48, %v8067_v11  ;;  %v7948_v20 = vor.u32 %v10112_v26, %v7947_v60  ;;  %5928 = vmatpush.bf16.msra.mxu1 %v8004_v39  ;;  %v7996_v25 = vor.u32 %v10124_v33, %v7995_v29  ;;  %v10140_v13 = vld [vmem:[#allocation5 + $0x1c4] sm:$0xf0]  ;;  %v7939_v11 = vld [vmem:[#allocation5 + $0xd0] sm:$0xf] }
 0x359   :  { %v13714_v8 = vpop.eup %10742  ;;  %v2267_v42 = vmul.f32 %v13710_v18, %v15040_v24  ;;  %v1545_v31 = vmax.f32 %v1543_v55, %v1544_v51  ;;  %v1732_v38 = vrot.slane %v1731_v1, 1  ;;  %v1919_v34 = vmax.f32 %v1917_v47, %v1918_v22  ;;  %v10110_v48 = vld [vmem:[#allocation5 + $0xd4] sm:$0xf0]  ;;  %v7987_v60 = vld [vmem:[#allocation5 + $0x130] sm:$0xf] }
 0x35a   :  { %v2283_v28 = vmul.f32 %v13714_v8, %v13369_v6  ;;  %v2107_v61 = vmax.f32 %v2105_v43, %v2106_v3  ;;  %v8060_v51 = vor.u32 %v10140_v13, %v8059_v62  ;;  %v10122_v26 = vld [vmem:[#allocation5 + $0x134] sm:$0xf0]  ;;  %v7940_v43 = vor.u32 %v10110_v48, %v7939_v11  ;;  %v8051_v39 = vld [vmem:[#allocation5 + $0x1b0] sm:$0xf]  ;;  %v7979_v33 = vld [vmem:[#allocation5 + $0x120] sm:$0xf] }
 0x35b   :  { %v1579_v58 = vsel %vm1421_vm1, %v1545_v31, %v1391_v15  ;;  %v1595_v24 = vsel %vm1422_vm7, %v1545_v31, %v1407_v36  ;;  %v1733_v55 = vmax.f32 %v1731_v1, %v1732_v38  ;;  %v1920_v6 = vrot.slane %v1919_v34, 1  ;;  %5941 = vmatpush.bf16.msrb.mxu0 %v8068_v54  ;;  %v10138_v22 = vld [vmem:[#allocation5 + $0x1b4] sm:$0xf0]  ;;  %v7931_v36 = vld [vmem:[#allocation5 + $0xc0] sm:$0xf]  ;;  %v2480_v38 = vpop.f32.mrf.mxu0 }
 0x35c   :  { %v2299_v0 = vpack.c.bf16 %v2283_v28, %v2267_v42  ;;  %v2108_v47 = vrot.slane %v2107_v61, 1  ;;  %5914 = vmatpush.bf16.msra.mxu3 %v7948_v20  ;;  %vm15043_vm11 = vcmp.eq.s32.totalorder %v12288_v45, 1  ;;  %v10108_v1 = vld [vmem:[#allocation5 + $0xc4] sm:$0xf0]  ;;  %5929 = vmatpush.bf16.msra.mxu1 %v7996_v25  ;;  %v7988_v31 = vor.u32 %v10122_v26, %v7987_v60  ;;  %v2467_v42 = vpop.f32.mrf.mxu1  ;;  %v8043_v25 = vld [vmem:[#allocation5 + $0x1a0] sm:$0xf] }
 0x35d   :  { %v1767_v3 = vsel %vm1609_vm3, %v1733_v55, %v1579_v58  ;;  %v1783_v15 = vsel %vm15043_vm11, %v1733_v55, %v1595_v24  ;;  %v1921_v29 = vmax.f32 %v1919_v34, %v1920_v6  ;;  %10744 = vrcp.f32 %v334_v32  ;;  %v10120_v62 = vld [vmem:[#allocation5 + $0x124] sm:$0xf0]  ;;  %v2454_v28 = vpop.f32.mrf.mxu3  ;;  %v7971_v42 = vld [vmem:[#allocation5 + $0x110] sm:$0xf]  ;;  %v10118_v38 = vld [vmem:[#allocation5 + $0x114] sm:$0xf0] }
 0x35e   :  { %2437 = vmatpush.bf16.msrb.mxu2 %v2299_v0  ;;  %v2109_v54 = vmax.f32 %v2107_v61, %v2108_v47  ;;  %v8052_v20 = vor.u32 %v10138_v22, %v8051_v39  ;;  %v7932_v0 = vor.u32 %v10108_v1, %v7931_v36  ;;  %vm15044_vm9 = vcmask 130048   ;;  %v10136_v11 = vld [vmem:[#allocation5 + $0x1a4] sm:$0xf0]  ;;  %v8259_v1 = vld [vmem:[#allocation5 + $0x350] sm:$0xf] }
 0x35f   :  { %v1955_v58 = vsel %vm1797_vm14, %v1921_v29, %v1767_v3  ;;  %v1971_v13 = vsel %vm14616_vm5, %v1921_v29, %v1783_v15  ;;  %5942 = vmatpush.bf16.msrb.mxu0 %v8060_v51  ;;  %vm15045_vm12 = vcmp.eq.s32.totalorder %v14848_v59, 1  ;;  %v345_v55 = vand.u32 2147483647, %v334_v32  ;;  %v7923_v3 = vld [vmem:[#allocation5 + $0xb0] sm:$0xf] }
 0x360   :  { %5915 = vmatpush.bf16.msra.mxu3 %v7940_v43  ;;  %v2143_v34 = vsel %vm1985_vm13, %v2109_v54, %v1955_v58  ;;  %v2159_v61 = vsel %vm15045_vm12, %v2109_v54, %v1971_v13  ;;  %5930 = vmatpush.bf16.msra.mxu1 %v7988_v31  ;;  %v7980_v51 = vor.u32 %v10120_v62, %v7979_v33  ;;  %v347_v60 = vand.u32 2147483648, %v334_v32  ;;  %v10106_v15 = vld [vmem:[#allocation5 + $0xb4] sm:$0xf0]  ;;  %v7915_v62 = vld [vmem:[#allocation5 + $0xa0] sm:$0xf] }
 0x361   :  { %7809 = vmatmul.msk.bf16.vlgmr.msrb.gmra.mxu2 %vm15044_vm9, %v14861_v30  ;;  %v2175_v48 = vsub.f32 %v13428_v19, %v2143_v34  ;;  %v2191_v24 = vsub.f32 %v13475_v57, %v2159_v61  ;;  %v8044_v43 = vor.u32 %v10136_v11, %v8043_v25  ;;  %vm341_vm9 = vweird.f32 %v334_v32  ;;  %v10134_v33 = vld [vmem:[#allocation5 + $0x194] sm:$0xf0]  ;;  %v10104_v13 = vld [vmem:[#allocation5 + $0xa4] sm:$0xf0]  ;;  %v8027_v11 = vld [vmem:[#allocation5 + $0x180] sm:$0xf] }
 0x362   :  { %vm13744_vm12 = vcmp.eq.f32.partialorder %v345_v55, 8.507059e+37  ;;  %v348_v29 = vor.u32 1.1754944e-38, %v347_v60  ;;  %v7924_v31 = vor.u32 %v10106_v15, %v7923_v3  ;;  %v10116_v34 = vld [vmem:[#allocation5 + $0x104] sm:$0xf0]  ;;  %v7916_v61 = vor.u32 %v10104_v13, %v7915_v62  ;;  %v8339_v60 = vld [vmem:[#allocation5 + $0x3f0] sm:$0xf] }
 0x363   :  { %v13740_v26 = vpop.eup %10744  ;;  %v2219_v6 = vmul.f32 1.442695, %v2175_v48  ;;  %v2251_v47 = vmul.f32 1.442695, %v2191_v24  ;;  %5943 = vmatpush.bf16.msrb.mxu0 %v8052_v20  ;;  %v8035_v20 = vld [vmem:[#allocation5 + $0x190] sm:$0xf] }
 0x364   :  { %5916 = vmatpush.bf16.msra.mxu3 %v7932_v0  ;;  %v337_v39 = vmul.f32 %v13740_v26, %v334_v32  ;;  %vm342_vm11 = vweird.f32 %v13740_v26  ;;  %5931 = vmatpush.bf16.msra.mxu1 %v7980_v51  ;;  %v7972_v32 = vor.u32 %v10118_v38, %v7971_v42  ;;  %v8036_v58 = vor.u32 %v10134_v33, %v8035_v20  ;;  %v7963_v0 = vld [vmem:[#allocation5 + $0x100] sm:$0xf]  ;;  %v10132_v48 = vld [vmem:[#allocation5 + $0x184] sm:$0xf0]  ;;  %v8275_v24 = vld [vmem:[#allocation5 + $0x370] sm:$0xf] }
 0x365   :  { %10746 = vpow2.f32 %v2219_v6  ;;  %vm13748_vm5 = vmor %vm341_vm9, %vm342_vm11  ;;  %v13752_v54 = vpop.f32.mrf.mxu3  ;;  %v7964_v25 = vor.u32 %v10116_v34, %v7963_v0  ;;  %v10194_v51 = vld [vmem:[#allocation5 + $0x374] sm:$0xf0]  ;;  %v7907_v3 = vld [vmem:[#allocation5 + $0x90] sm:$0xf] }
 0x366   :  { %10748 = vpow2.f32 %v2251_v47  ;;  %v338_v36 = vsub.f32 1.0, %v337_v39  ;;  %v10210_v6 = vld [vmem:[#allocation5 + $0x3f4] sm:$0xf0]  ;;  %v8276_v39 = vor.u32 %v10194_v51, %v8275_v24  ;;  %v10192_v33 = vld [vmem:[#allocation5 + $0x364] sm:$0xf0] }
 0x367   :  { %5944 = vmatpush.bf16.msrb.mxu0 %v8044_v43  ;;  %v8028_v43 = vor.u32 %v10132_v48, %v8027_v11  ;;  %v10102_v15 = vld [vmem:[#allocation5 + $0x94] sm:$0xf0]  ;;  %v10208_v13 = vld [vmem:[#allocation5 + $0x3e4] sm:$0xf0]  ;;  %v7899_v34 = vld [vmem:[#allocation5 + $0x80] sm:$0xf] }
 0x368   :  { %v339_v28 = vmul.f32 %v13740_v26, %v338_v36  ;;  %5917 = vmatpush.bf16.msra.mxu3 %v7924_v31  ;;  %5932 = vmatpush.bf16.msra.mxu1 %v7972_v32  ;;  %v8267_v36 = vld [vmem:[#allocation5 + $0x360] sm:$0xf]  ;;  %v8340_v32 = vor.u32 %v10210_v6, %v8339_v60  ;;  %v7908_v20 = vor.u32 %v10102_v15, %v7907_v3  ;;  %v8211_v11 = vld [vmem:[#allocation5 + $0x2f0] sm:$0xf] }
 0x369   :  { %v15050_v48 = vld [vmem:[#allocation150_spill] sm:$0xff]  ;;  %v15051_v6 = vpack.c.bf16 %v13544_v63, %v13538_v7 }
 0x36a   :  { %v340_v55 = vadd.f32 %v13740_v26, %v339_v28  ;;  %v13762_v38 = vpop.f32.mrf.mxu1  ;;  %v8323_v22 = vld [vmem:[#allocation5 + $0x3d0] sm:$0xf]  ;;  %v10188_v63 = vld [vmem:[#allocation5 + $0x344] sm:$0xf0] }
 0x36b   :  { %v13756_v47 = vpop.eup %10746  ;;  %5945 = vmatpush.bf16.msrb.mxu0 %v8036_v58  ;;  %v8331_v58 = vld [vmem:[#allocation5 + $0x3e0] sm:$0xf]  ;;  %v8371_v59 = vld [vmem:[#allocation5 + $0x430] sm:$0xf] }
 0x36c   :  { %v13758_v31 = vpop.eup %10748  ;;  %v2271_v42 = vmul.f32 %v13756_v47, %v13428_v19  ;;  %5918 = vmatpush.bf16.msra.mxu3 %v7916_v61  ;;  %v344_v62 = vsel %vm13748_vm5, %v13740_v26, %v340_v55  ;;  %5933 = vmatpush.bf16.msra.mxu1 %v7964_v25  ;;  %v8268_v19 = vor.u32 %v10192_v33, %v8267_v36  ;;  %v10100_v61 = vld [vmem:[#allocation5 + $0x84] sm:$0xf0]  ;;  %v10178_v26 = vld [vmem:[#allocation5 + $0x2f4] sm:$0xf0]  ;;  %vm15052_vm5 = vcmask 130048  }
 0x36d   :  { %v2287_v28 = vmul.f32 %v13758_v31, %v13475_v57  ;;  %v349_v0 = vsel %vm13744_vm12, %v348_v29, %v344_v62  ;;  %v2506_v51 = vpop.f32.mrf.mxu3  ;;  %v10190_v55 = vld [vmem:[#allocation5 + $0x354] sm:$0xf0]  ;;  %v8332_v57 = vor.u32 %v10208_v13, %v8331_v58  ;;  %v7900_v25 = vor.u32 %v10100_v61, %v7899_v34  ;;  %v8315_v33 = vld [vmem:[#allocation5 + $0x3c0] sm:$0xf]  ;;  %v10204_v62 = vld [vmem:[#allocation5 + $0x3c4] sm:$0xf0] }
 0x36e   :  { %v350_v24 = vmul.f32 %v349_v0, %v15050_v48  ;;  %v10206_v29 = vld [vmem:[#allocation5 + $0x3d4] sm:$0xf0]  ;;  %v8260_v3 = vor.u32 %v10190_v55, %v8259_v1  ;;  %v8195_v58 = vld [vmem:[#allocation5 + $0x2d0] sm:$0xf]  ;;  %v8187_v51 = vld [vmem:[#allocation5 + $0x2c0] sm:$0xf] }
 0x36f   :  { %v2303_v60 = vpack.c.bf16 %v2287_v28, %v2271_v42  ;;  %5946 = vmatpush.bf16.msrb.mxu0 %v8028_v43  ;;  %v2311_v43 = vpack.c.bf16 %v13643_v5, %v13640_v27  ;;  %v8324_v36 = vor.u32 %v10206_v29, %v8323_v22  ;;  %v8203_v42 = vld [vmem:[#allocation5 + $0x2e0] sm:$0xf]  ;;  %v10174_v27 = vld [vmem:[#allocation5 + $0x2d4] sm:$0xf0]  ;;  %v8316_v5 = vor.u32 %v10204_v62, %v8315_v33  ;;  %v8243_v0 = vld [vmem:[#allocation5 + $0x330] sm:$0xf] }
 0x370   :  { %5978 = vmatpush.bf16.msrb.mxu1 %v8276_v39  ;;  %5919 = vmatpush.bf16.msra.mxu3 %v7908_v20  ;;  %v8212_v39 = vor.u32 %v10178_v26, %v8211_v11  ;;  %v8251_v20 = vld [vmem:[#allocation5 + $0x340] sm:$0xf]  ;;  %v8196_v13 = vor.u32 %v10174_v27, %v8195_v58  ;;  %v8307_v34 = vld [vmem:[#allocation5 + $0x3b0] sm:$0xf]  ;;  %v10184_v55 = vld [vmem:[#allocation5 + $0x324] sm:$0xf0]  ;;  %v2315_v62 = vpack.c.bf16 %v13714_v8, %v13710_v18 }
 0x371   :  { %2489 = vmatpush.bf16.msra.mxu2 %v2303_v60  ;;  %6735 = vperm.xlu2 %10670, %v350_v24   ;;  %v8252_v28 = vor.u32 %v10188_v63, %v8251_v20  ;;  %v10202_v24 = vld [vmem:[#allocation5 + $0x3b4] sm:$0xf0]  ;;  %v10172_v60 = vld [vmem:[#allocation5 + $0x2c4] sm:$0xf0]  ;;  %v8235_v1 = vld [vmem:[#allocation5 + $0x320] sm:$0xf] }
 0x372   :  { %v2519_v15 = vpop.f32.mrf.mxu1  ;;  %v8308_v26 = vor.u32 %v10202_v24, %v8307_v34  ;;  %v8236_v22 = vor.u32 %v10184_v55, %v8235_v1  ;;  %v8299_v29 = vld [vmem:[#allocation5 + $0x3a0] sm:$0xf]  ;;  %v8291_v20 = vld [vmem:[#allocation5 + $0x390] sm:$0xf]  ;;  %vm15053_vm12 = vmmov %vm15052_vm5 }
 0x373   :  { %5991 = vmatpush.bf16.msra.mxu0 %v8340_v32  ;;  %v10176_v32 = vld [vmem:[#allocation5 + $0x2e4] sm:$0xf0]  ;;  %v10170_v15 = vld [vmem:[#allocation5 + $0x2b4] sm:$0xf0]  ;;  %v8171_v27 = vld [vmem:[#allocation5 + $0x2a0] sm:$0xf] }
 0x374   :  { %5979 = vmatpush.bf16.msrb.mxu1 %v8268_v19  ;;  %7813 = vmatmul.msk.bf16.vlgmr.msra.gmra.mxu2 %vm15052_vm5, %v14861_v30  ;;  %v8204_v7 = vor.u32 %v10176_v32, %v8203_v42  ;;  %v10186_v19 = vld [vmem:[#allocation5 + $0x334] sm:$0xf0]  ;;  %v10180_v34 = vld [vmem:[#allocation5 + $0x304] sm:$0xf0]  ;;  %v8163_v55 = vld [vmem:[#allocation5 + $0x290] sm:$0xf] }
 0x375   :  { %2541 = vmatpush.bf16.msrb.mxu2 %v15051_v6  ;;  %5920 = vmatpush.bf16.msra.mxu3 %v7900_v25  ;;  %v2556_v61 = vpop.f32.mrf.mxu3  ;;  %v8244_v48 = vor.u32 %v10186_v19, %v8243_v0  ;;  %v8188_v25 = vor.u32 %v10172_v60, %v8187_v51  ;;  %v10200_v6 = vld [vmem:[#allocation5 + $0x3a4] sm:$0xf0]  ;;  %v10182_v32 = vld [vmem:[#allocation5 + $0x314] sm:$0xf0]  ;;  %v8531_v51 = vld [vmem:[#allocation5 + $0x570] sm:$0xf] }
 0x376   :  { %vm2743_vm9 = vcmp.gt.f32.partialorder %v2556_v61, 0.0  ;;  %v8300_v42 = vor.u32 %v10200_v6, %v8299_v29  ;;  %v10258_v60 = vld [vmem:[#allocation5 + $0x574] sm:$0xf0] }
 0x377   :  { %5992 = vmatpush.bf16.msra.mxu0 %v8332_v57  ;;  %v8532_v29 = vor.u32 %v10258_v60, %v8531_v51  ;;  %v10250_v51 = vld [vmem:[#allocation5 + $0x534] sm:$0xf0]  ;;  %v8595_v60 = vld [vmem:[#allocation5 + $0x5f0] sm:$0xf] }
 0x378   :  { %5980 = vmatpush.bf16.msrb.mxu1 %v8260_v3 }
 0x379   :  { %2593 = vmatpush.bf16.msra.mxu2 %v2311_v43  ;;  %5965 = vmatpush.bf16.msrb.mxu3 %v8212_v39  ;;  %v2759_v39 = vsel %vm2743_vm9, %v2556_v61, 1.0  ;;  %v8179_v43 = vld [vmem:[#allocation5 + $0x2b0] sm:$0xf]  ;;  %v8283_v61 = vld [vmem:[#allocation5 + $0x380] sm:$0xf] }
 0x37a   :  { %v2569_v11 = vpop.f32.mrf.mxu1  ;;  %v8180_v63 = vor.u32 %v10170_v15, %v8179_v43  ;;  %v8155_v15 = vld [vmem:[#allocation5 + $0x280] sm:$0xf] }
 0x37b   :  { %5993 = vmatpush.bf16.msra.mxu0 %v8324_v36  ;;  %vm2744_vm11 = vcmp.gt.f32.partialorder %v2569_v11, 0.0  ;;  %v8227_v36 = vld [vmem:[#allocation5 + $0x310] sm:$0xf] }
 0x37c   :  { %5981 = vmatpush.bf16.msrb.mxu1 %v8252_v28  ;;  %v2760_v57 = vsel %vm2744_vm11, %v2569_v11, 1.0  ;;  %v8228_v33 = vor.u32 %v10182_v32, %v8227_v36  ;;  %v10196_v11 = vld [vmem:[#allocation5 + $0x384] sm:$0xf0]  ;;  %v10242_v32 = vld [vmem:[#allocation5 + $0x4f4] sm:$0xf0]  ;;  %vm15054_vm11 = vmmov %vm15053_vm12 }
 0x37d   :  { %5966 = vmatpush.bf16.msrb.mxu3 %v8204_v7  ;;  %10750 = vrcp.f32 %v2760_v57  ;;  %v10198_v7 = vld [vmem:[#allocation5 + $0x394] sm:$0xf0]  ;;  %v2558_v28 = vpop.f32.mrf.mxu3  ;;  %v10164_v36 = vld [vmem:[#allocation5 + $0x284] sm:$0xf0] }
 0x37e   :  { %v13779_v3 = vpop.f32.mrf.mxu0  ;;  %10752 = vrcp.f32 %v2759_v39  ;;  %v8292_v58 = vor.u32 %v10198_v7, %v8291_v20  ;;  %v10166_v57 = vld [vmem:[#allocation5 + $0x294] sm:$0xf0]  ;;  %v8523_v39 = vld [vmem:[#allocation5 + $0x560] sm:$0xf]  ;;  %v8515_v20 = vld [vmem:[#allocation5 + $0x550] sm:$0xf] }
 0x37f   :  { %5994 = vmatpush.bf16.msra.mxu0 %v8316_v5  ;;  %v10168_v5 = vld [vmem:[#allocation5 + $0x2a4] sm:$0xf0]  ;;  %v8164_v43 = vor.u32 %v10166_v57, %v8163_v55  ;;  %v10254_v7 = vld [vmem:[#allocation5 + $0x554] sm:$0xf0] }
 0x380   :  { %5982 = vmatpush.bf16.msrb.mxu1 %v8244_v48  ;;  %v8172_v18 = vor.u32 %v10168_v5, %v8171_v27  ;;  %v8516_v28 = vor.u32 %v10254_v7, %v8515_v20  ;;  %v10240_v27 = vld [vmem:[#allocation5 + $0x4e4] sm:$0xf0] }
 0x381   :  { %5967 = vmatpush.bf16.msrb.mxu3 %v8196_v13  ;;  %v8219_v13 = vld [vmem:[#allocation5 + $0x300] sm:$0xf] }
 0x382   :  { %v2571_v0 = vpop.f32.mrf.mxu1  ;;  %v8220_v8 = vor.u32 %v10180_v34, %v8219_v13  ;;  %v2319_v13 = vpack.c.bf16 %v13758_v31, %v13756_v47  ;;  %v10252_v34 = vld [vmem:[#allocation5 + $0x544] sm:$0xf0]  ;;  %v10274_v47 = vld [vmem:[#allocation5 + $0x5f4] sm:$0xf0] }
 0x383   :  { %5995 = vmatpush.bf16.msra.mxu0 %v8308_v26  ;;  %v10751_v19 = vpop.eup %10750 }
 0x384   :  { %5983 = vmatpush.bf16.msrb.mxu1 %v8236_v22  ;;  %7817 = vmatmul.msk.bf16.vlgmr.msrb.gmra.mxu2 %vm15053_vm12, %v14861_v30  ;;  %v10753_v48 = vpop.eup %10752  ;;  %v2792_v24 = vmul.f32 %v10751_v19, %v13548_v53  ;;  %v8284_v22 = vor.u32 %v10196_v11, %v8283_v61  ;;  %v10256_v53 = vld [vmem:[#allocation5 + $0x564] sm:$0xf0]  ;;  %v8507_v19 = vld [vmem:[#allocation5 + $0x540] sm:$0xf] }
 0x385   :  { %5968 = vmatpush.bf16.msrb.mxu3 %v8188_v25  ;;  %2645 = vmatpush.bf16.msrb.mxu2 %v2315_v62  ;;  %v2791_v1 = vmul.f32 %v10753_v48, %v13555_v37  ;;  %v8524_v37 = vor.u32 %v10256_v53, %v8523_v39  ;;  %v2608_v11 = vpop.f32.mrf.mxu3  ;;  %v8508_v48 = vor.u32 %v10252_v34, %v8507_v19  ;;  %v10236_v39 = vld [vmem:[#allocation5 + $0x4c4] sm:$0xf0]  ;;  %v10270_v19 = vld [vmem:[#allocation5 + $0x5d4] sm:$0xf0] }
 0x386   :  { %v2532_v26 = vpop.f32.mrf.mxu0  ;;  %v13787_v25 = vpack.c.bf16 %v2792_v24, %v2792_v24  ;;  %v8451_v24 = vld [vmem:[#allocation5 + $0x4d0] sm:$0xf]  ;;  %vm2747_vm12 = vcmp.gt.f32.partialorder %v2608_v11, 0.0 }
 0x387   :  { %5996 = vmatpush.bf16.msra.mxu0 %v8300_v42  ;;  %v13789_v6 = vpack.c.bf16 %v2791_v1, %v2791_v1  ;;  %v8467_v42 = vld [vmem:[#allocation5 + $0x4f0] sm:$0xf]  ;;  %v2763_v55 = vsel %vm2747_vm12, %v2608_v11, 1.0 }
 0x388   :  { %5984 = vmatpush.bf16.msrb.mxu1 %v8228_v33  ;;  %v8468_v62 = vor.u32 %v10242_v32, %v8467_v42  ;;  %v8587_v42 = vld [vmem:[#allocation5 + $0x5e0] sm:$0xf]  ;;  %v10272_v32 = vld [vmem:[#allocation5 + $0x5e4] sm:$0xf0] }
 0x389   :  { %5969 = vmatpush.bf16.msrb.mxu3 %v8180_v63  ;;  %5934 = vmatmul.bf16.vlgmr.msra.gmra.mxu1 %v13787_v25  ;;  %v8156_v63 = vor.u32 %v10164_v36, %v8155_v15  ;;  %v10248_v15 = vld [vmem:[#allocation5 + $0x524] sm:$0xf0]  ;;  %v8596_v36 = vor.u32 %v10274_v47, %v8595_v60  ;;  %v8475_v47 = vld [vmem:[#allocation5 + $0x500] sm:$0xf] }
 0x38a   :  { %5921 = vmatmul.bf16.vlgmr.msra.gmra.mxu3 %v13789_v6  ;;  %v2621_v61 = vpop.f32.mrf.mxu1 }
 0x38b   :  { %5997 = vmatpush.bf16.msra.mxu0 %v8292_v58  ;;  %v8459_v58 = vld [vmem:[#allocation5 + $0x4e0] sm:$0xf]  ;;  %vm2748_vm9 = vcmp.gt.f32.partialorder %v2621_v61, 0.0 }
 0x38c   :  { %5985 = vmatpush.bf16.msrb.mxu1 %v8220_v8  ;;  %v8460_v0 = vor.u32 %v10240_v27, %v8459_v58  ;;  %v8499_v8 = vld [vmem:[#allocation5 + $0x530] sm:$0xf]  ;;  %v2764_v1 = vsel %vm2748_vm9, %v2621_v61, 1.0 }
 0x38d   :  { %5970 = vmatpush.bf16.msrb.mxu3 %v8172_v18  ;;  %v10238_v18 = vld [vmem:[#allocation5 + $0x4d4] sm:$0xf0]  ;;  %v8483_v58 = vld [vmem:[#allocation5 + $0x510] sm:$0xf] }
 0x38e   :  { %v2582_v33 = vpop.f32.mrf.mxu0  ;;  %v8452_v26 = vor.u32 %v10238_v18, %v8451_v24  ;;  %v8427_v18 = vld [vmem:[#allocation5 + $0x4a0] sm:$0xf] }
 0x38f   :  { %5998 = vmatpush.bf16.msra.mxu0 %v8284_v22  ;;  %vm2745_vm5 = vcmp.gt.f32.partialorder %v2582_v33, 0.0  ;;  %v8500_v22 = vor.u32 %v10250_v51, %v8499_v8  ;;  %v10232_v8 = vld [vmem:[#allocation5 + $0x4a4] sm:$0xf0] }
 0x390   :  { %6030 = vmatpush.bf16.msra.mxu1 %v8532_v29  ;;  %v2761_v5 = vsel %vm2745_vm5, %v2582_v33, 1.0  ;;  %v8443_v29 = vld [vmem:[#allocation5 + $0x4c0] sm:$0xf]  ;;  %v10234_v33 = vld [vmem:[#allocation5 + $0x4b4] sm:$0xf0] }
 0x391   :  { %5971 = vmatpush.bf16.msrb.mxu3 %v8164_v43  ;;  %10754 = vrcp.f32 %v2761_v5  ;;  %v8491_v43 = vld [vmem:[#allocation5 + $0x520] sm:$0xf]  ;;  %v8444_v20 = vor.u32 %v10236_v39, %v8443_v29  ;;  %v8588_v5 = vor.u32 %v10272_v32, %v8587_v42  ;;  %v8428_v29 = vor.u32 %v10232_v8, %v8427_v18  ;;  %v8419_v39 = vld [vmem:[#allocation5 + $0x490] sm:$0xf]  ;;  %v10320_v42 = vld [vmem:[#allocation5 + $0x764] sm:$0xf0] }
 0x392   :  { %10756 = vrcp.f32 %v2764_v1  ;;  %v8492_v7 = vor.u32 %v10248_v15, %v8491_v43  ;;  %v8563_v32 = vld [vmem:[#allocation5 + $0x5b0] sm:$0xf] }
 0x393   :  { %10758 = vrcp.f32 %v2763_v55  ;;  %v10322_v55 = vld [vmem:[#allocation5 + $0x774] sm:$0xf0] }
 0x394   :  { %6031 = vmatpush.bf16.msra.mxu1 %v8524_v37  ;;  %7821 = vmatmul.msk.bf16.vlgmr.msra.gmra.mxu2 %vm15054_vm11, %v14861_v30 }
 0x395   :  { %5972 = vmatpush.bf16.msrb.mxu3 %v8156_v63  ;;  %2697 = vmatpush.bf16.msra.mxu2 %v2319_v13  ;;  %v8435_v63 = vld [vmem:[#allocation5 + $0x4b0] sm:$0xf] }
 0x396   :  { %v2584_v31 = vpop.f32.mrf.mxu0  ;;  %v8436_v11 = vor.u32 %v10234_v33, %v8435_v63 }
 0x397   :  { %v10755_v57 = vpop.eup %10754  ;;  %v10244_v31 = vld [vmem:[#allocation5 + $0x504] sm:$0xf0] }
 0x398   :  { %6032 = vmatpush.bf16.msra.mxu1 %v8516_v28  ;;  %v2793_v53 = vmul.f32 %v10755_v57, %v13550_v12  ;;  %v2610_v28 = vpop.f32.mrf.mxu3  ;;  %v10246_v12 = vld [vmem:[#allocation5 + $0x514] sm:$0xf0]  ;;  %v10757_v27 = vpop.eup %10756  ;;  %v8571_v57 = vld [vmem:[#allocation5 + $0x5c0] sm:$0xf] }
 0x399   :  { %6017 = vmatpush.bf16.msra.mxu3 %v8468_v62  ;;  %v2623_v62 = vpop.f32.mrf.mxu1  ;;  %v10759_v13 = vpop.eup %10758  ;;  %v2796_v34 = vmul.f32 %v10757_v27, %v13621_v52  ;;  %v8484_v24 = vor.u32 %v10246_v12, %v8483_v58  ;;  %v8787_v52 = vld [vmem:[#allocation5 + $0x770] sm:$0xf]  ;;  %v8411_v28 = vld [vmem:[#allocation5 + $0x480] sm:$0xf]  ;;  %v10228_v58 = vld [vmem:[#allocation5 + $0x484] sm:$0xf0] }
 0x39a   :  { %v13798_v37 = vpack.c.bf16 %v2793_v53, %v2793_v53  ;;  %v10230_v53 = vld [vmem:[#allocation5 + $0x494] sm:$0xf0]  ;;  %v8788_v43 = vor.u32 %v10322_v55, %v8787_v52  ;;  %v8412_v18 = vor.u32 %v10228_v58, %v8411_v28  ;;  %v10316_v52 = vld [vmem:[#allocation5 + $0x744] sm:$0xf0]  ;;  %v8547_v55 = vld [vmem:[#allocation5 + $0x590] sm:$0xf] }
 0x39b   :  { %v13803_v51 = vpack.c.bf16 %v2796_v34, %v2796_v34  ;;  %v8771_v34 = vld [vmem:[#allocation5 + $0x750] sm:$0xf]  ;;  %v10260_v28 = vld [vmem:[#allocation5 + $0x584] sm:$0xf0] }
 0x39c   :  { %6033 = vmatpush.bf16.msra.mxu1 %v8508_v48  ;;  %5947 = vmatmul.bf16.vlgmr.msrb.gmra.mxu0 %v13798_v37  ;;  %v2795_v48 = vmul.f32 %v10759_v13, %v13631_v21  ;;  %v8476_v21 = vor.u32 %v10244_v31, %v8475_v47  ;;  %v10306_v13 = vld [vmem:[#allocation5 + $0x6f4] sm:$0xf0]  ;;  %v10304_v47 = vld [vmem:[#allocation5 + $0x6e4] sm:$0xf0] }
 0x39d   :  { %6018 = vmatpush.bf16.msra.mxu3 %v8460_v0  ;;  %6043 = vmatpush.bf16.msrb.mxu0 %v8596_v36  ;;  %v8579_v0 = vld [vmem:[#allocation5 + $0x5d0] sm:$0xf]  ;;  %v8779_v36 = vld [vmem:[#allocation5 + $0x760] sm:$0xf] }
 0x39e   :  { %v2634_v61 = vpop.f32.mrf.mxu0  ;;  %v13805_v1 = vpack.c.bf16 %v2795_v48, %v2795_v48  ;;  %5986 = vmatmul.bf16.vlgmr.msrb.gmra.mxu1 %v13803_v51  ;;  %v8780_v27 = vor.u32 %v10320_v42, %v8779_v36  ;;  %v8555_v48 = vld [vmem:[#allocation5 + $0x5a0] sm:$0xf]  ;;  %v8707_v36 = vld [vmem:[#allocation5 + $0x6d0] sm:$0xf]  ;;  %v10302_v42 = vld [vmem:[#allocation5 + $0x6d4] sm:$0xf0] }
 0x39f   :  { %vm2749_vm5 = vcmp.gt.f32.partialorder %v2634_v61, 0.0 }
 0x3a0   :  { %6034 = vmatpush.bf16.msra.mxu1 %v8500_v22  ;;  %v2765_v60 = vsel %vm2749_vm5, %v2634_v61, 1.0  ;;  %v10268_v22 = vld [vmem:[#allocation5 + $0x5c4] sm:$0xf0]  ;;  %5973 = vmatmul.bf16.vlgmr.msrb.gmra.mxu3 %v13805_v1  ;;  %v10318_v61 = vld [vmem:[#allocation5 + $0x754] sm:$0xf0] }
 0x3a1   :  { %6019 = vmatpush.bf16.msra.mxu3 %v8452_v26  ;;  %6044 = vmatpush.bf16.msrb.mxu0 %v8588_v5  ;;  %v8580_v26 = vor.u32 %v10270_v19, %v8579_v0  ;;  %10760 = vrcp.f32 %v2765_v60  ;;  %v8572_v15 = vor.u32 %v10268_v22, %v8571_v57  ;;  %v2673_v33 = vpop.f32.mrf.mxu1  ;;  %v8723_v5 = vld [vmem:[#allocation5 + $0x6f0] sm:$0xf]  ;;  %v8715_v60 = vld [vmem:[#allocation5 + $0x6e0] sm:$0xf]  ;;  %v10262_v57 = vld [vmem:[#allocation5 + $0x594] sm:$0xf0] }
 0x3a2   :  { %vm2752_vm9 = vcmp.gt.f32.partialorder %v2673_v33, 0.0  ;;  %v8724_v8 = vor.u32 %v10306_v13, %v8723_v5  ;;  %v8851_v5 = vld [vmem:[#allocation5 + $0x7f0] sm:$0xf]  ;;  %v10338_v13 = vld [vmem:[#allocation5 + $0x7f4] sm:$0xf0] }
 0x3a3   :  { %v2768_v0 = vsel %vm2752_vm9, %v2673_v33, 1.0  ;;  %v10314_v33 = vld [vmem:[#allocation5 + $0x734] sm:$0xf0] }
 0x3a4   :  { %6035 = vmatpush.bf16.msra.mxu1 %v8492_v7  ;;  %7825 = vmatmul.msk.bf16.vlgmr.msrb.gmra.mxu2 %vm15054_vm11, %v14861_v30  ;;  %v8420_v7 = vor.u32 %v10230_v53, %v8419_v39  ;;  %10762 = vrcp.f32 %v2768_v0  ;;  %v8716_v39 = vor.u32 %v10304_v47, %v8715_v60  ;;  %v2660_v53 = vpop.f32.mrf.mxu3 }
 0x3a5   :  { %6020 = vmatpush.bf16.msra.mxu3 %v8444_v20  ;;  %6045 = vmatpush.bf16.msrb.mxu0 %v8580_v26  ;;  %v10266_v20 = vld [vmem:[#allocation5 + $0x5b4] sm:$0xf0]  ;;  %v8763_v26 = vld [vmem:[#allocation5 + $0x740] sm:$0xf]  ;;  %vm2751_vm5 = vcmp.gt.f32.partialorder %v2660_v53, 0.0 }
 0x3a6   :  { %v2636_v63 = vpop.f32.mrf.mxu0  ;;  %v8564_v19 = vor.u32 %v10266_v20, %v8563_v32 }
 0x3a7   :  { %v10761_v62 = vpop.eup %10760  ;;  %v8755_v63 = vld [vmem:[#allocation5 + $0x730] sm:$0xf] }
 0x3a8   :  { %6036 = vmatpush.bf16.msra.mxu1 %v8484_v24  ;;  %v2797_v12 = vmul.f32 %v10761_v62, %v13623_v16  ;;  %v10264_v24 = vld [vmem:[#allocation5 + $0x5a4] sm:$0xf0]  ;;  %v8772_v16 = vor.u32 %v10318_v61, %v8771_v34  ;;  %v2767_v62 = vsel %vm2751_vm5, %v2660_v53, 1.0  ;;  %v8699_v34 = vld [vmem:[#allocation5 + $0x6c0] sm:$0xf] }
 0x3a9   :  { %6021 = vmatpush.bf16.msra.mxu3 %v8436_v11  ;;  %6046 = vmatpush.bf16.msrb.mxu0 %v8572_v15  ;;  %v8556_v31 = vor.u32 %v10264_v24, %v8555_v48  ;;  %v8764_v15 = vor.u32 %v10316_v52, %v8763_v26  ;;  %v10300_v61 = vld [vmem:[#allocation5 + $0x6c4] sm:$0xf0]  ;;  %v8747_v24 = vld [vmem:[#allocation5 + $0x720] sm:$0xf]  ;;  %v8691_v53 = vld [vmem:[#allocation5 + $0x6b0] sm:$0xf] }
 0x3aa   :  { %v13812_v11 = vpack.c.bf16 %v2797_v12, %v2797_v12  ;;  %v7891_v12 = vld [vmem:[#allocation5 + $0x70] sm:$0xf]  ;;  %v10336_v26 = vld [vmem:[#allocation5 + $0x7e4] sm:$0xf0]  ;;  %v8700_v52 = vor.u32 %v10300_v61, %v8699_v34  ;;  %v10386_v61 = vld [vmem:[#allocation5 + $0x974] sm:$0xf0] }
 0x3ab   :  { %v9043_v34 = vld [vmem:[#allocation5 + $0x970] sm:$0xf] }
 0x3ac   :  { %6037 = vmatpush.bf16.msra.mxu1 %v8476_v21  ;;  %5999 = vmatmul.bf16.vlgmr.msra.gmra.mxu0 %v13812_v11  ;;  %v10763_v21 = vpop.eup %10762 }
 0x3ad   :  { %6022 = vmatpush.bf16.msra.mxu3 %v8428_v29  ;;  %6047 = vmatpush.bf16.msrb.mxu0 %v8564_v19  ;;  %v2675_v29 = vpop.f32.mrf.mxu1  ;;  %v2800_v32 = vmul.f32 %v10763_v21, %v13702_v50  ;;  %v8708_v50 = vor.u32 %v10302_v42, %v8707_v36  ;;  %v8756_v19 = vor.u32 %v10314_v33, %v8755_v63  ;;  %v8739_v42 = vld [vmem:[#allocation5 + $0x710] sm:$0xf]  ;;  %v10334_v33 = vld [vmem:[#allocation5 + $0x7d4] sm:$0xf0] }
 0x3ae   :  { %v2686_v22 = vpop.f32.mrf.mxu0 }
 0x3af   :  { %vm2753_vm12 = vcmp.gt.f32.partialorder %v2686_v22, 0.0  ;;  %v13816_v58 = vpack.c.bf16 %v2800_v32, %v2800_v32  ;;  %v10310_v32 = vld [vmem:[#allocation5 + $0x714] sm:$0xf0] }
 0x3b0   :  { %6082 = vmatpush.bf16.msrb.mxu1 %v8788_v43  ;;  %v8539_v43 = vld [vmem:[#allocation5 + $0x580] sm:$0xf]  ;;  %v2769_v20 = vsel %vm2753_vm12, %v2686_v22, 1.0  ;;  %v2662_v22 = vpop.f32.mrf.mxu3 }
 0x3b1   :  { %6023 = vmatpush.bf16.msra.mxu3 %v8420_v7  ;;  %6048 = vmatpush.bf16.msrb.mxu0 %v8556_v31  ;;  %v8548_v7 = vor.u32 %v10262_v57, %v8547_v55  ;;  %10764 = vrcp.f32 %v2769_v20  ;;  %v8540_v48 = vor.u32 %v10260_v28, %v8539_v43  ;;  %v7883_v55 = vld [vmem:[#allocation5 + $0x60] sm:$0xf]  ;;  %v10096_v57 = vld [vmem:[#allocation5 + $0x64] sm:$0xf0]  ;;  %v10298_v43 = vld [vmem:[#allocation5 + $0x6b4] sm:$0xf0] }
 0x3b2   :  { %10766 = vrcp.f32 %v2767_v62  ;;  %6038 = vmatmul.bf16.vlgmr.msra.gmra.mxu1 %v13816_v58  ;;  %v7875_v28 = vld [vmem:[#allocation5 + $0x50] sm:$0xf]  ;;  %v7867_v22 = vld [vmem:[#allocation5 + $0x40] sm:$0xf] }
 0x3b4   :  { %6083 = vmatpush.bf16.msrb.mxu1 %v8780_v27  ;;  %v10098_v27 = vld [vmem:[#allocation5 + $0x74] sm:$0xf0]  ;;  %7829 = vmatmul.msk.bf16.vlgmr.msra.gmra.mxu2 %vm15054_vm11, %v14861_v30  ;;  %v10504_v30 = vld [vmem:[#allocation5 + $0xd24] sm:$0xf0] }
 0x3b5   :  { %6024 = vmatpush.bf16.msra.mxu3 %v8412_v18  ;;  %v7892_v0 = vor.u32 %v10098_v27, %v7891_v12  ;;  %6049 = vmatpush.bf16.msrb.mxu0 %v8548_v7  ;;  %v10312_v18 = vld [vmem:[#allocation5 + $0x724] sm:$0xf0]  ;;  %v8835_v7 = vld [vmem:[#allocation5 + $0x7d0] sm:$0xf]  ;;  %v10094_v12 = vld [vmem:[#allocation5 + $0x54] sm:$0xf0]  ;;  %v8740_v27 = vor.u32 %v10310_v32, %v8739_v42 }
 0x3b6   :  { %v2688_v60 = vpop.f32.mrf.mxu0  ;;  %v10292_v42 = vld [vmem:[#allocation5 + $0x684] sm:$0xf0] }
 0x3b7   :  { %5900 = vmatpush.bf16.msrb.mxu2 %v7892_v0  ;;  %v10765_v47 = vpop.eup %10764  ;;  %v13821_v31 = vpop.f32.mrf.mxu2  ;;  %v10308_v0 = vld [vmem:[#allocation5 + $0x704] sm:$0xf0]  ;;  %v8675_v60 = vld [vmem:[#allocation5 + $0x690] sm:$0xf] }
 0x3b8   :  { %6084 = vmatpush.bf16.msrb.mxu1 %v8772_v16  ;;  %v8843_v16 = vld [vmem:[#allocation5 + $0x7e0] sm:$0xf]  ;;  %v10767_v29 = vpop.eup %10766  ;;  %v2801_v21 = vmul.f32 %v10765_v47, %v13704_v40  ;;  %v8692_v40 = vor.u32 %v10298_v43, %v8691_v53  ;;  %v10294_v47 = vld [vmem:[#allocation5 + $0x694] sm:$0xf0] }
 0x3b9   :  { %6069 = vmatpush.bf16.msrb.mxu3 %v8724_v8  ;;  %v8852_v8 = vor.u32 %v10338_v13, %v8851_v5  ;;  %6050 = vmatpush.bf16.msrb.mxu0 %v8540_v48  ;;  %v2799_v36 = vmul.f32 %v10767_v29, %v13708_v35  ;;  %v8844_v20 = vor.u32 %v10336_v26, %v8843_v16  ;;  %v8683_v5 = vld [vmem:[#allocation5 + $0x6a0] sm:$0xf]  ;;  %v10296_v13 = vld [vmem:[#allocation5 + $0x6a4] sm:$0xf0]  ;;  %v10330_v53 = vld [vmem:[#allocation5 + $0x7b4] sm:$0xf0] }
 0x3ba   :  { %v13825_v63 = vpack.c.bf16 %v2801_v21, %v2801_v21  ;;  %v7876_v35 = vor.u32 %v10094_v12, %v7875_v28  ;;  %v9044_v26 = vor.u32 %v10386_v61, %v9043_v34  ;;  %v10092_v29 = vld [vmem:[#allocation5 + $0x44] sm:$0xf0]  ;;  %v2712_v21 = vpop.f32.mrf.mxu3  ;;  %v8676_v43 = vor.u32 %v10294_v47, %v8675_v60  ;;  %v9027_v28 = vld [vmem:[#allocation5 + $0x950] sm:$0xf] }
 0x3bb   :  { %v13827_v62 = vpack.c.bf16 %v2799_v36, %v2799_v36  ;;  %vm2755_vm9 = vcmp.gt.f32.partialorder %v2712_v21, 0.0  ;;  %v8667_v36 = vld [vmem:[#allocation5 + $0x680] sm:$0xf]  ;;  %v10380_v47 = vld [vmem:[#allocation5 + $0x944] sm:$0xf0] }
 0x3bc   :  { %6085 = vmatpush.bf16.msrb.mxu1 %v8764_v15  ;;  %v7884_v15 = vor.u32 %v10096_v57, %v7883_v55  ;;  %6051 = vmatmul.bf16.vlgmr.msrb.gmra.mxu0 %v13825_v63  ;;  %v10384_v57 = vld [vmem:[#allocation5 + $0x964] sm:$0xf0]  ;;  %v2771_v32 = vsel %vm2755_vm9, %v2712_v21, 1.0 }
 0x3bd   :  { %6070 = vmatpush.bf16.msrb.mxu3 %v8716_v39  ;;  %v8748_v39 = vor.u32 %v10312_v18, %v8747_v24  ;;  %6095 = vmatpush.bf16.msra.mxu0 %v8852_v8  ;;  %v8827_v24 = vld [vmem:[#allocation5 + $0x7c0] sm:$0xf]  ;;  %v10332_v18 = vld [vmem:[#allocation5 + $0x7c4] sm:$0xf0]  ;;  %v8684_v8 = vor.u32 %v10296_v13, %v8683_v5  ;;  %10768 = vrcp.f32 %v2771_v32  ;;  %v7859_v5 = vld [vmem:[#allocation5 + $0x30] sm:$0xf] }
 0x3be   :  { %5901 = vmatpush.bf16.msrb.mxu2 %v7884_v15  ;;  %6025 = vmatmul.bf16.vlgmr.msra.gmra.mxu3 %v13827_v62  ;;  %v8828_v55 = vor.u32 %v10332_v18, %v8827_v24  ;;  %v7868_v15 = vor.u32 %v10092_v29, %v7867_v22  ;;  %v10090_v13 = vld [vmem:[#allocation5 + $0x34] sm:$0xf0]  ;;  %v8971_v24 = vld [vmem:[#allocation5 + $0x8e0] sm:$0xf]  ;;  %v10368_v18 = vld [vmem:[#allocation5 + $0x8e4] sm:$0xf0] }
 0x3bf   :  { %v2337_v48 = vpop.f32.mrf.mxu2  ;;  %v8803_v22 = vld [vmem:[#allocation5 + $0x790] sm:$0xf]  ;;  %v10326_v29 = vld [vmem:[#allocation5 + $0x794] sm:$0xf0] }
 0x3c0   :  { %6086 = vmatpush.bf16.msrb.mxu1 %v8756_v19  ;;  %v8836_v19 = vor.u32 %v10334_v33, %v8835_v7  ;;  %v8979_v33 = vld [vmem:[#allocation5 + $0x8f0] sm:$0xf]  ;;  %v10366_v32 = vld [vmem:[#allocation5 + $0x8d4] sm:$0xf0] }
 0x3c1   :  { %6071 = vmatpush.bf16.msrb.mxu3 %v8708_v50  ;;  %v8731_v50 = vld [vmem:[#allocation5 + $0x700] sm:$0xf]  ;;  %6096 = vmatpush.bf16.msra.mxu0 %v8844_v20 }
 0x3c2   :  { %5902 = vmatpush.bf16.msrb.mxu2 %v7876_v35  ;;  %v8732_v16 = vor.u32 %v10308_v0, %v8731_v50  ;;  %v8811_v20 = vld [vmem:[#allocation5 + $0x7a0] sm:$0xf]  ;;  %v10328_v35 = vld [vmem:[#allocation5 + $0x7a4] sm:$0xf0]  ;;  %v8668_v50 = vor.u32 %v10292_v42, %v8667_v36  ;;  %v7860_v0 = vor.u32 %v10090_v13, %v7859_v5  ;;  %v8963_v42 = vld [vmem:[#allocation5 + $0x8d0] sm:$0xf] }
 0x3c3   :  { %v10086_v5 = vld [vmem:[#allocation5 + $0x14] sm:$0xf0] }
 0x3c4   :  { %6087 = vmatpush.bf16.msrb.mxu1 %v8748_v39  ;;  %v8819_v39 = vld [vmem:[#allocation5 + $0x7b0] sm:$0xf] }
 0x3c5   :  { %6072 = vmatpush.bf16.msrb.mxu3 %v8700_v52  ;;  %v9035_v52 = vld [vmem:[#allocation5 + $0x960] sm:$0xf]  ;;  %6097 = vmatpush.bf16.msra.mxu0 %v8836_v19  ;;  %v8820_v12 = vor.u32 %v10330_v53, %v8819_v39  ;;  %v2738_v39 = vpop.f32.mrf.mxu0  ;;  %v2714_v53 = vpop.f32.mrf.mxu3 }
 0x3c6   :  { %v9036_v7 = vor.u32 %v10384_v57, %v9035_v52  ;;  %5903 = vmatpush.bf16.msrb.mxu2 %v7868_v15  ;;  %v6732_v19 = vld [vmem:[#allocation7] ss:$2 sm:$0x3]  ;;  %v10088_v52 = vld [vmem:[#allocation5 + $0x24] sm:$0xf0]  ;;  %v10769_v57 = vpop.eup %10768  ;;  %v8972_v15 = vor.u32 %v10368_v18, %v8971_v24  ;;  %vm2757_vm5 = vcmp.gt.f32.partialorder %v2738_v39, 0.0 }
 0x3c7   :  { %v6740_v61 = vperm.slane %v6732_v19, 1  ;;  %v9107_v19 = vld [vmem:[#allocation5 + $0x9f0] sm:$0xf]  ;;  %v8955_v24 = vld [vmem:[#allocation5 + $0x8c0] sm:$0xf] }
 0x3c8   :  { %6088 = vmatpush.bf16.msrb.mxu1 %v8740_v27  ;;  %v10382_v27 = vld [vmem:[#allocation5 + $0x954] sm:$0xf0]  ;;  %v10364_v18 = vld [vmem:[#allocation5 + $0x8c4] sm:$0xf0] }
 0x3c9   :  { %6073 = vmatpush.bf16.msrb.mxu3 %v8692_v40  ;;  %v10370_v40 = vld [vmem:[#allocation5 + $0x8f4] sm:$0xf0]  ;;  %6098 = vmatpush.bf16.msra.mxu0 %v8828_v55  ;;  %v9028_v48 = vor.u32 %v10382_v27, %v9027_v28  ;;  %v2725_v55 = vpop.f32.mrf.mxu1  ;;  %v8804_v28 = vor.u32 %v10326_v29, %v8803_v22  ;;  %v2773_v27 = vsel %vm2757_vm5, %v2738_v39, 1.0  ;;  %v9099_v22 = vld [vmem:[#allocation5 + $0x9e0] sm:$0xf]  ;;  %v8956_v39 = vor.u32 %v10364_v18, %v8955_v24 }
 0x3ca   :  { %v8980_v34 = vor.u32 %v10370_v40, %v8979_v33  ;;  %5904 = vmatpush.bf16.msrb.mxu2 %v7860_v0  ;;  %vm2756_vm12 = vcmp.gt.f32.partialorder %v2725_v55, 0.0  ;;  %v9011_v33 = vld [vmem:[#allocation5 + $0x930] sm:$0xf]  ;;  %v10400_v29 = vld [vmem:[#allocation5 + $0x9e4] sm:$0xf0] }
 0x3cb   :  { %v13831_v60 = vpop.permute.xlu2 %6735  ;;  %v7843_v40 = vld [vmem:[#allocation5 + $0x10] sm:$0xf]  ;;  %v10160_v24 = vld [vmem:[#allocation5 + $0x264] sm:$0xf0] }
 0x3cc   :  { %6089 = vmatpush.bf16.msrb.mxu1 %v8732_v16  ;;  %v8812_v16 = vor.u32 %v10328_v35, %v8811_v20  ;;  %15055 = vst [vmem:[#allocation151_spill] sm:$0xff] %v13831_v60  ;;  %v13834_v21 = vmul.f32 %v6740_v61, %v13831_v60  ;;  %v8795_v35 = vld [vmem:[#allocation5 + $0x780] sm:$0xf]  ;;  %v7844_v0 = vor.u32 %v10086_v5, %v7843_v40  ;;  %v8947_v5 = vld [vmem:[#allocation5 + $0x8b0] sm:$0xf] }
 0x3cd   :  { %6074 = vmatpush.bf16.msrb.mxu3 %v8684_v8  ;;  %v9019_v8 = vld [vmem:[#allocation5 + $0x940] sm:$0xf]  ;;  %6099 = vmatpush.bf16.msra.mxu0 %v8820_v12  ;;  %v8964_v61 = vor.u32 %v10366_v32, %v8963_v42  ;;  %v9100_v40 = vor.u32 %v10400_v29, %v9099_v22  ;;  %v10191_v60 = vld [vmem:[#allocation5 + $0x364] sm:$0xf] }
 0x3ce   :  { %15056 = vst [vmem:[#allocation84_spill] sm:$0xff] %v13834_v21  ;;  %v9020_v20 = vor.u32 %v10380_v47, %v9019_v8  ;;  %v10376_v47 = vld [vmem:[#allocation5 + $0x924] sm:$0xf0]  ;;  %v7835_v32 = vld [vmem:[#allocation5] sm:$0xf] }
 0x3d0   :  { %6134 = vmatpush.bf16.msra.mxu1 %v9044_v26  ;;  %v7851_v26 = vld [vmem:[#allocation5 + $0x20] sm:$0xf] }
 0x3d1   :  { %6075 = vmatpush.bf16.msrb.mxu3 %v8676_v43  ;;  %v2803_v43 = vmul.f32 %v10769_v57, %v13752_v54  ;;  %v7852_v36 = vor.u32 %v10088_v52, %v7851_v26  ;;  %6100 = vmatpush.bf16.msra.mxu0 %v8812_v16  ;;  %v10378_v54 = vld [vmem:[#allocation5 + $0x934] sm:$0xf0]  ;;  %v13839_v13 = vpop.f32.mrf.mxu2  ;;  %v9003_v16 = vld [vmem:[#allocation5 + $0x920] sm:$0xf]  ;;  %v2727_v26 = vpop.f32.mrf.mxu1 }
 0x3d3   :  { %v13837_v12 = vpack.c.bf16 %v2803_v43, %v2803_v43  ;;  %5905 = vmatpush.bf16.msrb.mxu2 %v7852_v36  ;;  %v9091_v36 = vld [vmem:[#allocation5 + $0x9d0] sm:$0xf] }
 0x3d4   :  { %6135 = vmatpush.bf16.msra.mxu1 %v9036_v7  ;;  %v2772_v7 = vsel %vm2756_vm12, %v2725_v55, 1.0  ;;  %v2740_v55 = vpop.f32.mrf.mxu0 }
 0x3d5   :  { %6076 = vmatpush.bf16.msrb.mxu3 %v8668_v50  ;;  %10770 = vrcp.f32 %v2772_v7  ;;  %v10324_v50 = vld [vmem:[#allocation5 + $0x784] sm:$0xf0]  ;;  %6101 = vmatpush.bf16.msra.mxu0 %v8804_v28  ;;  %v8147_v7 = vld [vmem:[#allocation5 + $0x270] sm:$0xf]  ;;  %v9083_v55 = vld [vmem:[#allocation5 + $0x9c0] sm:$0xf] }
 0x3d6   :  { %10772 = vrcp.f32 %v2773_v27  ;;  %v8796_v8 = vor.u32 %v10324_v50, %v8795_v35  ;;  %v10362_v35 = vld [vmem:[#allocation5 + $0x8b4] sm:$0xf0] }
 0x3d7   :  { %5906 = vmatpush.bf16.msrb.mxu2 %v7844_v0  ;;  %v10398_v50 = vld [vmem:[#allocation5 + $0x9d4] sm:$0xf0] }
 0x3d8   :  { %6136 = vmatpush.bf16.msra.mxu1 %v9028_v48  ;;  %v9012_v48 = vor.u32 %v10378_v54, %v9011_v33  ;;  %6077 = vmatmul.bf16.vlgmr.msrb.gmra.mxu3 %v13837_v12  ;;  %v10162_v54 = vld [vmem:[#allocation5 + $0x274] sm:$0xf0]  ;;  %v9092_v26 = vor.u32 %v10398_v50, %v9091_v36 }
 0x3d9   :  { %6121 = vmatpush.bf16.msra.mxu3 %v8980_v34  ;;  %v10402_v34 = vld [vmem:[#allocation5 + $0x9f4] sm:$0xf0]  ;;  %6102 = vmatpush.bf16.msra.mxu0 %v8796_v8  ;;  %v2389_v33 = vpop.f32.mrf.mxu2  ;;  %v8148_v0 = vor.u32 %v10162_v54, %v8147_v7  ;;  %v8939_v8 = vld [vmem:[#allocation5 + $0x8a0] sm:$0xf] }
 0x3da   :  { %v9108_v52 = vor.u32 %v10402_v34, %v9107_v19  ;;  %v8948_v19 = vor.u32 %v10362_v35, %v8947_v5  ;;  %v8995_v34 = vld [vmem:[#allocation5 + $0x910] sm:$0xf]  ;;  %v10158_v7 = vld [vmem:[#allocation5 + $0x254] sm:$0xf0]  ;;  %v10448_v5 = vld [vmem:[#allocation5 + $0xb64] sm:$0xf0] }
 0x3db   :  { %v10771_v57 = vpop.eup %10770  ;;  %v8931_v33 = vld [vmem:[#allocation5 + $0x890] sm:$0xf] }
 0x3dc   :  { %6137 = vmatpush.bf16.msra.mxu1 %v9020_v20  ;;  %v10773_v53 = vpop.eup %10772  ;;  %v2804_v43 = vmul.f32 %v10771_v57, %v13762_v38  ;;  %v10084_v20 = vld [vmem:[#allocation5 + $0x4] sm:$0xf0] }
 0x3dd   :  { %6122 = vmatpush.bf16.msra.mxu3 %v8972_v15  ;;  %v9004_v15 = vor.u32 %v10376_v47, %v9003_v16  ;;  %v2805_v42 = vmul.f32 %v10773_v53, %v13779_v3  ;;  %6147 = vmatpush.bf16.msrb.mxu0 %v9108_v52  ;;  %v7836_v27 = vor.u32 %v10084_v20, %v7835_v32  ;;  %v10374_v3 = vld [vmem:[#allocation5 + $0x914] sm:$0xf0]  ;;  %v10360_v16 = vld [vmem:[#allocation5 + $0x8a4] sm:$0xf0]  ;;  %v8987_v47 = vld [vmem:[#allocation5 + $0x900] sm:$0xf] }
 0x3de   :  { %v13844_v28 = vpack.c.bf16 %v2804_v43, %v2804_v43  ;;  %v10372_v52 = vld [vmem:[#allocation5 + $0x904] sm:$0xf0]  ;;  %v8940_v22 = vor.u32 %v10360_v16, %v8939_v8  ;;  %v9299_v53 = vld [vmem:[#allocation5 + $0xb70] sm:$0xf]  ;;  %v10450_v43 = vld [vmem:[#allocation5 + $0xb74] sm:$0xf0] }
 0x3df   :  { %v13846_v38 = vpack.c.bf16 %v2805_v42, %v2805_v42  ;;  %5907 = vmatpush.bf16.msrb.mxu2 %v7836_v27  ;;  %v10396_v57 = vld [vmem:[#allocation5 + $0x9c4] sm:$0xf0]  ;;  %v8988_v29 = vor.u32 %v10372_v52, %v8987_v47  ;;  %v10394_v42 = vld [vmem:[#allocation5 + $0x9b4] sm:$0xf0]  ;;  %v9300_v32 = vor.u32 %v10450_v43, %v9299_v53  ;;  %v8131_v20 = vld [vmem:[#allocation5 + $0x250] sm:$0xf] }
 0x3e0   :  { %6138 = vmatpush.bf16.msra.mxu1 %v9012_v48  ;;  %v8139_v48 = vld [vmem:[#allocation5 + $0x260] sm:$0xf]  ;;  %v8132_v36 = vor.u32 %v10158_v7, %v8131_v20  ;;  %v10392_v16 = vld [vmem:[#allocation5 + $0x9a4] sm:$0xf0] }
 0x3e1   :  { %6123 = vmatpush.bf16.msra.mxu3 %v8964_v61  ;;  %v8996_v61 = vor.u32 %v10374_v3, %v8995_v34  ;;  %v8140_v18 = vor.u32 %v10160_v24, %v8139_v48  ;;  %6090 = vmatmul.bf16.vlgmr.msrb.gmra.mxu1 %v13844_v28  ;;  %v9291_v27 = vld [vmem:[#allocation5 + $0xb60] sm:$0xf]  ;;  %v10356_v48 = vld [vmem:[#allocation5 + $0x884] sm:$0xf0]  ;;  %v9235_v24 = vld [vmem:[#allocation5 + $0xaf0] sm:$0xf] }
 0x3e2   :  { %6148 = vmatpush.bf16.msrb.mxu0 %v9100_v40  ;;  %v10358_v40 = vld [vmem:[#allocation5 + $0x894] sm:$0xf0]  ;;  %v9292_v50 = vor.u32 %v10448_v5, %v9291_v27  ;;  %v8923_v34 = vld [vmem:[#allocation5 + $0x880] sm:$0xf]  ;;  %v8115_v5 = vld [vmem:[#allocation5 + $0x230] sm:$0xf] }
 0x3e3   :  { %5952 = vmatpush.bf16.msra.mxu2 %v8148_v0  ;;  %6103 = vmatmul.bf16.vlgmr.msra.gmra.mxu0 %v13846_v38  ;;  %v8932_v54 = vor.u32 %v10358_v40, %v8931_v33  ;;  %v8123_v0 = vld [vmem:[#allocation5 + $0x240] sm:$0xf]  ;;  %v8924_v47 = vor.u32 %v10356_v48, %v8923_v34  ;;  %v10464_v33 = vld [vmem:[#allocation5 + $0xbe4] sm:$0xf0]  ;;  %v9283_v40 = vld [vmem:[#allocation5 + $0xb50] sm:$0xf] }
 0x3e4   :  { %6139 = vmatpush.bf16.msra.mxu1 %v9004_v15  ;;  %v9084_v15 = vor.u32 %v10396_v57, %v9083_v55  ;;  %v13850_v35 = vpop.f32.mrf.mxu2  ;;  %v9067_v8 = vld [vmem:[#allocation5 + $0x9a0] sm:$0xf]  ;;  %v9059_v55 = vld [vmem:[#allocation5 + $0x990] sm:$0xf]  ;;  %v10390_v57 = vld [vmem:[#allocation5 + $0x994] sm:$0xf0] }
 0x3e5   :  { %6124 = vmatpush.bf16.msra.mxu3 %v8956_v39  ;;  %v9075_v39 = vld [vmem:[#allocation5 + $0x9b0] sm:$0xf]  ;;  %v9068_v52 = vor.u32 %v10392_v16, %v9067_v8  ;;  %v15058_v53 = vld [vmem:[#allocation29_spill] sm:$0xff]  ;;  %v10446_v27 = vld [vmem:[#allocation5 + $0xb54] sm:$0xf0] }
 0x3e6   :  { %6149 = vmatpush.bf16.msrb.mxu0 %v9092_v26  ;;  %v9076_v3 = vor.u32 %v10394_v42, %v9075_v39  ;;  %v9060_v39 = vor.u32 %v10390_v57, %v9059_v55  ;;  %v9051_v43 = vld [vmem:[#allocation5 + $0x980] sm:$0xf]  ;;  %v9363_v42 = vld [vmem:[#allocation5 + $0xbf0] sm:$0xf]  ;;  %v10444_v8 = vld [vmem:[#allocation5 + $0xb44] sm:$0xf0] }
 0x3e7   :  { %5953 = vmatpush.bf16.msra.mxu2 %v8140_v18  ;;  %v10434_v18 = vld [vmem:[#allocation5 + $0xaf4] sm:$0xf0]  ;;  %v9227_v34 = vld [vmem:[#allocation5 + $0xae0] sm:$0xf]  ;;  %v9347_v48 = vld [vmem:[#allocation5 + $0xbd0] sm:$0xf] }
 0x3e8   :  { %6140 = vmatpush.bf16.msra.mxu1 %v8996_v61  ;;  %v9236_v26 = vor.u32 %v10434_v18, %v9235_v24  ;;  %v10462_v24 = vld [vmem:[#allocation5 + $0xbd4] sm:$0xf0]  ;;  %v9219_v55 = vld [vmem:[#allocation5 + $0xad0] sm:$0xf] }
 0x3e9   :  { %6125 = vmatpush.bf16.msra.mxu3 %v8948_v19  ;;  %v10156_v19 = vld [vmem:[#allocation5 + $0x244] sm:$0xf0]  ;;  %v15059_v57 = vld [vmem:[#allocation39_spill] sm:$0xff] }
 0x3ea   :  { %6150 = vmatpush.bf16.msrb.mxu0 %v9084_v15  ;;  %v8124_v61 = vor.u32 %v10156_v19, %v8123_v0  ;;  %v10388_v15 = vld [vmem:[#allocation5 + $0x984] sm:$0xf0] }
 0x3eb   :  { %5954 = vmatpush.bf16.msra.mxu2 %v8132_v36  ;;  %v9052_v20 = vor.u32 %v10388_v15, %v9051_v43  ;;  %v9355_v36 = vld [vmem:[#allocation5 + $0xbe0] sm:$0xf]  ;;  %v9267_v43 = vld [vmem:[#allocation5 + $0xb30] sm:$0xf]  ;;  %v10442_v15 = vld [vmem:[#allocation5 + $0xb34] sm:$0xf0] }
 0x3ec   :  { %6141 = vmatpush.bf16.msra.mxu1 %v8988_v29  ;;  %v15057_v29 = vld [vmem:[#allocation30_spill] sm:$0xff]  ;;  %v9356_v0 = vor.u32 %v10464_v33, %v9355_v36  ;;  %v9268_v33 = vor.u32 %v10442_v15, %v9267_v43 }
 0x3ed   :  { %6126 = vmatpush.bf16.msra.mxu3 %v8940_v22  ;;  %v2441_v22 = vpop.f32.mrf.mxu2  ;;  %v8099_v36 = vld [vmem:[#allocation5 + $0x210] sm:$0xf]  ;;  %v10456_v43 = vld [vmem:[#allocation5 + $0xba4] sm:$0xf0] }
 0x3ee   :  { %6151 = vmatpush.bf16.msrb.mxu0 %v9076_v3  ;;  %v10432_v3 = vld [vmem:[#allocation5 + $0xae4] sm:$0xf0]  ;;  %v9251_v15 = vld [vmem:[#allocation5 + $0xb10] sm:$0xf] }
 0x3ef   :  { %5955 = vmatpush.bf16.msra.mxu2 %v8124_v61  ;;  %v9275_v61 = vld [vmem:[#allocation5 + $0xb40] sm:$0xf]  ;;  %v9228_v18 = vor.u32 %v10432_v3, %v9227_v34 }
 0x3f0   :  { %6186 = vmatpush.bf16.msrb.mxu1 %v9300_v32  ;;  %v10466_v32 = vld [vmem:[#allocation5 + $0xbf4] sm:$0xf0]  ;;  %v8091_v3 = vld [vmem:[#allocation5 + $0x200] sm:$0xf] }
 0x3f1   :  { %6127 = vmatpush.bf16.msra.mxu3 %v8932_v54  ;;  %6142 = vmatmul.bf16.vlgmr.msra.gmra.mxu1 %v15057_v29  ;;  %v9364_v7 = vor.u32 %v10466_v32, %v9363_v42  ;;  %v9284_v54 = vor.u32 %v10446_v27, %v9283_v40  ;;  %v9348_v42 = vor.u32 %v10462_v24, %v9347_v48  ;;  %v9339_v32 = vld [vmem:[#allocation5 + $0xbc0] sm:$0xf]  ;;  %v10150_v40 = vld [vmem:[#allocation5 + $0x214] sm:$0xf0]  ;;  %v9203_v48 = vld [vmem:[#allocation5 + $0xab0] sm:$0xf] }
 0x3f2   :  { %6152 = vmatpush.bf16.msrb.mxu0 %v9068_v52  ;;  %v10152_v52 = vld [vmem:[#allocation5 + $0x224] sm:$0xf0]  ;;  %v9211_v27 = vld [vmem:[#allocation5 + $0xac0] sm:$0xf]  ;;  %v9331_v24 = vld [vmem:[#allocation5 + $0xbb0] sm:$0xf] }
 0x3f4   :  { %6187 = vmatpush.bf16.msrb.mxu1 %v9292_v50  ;;  %v10154_v50 = vld [vmem:[#allocation5 + $0x234] sm:$0xf0] }
 0x3f5   :  { %6128 = vmatpush.bf16.msra.mxu3 %v8924_v47  ;;  %v8116_v19 = vor.u32 %v10154_v50, %v8115_v5  ;;  %v9276_v47 = vor.u32 %v10444_v8, %v9275_v61  ;;  %v8100_v5 = vor.u32 %v10150_v40, %v8099_v36  ;;  %v9259_v50 = vld [vmem:[#allocation5 + $0xb20] sm:$0xf]  ;;  %v10148_v61 = vld [vmem:[#allocation5 + $0x204] sm:$0xf0]  ;;  %v9315_v40 = vld [vmem:[#allocation5 + $0xb90] sm:$0xf] }
 0x3f6   :  { %6153 = vmatpush.bf16.msrb.mxu0 %v9060_v39  ;;  %v10430_v39 = vld [vmem:[#allocation5 + $0xad4] sm:$0xf0]  ;;  %v10424_v36 = vld [vmem:[#allocation5 + $0xaa4] sm:$0xf0] }
 0x3f7   :  { %v13854_v16 = vpop.f32.mrf.mxu2  ;;  %5956 = vmatpush.bf16.msra.mxu2 %v8116_v19  ;;  %v10440_v19 = vld [vmem:[#allocation5 + $0xb24] sm:$0xf0] }
 0x3f8   :  { %6129 = vmatmul.bf16.vlgmr.msra.gmra.mxu3 %v15058_v53  ;;  %6188 = vmatpush.bf16.msrb.mxu1 %v9284_v54  ;;  %v10428_v54 = vld [vmem:[#allocation5 + $0xac4] sm:$0xf0]  ;;  %v9260_v8 = vor.u32 %v10440_v19, %v9259_v50 }
 0x3f9   :  { %6173 = vmatpush.bf16.msrb.mxu3 %v9236_v26  ;;  %v8107_v26 = vld [vmem:[#allocation5 + $0x220] sm:$0xf]  ;;  %v9212_v34 = vor.u32 %v10428_v54, %v9211_v27  ;;  %v10454_v27 = vld [vmem:[#allocation5 + $0xb94] sm:$0xf0] }
 0x3fa   :  { %6154 = vmatpush.bf16.msrb.mxu0 %v9052_v20  ;;  %v8108_v22 = vor.u32 %v10152_v52, %v8107_v26  ;;  %v10460_v20 = vld [vmem:[#allocation5 + $0xbc4] sm:$0xf0]  ;;  %v8092_v52 = vor.u32 %v10148_v61, %v8091_v3  ;;  %v10514_v3 = vld [vmem:[#allocation5 + $0xd74] sm:$0xf0]  ;;  %v9307_v61 = vld [vmem:[#allocation5 + $0xb80] sm:$0xf] }
 0x3fc   :  { %6189 = vmatpush.bf16.msrb.mxu1 %v9276_v47  ;;  %5957 = vmatpush.bf16.msra.mxu2 %v8108_v22  ;;  %v10426_v47 = vld [vmem:[#allocation5 + $0xab4] sm:$0xf0] }
 0x3fd   :  { %6155 = vmatmul.bf16.vlgmr.msrb.gmra.mxu0 %v15059_v57  ;;  %6174 = vmatpush.bf16.msrb.mxu3 %v9228_v18  ;;  %v10458_v18 = vld [vmem:[#allocation5 + $0xbb4] sm:$0xf0] }
 0x3fe   :  { %6199 = vmatpush.bf16.msra.mxu0 %v9364_v7  ;;  %v9220_v7 = vor.u32 %v10430_v39, %v9219_v55  ;;  %v9204_v55 = vor.u32 %v10426_v47, %v9203_v48  ;;  %v9332_v22 = vor.u32 %v10458_v18, %v9331_v24  ;;  %v9323_v39 = vld [vmem:[#allocation5 + $0xba0] sm:$0xf]  ;;  %v9316_v24 = vor.u32 %v10454_v27, %v9315_v40  ;;  %v10452_v18 = vld [vmem:[#allocation5 + $0xb84] sm:$0xf0]  ;;  %v10422_v47 = vld [vmem:[#allocation5 + $0xa94] sm:$0xf0] }
 0x3ff   :  { %v2493_v26 = vpop.f32.mrf.mxu2  ;;  %v8403_v40 = vld [vmem:[#allocation5 + $0x470] sm:$0xf] }
 0x400   :  { %6190 = vmatpush.bf16.msrb.mxu1 %v9268_v33  ;;  %5958 = vmatpush.bf16.msra.mxu2 %v8100_v5  ;;  %v9243_v33 = vld [vmem:[#allocation5 + $0xb00] sm:$0xf]  ;;  %v10436_v5 = vld [vmem:[#allocation5 + $0xb04] sm:$0xf0] }
 0x401   :  { %6175 = vmatpush.bf16.msrb.mxu3 %v9220_v7  ;;  %v9195_v7 = vld [vmem:[#allocation5 + $0xaa0] sm:$0xf]  ;;  %v9244_v19 = vor.u32 %v10436_v5, %v9243_v33  ;;  %v9539_v33 = vld [vmem:[#allocation5 + $0xd50] sm:$0xf]  ;;  %v10510_v5 = vld [vmem:[#allocation5 + $0xd54] sm:$0xf0] }
 0x402   :  { %6200 = vmatpush.bf16.msra.mxu0 %v9356_v0  ;;  %v9340_v0 = vor.u32 %v10460_v20, %v9339_v32  ;;  %v9324_v20 = vor.u32 %v10456_v43, %v9323_v39  ;;  %v9196_v54 = vor.u32 %v10424_v36, %v9195_v7  ;;  %v9547_v26 = vld [vmem:[#allocation5 + $0xd60] sm:$0xf]  ;;  %v10498_v36 = vld [vmem:[#allocation5 + $0xcf4] sm:$0xf0] }
 0x404   :  { %6191 = vmatpush.bf16.msrb.mxu1 %v9260_v8  ;;  %5959 = vmatpush.bf16.msra.mxu2 %v8092_v52  ;;  %v9187_v8 = vld [vmem:[#allocation5 + $0xa90] sm:$0xf]  ;;  %v10512_v52 = vld [vmem:[#allocation5 + $0xd64] sm:$0xf0] }
 0x405   :  { %6176 = vmatpush.bf16.msrb.mxu3 %v9212_v34  ;;  %v9555_v34 = vld [vmem:[#allocation5 + $0xd70] sm:$0xf]  ;;  %v9188_v39 = vor.u32 %v10422_v47, %v9187_v8  ;;  %v9548_v43 = vor.u32 %v10512_v52, %v9547_v26  ;;  %v8395_v26 = vld [vmem:[#allocation5 + $0x460] sm:$0xf]  ;;  %v10224_v52 = vld [vmem:[#allocation5 + $0x464] sm:$0xf0] }
 0x406   :  { %6201 = vmatpush.bf16.msra.mxu0 %v9348_v42  ;;  %v10438_v42 = vld [vmem:[#allocation5 + $0xb14] sm:$0xf0]  ;;  %v13870_v45 = vpop.f32.mrf.mxu1 }
 0x407   :  { %v9252_v32 = vor.u32 %v10438_v42, %v9251_v15  ;;  %v2543_v50 = vpop.f32.mrf.mxu2  ;;  %v9179_v15 = vld [vmem:[#allocation5 + $0xa80] sm:$0xf]  ;;  %v10420_v42 = vld [vmem:[#allocation5 + $0xa84] sm:$0xf0] }
 0x408   :  { %vm2742_vm11 = vcmp.gt.f32.partialorder %v2543_v50, 0.0  ;;  %v9180_v7 = vor.u32 %v10420_v42, %v9179_v15  ;;  %v9531_v42 = vld [vmem:[#allocation5 + $0xd40] sm:$0xf] }
 0x409   :  { %6177 = vmatpush.bf16.msrb.mxu3 %v9204_v55  ;;  %6192 = vmatpush.bf16.msrb.mxu1 %v9252_v32  ;;  %v2758_v48 = vsel %vm2742_vm11, %v2543_v50, 1.0  ;;  %v9619_v55 = vld [vmem:[#allocation5 + $0xdf0] sm:$0xf]  ;;  %v9308_v32 = vor.u32 %v10452_v18, %v9307_v61  ;;  %v15060_v50 = vld [vmem:[#allocation32_spill] sm:$0xff]  ;;  %v10496_v61 = vld [vmem:[#allocation5 + $0xce4] sm:$0xf0] }
 0x40a   :  { %6202 = vmatpush.bf16.msra.mxu0 %v9340_v0  ;;  %v9556_v0 = vor.u32 %v10514_v3, %v9555_v34  ;;  %10774 = vrcp.f32 %v2758_v48  ;;  %v10226_v34 = vld [vmem:[#allocation5 + $0x474] sm:$0xf0]  ;;  %v9611_v3 = vld [vmem:[#allocation5 + $0xde0] sm:$0xf]  ;;  %v9540_v48 = vor.u32 %v10510_v5, %v9539_v33 }
 0x40b   :  { %v8404_v47 = vor.u32 %v10226_v34, %v8403_v40  ;;  %v15061_v33 = vld [vmem:[#allocation40_spill] sm:$0xff]  ;;  %v9523_v40 = vld [vmem:[#allocation5 + $0xd30] sm:$0xf] }
 0x40c   :  { %v10222_v5 = vld [vmem:[#allocation5 + $0x454] sm:$0xf0] }
 0x40d   :  { %6178 = vmatpush.bf16.msrb.mxu3 %v9196_v54  ;;  %6193 = vmatpush.bf16.msrb.mxu1 %v9244_v19  ;;  %v10506_v34 = vld [vmem:[#allocation5 + $0xd34] sm:$0xf0] }
 0x40e   :  { %6203 = vmatpush.bf16.msra.mxu0 %v9332_v22  ;;  %v10530_v22 = vld [vmem:[#allocation5 + $0xdf4] sm:$0xf0] }
 0x40f   :  { %v9620_v27 = vor.u32 %v10530_v22, %v9619_v55  ;;  %v2545_v19 = vpop.f32.mrf.mxu2  ;;  %v9603_v22 = vld [vmem:[#allocation5 + $0xdd0] sm:$0xf] }
 0x410   :  { %6194 = vmatmul.bf16.vlgmr.msrb.gmra.mxu1 %v15060_v50  ;;  %v10775_v8 = vpop.eup %10774 }
 0x411   :  { %6238 = vmatpush.bf16.msra.mxu1 %v9556_v0  ;;  %6179 = vmatpush.bf16.msrb.mxu3 %v9188_v39  ;;  %v10528_v0 = vld [vmem:[#allocation5 + $0xde4] sm:$0xf0]  ;;  %v2790_v18 = vmul.f32 %v10775_v8, %v13821_v31  ;;  %v15062_v31 = vld [vmem:[#allocation31_spill] sm:$0xff] }
 0x412   :  { %6204 = vmatpush.bf16.msra.mxu0 %v9324_v20  ;;  %v9491_v20 = vld [vmem:[#allocation5 + $0xcf0] sm:$0xf]  ;;  %v9612_v55 = vor.u32 %v10528_v0, %v9611_v3  ;;  %v9595_v0 = vld [vmem:[#allocation5 + $0xdc0] sm:$0xf] }
 0x413   :  { %v9492_v54 = vor.u32 %v10498_v36, %v9491_v20  ;;  %v13859_v39 = vpack.c.bf16 %v2790_v18, %v2790_v18  ;;  %v10508_v20 = vld [vmem:[#allocation5 + $0xd44] sm:$0xf0] }
 0x414   :  { %v9532_v36 = vor.u32 %v10508_v20, %v9531_v42  ;;  %v10492_v18 = vld [vmem:[#allocation5 + $0xcc4] sm:$0xf0]  ;;  %v9515_v42 = vld [vmem:[#allocation5 + $0xd20] sm:$0xf] }
 0x415   :  { %6239 = vmatpush.bf16.msra.mxu1 %v9548_v43  ;;  %6180 = vmatpush.bf16.msrb.mxu3 %v9180_v7  ;;  %v10526_v43 = vld [vmem:[#allocation5 + $0xdd4] sm:$0xf0] }
 0x416   :  { %6205 = vmatpush.bf16.msra.mxu0 %v9316_v24  ;;  %v9483_v24 = vld [vmem:[#allocation5 + $0xce0] sm:$0xf]  ;;  %5908 = vmatmul.bf16.vlgmr.msrb.gmra.mxu2 %v13859_v39  ;;  %v10494_v7 = vld [vmem:[#allocation5 + $0xcd4] sm:$0xf0]  ;;  %v9604_v19 = vor.u32 %v10526_v43, %v9603_v22  ;;  %v9587_v22 = vld [vmem:[#allocation5 + $0xdb0] sm:$0xf] }
 0x417   :  { %v9484_v15 = vor.u32 %v10496_v61, %v9483_v24  ;;  %6004 = vmatpush.bf16.msrb.mxu2 %v8404_v47  ;;  %v2595_v3 = vpop.f32.mrf.mxu2  ;;  %v9524_v24 = vor.u32 %v10506_v34, %v9523_v40  ;;  %v9467_v61 = vld [vmem:[#allocation5 + $0xcc0] sm:$0xf]  ;;  %v10522_v43 = vld [vmem:[#allocation5 + $0xdb4] sm:$0xf0]  ;;  %v9507_v40 = vld [vmem:[#allocation5 + $0xd10] sm:$0xf] }
 0x418   :  { %6181 = vmatmul.bf16.vlgmr.msrb.gmra.mxu3 %v15062_v31  ;;  %vm2746_vm9 = vcmp.gt.f32.partialorder %v2595_v3, 0.0  ;;  %v10502_v34 = vld [vmem:[#allocation5 + $0xd14] sm:$0xf0] }
 0x419   :  { %6225 = vmatpush.bf16.msra.mxu3 %v9492_v54  ;;  %6240 = vmatpush.bf16.msra.mxu1 %v9540_v48  ;;  %v8387_v54 = vld [vmem:[#allocation5 + $0x450] sm:$0xf]  ;;  %v10524_v48 = vld [vmem:[#allocation5 + $0xdc4] sm:$0xf0]  ;;  %v2762_v20 = vsel %vm2746_vm9, %v2595_v3, 1.0  ;;  %vm15081_vm9 = vcmask 1043456  }
 0x41a   :  { %6206 = vmatpush.bf16.msra.mxu0 %v9308_v32  ;;  %v9475_v32 = vld [vmem:[#allocation5 + $0xcd0] sm:$0xf]  ;;  %10776 = vrcp.f32 %v2762_v20  ;;  %v8388_v47 = vor.u32 %v10222_v5, %v8387_v54  ;;  %v10218_v5 = vld [vmem:[#allocation5 + $0x434] sm:$0xf0]  ;;  %v8363_v20 = vld [vmem:[#allocation5 + $0x420] sm:$0xf] }
 0x41b   :  { %v9476_v8 = vor.u32 %v10494_v7, %v9475_v32  ;;  %v9459_v32 = vld [vmem:[#allocation5 + $0xcb0] sm:$0xf]  ;;  %v10490_v7 = vld [vmem:[#allocation5 + $0xcb4] sm:$0xf0] }
 0x41d   :  { %6207 = vmatmul.bf16.vlgmr.msra.gmra.mxu0 %v15061_v33  ;;  %6226 = vmatpush.bf16.msra.mxu3 %v9484_v15  ;;  %v9468_v15 = vor.u32 %v10492_v18, %v9467_v61  ;;  %v9451_v61 = vld [vmem:[#allocation5 + $0xca0] sm:$0xf] }
 0x41e   :  { %6251 = vmatpush.bf16.msrb.mxu0 %v9620_v27  ;;  %v8396_v27 = vor.u32 %v10224_v52, %v8395_v26  ;;  %6241 = vmatpush.bf16.msra.mxu1 %v9532_v36  ;;  %v8379_v26 = vld [vmem:[#allocation5 + $0x440] sm:$0xf]  ;;  %v10220_v52 = vld [vmem:[#allocation5 + $0x444] sm:$0xf0]  ;;  %v9516_v36 = vor.u32 %v10504_v30, %v9515_v42  ;;  %v8372_v42 = vor.u32 %v10218_v5, %v8371_v59  ;;  %v10214_v59 = vld [vmem:[#allocation5 + $0x414] sm:$0xf0] }
 0x41f   :  { %v8380_v3 = vor.u32 %v10220_v52, %v8379_v26  ;;  %v2597_v54 = vpop.f32.mrf.mxu2  ;;  %v10488_v30 = vld [vmem:[#allocation5 + $0xca4] sm:$0xf0]  ;;  %v9571_v52 = vld [vmem:[#allocation5 + $0xd90] sm:$0xf] }
 0x420   :  { %6005 = vmatpush.bf16.msrb.mxu2 %v8396_v27  ;;  %v9588_v27 = vor.u32 %v10522_v43, %v9587_v22  ;;  %v10518_v22 = vld [vmem:[#allocation5 + $0xd94] sm:$0xf0]  ;;  %v9452_v43 = vor.u32 %v10488_v30, %v9451_v61  ;;  %v9563_v54 = vld [vmem:[#allocation5 + $0xd80] sm:$0xf]  ;;  %v9443_v5 = vld [vmem:[#allocation5 + $0xc90] sm:$0xf]  ;;  %v13868_v30 = vpop.f32.mrf.mxu3 }
 0x421   :  { %6227 = vmatpush.bf16.msra.mxu3 %v9476_v8  ;;  %v9508_v8 = vor.u32 %v10502_v34, %v9507_v40  ;;  %v10578_v40 = vld [vmem:[#allocation5 + $0xf74] sm:$0xf0]  ;;  %v10576_v61 = vld [vmem:[#allocation5 + $0xf64] sm:$0xf0] }
 0x422   :  { %6252 = vmatpush.bf16.msrb.mxu0 %v9612_v55  ;;  %v9596_v55 = vor.u32 %v10524_v48, %v9595_v0  ;;  %6242 = vmatpush.bf16.msra.mxu1 %v9524_v24  ;;  %v10520_v0 = vld [vmem:[#allocation5 + $0xda4] sm:$0xf0]  ;;  %v9460_v48 = vor.u32 %v10490_v7, %v9459_v32  ;;  %v10777_v24 = vpop.eup %10776  ;;  %v9811_v7 = vld [vmem:[#allocation5 + $0xf70] sm:$0xf] }
 0x423   :  { %v2794_v18 = vmul.f32 %v10777_v24, %v13839_v13  ;;  %v8355_v13 = vld [vmem:[#allocation5 + $0x410] sm:$0xf]  ;;  %v9812_v34 = vor.u32 %v10578_v40, %v9811_v7  ;;  %v9803_v24 = vld [vmem:[#allocation5 + $0xf60] sm:$0xf]  ;;  %v10562_v7 = vld [vmem:[#allocation5 + $0xef4] sm:$0xf0] }
 0x424   :  { %6006 = vmatpush.bf16.msrb.mxu2 %v8388_v47  ;;  %v10216_v47 = vld [vmem:[#allocation5 + $0x424] sm:$0xf0]  ;;  %v8659_v40 = vld [vmem:[#allocation5 + $0x670] sm:$0xf] }
 0x425   :  { %6228 = vmatpush.bf16.msra.mxu3 %v9468_v15  ;;  %v9499_v15 = vld [vmem:[#allocation5 + $0xd00] sm:$0xf] }
 0x426   :  { %6253 = vmatpush.bf16.msrb.mxu0 %v9604_v19  ;;  %6243 = vmatpush.bf16.msra.mxu1 %v9516_v36  ;;  %v9579_v19 = vld [vmem:[#allocation5 + $0xda0] sm:$0xf]  ;;  %v10500_v36 = vld [vmem:[#allocation5 + $0xd04] sm:$0xf0] }
 0x427   :  { %v9580_v26 = vor.u32 %v10520_v0, %v9579_v19  ;;  %v9500_v32 = vor.u32 %v10500_v36, %v9499_v15  ;;  %v10486_v19 = vld [vmem:[#allocation5 + $0xc94] sm:$0xf0]  ;;  %v2647_v0 = vpop.f32.mrf.mxu2  ;;  %v10484_v36 = vld [vmem:[#allocation5 + $0xc84] sm:$0xf0] }
 0x428   :  { %6007 = vmatpush.bf16.msrb.mxu2 %v8380_v3  ;;  %v8364_v3 = vor.u32 %v10216_v47, %v8363_v20  ;;  %vm2750_vm12 = vcmp.gt.f32.partialorder %v2647_v0, 0.0  ;;  %v10594_v15 = vld [vmem:[#allocation5 + $0xff4] sm:$0xf0]  ;;  %v8347_v47 = vld [vmem:[#allocation5 + $0x400] sm:$0xf]  ;;  %v5924_v23 = vpop.f32.mrf.mxu3 }
 0x429   :  { %6229 = vmatpush.bf16.msra.mxu3 %v9460_v48  ;;  %v10516_v48 = vld [vmem:[#allocation5 + $0xd84] sm:$0xf0]  ;;  %v2766_v20 = vsel %vm2750_vm12, %v2647_v0, 1.0  ;;  %v13872_v0 = vpop.f32.mrf.mxu0  ;;  %vm15083_vm12 = vcmask 64512  }
 0x42a   :  { %6254 = vmatpush.bf16.msrb.mxu0 %v9596_v55  ;;  %v13865_v55 = vpack.c.bf16 %v2794_v18, %v2794_v18  ;;  %6244 = vmatpush.bf16.msra.mxu1 %v9508_v8  ;;  %v9444_v8 = vor.u32 %v10486_v19, %v9443_v5  ;;  %v9875_v18 = vld [vmem:[#allocation5 + $0xff0] sm:$0xf]  ;;  %10778 = vrcp.f32 %v2766_v20  ;;  %v9787_v20 = vld [vmem:[#allocation5 + $0xf40] sm:$0xf] }
 0x42b   :  { %v9876_v5 = vor.u32 %v10594_v15, %v9875_v18  ;;  %v10572_v18 = vld [vmem:[#allocation5 + $0xf44] sm:$0xf0] }
 0x42c   :  { %5960 = vmatmul.bf16.vlgmr.msra.gmra.mxu2 %v13865_v55 }
 0x42d   :  { %6008 = vmatpush.bf16.msrb.mxu2 %v8372_v42  ;;  %6230 = vmatpush.bf16.msra.mxu3 %v9452_v43  ;;  %v9804_v42 = vor.u32 %v10576_v61, %v9803_v24  ;;  %v9564_v43 = vor.u32 %v10516_v48, %v9563_v54  ;;  %v15063_v24 = vld [vmem:[#allocation35_spill] sm:$0xff]  ;;  %v9739_v54 = vld [vmem:[#allocation5 + $0xee0] sm:$0xf]  ;;  %v10560_v48 = vld [vmem:[#allocation5 + $0xee4] sm:$0xf0] }
 0x42e   :  { %6255 = vmatpush.bf16.msrb.mxu0 %v9588_v27  ;;  %v9572_v27 = vor.u32 %v10518_v22, %v9571_v52  ;;  %6245 = vmatpush.bf16.msra.mxu1 %v9500_v32  ;;  %v9435_v52 = vld [vmem:[#allocation5 + $0xc80] sm:$0xf]  ;;  %v8356_v22 = vor.u32 %v10214_v59, %v8355_v13  ;;  %v9747_v32 = vld [vmem:[#allocation5 + $0xef0] sm:$0xf]  ;;  %v10290_v61 = vld [vmem:[#allocation5 + $0x674] sm:$0xf0] }
 0x42f   :  { %v9436_v19 = vor.u32 %v10484_v36, %v9435_v52  ;;  %v9867_v13 = vld [vmem:[#allocation5 + $0xfe0] sm:$0xf]  ;;  %v10592_v59 = vld [vmem:[#allocation5 + $0xfe4] sm:$0xf0]  ;;  %v2649_v15 = vpop.f32.mrf.mxu2  ;;  %v8660_v52 = vor.u32 %v10290_v61, %v8659_v40  ;;  %v8643_v61 = vld [vmem:[#allocation5 + $0x650] sm:$0xf] }
 0x430   :  { %v8651_v36 = vld [vmem:[#allocation5 + $0x660] sm:$0xf]  ;;  %v9868_v49 = vor.u32 %v10592_v59, %v9867_v13  ;;  %v10286_v13 = vld [vmem:[#allocation5 + $0x654] sm:$0xf0] }
 0x431   :  { %6009 = vmatpush.bf16.msrb.mxu2 %v8364_v3  ;;  %6231 = vmatpush.bf16.msra.mxu3 %v9444_v8  ;;  %v9748_v3 = vor.u32 %v10562_v7, %v9747_v32  ;;  %v9859_v32 = vld [vmem:[#allocation5 + $0xfd0] sm:$0xf]  ;;  %v9740_v7 = vor.u32 %v10560_v48, %v9739_v54  ;;  %v15064_v40 = vld [vmem:[#allocation41_spill] sm:$0xff]  ;;  %v8652_v23 = vor.u32 %v10288_v44, %v8651_v36 }
 0x432   :  { %6256 = vmatpush.bf16.msrb.mxu0 %v9580_v26  ;;  %6290 = vmatpush.bf16.msrb.mxu1 %v9812_v34  ;;  %v10212_v26 = vld [vmem:[#allocation5 + $0x404] sm:$0xf0]  ;;  %v9795_v34 = vld [vmem:[#allocation5 + $0xf50] sm:$0xf]  ;;  %v9771_v15 = vld [vmem:[#allocation5 + $0xf20] sm:$0xf] }
 0x433   :  { %6246 = vmatmul.bf16.vlgmr.msra.gmra.mxu1 %v15063_v24  ;;  %v8348_v8 = vor.u32 %v10212_v26, %v8347_v47  ;;  %v10558_v26 = vld [vmem:[#allocation5 + $0xed4] sm:$0xf0]  ;;  %v10588_v54 = vld [vmem:[#allocation5 + $0xfc4] sm:$0xf0]  ;;  %v8635_v36 = vld [vmem:[#allocation5 + $0x640] sm:$0xf] }
 0x434   :  { %v9732_v48 = vor.u32 %v10558_v26, %v9731_v2  ;;  %v13881_v26 = vpop.f32.mrf.mxu3  ;;  %v10418_v24 = vld [vmem:[#allocation5 + $0xa74] sm:$0xf0] }
 0x435   :  { %6010 = vmatpush.bf16.msrb.mxu2 %v8356_v22  ;;  %6232 = vmatpush.bf16.msra.mxu3 %v9436_v19  ;;  %v9779_v22 = vld [vmem:[#allocation5 + $0xf30] sm:$0xf] }
 0x436   :  { %6257 = vmatpush.bf16.msrb.mxu0 %v9572_v27  ;;  %6291 = vmatpush.bf16.msrb.mxu1 %v9804_v42  ;;  %v9796_v27 = vor.u32 %v10574_v4, %v9795_v34  ;;  %v10779_v42 = vpop.eup %10778  ;;  %v10590_v4 = vld [vmem:[#allocation5 + $0xfd4] sm:$0xf0]  ;;  %v9788_v34 = vor.u32 %v10572_v18, %v9787_v20  ;;  %v9723_v18 = vld [vmem:[#allocation5 + $0xec0] sm:$0xf] }
 0x437   :  { %v2798_v47 = vmul.f32 %v10779_v42, %v13850_v35  ;;  %v9860_v59 = vor.u32 %v10590_v4, %v9859_v32  ;;  %v9851_v35 = vld [vmem:[#allocation5 + $0xfc0] sm:$0xf]  ;;  %v10568_v42 = vld [vmem:[#allocation5 + $0xf24] sm:$0xf0]  ;;  %v2699_v44 = vpop.f32.mrf.mxu2  ;;  %v9843_v4 = vld [vmem:[#allocation5 + $0xfb0] sm:$0xf] }
 0x438   :  { %v9852_v32 = vor.u32 %v10588_v54, %v9851_v35  ;;  %v9772_v2 = vor.u32 %v10568_v42, %v9771_v15  ;;  %vm2754_vm5 = vcmp.gt.f32.partialorder %v2699_v44, 0.0  ;;  %v10584_v54 = vld [vmem:[#allocation5 + $0xfa4] sm:$0xf0]  ;;  %v9755_v42 = vld [vmem:[#allocation5 + $0xf00] sm:$0xf] }
 0x439   :  { %6277 = vmatpush.bf16.msrb.mxu3 %v9748_v3  ;;  %6011 = vmatpush.bf16.msrb.mxu2 %v8348_v8  ;;  %v13878_v19 = vpack.c.bf16 %v2798_v47, %v2798_v47  ;;  %v5937_v3 = vpop.f32.mrf.mxu1  ;;  %v10556_v8 = vld [vmem:[#allocation5 + $0xec4] sm:$0xf0]  ;;  %v9715_v47 = vld [vmem:[#allocation5 + $0xeb0] sm:$0xf] }
 0x43a   :  { %6258 = vmatpush.bf16.msrb.mxu0 %v9564_v43  ;;  %6292 = vmatpush.bf16.msrb.mxu1 %v9796_v27  ;;  %v10570_v43 = vld [vmem:[#allocation5 + $0xf34] sm:$0xf0]  ;;  %v5950_v27 = vpop.f32.mrf.mxu0  ;;  %v10552_v15 = vld [vmem:[#allocation5 + $0xea4] sm:$0xf0] }
 0x43b   :  { %v9780_v20 = vor.u32 %v10570_v43, %v9779_v22  ;;  %v10554_v22 = vld [vmem:[#allocation5 + $0xeb4] sm:$0xf0]  ;;  %v9763_v43 = vld [vmem:[#allocation5 + $0xf10] sm:$0xf] }
 0x43c   :  { %6012 = vmatmul.bf16.vlgmr.msrb.gmra.mxu2 %v13878_v19  ;;  %v10566_v3 = vld [vmem:[#allocation5 + $0xf14] sm:$0xf0]  ;;  %v8627_v27 = vld [vmem:[#allocation5 + $0x630] sm:$0xf] }
 0x43d   :  { %6259 = vmatmul.bf16.vlgmr.msrb.gmra.mxu0 %v15064_v40  ;;  %6056 = vmatpush.bf16.msra.mxu2 %v8660_v52  ;;  %v8644_v52 = vor.u32 %v10286_v13, %v8643_v61  ;;  %v10282_v61 = vld [vmem:[#allocation5 + $0x634] sm:$0xf0]  ;;  %v8213_v40 = vld [vmem:[#allocation5 + $0x2f8] sm:$0xf0] }
 0x43e   :  { %6303 = vmatpush.bf16.msra.mxu0 %v9876_v5  ;;  %v15065_v5 = vld [vmem:[#allocation34_spill] sm:$0xff]  ;;  %6278 = vmatpush.bf16.msrb.mxu3 %v9740_v7  ;;  %v10586_v7 = vld [vmem:[#allocation5 + $0xfb4] sm:$0xf0] }
 0x43f   :  { %6233 = vmatmul.bf16.vlgmr.msra.gmra.mxu3 %v15065_v5  ;;  %6293 = vmatpush.bf16.msrb.mxu1 %v9788_v34  ;;  %v9724_v34 = vor.u32 %v10556_v8, %v9723_v18  ;;  %v9844_v13 = vor.u32 %v10586_v7, %v9843_v4  ;;  %v9707_v18 = vld [vmem:[#allocation5 + $0xea0] sm:$0xf]  ;;  %v10280_v7 = vld [vmem:[#allocation5 + $0x624] sm:$0xf0]  ;;  %v2701_v46 = vpop.f32.mrf.mxu2 }
 0x440   :  { %v8619_v4 = vld [vmem:[#allocation5 + $0x620] sm:$0xf] }
 0x441   :  { %6057 = vmatpush.bf16.msra.mxu2 %v8652_v23  ;;  %v13883_v35 = vpop.f32.mrf.mxu1 }
 0x442   :  { %6304 = vmatpush.bf16.msra.mxu0 %v9868_v49  ;;  %v10284_v49 = vld [vmem:[#allocation5 + $0x644] sm:$0xf0]  ;;  %6279 = vmatpush.bf16.msrb.mxu3 %v9732_v48  ;;  %v9716_v48 = vor.u32 %v10554_v22, %v9715_v47  ;;  %v13885_v8 = vpop.f32.mrf.mxu0  ;;  %v10582_v47 = vld [vmem:[#allocation5 + $0xf94] sm:$0xf0]  ;;  %v9708_v22 = vor.u32 %v10552_v15, %v9707_v18  ;;  %v9700_v18 = vor.u32 %v10550_v10, %v9699_v9 }
 0x443   :  { %6294 = vmatpush.bf16.msrb.mxu1 %v9780_v20  ;;  %v8636_v23 = vor.u32 %v10284_v49, %v8635_v36  ;;  %v9764_v20 = vor.u32 %v10566_v3, %v9763_v43  ;;  %v10129_v36 = vld [vmem:[#allocation5 + $0x174] sm:$0xf]  ;;  %v8021_v49 = vld [vmem:[#allocation5 + $0x178] sm:$0xf0]  ;;  %v5976_v3 = vpop.f32.mrf.mxu3  ;;  %v15066_v10 = vld [vmem:[#allocation38_spill] sm:$0xff] }
 0x444   :  { %v8024_v56 = vor.u32 %v10129_v36, %v8021_v49  ;;  %v10548_v36 = vld [vmem:[#allocation5 + $0xe84] sm:$0xf0]  ;;  %v10113_v49 = vld [vmem:[#allocation5 + $0xf4] sm:$0xf] }
 0x445   :  { %6058 = vmatpush.bf16.msra.mxu2 %v8644_v52  ;;  %v10564_v52 = vld [vmem:[#allocation5 + $0xf04] sm:$0xf0] }
 0x446   :  { %6305 = vmatpush.bf16.msra.mxu0 %v9860_v59  ;;  %v9835_v59 = vld [vmem:[#allocation5 + $0xfa0] sm:$0xf]  ;;  %6280 = vmatpush.bf16.msrb.mxu3 %v9724_v34  ;;  %v2770_v34 = vsel %vm2754_vm5, %v2699_v44, 1.0  ;;  %v9756_v43 = vor.u32 %v10564_v52, %v9755_v42 }
 0x447   :  { %6295 = vmatpush.bf16.msrb.mxu1 %v9772_v2  ;;  %v9836_v14 = vor.u32 %v10584_v54, %v9835_v59  ;;  %v9827_v2 = vld [vmem:[#allocation5 + $0xf90] sm:$0xf]  ;;  %10780 = vrcp.f32 %v2770_v34  ;;  %v9819_v44 = vld [vmem:[#allocation5 + $0xf80] sm:$0xf]  ;;  %v10580_v54 = vld [vmem:[#allocation5 + $0xf84] sm:$0xf0] }
 0x448   :  { %v9828_v46 = vor.u32 %v10582_v47, %v9827_v2  ;;  %v9691_v52 = vld [vmem:[#allocation5 + $0xe80] sm:$0xf]  ;;  %v9820_v2 = vor.u32 %v10580_v54, %v9819_v44  ;;  %v10276_v47 = vld [vmem:[#allocation5 + $0x604] sm:$0xf0]  ;;  %v7997_v44 = vld [vmem:[#allocation5 + $0x148] sm:$0xf0] }
 0x449   :  { %6059 = vmatpush.bf16.msra.mxu2 %v8636_v23  ;;  %v8013_v23 = vld [vmem:[#allocation5 + $0x168] sm:$0xf0]  ;;  %v5989_v59 = vpop.f32.mrf.mxu1  ;;  %v8603_v34 = vld [vmem:[#allocation5 + $0x600] sm:$0xf]  ;;  %v9692_v9 = vor.u32 %v10548_v36, %v9691_v52  ;;  %v10352_v36 = vld [vmem:[#allocation5 + $0x864] sm:$0xf0] }
 0x44a   :  { %6306 = vmatpush.bf16.msra.mxu0 %v9852_v32  ;;  %v8628_v32 = vor.u32 %v10282_v61, %v8627_v27  ;;  %6281 = vmatpush.bf16.msrb.mxu3 %v9716_v48  ;;  %v8620_v27 = vor.u32 %v10280_v7, %v8619_v4  ;;  %v8611_v61 = vld [vmem:[#allocation5 + $0x610] sm:$0xf]  ;;  %v10145_v48 = vld [vmem:[#allocation5 + $0x1f4] sm:$0xf]  ;;  %v6002_v15 = vpop.f32.mrf.mxu0  ;;  %v8016_v42 = vor.u32 %v10127_v17, %v8013_v23  ;;  %v8005_v7 = vld [vmem:[#allocation5 + $0x158] sm:$0xf0] }
 0x44b   :  { %6296 = vmatpush.bf16.msrb.mxu1 %v9764_v20  ;;  %v8085_v20 = vld [vmem:[#allocation5 + $0x1f8] sm:$0xf0]  ;;  %v10125_v4 = vld [vmem:[#allocation5 + $0x154] sm:$0xf]  ;;  %v10143_v23 = vld [vmem:[#allocation5 + $0x1e4] sm:$0xf]  ;;  %v8604_v54 = vor.u32 %v10276_v47, %v8603_v34 }
 0x44c   :  { %v8088_v3 = vor.u32 %v10145_v48, %v8085_v20  ;;  %v8077_v59 = vld [vmem:[#allocation5 + $0x1e8] sm:$0xf0]  ;;  %v8907_v52 = vld [vmem:[#allocation5 + $0x860] sm:$0xf]  ;;  %v7941_v34 = vld [vmem:[#allocation5 + $0xd8] sm:$0xf0] }
 0x44d   :  { %6060 = vmatpush.bf16.msra.mxu2 %v8628_v32  ;;  %v7957_v32 = vld [vmem:[#allocation5 + $0xf8] sm:$0xf0]  ;;  %v10781_v17 = vpop.eup %10780  ;;  %v10121_v47 = vld [vmem:[#allocation5 + $0x134] sm:$0xf] }
 0x44e   :  { %6307 = vmatpush.bf16.msra.mxu0 %v9844_v13  ;;  %v10278_v13 = vld [vmem:[#allocation5 + $0x614] sm:$0xf0]  ;;  %6282 = vmatpush.bf16.msrb.mxu3 %v9708_v22  ;;  %v8915_v22 = vld [vmem:[#allocation5 + $0x870] sm:$0xf]  ;;  %v7960_v15 = vor.u32 %v10113_v49, %v7957_v32  ;;  %v2802_v20 = vmul.f32 %v10781_v17, %v13854_v16  ;;  %v10141_v49 = vld [vmem:[#allocation5 + $0x1d4] sm:$0xf] }
 0x44f   :  { %6297 = vmatpush.bf16.msrb.mxu1 %v9756_v43  ;;  %v10354_v43 = vld [vmem:[#allocation5 + $0x874] sm:$0xf0]  ;;  %v8069_v32 = vld [vmem:[#allocation5 + $0x1d8] sm:$0xf0] }
 0x450   :  { %v7989_v16 = vld [vmem:[#allocation5 + $0x138] sm:$0xf0]  ;;  %v10350_v17 = vld [vmem:[#allocation5 + $0x854] sm:$0xf0] }
 0x451   :  { %6061 = vmatpush.bf16.msra.mxu2 %v8620_v27  ;;  %v8008_v27 = vor.u32 %v10125_v4, %v8005_v7  ;;  %v13891_v48 = vpop.f32.mrf.mxu1 }
 0x452   :  { %6308 = vmatpush.bf16.msra.mxu0 %v9836_v14  ;;  %v8612_v14 = vor.u32 %v10278_v13, %v8611_v61  ;;  %6283 = vmatpush.bf16.msrb.mxu3 %v9700_v18  ;;  %v10111_v61 = vld [vmem:[#allocation5 + $0xe4] sm:$0xf]  ;;  %v7949_v13 = vld [vmem:[#allocation5 + $0xe8] sm:$0xf0]  ;;  %v8916_v18 = vor.u32 %v10354_v43, %v8915_v22  ;;  %v13898_v43 = vpack.c.bf16 %v2802_v20, %v2802_v20 }
 0x453   :  { %6342 = vmatpush.bf16.msra.mxu1 %v8024_v56  ;;  %v13889_v56 = vpop.f32.mrf.mxu3  ;;  %v7952_v4 = vor.u32 %v10111_v61, %v7949_v13  ;;  %v15068_v22 = vld [vmem:[#allocation37_spill] sm:$0xff]  ;;  %v7944_v61 = vor.u32 %v10109_v41, %v7941_v34  ;;  %v7992_v13 = vor.u32 %v10121_v47, %v7989_v16  ;;  %v7981_v20 = vld [vmem:[#allocation5 + $0x128] sm:$0xf0]  ;;  %v7925_v47 = vld [vmem:[#allocation5 + $0xb8] sm:$0xf0] }
 0x454   :  { %6298 = vmatmul.bf16.vlgmr.msrb.gmra.mxu1 %v15066_v10  ;;  %v10117_v16 = vld [vmem:[#allocation5 + $0x114] sm:$0xf]  ;;  %v7909_v10 = vld [vmem:[#allocation5 + $0x98] sm:$0xf0] }
 0x455   :  { %6062 = vmatpush.bf16.msra.mxu2 %v8612_v14  ;;  %v13894_v14 = vpop.f32.mrf.mxu0 }
 0x456   :  { %6309 = vmatpush.bf16.msra.mxu0 %v9828_v46  ;;  %v10123_v46 = vld [vmem:[#allocation5 + $0x144] sm:$0xf]  ;;  %6284 = vmatpush.bf16.msrb.mxu3 %v9692_v9  ;;  %v8899_v9 = vld [vmem:[#allocation5 + $0x850] sm:$0xf] }
 0x457   :  { %6343 = vmatpush.bf16.msra.mxu1 %v8016_v42  ;;  %v8080_v42 = vor.u32 %v10143_v23, %v8077_v59  ;;  %v8000_v7 = vor.u32 %v10123_v46, %v7997_v44  ;;  %v8072_v23 = vor.u32 %v10141_v49, %v8069_v32  ;;  %v10107_v46 = vld [vmem:[#allocation5 + $0xc4] sm:$0xf]  ;;  %v7933_v44 = vld [vmem:[#allocation5 + $0xc8] sm:$0xf0]  ;;  %v10137_v49 = vld [vmem:[#allocation5 + $0x1b4] sm:$0xf] }
 0x458   :  { %v8053_v32 = vld [vmem:[#allocation5 + $0x1b8] sm:$0xf0] }
 0x459   :  { %6063 = vmatpush.bf16.msra.mxu2 %v8604_v54  ;;  %6285 = vmatmul.bf16.vlgmr.msrb.gmra.mxu3 %v15068_v22  ;;  %v10119_v54 = vld [vmem:[#allocation5 + $0x124] sm:$0xf]  ;;  %v6041_v21 = vpop.f32.mrf.mxu1  ;;  %v8269_v22 = vld [vmem:[#allocation5 + $0x368] sm:$0xf0] }
 0x45a   :  { %6310 = vmatpush.bf16.msra.mxu0 %v9820_v2  ;;  %6329 = vmatpush.bf16.msra.mxu3 %v7960_v15  ;;  %v15067_v2 = vld [vmem:[#allocation42_spill] sm:$0xff]  ;;  %v10139_v15 = vld [vmem:[#allocation5 + $0x1c4] sm:$0xf]  ;;  %v7984_v41 = vor.u32 %v10119_v54, %v7981_v20  ;;  %v10193_v20 = vld [vmem:[#allocation5 + $0x374] sm:$0xf] }
 0x45b   :  { %6344 = vmatpush.bf16.msra.mxu1 %v8008_v27  ;;  %v6028_v59 = vpop.f32.mrf.mxu3  ;;  %v8061_v27 = vld [vmem:[#allocation5 + $0x1c8] sm:$0xf0]  ;;  %v8883_v21 = vld [vmem:[#allocation5 + $0x830] sm:$0xf] }
 0x45c   :  { %6064 = vmatmul.bf16.vlgmr.msra.gmra.mxu2 %v13898_v43  ;;  %v7973_v59 = vld [vmem:[#allocation5 + $0x118] sm:$0xf0]  ;;  %v7965_v54 = vld [vmem:[#allocation5 + $0x108] sm:$0xf0] }
 0x45d   :  { %6311 = vmatmul.bf16.vlgmr.msra.gmra.mxu0 %v15067_v2  ;;  %6108 = vmatpush.bf16.msrb.mxu2 %v8916_v18  ;;  %v8900_v18 = vor.u32 %v10350_v17, %v8899_v9  ;;  %v6054_v34 = vpop.f32.mrf.mxu0  ;;  %v8056_v9 = vor.u32 %v10137_v49, %v8053_v32  ;;  %v10135_v17 = vld [vmem:[#allocation5 + $0x1a4] sm:$0xf]  ;;  %v10344_v49 = vld [vmem:[#allocation5 + $0x824] sm:$0xf0]  ;;  %v10133_v32 = vld [vmem:[#allocation5 + $0x194] sm:$0xf] }
 0x45e   :  { %6355 = vmatpush.bf16.msrb.mxu0 %v8088_v3  ;;  %v8908_v3 = vor.u32 %v10352_v36, %v8907_v52  ;;  %6330 = vmatpush.bf16.msra.mxu3 %v7952_v4  ;;  %v8891_v52 = vld [vmem:[#allocation5 + $0x840] sm:$0xf]  ;;  %v10348_v36 = vld [vmem:[#allocation5 + $0x844] sm:$0xf0]  ;;  %v7936_v4 = vor.u32 %v10107_v46, %v7933_v44  ;;  %v7917_v46 = vld [vmem:[#allocation5 + $0xa8] sm:$0xf0] }
 0x45f   :  { %6345 = vmatpush.bf16.msra.mxu1 %v8000_v7  ;;  %v10105_v7 = vld [vmem:[#allocation5 + $0xb4] sm:$0xf]  ;;  %v8892_v2 = vor.u32 %v10348_v36, %v8891_v52  ;;  %v10115_v44 = vld [vmem:[#allocation5 + $0x104] sm:$0xf]  ;;  %v8277_v34 = vld [vmem:[#allocation5 + $0x378] sm:$0xf0] }
 0x460   :  { %v8875_v36 = vld [vmem:[#allocation5 + $0x820] sm:$0xf] }
 0x461   :  { %6109 = vmatpush.bf16.msrb.mxu2 %v8908_v3  ;;  %v10346_v3 = vld [vmem:[#allocation5 + $0x834] sm:$0xf0] }
 0x462   :  { %6356 = vmatpush.bf16.msrb.mxu0 %v8080_v42  ;;  %v8064_v42 = vor.u32 %v10139_v15, %v8061_v27  ;;  %6331 = vmatpush.bf16.msra.mxu3 %v7944_v61  ;;  %v7928_v15 = vor.u32 %v10105_v7, %v7925_v47  ;;  %v7976_v27 = vor.u32 %v10117_v16, %v7973_v59  ;;  %v10103_v61 = vld [vmem:[#allocation5 + $0xa4] sm:$0xf]  ;;  %v10101_v59 = vld [vmem:[#allocation5 + $0x94] sm:$0xf] }
 0x463   :  { %6346 = vmatpush.bf16.msra.mxu1 %v7992_v13  ;;  %v13901_v13 = vpop.f32.mrf.mxu3  ;;  %v8884_v52 = vor.u32 %v10346_v3, %v8883_v21  ;;  %v7968_v7 = vor.u32 %v10115_v44, %v7965_v54  ;;  %v8280_v16 = vor.u32 %v10193_v20, %v8277_v34  ;;  %v8867_v21 = vld [vmem:[#allocation5 + $0x810] sm:$0xf]  ;;  %v10342_v3 = vld [vmem:[#allocation5 + $0x814] sm:$0xf0]  ;;  %v8272_v44 = vor.u32 %v10191_v60, %v8269_v22  ;;  %v10099_v54 = vld [vmem:[#allocation5 + $0x84] sm:$0xf] }
 0x464   :  { %v7901_v20 = vld [vmem:[#allocation5 + $0x88] sm:$0xf0]  ;;  %v10177_v34 = vld [vmem:[#allocation5 + $0x2f4] sm:$0xf]  ;;  %v10207_v22 = vld [vmem:[#allocation5 + $0x3e4] sm:$0xf] }
 0x465   :  { %6110 = vmatpush.bf16.msrb.mxu2 %v8900_v18  ;;  %v13903_v18 = vpop.f32.mrf.mxu1  ;;  %v13905_v47 = vpop.f32.mrf.mxu0  ;;  %v7904_v60 = vor.u32 %v10099_v54, %v7901_v20  ;;  %v10173_v54 = vld [vmem:[#allocation5 + $0x2d4] sm:$0xf]  ;;  %v8197_v20 = vld [vmem:[#allocation5 + $0x2d8] sm:$0xf0] }
 0x466   :  { %6357 = vmatpush.bf16.msrb.mxu0 %v8072_v23  ;;  %6332 = vmatpush.bf16.msra.mxu3 %v7936_v4  ;;  %v8045_v23 = vld [vmem:[#allocation5 + $0x1a8] sm:$0xf0]  ;;  %v8037_v4 = vld [vmem:[#allocation5 + $0x198] sm:$0xf0] }
 0x467   :  { %6347 = vmatpush.bf16.msra.mxu1 %v7984_v41  ;;  %v7920_v41 = vor.u32 %v10103_v61, %v7917_v46  ;;  %v7912_v61 = vor.u32 %v10101_v59, %v7909_v10  ;;  %v8216_v59 = vor.u32 %v10177_v34, %v8213_v40  ;;  %v10185_v34 = vld [vmem:[#allocation5 + $0x334] sm:$0xf] }
 0x469   :  { %6111 = vmatpush.bf16.msrb.mxu2 %v8892_v2  ;;  %v8876_v2 = vor.u32 %v10344_v49, %v8875_v36  ;;  %v8261_v36 = vld [vmem:[#allocation5 + $0x358] sm:$0xf0] }
 0x46a   :  { %6358 = vmatpush.bf16.msrb.mxu0 %v8064_v42  ;;  %v8048_v42 = vor.u32 %v10135_v17, %v8045_v23  ;;  %6333 = vmatpush.bf16.msra.mxu3 %v7928_v15  ;;  %v10131_v17 = vld [vmem:[#allocation5 + $0x184] sm:$0xf]  ;;  %v8029_v23 = vld [vmem:[#allocation5 + $0x188] sm:$0xf0]  ;;  %v10209_v15 = vld [vmem:[#allocation5 + $0x3f4] sm:$0xf] }
 0x46b   :  { %6348 = vmatpush.bf16.msra.mxu1 %v7976_v27  ;;  %v8341_v27 = vld [vmem:[#allocation5 + $0x3f8] sm:$0xf0]  ;;  %v6080_v46 = vpop.f32.mrf.mxu3 }
 0x46c   :  { %v8344_v5 = vor.u32 %v10209_v15, %v8341_v27  ;;  %v10416_v15 = vld [vmem:[#allocation5 + $0xa64] sm:$0xf0] }
 0x46d   :  { %6112 = vmatpush.bf16.msrb.mxu2 %v8884_v52  ;;  %v10189_v52 = vld [vmem:[#allocation5 + $0x354] sm:$0xf]  ;;  %v6093_v49 = vpop.f32.mrf.mxu1  ;;  %v6106_v10 = vpop.f32.mrf.mxu0 }
 0x46e   :  { %6359 = vmatpush.bf16.msrb.mxu0 %v8056_v9  ;;  %v8040_v9 = vor.u32 %v10133_v32, %v8037_v4  ;;  %6334 = vmatpush.bf16.msra.mxu3 %v7920_v41  ;;  %v8859_v32 = vld [vmem:[#allocation5 + $0x800] sm:$0xf]  ;;  %v8032_v4 = vor.u32 %v10131_v17, %v8029_v23  ;;  %v10340_v41 = vld [vmem:[#allocation5 + $0x804] sm:$0xf0]  ;;  %v8264_v46 = vor.u32 %v10189_v52, %v8261_v36  ;;  %v10175_v49 = vld [vmem:[#allocation5 + $0x2e4] sm:$0xf] }
 0x46f   :  { %6349 = vmatpush.bf16.msra.mxu1 %v7968_v7  ;;  %v9171_v7 = vld [vmem:[#allocation5 + $0xa70] sm:$0xf]  ;;  %v9163_v23 = vld [vmem:[#allocation5 + $0xa60] sm:$0xf]  ;;  %v8245_v52 = vld [vmem:[#allocation5 + $0x338] sm:$0xf0] }
 0x470   :  { %v9172_v17 = vor.u32 %v10418_v24, %v9171_v7  ;;  %v9164_v24 = vor.u32 %v10416_v15, %v9163_v23  ;;  %v10414_v36 = vld [vmem:[#allocation5 + $0xa54] sm:$0xf0]  ;;  %v8248_v7 = vor.u32 %v10185_v34, %v8245_v52  ;;  %v8189_v10 = vld [vmem:[#allocation5 + $0x2c8] sm:$0xf0]  ;;  %v8181_v23 = vld [vmem:[#allocation5 + $0x2b8] sm:$0xf0] }
 0x471   :  { %6113 = vmatpush.bf16.msrb.mxu2 %v8876_v2  ;;  %v8205_v2 = vld [vmem:[#allocation5 + $0x2e8] sm:$0xf0]  ;;  %v10181_v15 = vld [vmem:[#allocation5 + $0x314] sm:$0xf] }
 0x472   :  { %6360 = vmatpush.bf16.msrb.mxu0 %v8048_v42  ;;  %v8868_v42 = vor.u32 %v10342_v3, %v8867_v21  ;;  %6335 = vmatpush.bf16.msra.mxu3 %v7912_v61  ;;  %v10187_v21 = vld [vmem:[#allocation5 + $0x344] sm:$0xf]  ;;  %v8253_v3 = vld [vmem:[#allocation5 + $0x348] sm:$0xf0]  ;;  %v8325_v61 = vld [vmem:[#allocation5 + $0x3d8] sm:$0xf0] }
 0x473   :  { %6394 = vmatpush.bf16.msrb.mxu1 %v8280_v16  ;;  %v8333_v16 = vld [vmem:[#allocation5 + $0x3e8] sm:$0xf0]  ;;  %v8256_v40 = vor.u32 %v10187_v21, %v8253_v3  ;;  %v8309_v21 = vld [vmem:[#allocation5 + $0x3b8] sm:$0xf0] }
 0x474   :  { %6350 = vmatmul.bf16.vlgmr.msra.gmra.mxu1 %v13787_v25  ;;  %v8336_v27 = vor.u32 %v10207_v22, %v8333_v16  ;;  %v10205_v25 = vld [vmem:[#allocation5 + $0x3d4] sm:$0xf]  ;;  %v10183_v22 = vld [vmem:[#allocation5 + $0x324] sm:$0xf]  ;;  %v8237_v16 = vld [vmem:[#allocation5 + $0x328] sm:$0xf0] }
 0x475   :  { %6114 = vmatpush.bf16.msrb.mxu2 %v8868_v42  ;;  %v8328_v42 = vor.u32 %v10205_v25, %v8325_v61  ;;  %v9139_v61 = vld [vmem:[#allocation5 + $0xa30] sm:$0xf] }
 0x476   :  { %6361 = vmatpush.bf16.msrb.mxu0 %v8040_v9  ;;  %v8860_v9 = vor.u32 %v10340_v41, %v8859_v32  ;;  %6336 = vmatpush.bf16.msra.mxu3 %v7904_v60  ;;  %v10203_v32 = vld [vmem:[#allocation5 + $0x3c4] sm:$0xf]  ;;  %v8200_v41 = vor.u32 %v10173_v54, %v8197_v20  ;;  %v8301_v20 = vld [vmem:[#allocation5 + $0x3a8] sm:$0xf0] }
 0x477   :  { %6395 = vmatpush.bf16.msrb.mxu1 %v8272_v44  ;;  %v8208_v44 = vor.u32 %v10175_v49, %v8205_v2  ;;  %v10171_v60 = vld [vmem:[#allocation5 + $0x2c4] sm:$0xf]  ;;  %v10201_v2 = vld [vmem:[#allocation5 + $0x3b4] sm:$0xf] }
 0x478   :  { %v8192_v3 = vor.u32 %v10171_v60, %v8189_v10  ;;  %v10199_v54 = vld [vmem:[#allocation5 + $0x3a4] sm:$0xf]  ;;  %v10408_v10 = vld [vmem:[#allocation5 + $0xa24] sm:$0xf0] }
 0x479   :  { %6115 = vmatpush.bf16.msrb.mxu2 %v8860_v9  ;;  %6337 = vmatmul.bf16.vlgmr.msra.gmra.mxu3 %v13789_v6  ;;  %v8240_v9 = vor.u32 %v10183_v22, %v8237_v16  ;;  %v8304_v60 = vor.u32 %v10199_v54, %v8301_v20  ;;  %v10197_v22 = vld [vmem:[#allocation5 + $0x394] sm:$0xf]  ;;  %v8293_v16 = vld [vmem:[#allocation5 + $0x398] sm:$0xf0]  ;;  %v10163_v20 = vld [vmem:[#allocation5 + $0x284] sm:$0xf] }
 0x47a   :  { %6362 = vmatpush.bf16.msrb.mxu0 %v8032_v4  ;;  %6381 = vmatpush.bf16.msrb.mxu3 %v8216_v59  ;;  %v8317_v4 = vld [vmem:[#allocation5 + $0x3c8] sm:$0xf0]  ;;  %v9147_v59 = vld [vmem:[#allocation5 + $0xa40] sm:$0xf] }
 0x47b   :  { %6396 = vmatpush.bf16.msrb.mxu1 %v8264_v46  ;;  %v10412_v46 = vld [vmem:[#allocation5 + $0xa44] sm:$0xf0]  ;;  %v8320_v49 = vor.u32 %v10203_v32, %v8317_v4  ;;  %v10257_v32 = vld [vmem:[#allocation5 + $0x574] sm:$0xf]  ;;  %v8533_v4 = vld [vmem:[#allocation5 + $0x578] sm:$0xf0] }
 0x47c   :  { %v9148_v25 = vor.u32 %v10412_v46, %v9147_v59  ;;  %v8536_v46 = vor.u32 %v10257_v32, %v8533_v4  ;;  %v9115_v32 = vld [vmem:[#allocation5 + $0xa00] sm:$0xf] }
 0x47d   :  { %6363 = vmatmul.bf16.vlgmr.msrb.gmra.mxu0 %v13798_v37  ;;  %6160 = vmatpush.bf16.msra.mxu2 %v9172_v17  ;;  %v15069_v37 = vld [vmem:[#allocation126_spill] sm:$0xff]  ;;  %v10169_v17 = vld [vmem:[#allocation5 + $0x2b4] sm:$0xf] }
 0x47e   :  { %6407 = vmatpush.bf16.msra.mxu0 %v8344_v5  ;;  %v9155_v5 = vld [vmem:[#allocation5 + $0xa50] sm:$0xf]  ;;  %6382 = vmatpush.bf16.msrb.mxu3 %v8208_v44  ;;  %v10410_v44 = vld [vmem:[#allocation5 + $0xa34] sm:$0xf0]  ;;  %v8184_v34 = vor.u32 %v10169_v17, %v8181_v23 }
 0x47f   :  { %6397 = vmatpush.bf16.msrb.mxu1 %v8256_v40  ;;  %6116 = vmatmul.bf16.vlgmr.msrb.gmra.mxu2 %v15069_v37  ;;  %v9156_v6 = vor.u32 %v10414_v36, %v9155_v5  ;;  %v8312_v40 = vor.u32 %v10201_v2, %v8309_v21  ;;  %v8173_v5 = vld [vmem:[#allocation5 + $0x2a8] sm:$0xf0]  ;;  %v10179_v36 = vld [vmem:[#allocation5 + $0x304] sm:$0xf]  ;;  %v8165_v2 = vld [vmem:[#allocation5 + $0x298] sm:$0xf0] }
 0x480   :  { %v10255_v21 = vld [vmem:[#allocation5 + $0x564] sm:$0xf]  ;;  %v9123_v17 = vld [vmem:[#allocation5 + $0xa10] sm:$0xf]  ;;  %v10406_v23 = vld [vmem:[#allocation5 + $0xa14] sm:$0xf0] }
 0x481   :  { %6161 = vmatpush.bf16.msra.mxu2 %v9164_v24  ;;  %v10167_v24 = vld [vmem:[#allocation5 + $0x2a4] sm:$0xf] }
 0x482   :  { %6408 = vmatpush.bf16.msra.mxu0 %v8336_v27  ;;  %6383 = vmatpush.bf16.msrb.mxu3 %v8200_v41  ;;  %v8229_v27 = vld [vmem:[#allocation5 + $0x318] sm:$0xf0]  ;;  %v9140_v41 = vor.u32 %v10410_v44, %v9139_v61  ;;  %v10273_v61 = vld [vmem:[#allocation5 + $0x5f4] sm:$0xf] }
 0x483   :  { %6398 = vmatpush.bf16.msrb.mxu1 %v8248_v7  ;;  %v8232_v52 = vor.u32 %v10181_v15, %v8229_v27  ;;  %v9131_v7 = vld [vmem:[#allocation5 + $0xa20] sm:$0xf]  ;;  %v8296_v15 = vor.u32 %v10197_v22, %v8293_v16  ;;  %v10195_v27 = vld [vmem:[#allocation5 + $0x384] sm:$0xf]  ;;  %v8597_v44 = vld [vmem:[#allocation5 + $0x5f8] sm:$0xf0] }
 0x484   :  { %v10271_v16 = vld [vmem:[#allocation5 + $0x5e4] sm:$0xf] }
 0x485   :  { %6162 = vmatpush.bf16.msra.mxu2 %v9156_v6  ;;  %v8176_v6 = vor.u32 %v10167_v24, %v8173_v5  ;;  %v8469_v24 = vld [vmem:[#allocation5 + $0x4f8] sm:$0xf0]  ;;  %v10253_v5 = vld [vmem:[#allocation5 + $0x554] sm:$0xf] }
 0x486   :  { %6409 = vmatpush.bf16.msra.mxu0 %v8328_v42  ;;  %6384 = vmatpush.bf16.msrb.mxu3 %v8192_v3  ;;  %v8221_v42 = vld [vmem:[#allocation5 + $0x308] sm:$0xf0] }
 0x487   :  { %6399 = vmatpush.bf16.msrb.mxu1 %v8240_v9  ;;  %v8224_v59 = vor.u32 %v10179_v36, %v8221_v42  ;;  %v8525_v3 = vld [vmem:[#allocation5 + $0x568] sm:$0xf0]  ;;  %v9132_v9 = vor.u32 %v10408_v10, %v9131_v7  ;;  %v8517_v36 = vld [vmem:[#allocation5 + $0x558] sm:$0xf0]  ;;  %v9124_v42 = vor.u32 %v10406_v23, %v9123_v17  ;;  %v9427_v7 = vld [vmem:[#allocation5 + $0xc70] sm:$0xf]  ;;  %v8600_v10 = vor.u32 %v10273_v61, %v8597_v44 }
 0x488   :  { %v8528_v54 = vor.u32 %v10255_v21, %v8525_v3  ;;  %v10251_v21 = vld [vmem:[#allocation5 + $0x544] sm:$0xf]  ;;  %v8509_v3 = vld [vmem:[#allocation5 + $0x548] sm:$0xf0]  ;;  %v9419_v23 = vld [vmem:[#allocation5 + $0xc60] sm:$0xf] }
 0x489   :  { %6163 = vmatpush.bf16.msra.mxu2 %v9148_v25  ;;  %v8285_v25 = vld [vmem:[#allocation5 + $0x388] sm:$0xf0]  ;;  %v8512_v44 = vor.u32 %v10251_v21, %v8509_v3  ;;  %v10233_v3 = vld [vmem:[#allocation5 + $0x4b4] sm:$0xf] }
 0x48a   :  { %6410 = vmatpush.bf16.msra.mxu0 %v8320_v49  ;;  %6385 = vmatpush.bf16.msrb.mxu3 %v8184_v34  ;;  %v10165_v49 = vld [vmem:[#allocation5 + $0x294] sm:$0xf]  ;;  %v8157_v34 = vld [vmem:[#allocation5 + $0x288] sm:$0xf0]  ;;  %v8288_v4 = vor.u32 %v10195_v27, %v8285_v25  ;;  %v8581_v25 = vld [vmem:[#allocation5 + $0x5d8] sm:$0xf0] }
 0x48b   :  { %6400 = vmatpush.bf16.msrb.mxu1 %v8232_v52  ;;  %v10241_v52 = vld [vmem:[#allocation5 + $0x4f4] sm:$0xf]  ;;  %v8160_v22 = vor.u32 %v10163_v20, %v8157_v34  ;;  %v8501_v34 = vld [vmem:[#allocation5 + $0x538] sm:$0xf0] }
 0x48c   :  { %v10249_v20 = vld [vmem:[#allocation5 + $0x534] sm:$0xf] }
 0x48d   :  { %6164 = vmatpush.bf16.msra.mxu2 %v9140_v41  ;;  %v10404_v41 = vld [vmem:[#allocation5 + $0xa04] sm:$0xf0] }
 0x48e   :  { %6411 = vmatpush.bf16.msra.mxu0 %v8312_v40  ;;  %6386 = vmatpush.bf16.msrb.mxu3 %v8176_v6  ;;  %v8168_v40 = vor.u32 %v10165_v49, %v8165_v2  ;;  %v8589_v6 = vld [vmem:[#allocation5 + $0x5e8] sm:$0xf0]  ;;  %v10239_v49 = vld [vmem:[#allocation5 + $0x4e4] sm:$0xf] }
 0x48f   :  { %6401 = vmatpush.bf16.msrb.mxu1 %v8224_v59  ;;  %v8472_v59 = vor.u32 %v10241_v52, %v8469_v24  ;;  %v8461_v2 = vld [vmem:[#allocation5 + $0x4e8] sm:$0xf0]  ;;  %v8592_v27 = vor.u32 %v10271_v16, %v8589_v6  ;;  %v9411_v24 = vld [vmem:[#allocation5 + $0xc50] sm:$0xf]  ;;  %v9403_v16 = vld [vmem:[#allocation5 + $0xc40] sm:$0xf] }
 0x490   :  { %v8464_v61 = vor.u32 %v10239_v49, %v8461_v2  ;;  %v10476_v6 = vld [vmem:[#allocation5 + $0xc44] sm:$0xf0]  ;;  %v8565_v49 = vld [vmem:[#allocation5 + $0x5b8] sm:$0xf0] }
 0x491   :  { %6165 = vmatpush.bf16.msra.mxu2 %v9132_v9  ;;  %v9116_v9 = vor.u32 %v10404_v41, %v9115_v32  ;;  %v8573_v32 = vld [vmem:[#allocation5 + $0x5c8] sm:$0xf0]  ;;  %v8504_v41 = vor.u32 %v10249_v20, %v8501_v34 }
 0x492   :  { %6412 = vmatpush.bf16.msra.mxu0 %v8304_v60  ;;  %v10482_v60 = vld [vmem:[#allocation5 + $0xc74] sm:$0xf0]  ;;  %6387 = vmatpush.bf16.msrb.mxu3 %v8168_v40  ;;  %v10237_v40 = vld [vmem:[#allocation5 + $0x4d4] sm:$0xf]  ;;  %v8557_v20 = vld [vmem:[#allocation5 + $0x5a8] sm:$0xf0] }
 0x493   :  { %6446 = vmatpush.bf16.msra.mxu1 %v8536_v46  ;;  %v8520_v46 = vor.u32 %v10253_v5, %v8517_v36  ;;  %v9428_v17 = vor.u32 %v10482_v60, %v9427_v7  ;;  %v10478_v5 = vld [vmem:[#allocation5 + $0xc54] sm:$0xf0]  ;;  %v10235_v7 = vld [vmem:[#allocation5 + $0x4c4] sm:$0xf]  ;;  %v8445_v60 = vld [vmem:[#allocation5 + $0x4c8] sm:$0xf0] }
 0x494   :  { %6402 = vmatmul.bf16.vlgmr.msrb.gmra.mxu1 %v13803_v51  ;;  %v10269_v51 = vld [vmem:[#allocation5 + $0x5d4] sm:$0xf]  ;;  %v8448_v2 = vor.u32 %v10235_v7, %v8445_v60  ;;  %v9387_v60 = vld [vmem:[#allocation5 + $0xc20] sm:$0xf] }
 0x495   :  { %6166 = vmatpush.bf16.msra.mxu2 %v9124_v42  ;;  %v8584_v36 = vor.u32 %v10269_v51, %v8581_v25  ;;  %v10267_v42 = vld [vmem:[#allocation5 + $0x5c4] sm:$0xf]  ;;  %v9404_v51 = vor.u32 %v10476_v6, %v9403_v16  ;;  %v8549_v16 = vld [vmem:[#allocation5 + $0x598] sm:$0xf0] }
 0x496   :  { %6413 = vmatpush.bf16.msra.mxu0 %v8296_v15  ;;  %v10480_v15 = vld [vmem:[#allocation5 + $0xc64] sm:$0xf0]  ;;  %6388 = vmatpush.bf16.msrb.mxu3 %v8160_v22  ;;  %v8493_v22 = vld [vmem:[#allocation5 + $0x528] sm:$0xf0]  ;;  %v3334_v25 = vld [vmem:[#allocation8] sm:$0x3] }
 0x497   :  { %6447 = vmatpush.bf16.msra.mxu1 %v8528_v54  ;;  %v8453_v54 = vld [vmem:[#allocation5 + $0x4d8] sm:$0xf0]  ;;  %v9420_v52 = vor.u32 %v10480_v15, %v9419_v23  ;;  %v13915_v15 = vpop.f32.mrf.mxu1 }
 0x498   :  { %v8485_v23 = vld [vmem:[#allocation5 + $0x518] sm:$0xf0] }
 0x499   :  { %6167 = vmatpush.bf16.msra.mxu2 %v9116_v9  ;;  %6389 = vmatmul.bf16.vlgmr.msrb.gmra.mxu3 %v13805_v1  ;;  %v9412_v1 = vor.u32 %v10478_v5, %v9411_v24  ;;  %v8437_v9 = vld [vmem:[#allocation5 + $0x4b8] sm:$0xf0]  ;;  %v10231_v24 = vld [vmem:[#allocation5 + $0x4a4] sm:$0xf]  ;;  %v8429_v5 = vld [vmem:[#allocation5 + $0x4a8] sm:$0xf0] }
 0x49a   :  { %6414 = vmatpush.bf16.msra.mxu0 %v8288_v4  ;;  %6433 = vmatpush.bf16.msra.mxu3 %v8472_v59  ;;  %v8456_v4 = vor.u32 %v10237_v40, %v8453_v54  ;;  %v8576_v59 = vor.u32 %v10267_v42, %v8573_v32  ;;  %v10263_v54 = vld [vmem:[#allocation5 + $0x5a4] sm:$0xf]  ;;  %v8440_v34 = vor.u32 %v10233_v3, %v8437_v9  ;;  %v8477_v42 = vld [vmem:[#allocation5 + $0x508] sm:$0xf0]  ;;  %v10321_v32 = vld [vmem:[#allocation5 + $0x774] sm:$0xf] }
 0x49b   :  { %6448 = vmatpush.bf16.msra.mxu1 %v8520_v46  ;;  %v10265_v46 = vld [vmem:[#allocation5 + $0x5b4] sm:$0xf]  ;;  %v8432_v6 = vor.u32 %v10231_v24, %v8429_v5  ;;  %v10319_v9 = vld [vmem:[#allocation5 + $0x764] sm:$0xf]  ;;  %v13919_v5 = vpop.f32.mrf.mxu3 }
 0x49c   :  { %v8568_v40 = vor.u32 %v10265_v46, %v8565_v49  ;;  %v5909_v46 = vpop.f32.mrf.mxu2 }
 0x49d   :  { %6415 = vmatmul.bf16.vlgmr.msra.gmra.mxu0 %v13812_v11  ;;  %6212 = vmatpush.bf16.msrb.mxu2 %v9428_v17  ;;  %v15070_v11 = vld [vmem:[#allocation129_spill] sm:$0xff]  ;;  %v10245_v17 = vld [vmem:[#allocation5 + $0x514] sm:$0xf] }
 0x49e   :  { %6459 = vmatpush.bf16.msrb.mxu0 %v8600_v10  ;;  %6434 = vmatpush.bf16.msra.mxu3 %v8464_v61  ;;  %v10247_v10 = vld [vmem:[#allocation5 + $0x524] sm:$0xf]  ;;  %v9395_v61 = vld [vmem:[#allocation5 + $0xc30] sm:$0xf] }
 0x49f   :  { %6449 = vmatpush.bf16.msra.mxu1 %v8512_v44  ;;  %6168 = vmatmul.bf16.vlgmr.msra.gmra.mxu2 %v15070_v11  ;;  %v8496_v21 = vor.u32 %v10247_v10, %v8493_v22  ;;  %v10474_v44 = vld [vmem:[#allocation5 + $0xc34] sm:$0xf0]  ;;  %v8560_v10 = vor.u32 %v10263_v54, %v8557_v20  ;;  %v10472_v22 = vld [vmem:[#allocation5 + $0xc24] sm:$0xf0]  ;;  %v6145_v3 = vpop.f32.mrf.mxu1  ;;  %v8541_v20 = vld [vmem:[#allocation5 + $0x588] sm:$0xf0] }
 0x4a0   :  { %v9396_v7 = vor.u32 %v10474_v44, %v9395_v61  ;;  %v10470_v61 = vld [vmem:[#allocation5 + $0xc14] sm:$0xf0]  ;;  %v10335_v3 = vld [vmem:[#allocation5 + $0x7e4] sm:$0xf] }
 0x4a1   :  { %6213 = vmatpush.bf16.msrb.mxu2 %v9420_v52  ;;  %v8488_v52 = vor.u32 %v10245_v17, %v8485_v23  ;;  %v8781_v17 = vld [vmem:[#allocation5 + $0x768] sm:$0xf0] }
 0x4a2   :  { %6460 = vmatpush.bf16.msrb.mxu0 %v8592_v27  ;;  %6435 = vmatpush.bf16.msra.mxu3 %v8456_v4  ;;  %v13917_v27 = vpop.f32.mrf.mxu0  ;;  %v8789_v4 = vld [vmem:[#allocation5 + $0x778] sm:$0xf0] }
 0x4a3   :  { %6450 = vmatpush.bf16.msra.mxu1 %v8504_v41  ;;  %v3336_v41 = vperm.slane %v3334_v25, 0  ;;  %v8792_v49 = vor.u32 %v10321_v32, %v8789_v4  ;;  %v9379_v25 = vld [vmem:[#allocation5 + $0xc10] sm:$0xf]  ;;  %v8413_v32 = vld [vmem:[#allocation5 + $0x488] sm:$0xf0] }
 0x4a4   :  { %v10305_v4 = vld [vmem:[#allocation5 + $0x6f4] sm:$0xf] }
 0x4a5   :  { %6214 = vmatpush.bf16.msrb.mxu2 %v9412_v1  ;;  %v10261_v1 = vld [vmem:[#allocation5 + $0x594] sm:$0xf]  ;;  %v5910_v54 = vadd.f32 %v5909_v46, %v3336_v41  ;;  %v10546_v46 = vld [vmem:[#allocation5 + $0xe74] sm:$0xf0] }
 0x4a6   :  { %6461 = vmatpush.bf16.msrb.mxu0 %v8584_v36  ;;  %6436 = vmatpush.bf16.msra.mxu3 %v8448_v2  ;;  %v10243_v36 = vld [vmem:[#allocation5 + $0x504] sm:$0xf]  ;;  %v10229_v2 = vld [vmem:[#allocation5 + $0x494] sm:$0xf]  ;;  %v8552_v44 = vor.u32 %v10261_v1, %v8549_v16  ;;  %v9371_v1 = vld [vmem:[#allocation5 + $0xc00] sm:$0xf] }
 0x4a7   :  { %6451 = vmatpush.bf16.msra.mxu1 %v8496_v21  ;;  %v8421_v21 = vld [vmem:[#allocation5 + $0x498] sm:$0xf0]  ;;  %v5923_v16 = vadd.f32 %v13868_v30, %v5910_v54  ;;  %v8765_v30 = vld [vmem:[#allocation5 + $0x748] sm:$0xf0] }
 0x4a8   :  { %v8424_v24 = vor.u32 %v10229_v2, %v8421_v21  ;;  %v5911_v21 = vpop.f32.mrf.mxu2 }
 0x4a9   :  { %6215 = vmatpush.bf16.msrb.mxu2 %v9404_v51  ;;  %v9388_v51 = vor.u32 %v10472_v22, %v9387_v60  ;;  %v10317_v60 = vld [vmem:[#allocation5 + $0x754] sm:$0xf]  ;;  %v8773_v22 = vld [vmem:[#allocation5 + $0x758] sm:$0xf0] }
 0x4aa   :  { %6462 = vmatpush.bf16.msrb.mxu0 %v8576_v59  ;;  %6437 = vmatpush.bf16.msra.mxu3 %v8440_v34  ;;  %v8480_v59 = vor.u32 %v10243_v36, %v8477_v42  ;;  %v6158_v23 = vpop.f32.mrf.mxu0  ;;  %v10337_v34 = vld [vmem:[#allocation5 + $0x7f4] sm:$0xf]  ;;  %v8784_v36 = vor.u32 %v10319_v9, %v8781_v17  ;;  %v10227_v42 = vld [vmem:[#allocation5 + $0x484] sm:$0xf]  ;;  %v8845_v9 = vld [vmem:[#allocation5 + $0x7e8] sm:$0xf0] }
 0x4ab   :  { %6452 = vmatpush.bf16.msra.mxu1 %v8488_v52  ;;  %v8853_v52 = vld [vmem:[#allocation5 + $0x7f8] sm:$0xf0]  ;;  %v8776_v23 = vor.u32 %v10317_v60, %v8773_v22  ;;  %v10301_v60 = vld [vmem:[#allocation5 + $0x6d4] sm:$0xf] }
 0x4ac   :  { %v8856_v2 = vor.u32 %v10337_v34, %v8853_v52  ;;  %v9675_v34 = vld [vmem:[#allocation5 + $0xe60] sm:$0xf]  ;;  %v10544_v52 = vld [vmem:[#allocation5 + $0xe64] sm:$0xf0]  ;;  %v8709_v22 = vld [vmem:[#allocation5 + $0x6d8] sm:$0xf0] }
 0x4ad   :  { %6216 = vmatpush.bf16.msrb.mxu2 %v9396_v7  ;;  %v8725_v7 = vld [vmem:[#allocation5 + $0x6f8] sm:$0xf0] }
 0x4ae   :  { %6463 = vmatpush.bf16.msrb.mxu0 %v8568_v40  ;;  %v10259_v40 = vld [vmem:[#allocation5 + $0x584] sm:$0xf]  ;;  %6438 = vmatpush.bf16.msra.mxu3 %v8432_v6  ;;  %v10468_v6 = vld [vmem:[#allocation5 + $0xc04] sm:$0xf0]  ;;  %v8728_v17 = vor.u32 %v10305_v4, %v8725_v7 }
 0x4af   :  { %6453 = vmatpush.bf16.msra.mxu1 %v8480_v59  ;;  %v8544_v41 = vor.u32 %v10259_v40, %v8541_v20  ;;  %v9683_v59 = vld [vmem:[#allocation5 + $0xe70] sm:$0xf]  ;;  %v9372_v54 = vor.u32 %v10468_v6, %v9371_v1  ;;  %v8757_v1 = vld [vmem:[#allocation5 + $0x738] sm:$0xf0]  ;;  %v10542_v6 = vld [vmem:[#allocation5 + $0xe54] sm:$0xf0] }
 0x4b0   :  { %v9684_v20 = vor.u32 %v10546_v46, %v9683_v59  ;;  %v5961_v46 = vpop.f32.mrf.mxu2 }
 0x4b1   :  { %6217 = vmatpush.bf16.msrb.mxu2 %v9388_v51  ;;  %v10303_v51 = vld [vmem:[#allocation5 + $0x6e4] sm:$0xf] }
 0x4b2   :  { %6464 = vmatpush.bf16.msrb.mxu0 %v8560_v10  ;;  %v9380_v10 = vor.u32 %v10470_v61, %v9379_v25  ;;  %6439 = vmatpush.bf16.msra.mxu3 %v8424_v24  ;;  %v13923_v25 = vpop.f32.mrf.mxu1  ;;  %v8717_v61 = vld [vmem:[#allocation5 + $0x6e8] sm:$0xf0]  ;;  %v13925_v40 = vpop.f32.mrf.mxu0  ;;  %v8848_v24 = vor.u32 %v10335_v3, %v8845_v9  ;;  %v10299_v3 = vld [vmem:[#allocation5 + $0x6c4] sm:$0xf] }
 0x4b3   :  { %6498 = vmatpush.bf16.msrb.mxu1 %v8792_v49  ;;  %v8416_v49 = vor.u32 %v10227_v42, %v8413_v32  ;;  %v10333_v42 = vld [vmem:[#allocation5 + $0x7d4] sm:$0xf]  ;;  %v8837_v32 = vld [vmem:[#allocation5 + $0x7d8] sm:$0xf0]  ;;  %v8720_v4 = vor.u32 %v10303_v51, %v8717_v61  ;;  %v10311_v51 = vld [vmem:[#allocation5 + $0x724] sm:$0xf] }
 0x4b4   :  { %6454 = vmatmul.bf16.vlgmr.msra.gmra.mxu1 %v13816_v58  ;;  %v5936_v58 = vadd.f32 %v13870_v45, %v5923_v16  ;;  %v9667_v16 = vld [vmem:[#allocation5 + $0xe50] sm:$0xf]  ;;  %v8840_v59 = vor.u32 %v10333_v42, %v8837_v32  ;;  %v8693_v32 = vld [vmem:[#allocation5 + $0x6b8] sm:$0xf0] }
 0x4b5   :  { %6218 = vmatpush.bf16.msrb.mxu2 %v9380_v10  ;;  %v10313_v10 = vld [vmem:[#allocation5 + $0x734] sm:$0xf] }
 0x4b6   :  { %6465 = vmatpush.bf16.msrb.mxu0 %v8552_v44  ;;  %v10315_v44 = vld [vmem:[#allocation5 + $0x744] sm:$0xf]  ;;  %6440 = vmatpush.bf16.msra.mxu3 %v8416_v49  ;;  %v5949_v45 = vadd.f32 %v13872_v0, %v5936_v58  ;;  %v8829_v49 = vld [vmem:[#allocation5 + $0x7c8] sm:$0xf0]  ;;  %v8760_v21 = vor.u32 %v10313_v10, %v8757_v1  ;;  %v10329_v58 = vld [vmem:[#allocation5 + $0x7b4] sm:$0xf] }
 0x4b7   :  { %6499 = vmatpush.bf16.msrb.mxu1 %v8784_v36  ;;  %v6132_v36 = vpop.f32.mrf.mxu3  ;;  %v8768_v7 = vor.u32 %v10315_v44, %v8765_v30  ;;  %v8749_v0 = vld [vmem:[#allocation5 + $0x728] sm:$0xf0]  ;;  %v9668_v44 = vor.u32 %v10542_v6, %v9667_v16  ;;  %v9659_v30 = vld [vmem:[#allocation5 + $0xe40] sm:$0xf]  ;;  %v9651_v10 = vld [vmem:[#allocation5 + $0xe30] sm:$0xf] }
 0x4b8   :  { %v10297_v36 = vld [vmem:[#allocation5 + $0x6b4] sm:$0xf]  ;;  %v10538_v1 = vld [vmem:[#allocation5 + $0xe34] sm:$0xf0]  ;;  %v10327_v16 = vld [vmem:[#allocation5 + $0x7a4] sm:$0xf] }
 0x4b9   :  { %6219 = vmatpush.bf16.msrb.mxu2 %v9372_v54  ;;  %6441 = vmatmul.bf16.vlgmr.msra.gmra.mxu3 %v13827_v62  ;;  %v8701_v62 = vld [vmem:[#allocation5 + $0x6c8] sm:$0xf0]  ;;  %v10540_v54 = vld [vmem:[#allocation5 + $0xe44] sm:$0xf0] }
 0x4ba   :  { %6466 = vmatpush.bf16.msrb.mxu0 %v8544_v41  ;;  %6485 = vmatpush.bf16.msrb.mxu3 %v8728_v17  ;;  %v9676_v41 = vor.u32 %v10544_v52, %v9675_v34  ;;  %v6197_v9 = vpop.f32.mrf.mxu1  ;;  %v5962_v17 = vadd.f32 %v5961_v46, %v5949_v45  ;;  %v6210_v61 = vpop.f32.mrf.mxu0  ;;  %v8821_v34 = vld [vmem:[#allocation5 + $0x7b8] sm:$0xf0]  ;;  %v8704_v52 = vor.u32 %v10299_v3, %v8701_v62  ;;  %v8813_v6 = vld [vmem:[#allocation5 + $0x7a8] sm:$0xf0]  ;;  %v9643_v62 = vld [vmem:[#allocation5 + $0xe20] sm:$0xf] }
 0x4bb   :  { %6500 = vmatpush.bf16.msrb.mxu1 %v8776_v23  ;;  %v15071_v23 = vld [vmem:[#allocation162_spill] sm:$0xff]  ;;  %v8824_v45 = vor.u32 %v10329_v58, %v8821_v34  ;;  %v9652_v9 = vor.u32 %v10538_v1, %v9651_v10  ;;  %v10325_v61 = vld [vmem:[#allocation5 + $0x794] sm:$0xf]  ;;  %v8677_v34 = vld [vmem:[#allocation5 + $0x698] sm:$0xf0] }
 0x4bc   :  { %6220 = vmatmul.bf16.vlgmr.msrb.gmra.mxu2 %v15071_v23  ;;  %v8733_v3 = vld [vmem:[#allocation5 + $0x708] sm:$0xf0]  ;;  %v10293_v58 = vld [vmem:[#allocation5 + $0x694] sm:$0xf] }
 0x4bd   :  { %6467 = vmatmul.bf16.vlgmr.msrb.gmra.mxu0 %v13825_v63  ;;  %6264 = vmatpush.bf16.msra.mxu2 %v9684_v20  ;;  %v8712_v63 = vor.u32 %v10301_v60, %v8709_v22  ;;  %v5975_v60 = vadd.f32 %v13881_v26, %v5962_v17  ;;  %v9660_v22 = vor.u32 %v10540_v54, %v9659_v30 }
 0x4be   :  { %6511 = vmatpush.bf16.msra.mxu0 %v8856_v2  ;;  %6486 = vmatpush.bf16.msrb.mxu3 %v8720_v4  ;;  %v10331_v2 = vld [vmem:[#allocation5 + $0x7c4] sm:$0xf]  ;;  %v10309_v4 = vld [vmem:[#allocation5 + $0x714] sm:$0xf] }
 0x4bf   :  { %6501 = vmatpush.bf16.msrb.mxu1 %v8768_v7  ;;  %v8832_v20 = vor.u32 %v10331_v2, %v8829_v49  ;;  %v13932_v42 = vpop.f32.mrf.mxu3  ;;  %v8741_v7 = vld [vmem:[#allocation5 + $0x718] sm:$0xf0]  ;;  %v10295_v2 = vld [vmem:[#allocation5 + $0x6a4] sm:$0xf]  ;;  %v5988_v17 = vadd.f32 %v13883_v35, %v5975_v60  ;;  %v8797_v60 = vld [vmem:[#allocation5 + $0x788] sm:$0xf0] }
 0x4c0   :  { %v8744_v46 = vor.u32 %v10309_v4, %v8741_v7  ;;  %v10534_v4 = vld [vmem:[#allocation5 + $0xe14] sm:$0xf0]  ;;  %v10323_v7 = vld [vmem:[#allocation5 + $0x784] sm:$0xf] }
 0x4c1   :  { %6265 = vmatpush.bf16.msra.mxu2 %v9676_v41  ;;  %v5963_v41 = vpop.f32.mrf.mxu2 }
 0x4c2   :  { %6512 = vmatpush.bf16.msra.mxu0 %v8848_v24  ;;  %6487 = vmatpush.bf16.msrb.mxu3 %v8712_v63  ;;  %v8752_v24 = vor.u32 %v10311_v51, %v8749_v0  ;;  %v13935_v49 = vpop.f32.mrf.mxu1  ;;  %v8685_v63 = vld [vmem:[#allocation5 + $0x6a8] sm:$0xf0]  ;;  %v13937_v26 = vpop.f32.mrf.mxu0  ;;  %v8816_v51 = vor.u32 %v10327_v16, %v8813_v6  ;;  %v10536_v0 = vld [vmem:[#allocation5 + $0xe24] sm:$0xf0] }
 0x4c3   :  { %6502 = vmatpush.bf16.msrb.mxu1 %v8760_v21  ;;  %v10307_v21 = vld [vmem:[#allocation5 + $0x704] sm:$0xf]  ;;  %v8688_v30 = vor.u32 %v10295_v2, %v8685_v63  ;;  %v8669_v41 = vld [vmem:[#allocation5 + $0x688] sm:$0xf0]  ;;  %v10097_v63 = vld [vmem:[#allocation5 + $0x74] sm:$0xf] }
 0x4c4   :  { %v8736_v54 = vor.u32 %v10307_v21, %v8733_v3  ;;  %v7893_v21 = vld [vmem:[#allocation5 + $0x78] sm:$0xf0] }
 0x4c5   :  { %6266 = vmatpush.bf16.msra.mxu2 %v9668_v44  ;;  %v8805_v44 = vld [vmem:[#allocation5 + $0x798] sm:$0xf0] }
 0x4c6   :  { %6513 = vmatpush.bf16.msra.mxu0 %v8840_v59  ;;  %6488 = vmatpush.bf16.msrb.mxu3 %v8704_v52  ;;  %v8696_v59 = vor.u32 %v10297_v36, %v8693_v32  ;;  %v6001_v52 = vadd.f32 %v13885_v8, %v5988_v17  ;;  %v9635_v36 = vld [vmem:[#allocation5 + $0xe10] sm:$0xf]  ;;  %v8808_v35 = vor.u32 %v10325_v61, %v8805_v44  ;;  %v10093_v61 = vld [vmem:[#allocation5 + $0x54] sm:$0xf]  ;;  %v7877_v44 = vld [vmem:[#allocation5 + $0x58] sm:$0xf0] }
 0x4c7   :  { %6503 = vmatpush.bf16.msrb.mxu1 %v8752_v24  ;;  %v9644_v24 = vor.u32 %v10536_v0, %v9643_v62  ;;  %v9636_v6 = vor.u32 %v10534_v4, %v9635_v36  ;;  %v8800_v8 = vor.u32 %v10323_v7, %v8797_v60  ;;  %v7896_v62 = vor.u32 %v10097_v63, %v7893_v21  ;;  %v7885_v0 = vld [vmem:[#allocation5 + $0x68] sm:$0xf0]  ;;  %v10087_v60 = vld [vmem:[#allocation5 + $0x24] sm:$0xf]  ;;  %v10161_v63 = vld [vmem:[#allocation5 + $0x274] sm:$0xf] }
 0x4c8   :  { %v8149_v21 = vld [vmem:[#allocation5 + $0x278] sm:$0xf0] }
 0x4c9   :  { %6267 = vmatpush.bf16.msra.mxu2 %v9660_v22  ;;  %v6013_v32 = vpop.f32.mrf.mxu2  ;;  %v8680_v22 = vor.u32 %v10293_v58, %v8677_v34  ;;  %v7880_v58 = vor.u32 %v10093_v61, %v7877_v44  ;;  %v10091_v34 = vld [vmem:[#allocation5 + $0x44] sm:$0xf]  ;;  %v8133_v61 = vld [vmem:[#allocation5 + $0x258] sm:$0xf0] }
 0x4ca   :  { %6514 = vmatpush.bf16.msra.mxu0 %v8832_v20  ;;  %6489 = vmatpush.bf16.msrb.mxu3 %v8696_v59  ;;  %v6184_v20 = vpop.f32.mrf.mxu3  ;;  %v6249_v10 = vpop.f32.mrf.mxu1  ;;  %v6014_v1 = vadd.f32 %v6013_v32, %v6001_v52  ;;  %v9627_v59 = vld [vmem:[#allocation5 + $0xe00] sm:$0xf]  ;;  %v7869_v52 = vld [vmem:[#allocation5 + $0x48] sm:$0xf0] }
 0x4cb   :  { %6504 = vmatpush.bf16.msrb.mxu1 %v8744_v46  ;;  %v6262_v16 = vpop.f32.mrf.mxu0  ;;  %v10532_v46 = vld [vmem:[#allocation5 + $0xe04] sm:$0xf0]  ;;  %v7872_v36 = vor.u32 %v10091_v34, %v7869_v52  ;;  %v8125_v34 = vld [vmem:[#allocation5 + $0x248] sm:$0xf0] }
 0x4cc   :  { %v15072_v20 = vld [vmem:[#allocation78_spill] sm:$0xff] }
 0x4cd   :  { %6268 = vmatpush.bf16.msra.mxu2 %v9652_v9  ;;  %v9628_v9 = vor.u32 %v10532_v46, %v9627_v59  ;;  %v10083_v46 = vld [vmem:[#allocation5 + $0x4] sm:$0xf] }
 0x4ce   :  { %6515 = vmatpush.bf16.msra.mxu0 %v8824_v45  ;;  %6490 = vmatpush.bf16.msrb.mxu3 %v8688_v30  ;;  %v10291_v45 = vld [vmem:[#allocation5 + $0x684] sm:$0xf] }
 0x4cf   :  { %6505 = vmatpush.bf16.msrb.mxu1 %v8736_v54  ;;  %v8672_v2 = vor.u32 %v10291_v45, %v8669_v41 }
 0x4d1   :  { %6269 = vmatpush.bf16.msra.mxu2 %v9644_v24  ;;  %v6015_v17 = vpop.f32.mrf.mxu2 }
 0x4d2   :  { %6516 = vmatpush.bf16.msra.mxu0 %v8816_v51  ;;  %6491 = vmatpush.bf16.msrb.mxu3 %v8680_v22  ;;  %v13942_v3 = vpop.f32.mrf.mxu3  ;;  %v10095_v51 = vld [vmem:[#allocation5 + $0x64] sm:$0xf]  ;;  %v13946_v30 = vpop.f32.mrf.mxu1  ;;  %v7853_v22 = vld [vmem:[#allocation5 + $0x28] sm:$0xf0] }
 0x4d3   :  { %6506 = vmatmul.bf16.vlgmr.msrb.gmra.mxu1 %v13844_v28  ;;  %v7888_v28 = vor.u32 %v10095_v51, %v7885_v0  ;;  %v7856_v16 = vor.u32 %v10087_v60, %v7853_v22  ;;  %v10159_v51 = vld [vmem:[#allocation5 + $0x264] sm:$0xf]  ;;  %v8141_v0 = vld [vmem:[#allocation5 + $0x268] sm:$0xf0] }
 0x4d4   :  { %v10151_v60 = vld [vmem:[#allocation5 + $0x224] sm:$0xf]  ;;  %v8109_v22 = vld [vmem:[#allocation5 + $0x228] sm:$0xf0] }
 0x4d5   :  { %6270 = vmatpush.bf16.msra.mxu2 %v9636_v6 }
 0x4d6   :  { %6517 = vmatpush.bf16.msra.mxu0 %v8808_v35  ;;  %6492 = vmatpush.bf16.msrb.mxu3 %v8672_v2  ;;  %v7861_v35 = vld [vmem:[#allocation5 + $0x38] sm:$0xf0]  ;;  %v7837_v2 = vld [vmem:[#allocation5 + $0x8] sm:$0xf0] }
 0x4d9   :  { %6271 = vmatpush.bf16.msra.mxu2 %v9628_v9  ;;  %6493 = vmatmul.bf16.vlgmr.msrb.gmra.mxu3 %v13837_v12  ;;  %v10089_v12 = vld [vmem:[#allocation5 + $0x34] sm:$0xf]  ;;  %v7840_v9 = vor.u32 %v10083_v46, %v7837_v2  ;;  %v8093_v46 = vld [vmem:[#allocation5 + $0x208] sm:$0xf0] }
 0x4da   :  { %6518 = vmatpush.bf16.msra.mxu0 %v8800_v8  ;;  %v6236_v54 = vpop.f32.mrf.mxu3  ;;  %v13949_v24 = vpop.f32.mrf.mxu0  ;;  %v7864_v4 = vor.u32 %v10089_v12, %v7861_v35  ;;  %v10153_v12 = vld [vmem:[#allocation5 + $0x234] sm:$0xf]  ;;  %v8117_v35 = vld [vmem:[#allocation5 + $0x238] sm:$0xf0] }
 0x4db   :  { %v6301_v32 = vpop.f32.mrf.mxu1  ;;  %v10225_v2 = vld [vmem:[#allocation5 + $0x474] sm:$0xf] }
 0x4dc   :  { %6272 = vmatmul.bf16.vlgmr.msra.gmra.mxu2 %v15072_v20 }
 0x4dd   :  { %6519 = vmatmul.bf16.vlgmr.msra.gmra.mxu0 %v13846_v38  ;;  %6316 = vmatpush.bf16.msrb.mxu2 %v7896_v62  ;;  %v6027_v38 = vadd.f32 %v13889_v56, %v6014_v1  ;;  %v10085_v56 = vld [vmem:[#allocation5 + $0x14] sm:$0xf]  ;;  %v7845_v1 = vld [vmem:[#allocation5 + $0x18] sm:$0xf0]  ;;  %v8152_v62 = vor.u32 %v10161_v63, %v8149_v21 }
 0x4de   :  { %v7848_v59 = vor.u32 %v10085_v56, %v7845_v1  ;;  %v8101_v56 = vld [vmem:[#allocation5 + $0x218] sm:$0xf0] }
 0x4df   :  { %v6040_v7 = vadd.f32 %v13891_v48, %v6027_v38  ;;  %v6065_v6 = vpop.f32.mrf.mxu2  ;;  %v8405_v63 = vld [vmem:[#allocation5 + $0x478] sm:$0xf0] }
 0x4e1   :  { %6317 = vmatpush.bf16.msrb.mxu2 %v7888_v28  ;;  %v6053_v41 = vadd.f32 %v13894_v14, %v6040_v7  ;;  %v8144_v14 = vor.u32 %v10159_v51, %v8141_v0  ;;  %v10157_v28 = vld [vmem:[#allocation5 + $0x254] sm:$0xf]  ;;  %v8389_v0 = vld [vmem:[#allocation5 + $0x458] sm:$0xf0] }
 0x4e2   :  { %v13953_v10 = vpop.f32.mrf.mxu3  ;;  %v6314_v45 = vpop.f32.mrf.mxu0  ;;  %v8136_v54 = vor.u32 %v10157_v28, %v8133_v61  ;;  %v10221_v51 = vld [vmem:[#allocation5 + $0x454] sm:$0xf]  ;;  %v10219_v61 = vld [vmem:[#allocation5 + $0x444] sm:$0xf] }
 0x4e3   :  { %v6066_v8 = vadd.f32 %v6065_v6, %v6053_v41  ;;  %v8392_v28 = vor.u32 %v10221_v51, %v8389_v0  ;;  %v8653_v51 = vld [vmem:[#allocation5 + $0x668] sm:$0xf0]  ;;  %v10365_v0 = vld [vmem:[#allocation5 + $0x8d4] sm:$0xf] }
 0x4e5   :  { %6318 = vmatpush.bf16.msrb.mxu2 %v7880_v58  ;;  %v10155_v58 = vld [vmem:[#allocation5 + $0x244] sm:$0xf]  ;;  %v6079_v38 = vadd.f32 %v13901_v13, %v6066_v8  ;;  %v10149_v13 = vld [vmem:[#allocation5 + $0x214] sm:$0xf] }
 0x4e6   :  { %v8104_v8 = vor.u32 %v10149_v13, %v8101_v56  ;;  %v10369_v13 = vld [vmem:[#allocation5 + $0x8f4] sm:$0xf] }
 0x4e7   :  { %v6067_v17 = vpop.f32.mrf.mxu2  ;;  %v6092_v7 = vadd.f32 %v13903_v18, %v6079_v38 }
 0x4e8   :  { %v10223_v17 = vld [vmem:[#allocation5 + $0x464] sm:$0xf] }
 0x4e9   :  { %6319 = vmatpush.bf16.msrb.mxu2 %v7872_v36  ;;  %v8128_v36 = vor.u32 %v10155_v58, %v8125_v34  ;;  %v6105_v41 = vadd.f32 %v13905_v47, %v6092_v7  ;;  %v10215_v7 = vld [vmem:[#allocation5 + $0x424] sm:$0xf] }
 0x4ea   :  { %v6288_v48 = vpop.f32.mrf.mxu3 }
 0x4eb   :  { %v8408_v48 = vor.u32 %v10225_v2, %v8405_v63  ;;  %v10367_v2 = vld [vmem:[#allocation5 + $0x8e4] sm:$0xf]  ;;  %v8973_v63 = vld [vmem:[#allocation5 + $0x8e8] sm:$0xf0] }
 0x4ed   :  { %6320 = vmatpush.bf16.msrb.mxu2 %v7864_v4  ;;  %v8120_v4 = vor.u32 %v10153_v12, %v8117_v35  ;;  %v8373_v12 = vld [vmem:[#allocation5 + $0x438] sm:$0xf0] }
 0x4f1   :  { %6321 = vmatpush.bf16.msrb.mxu2 %v7856_v16  ;;  %v13956_v44 = vpop.f32.mrf.mxu1  ;;  %v8112_v16 = vor.u32 %v10151_v60, %v8109_v22  ;;  %v8365_v60 = vld [vmem:[#allocation5 + $0x428] sm:$0xf0] }
 0x4f5   :  { %6322 = vmatpush.bf16.msrb.mxu2 %v7848_v59  ;;  %v10147_v59 = vld [vmem:[#allocation5 + $0x204] sm:$0xf] }
 0x4f6   :  { %v8096_v21 = vor.u32 %v10147_v59, %v8093_v46  ;;  %v10211_v46 = vld [vmem:[#allocation5 + $0x404] sm:$0xf] }
 0x4f9   :  { %6323 = vmatpush.bf16.msrb.mxu2 %v7840_v9  ;;  %v6353_v32 = vpop.f32.mrf.mxu1 }
 0x4fa   :  { %v13959_v52 = vpop.f32.mrf.mxu0 }
 0x4fc   :  { %6324 = vmatmul.bf16.vlgmr.msrb.gmra.mxu2 %v13859_v39  ;;  %v13963_v39 = vpop.f32.mrf.mxu3 }
 0x4fd   :  { %6368 = vmatpush.bf16.msra.mxu2 %v8152_v62  ;;  %v8397_v62 = vld [vmem:[#allocation5 + $0x468] sm:$0xf0] }
 0x4fe   :  { %v8400_v47 = vor.u32 %v10223_v17, %v8397_v62 }
 0x501   :  { %6369 = vmatpush.bf16.msra.mxu2 %v8144_v14 }
 0x502   :  { %v6366_v45 = vpop.f32.mrf.mxu0  ;;  %v6117_v6 = vpop.f32.mrf.mxu2 }
 0x503   :  { %v6118_v1 = vadd.f32 %v6117_v6, %v6105_v41  ;;  %v8368_v41 = vor.u32 %v10215_v7, %v8365_v60  ;;  %v8357_v6 = vld [vmem:[#allocation5 + $0x418] sm:$0xf0]  ;;  %v10363_v60 = vld [vmem:[#allocation5 + $0x8c4] sm:$0xf] }
 0x504   :  { %v6340_v18 = vpop.f32.mrf.mxu3  ;;  %v9109_v7 = vld [vmem:[#allocation5 + $0x9f8] sm:$0xf0] }
 0x505   :  { %6370 = vmatpush.bf16.msra.mxu2 %v8136_v54  ;;  %v8381_v54 = vld [vmem:[#allocation5 + $0x448] sm:$0xf0]  ;;  %v6131_v34 = vadd.f32 %v13919_v5, %v6118_v1  ;;  %v10213_v5 = vld [vmem:[#allocation5 + $0x414] sm:$0xf]  ;;  %v8981_v1 = vld [vmem:[#allocation5 + $0x8f8] sm:$0xf0] }
 0x506   :  { %v8384_v38 = vor.u32 %v10219_v61, %v8381_v54  ;;  %v8360_v59 = vor.u32 %v10213_v5, %v8357_v6  ;;  %v10289_v18 = vld [vmem:[#allocation5 + $0x674] sm:$0xf] }
 0x507   :  { %v10385_v61 = vld [vmem:[#allocation5 + $0x974] sm:$0xf] }
 0x509   :  { %6371 = vmatpush.bf16.msra.mxu2 %v8128_v36  ;;  %v10217_v36 = vld [vmem:[#allocation5 + $0x434] sm:$0xf] }
 0x50a   :  { %v6119_v9 = vpop.f32.mrf.mxu2  ;;  %v8376_v32 = vor.u32 %v10217_v36, %v8373_v12  ;;  %v9045_v12 = vld [vmem:[#allocation5 + $0x978] sm:$0xf0] }
 0x50b   :  { %v8976_v9 = vor.u32 %v10367_v2, %v8973_v63  ;;  %v8949_v63 = vld [vmem:[#allocation5 + $0x8b8] sm:$0xf0] }
 0x50d   :  { %6372 = vmatpush.bf16.msra.mxu2 %v8120_v4  ;;  %v6144_v4 = vadd.f32 %v13915_v15, %v6131_v34  ;;  %v8349_v15 = vld [vmem:[#allocation5 + $0x408] sm:$0xf0]  ;;  %v10285_v34 = vld [vmem:[#allocation5 + $0x654] sm:$0xf] }
 0x50f   :  { %v6157_v45 = vadd.f32 %v13917_v27, %v6144_v4  ;;  %v8352_v27 = vor.u32 %v10211_v46, %v8349_v15  ;;  %v10401_v4 = vld [vmem:[#allocation5 + $0x9f4] sm:$0xf]  ;;  %v9101_v46 = vld [vmem:[#allocation5 + $0x9e8] sm:$0xf0] }
 0x510   :  { %v10361_v15 = vld [vmem:[#allocation5 + $0x8b4] sm:$0xf] }
 0x511   :  { %6373 = vmatpush.bf16.msra.mxu2 %v8112_v16  ;;  %v13966_v14 = vpop.f32.mrf.mxu1 }
 0x515   :  { %6374 = vmatpush.bf16.msra.mxu2 %v8104_v8  ;;  %v8984_v8 = vor.u32 %v10369_v13, %v8981_v1  ;;  %v10283_v1 = vld [vmem:[#allocation5 + $0x644] sm:$0xf] }
 0x517   :  { %6537 = vmatpush.bf16.msra.mxu3 %v8984_v8  ;;  %v8637_v8 = vld [vmem:[#allocation5 + $0x648] sm:$0xf0] }
 0x519   :  { %6375 = vmatpush.bf16.msra.mxu2 %v8096_v21  ;;  %v6405_v35 = vpop.f32.mrf.mxu1  ;;  %v8661_v21 = vld [vmem:[#allocation5 + $0x678] sm:$0xf0] }
 0x51a   :  { %v13969_v58 = vpop.f32.mrf.mxu0  ;;  %v8664_v17 = vor.u32 %v10289_v18, %v8661_v21  ;;  %v9029_v18 = vld [vmem:[#allocation5 + $0x958] sm:$0xf0] }
 0x51b   :  { %6538 = vmatpush.bf16.msra.mxu3 %v8976_v9 }
 0x51c   :  { %6376 = vmatmul.bf16.vlgmr.msra.gmra.mxu2 %v13865_v55  ;;  %v13973_v55 = vpop.f32.mrf.mxu3 }
 0x51d   :  { %6420 = vmatpush.bf16.msrb.mxu2 %v8408_v48 }
 0x521   :  { %6421 = vmatpush.bf16.msrb.mxu2 %v8400_v47  ;;  %v10287_v47 = vld [vmem:[#allocation5 + $0x664] sm:$0xf] }
 0x522   :  { %v6418_v22 = vpop.f32.mrf.mxu0  ;;  %v6169_v16 = vpop.f32.mrf.mxu2  ;;  %v8656_v54 = vor.u32 %v10287_v47, %v8653_v51  ;;  %v8629_v47 = vld [vmem:[#allocation5 + $0x638] sm:$0xf0] }
 0x523   :  { %v6170_v56 = vadd.f32 %v6169_v16, %v6157_v45  ;;  %v9112_v22 = vor.u32 %v10401_v4, %v9109_v7  ;;  %v8957_v45 = vld [vmem:[#allocation5 + $0x8c8] sm:$0xf0] }
 0x524   :  { %v6392_v48 = vpop.f32.mrf.mxu3  ;;  %v9037_v16 = vld [vmem:[#allocation5 + $0x968] sm:$0xf0]  ;;  %v8960_v5 = vor.u32 %v10363_v60, %v8957_v45  ;;  %v10395_v60 = vld [vmem:[#allocation5 + $0x9c4] sm:$0xf] }
 0x525   :  { %6422 = vmatpush.bf16.msrb.mxu2 %v8392_v28  ;;  %v8965_v28 = vld [vmem:[#allocation5 + $0x8d8] sm:$0xf0]  ;;  %6563 = vmatpush.bf16.msrb.mxu0 %v9112_v22  ;;  %v8952_v48 = vor.u32 %v10361_v15, %v8949_v63  ;;  %v8621_v7 = vld [vmem:[#allocation5 + $0x628] sm:$0xf0] }
 0x526   :  { %v8968_v36 = vor.u32 %v10365_v0, %v8965_v28  ;;  %v10397_v0 = vld [vmem:[#allocation5 + $0x9d4] sm:$0xf]  ;;  %v9093_v28 = vld [vmem:[#allocation5 + $0x9d8] sm:$0xf0]  ;;  %v9085_v22 = vld [vmem:[#allocation5 + $0x9c8] sm:$0xf0] }
 0x527   :  { %v8605_v15 = vld [vmem:[#allocation5 + $0x608] sm:$0xf0]  ;;  %v8917_v63 = vld [vmem:[#allocation5 + $0x878] sm:$0xf0] }
 0x528   :  { %6539 = vmatpush.bf16.msra.mxu3 %v8968_v36  ;;  %v9021_v36 = vld [vmem:[#allocation5 + $0x948] sm:$0xf0] }
 0x529   :  { %6423 = vmatpush.bf16.msrb.mxu2 %v8384_v38  ;;  %v8645_v38 = vld [vmem:[#allocation5 + $0x658] sm:$0xf0] }
 0x52a   :  { %v6171_v62 = vpop.f32.mrf.mxu2  ;;  %v8648_v13 = vor.u32 %v10285_v34, %v8645_v38  ;;  %v8941_v34 = vld [vmem:[#allocation5 + $0x8a8] sm:$0xf0]  ;;  %v10379_v38 = vld [vmem:[#allocation5 + $0x944] sm:$0xf] }
 0x52b   :  { %v10281_v62 = vld [vmem:[#allocation5 + $0x634] sm:$0xf] }
 0x52c   :  { %6540 = vmatpush.bf16.msra.mxu3 %v8960_v5  ;;  %v8632_v4 = vor.u32 %v10281_v62, %v8629_v47  ;;  %v9013_v47 = vld [vmem:[#allocation5 + $0x938] sm:$0xf0] }
 0x52d   :  { %6424 = vmatpush.bf16.msrb.mxu2 %v8376_v32  ;;  %v9048_v32 = vor.u32 %v10385_v61, %v9045_v12  ;;  %v10359_v61 = vld [vmem:[#allocation5 + $0x8a4] sm:$0xf] }
 0x52e   :  { %v8944_v12 = vor.u32 %v10359_v61, %v8941_v34  ;;  %v10393_v61 = vld [vmem:[#allocation5 + $0x9b4] sm:$0xf]  ;;  %v10355_v34 = vld [vmem:[#allocation5 + $0x884] sm:$0xf] }
 0x52f   :  { %6550 = vmatpush.bf16.msra.mxu1 %v9048_v32  ;;  %v9024_v32 = vor.u32 %v10379_v38, %v9021_v36  ;;  %v8925_v36 = vld [vmem:[#allocation5 + $0x888] sm:$0xf0] }
 0x530   :  { %6541 = vmatpush.bf16.msra.mxu3 %v8952_v48  ;;  %v8933_v48 = vld [vmem:[#allocation5 + $0x898] sm:$0xf0] }
 0x531   :  { %6425 = vmatpush.bf16.msrb.mxu2 %v8368_v41  ;;  %v13976_v35 = vpop.f32.mrf.mxu1  ;;  %v10383_v41 = vld [vmem:[#allocation5 + $0x964] sm:$0xf] }
 0x532   :  { %v9040_v6 = vor.u32 %v10383_v41, %v9037_v16  ;;  %v9088_v41 = vor.u32 %v10395_v60, %v9085_v22  ;;  %v10391_v22 = vld [vmem:[#allocation5 + $0x9a4] sm:$0xf] }
 0x534   :  { %6551 = vmatpush.bf16.msra.mxu1 %v9040_v6  ;;  %6542 = vmatpush.bf16.msra.mxu3 %v8944_v12  ;;  %v10375_v12 = vld [vmem:[#allocation5 + $0x924] sm:$0xf] }
 0x535   :  { %6426 = vmatpush.bf16.msrb.mxu2 %v8360_v59  ;;  %v10399_v59 = vld [vmem:[#allocation5 + $0x9e4] sm:$0xf] }
 0x536   :  { %v9104_v2 = vor.u32 %v10399_v59, %v9101_v46  ;;  %v10275_v46 = vld [vmem:[#allocation5 + $0x604] sm:$0xf] }
 0x538   :  { %6564 = vmatpush.bf16.msrb.mxu0 %v9104_v2  ;;  %v10353_v2 = vld [vmem:[#allocation5 + $0x874] sm:$0xf] }
 0x539   :  { %6427 = vmatpush.bf16.msrb.mxu2 %v8352_v27  ;;  %v6183_v27 = vadd.f32 %v13932_v42, %v6170_v56  ;;  %v6457_v51 = vpop.f32.mrf.mxu1  ;;  %v10279_v56 = vld [vmem:[#allocation5 + $0x624] sm:$0xf] }
 0x53a   :  { %v13979_v21 = vpop.f32.mrf.mxu0  ;;  %v8624_v6 = vor.u32 %v10279_v56, %v8621_v7  ;;  %v8920_v51 = vor.u32 %v10353_v2, %v8917_v63  ;;  %v10433_v56 = vld [vmem:[#allocation5 + $0xaf4] sm:$0xf]  ;;  %v9237_v7 = vld [vmem:[#allocation5 + $0xaf8] sm:$0xf0] }
 0x53b   :  { %v6196_v42 = vadd.f32 %v13923_v25, %v6183_v27  ;;  %v8608_v27 = vor.u32 %v10275_v46, %v8605_v15  ;;  %v9240_v60 = vor.u32 %v10433_v56, %v9237_v7  ;;  %v9229_v15 = vld [vmem:[#allocation5 + $0xae8] sm:$0xf0]  ;;  %v10389_v63 = vld [vmem:[#allocation5 + $0x994] sm:$0xf] }
 0x53c   :  { %6428 = vmatmul.bf16.vlgmr.msrb.gmra.mxu2 %v13878_v19  ;;  %v10381_v19 = vld [vmem:[#allocation5 + $0x954] sm:$0xf]  ;;  %v13983_v45 = vpop.f32.mrf.mxu3  ;;  %v9213_v7 = vld [vmem:[#allocation5 + $0xac8] sm:$0xf0] }
 0x53d   :  { %6472 = vmatpush.bf16.msra.mxu2 %v8664_v17  ;;  %v9032_v9 = vor.u32 %v10381_v19, %v9029_v18  ;;  %v8640_v17 = vor.u32 %v10283_v1, %v8637_v8  ;;  %v6209_v5 = vadd.f32 %v13925_v40, %v6196_v42  ;;  %v10277_v1 = vld [vmem:[#allocation5 + $0x614] sm:$0xf]  ;;  %v8613_v8 = vld [vmem:[#allocation5 + $0x618] sm:$0xf0]  ;;  %v10351_v40 = vld [vmem:[#allocation5 + $0x864] sm:$0xf] }
 0x53e   :  { %v8616_v59 = vor.u32 %v10277_v1, %v8613_v8  ;;  %v10357_v18 = vld [vmem:[#allocation5 + $0x894] sm:$0xf]  ;;  %v10431_v1 = vld [vmem:[#allocation5 + $0xae4] sm:$0xf] }
 0x53f   :  { %6552 = vmatpush.bf16.msra.mxu1 %v9032_v9  ;;  %v10377_v9 = vld [vmem:[#allocation5 + $0x934] sm:$0xf]  ;;  %v8936_v62 = vor.u32 %v10357_v18, %v8933_v48  ;;  %v10347_v18 = vld [vmem:[#allocation5 + $0x844] sm:$0xf]  ;;  %v8893_v48 = vld [vmem:[#allocation5 + $0x848] sm:$0xf0] }
 0x540   :  { %v10349_v8 = vld [vmem:[#allocation5 + $0x854] sm:$0xf]  ;;  %v8896_v56 = vor.u32 %v10347_v18, %v8893_v48  ;;  %v10343_v18 = vld [vmem:[#allocation5 + $0x824] sm:$0xf]  ;;  %v8877_v48 = vld [vmem:[#allocation5 + $0x828] sm:$0xf0] }
 0x541   :  { %6473 = vmatpush.bf16.msra.mxu2 %v8656_v54  ;;  %v9096_v54 = vor.u32 %v10397_v0, %v9093_v28  ;;  %v9016_v28 = vor.u32 %v10377_v9, %v9013_v47  ;;  %6543 = vmatpush.bf16.msra.mxu3 %v8936_v62  ;;  %v9232_v9 = vor.u32 %v10431_v1, %v9229_v15  ;;  %v10429_v47 = vld [vmem:[#allocation5 + $0xad4] sm:$0xf]  ;;  %v9357_v1 = vld [vmem:[#allocation5 + $0xbe8] sm:$0xf0] }
 0x542   :  { %v6470_v16 = vpop.f32.mrf.mxu0  ;;  %v10425_v15 = vld [vmem:[#allocation5 + $0xab4] sm:$0xf] }
 0x543   :  { %6565 = vmatpush.bf16.msrb.mxu0 %v9096_v54  ;;  %6553 = vmatpush.bf16.msra.mxu1 %v9024_v32  ;;  %v9077_v54 = vld [vmem:[#allocation5 + $0x9b8] sm:$0xf0]  ;;  %v9005_v32 = vld [vmem:[#allocation5 + $0x928] sm:$0xf0] }
 0x544   :  { %v6444_v19 = vpop.f32.mrf.mxu3  ;;  %v9080_v38 = vor.u32 %v10393_v61, %v9077_v54  ;;  %v9008_v42 = vor.u32 %v10375_v12, %v9005_v32  ;;  %v9053_v61 = vld [vmem:[#allocation5 + $0x988] sm:$0xf0]  ;;  %v9365_v32 = vld [vmem:[#allocation5 + $0xbf8] sm:$0xf0] }
 0x545   :  { %6474 = vmatpush.bf16.msra.mxu2 %v8648_v13  ;;  %v6221_v13 = vpop.f32.mrf.mxu2  ;;  %v9061_v19 = vld [vmem:[#allocation5 + $0x998] sm:$0xf0] }
 0x546   :  { %v13986_v25 = vadd.f32 %v6221_v13, %v6209_v5  ;;  %v8997_v13 = vld [vmem:[#allocation5 + $0x918] sm:$0xf0] }
 0x547   :  { %6566 = vmatpush.bf16.msrb.mxu0 %v9088_v41  ;;  %6554 = vmatpush.bf16.msra.mxu1 %v9016_v28  ;;  %v9069_v41 = vld [vmem:[#allocation5 + $0x9a8] sm:$0xf0]  ;;  %v10387_v28 = vld [vmem:[#allocation5 + $0x984] sm:$0xf] }
 0x548   :  { %v9072_v5 = vor.u32 %v10391_v22, %v9069_v41  ;;  %v9293_v22 = vld [vmem:[#allocation5 + $0xb68] sm:$0xf0]  ;;  %v10345_v41 = vld [vmem:[#allocation5 + $0x834] sm:$0xf] }
 0x549   :  { %6475 = vmatpush.bf16.msra.mxu2 %v8640_v17  ;;  %v8909_v17 = vld [vmem:[#allocation5 + $0x868] sm:$0xf0] }
 0x54a   :  { %v8912_v16 = vor.u32 %v10351_v40, %v8909_v17  ;;  %v10371_v40 = vld [vmem:[#allocation5 + $0x904] sm:$0xf]  ;;  %v8989_v17 = vld [vmem:[#allocation5 + $0x908] sm:$0xf0] }
 0x54b   :  { %6567 = vmatpush.bf16.msrb.mxu0 %v9080_v38  ;;  %6555 = vmatpush.bf16.msra.mxu1 %v9008_v42  ;;  %v8992_v54 = vor.u32 %v10371_v40, %v8989_v17  ;;  %v6235_v42 = vadd.f32 %v13942_v3, %v13986_v25  ;;  %v10461_v40 = vld [vmem:[#allocation5 + $0xbd4] sm:$0xf]  ;;  %v9349_v17 = vld [vmem:[#allocation5 + $0xbd8] sm:$0xf0] }
 0x54d   :  { %6476 = vmatpush.bf16.msra.mxu2 %v8632_v4  ;;  %v6223_v0 = vpop.f32.mrf.mxu2  ;;  %v8928_v4 = vor.u32 %v10355_v34, %v8925_v36  ;;  %v10465_v34 = vld [vmem:[#allocation5 + $0xbf4] sm:$0xf]  ;;  %v6248_v25 = vadd.f32 %v13935_v49, %v6235_v42  ;;  %v10423_v49 = vld [vmem:[#allocation5 + $0xaa4] sm:$0xf]  ;;  %v9341_v42 = vld [vmem:[#allocation5 + $0xbc8] sm:$0xf0] }
 0x54e   :  { %v10449_v0 = vld [vmem:[#allocation5 + $0xb74] sm:$0xf] }
 0x54f   :  { %6544 = vmatpush.bf16.msra.mxu3 %v8928_v4  ;;  %6568 = vmatpush.bf16.msrb.mxu0 %v9072_v5  ;;  %v10427_v4 = vld [vmem:[#allocation5 + $0xac4] sm:$0xf] }
 0x550   :  { %v13988_v46 = vpop.f32.mrf.mxu1 }
 0x551   :  { %6477 = vmatpush.bf16.msra.mxu2 %v8624_v6  ;;  %v10373_v6 = vld [vmem:[#allocation5 + $0x914] sm:$0xf] }
 0x552   :  { %v9000_v2 = vor.u32 %v10373_v6, %v8997_v13  ;;  %6545 = vmatmul.bf16.vlgmr.msra.gmra.mxu3 %v15058_v53  ;;  %v9056_v53 = vor.u32 %v10387_v28, %v9053_v61  ;;  %v9368_v6 = vor.u32 %v10465_v34, %v9365_v32  ;;  %v10463_v13 = vld [vmem:[#allocation5 + $0xbe4] sm:$0xf]  ;;  %v9197_v28 = vld [vmem:[#allocation5 + $0xaa8] sm:$0xf0]  ;;  %v10341_v34 = vld [vmem:[#allocation5 + $0x814] sm:$0xf] }
 0x553   :  { %6589 = vmatpush.bf16.msrb.mxu3 %v9240_v60  ;;  %v10447_v60 = vld [vmem:[#allocation5 + $0xb64] sm:$0xf] }
 0x554   :  { %6556 = vmatpush.bf16.msra.mxu1 %v9000_v2  ;;  %v9205_v2 = vld [vmem:[#allocation5 + $0xab8] sm:$0xf0]  ;;  %v10443_v61 = vld [vmem:[#allocation5 + $0xb44] sm:$0xf] }
 0x555   :  { %6478 = vmatpush.bf16.msra.mxu2 %v8616_v59  ;;  %v8901_v59 = vld [vmem:[#allocation5 + $0x858] sm:$0xf0] }
 0x556   :  { %v8904_v62 = vor.u32 %v10349_v8, %v8901_v59  ;;  %v9216_v8 = vor.u32 %v10427_v4, %v9213_v7  ;;  %v9296_v59 = vor.u32 %v10447_v60, %v9293_v22  ;;  %v10459_v4 = vld [vmem:[#allocation5 + $0xbc4] sm:$0xf]  ;;  %v10441_v60 = vld [vmem:[#allocation5 + $0xb34] sm:$0xf]  ;;  %v9269_v22 = vld [vmem:[#allocation5 + $0xb38] sm:$0xf0] }
 0x557   :  { %6590 = vmatpush.bf16.msrb.mxu3 %v9232_v9  ;;  %v9360_v9 = vor.u32 %v10463_v13, %v9357_v1  ;;  %v9173_v13 = vld [vmem:[#allocation5 + $0xa78] sm:$0xf0] }
 0x558   :  { %v6509_v5 = vpop.f32.mrf.mxu1  ;;  %6557 = vmatpush.bf16.msra.mxu1 %v8992_v54  ;;  %v9277_v54 = vld [vmem:[#allocation5 + $0xb48] sm:$0xf0] }
 0x559   :  { %6479 = vmatpush.bf16.msra.mxu2 %v8608_v27  ;;  %v9064_v27 = vor.u32 %v10389_v63, %v9061_v19  ;;  %v10445_v63 = vld [vmem:[#allocation5 + $0xb54] sm:$0xf]  ;;  %v9285_v19 = vld [vmem:[#allocation5 + $0xb58] sm:$0xf0] }
 0x55a   :  { %v13992_v38 = vpop.f32.mrf.mxu0  ;;  %v10417_v5 = vld [vmem:[#allocation5 + $0xa74] sm:$0xf] }
 0x55b   :  { %6569 = vmatpush.bf16.msrb.mxu0 %v9064_v27  ;;  %6558 = vmatmul.bf16.vlgmr.msra.gmra.mxu1 %v15057_v29 }
 0x55c   :  { %6480 = vmatmul.bf16.vlgmr.msra.gmra.mxu2 %v13898_v43  ;;  %v9301_v43 = vld [vmem:[#allocation5 + $0xb78] sm:$0xf0]  ;;  %v13998_v27 = vpop.f32.mrf.mxu3 }
 0x55d   :  { %6524 = vmatpush.bf16.msrb.mxu2 %v8920_v51  ;;  %v9221_v51 = vld [vmem:[#allocation5 + $0xad8] sm:$0xf0]  ;;  %v9304_v12 = vor.u32 %v10449_v0, %v9301_v43  ;;  %v6261_v0 = vadd.f32 %v13937_v26, %v6248_v25  ;;  %v8880_v43 = vor.u32 %v10343_v18, %v8877_v48  ;;  %v10421_v26 = vld [vmem:[#allocation5 + $0xa94] sm:$0xf]  ;;  %v10439_v18 = vld [vmem:[#allocation5 + $0xb24] sm:$0xf]  ;;  %v9176_v48 = vor.u32 %v10417_v5, %v9173_v13 }
 0x55e   :  { %v9224_v36 = vor.u32 %v10429_v47, %v9221_v51  ;;  %v9208_v47 = vor.u32 %v10425_v15, %v9205_v2  ;;  %v9288_v51 = vor.u32 %v10445_v63, %v9285_v19  ;;  %v10415_v2 = vld [vmem:[#allocation5 + $0xa64] sm:$0xf]  ;;  %v9181_v19 = vld [vmem:[#allocation5 + $0xa88] sm:$0xf0]  ;;  %v9477_v13 = vld [vmem:[#allocation5 + $0xcd8] sm:$0xf0] }
 0x55f   :  { %6602 = vmatpush.bf16.msrb.mxu1 %v9304_v12  ;;  %6570 = vmatpush.bf16.msrb.mxu0 %v9056_v53  ;;  %v6273_v29 = vpop.f32.mrf.mxu2  ;;  %v9352_v12 = vor.u32 %v10461_v40, %v9349_v17  ;;  %v9280_v53 = vor.u32 %v10443_v61, %v9277_v54  ;;  %v10419_v63 = vld [vmem:[#allocation5 + $0xa84] sm:$0xf]  ;;  %v9261_v17 = vld [vmem:[#allocation5 + $0xb28] sm:$0xf0] }
 0x560   :  { %6591 = vmatpush.bf16.msrb.mxu3 %v9224_v36  ;;  %v8869_v36 = vld [vmem:[#allocation5 + $0x818] sm:$0xf0]  ;;  %v14002_v32 = vadd.f32 %v6273_v29, %v6261_v0  ;;  %v9325_v0 = vld [vmem:[#allocation5 + $0xba8] sm:$0xf0]  ;;  %v9264_v61 = vor.u32 %v10439_v18, %v9261_v17  ;;  %v10437_v29 = vld [vmem:[#allocation5 + $0xb14] sm:$0xf] }
 0x561   :  { %6525 = vmatpush.bf16.msrb.mxu2 %v8912_v16  ;;  %v8885_v16 = vld [vmem:[#allocation5 + $0x838] sm:$0xf0]  ;;  %v8872_v7 = vor.u32 %v10341_v34, %v8869_v36  ;;  %v9245_v5 = vld [vmem:[#allocation5 + $0xb08] sm:$0xf0]  ;;  %v10409_v18 = vld [vmem:[#allocation5 + $0xa34] sm:$0xf] }
 0x562   :  { %v8888_v3 = vor.u32 %v10345_v41, %v8885_v16  ;;  %6571 = vmatmul.bf16.vlgmr.msrb.gmra.mxu0 %v15059_v57  ;;  %v9189_v57 = vld [vmem:[#allocation5 + $0xa98] sm:$0xf0]  ;;  %v10339_v41 = vld [vmem:[#allocation5 + $0x804] sm:$0xf]  ;;  %v8861_v16 = vld [vmem:[#allocation5 + $0x808] sm:$0xf0] }
 0x563   :  { %6615 = vmatpush.bf16.msra.mxu0 %v9368_v6  ;;  %6603 = vmatpush.bf16.msrb.mxu1 %v9296_v59  ;;  %v9344_v6 = vor.u32 %v10459_v4, %v9341_v42  ;;  %v9333_v59 = vld [vmem:[#allocation5 + $0xbb8] sm:$0xf0]  ;;  %v9192_v15 = vor.u32 %v10421_v26, %v9189_v57  ;;  %v8864_v25 = vor.u32 %v10339_v41, %v8861_v16  ;;  %v10495_v4 = vld [vmem:[#allocation5 + $0xce4] sm:$0xf]  ;;  %v9485_v42 = vld [vmem:[#allocation5 + $0xce8] sm:$0xf0] }
 0x564   :  { %6592 = vmatpush.bf16.msrb.mxu3 %v9216_v8  ;;  %v6496_v1 = vpop.f32.mrf.mxu3  ;;  %v10457_v8 = vld [vmem:[#allocation5 + $0xbb4] sm:$0xf]  ;;  %v9317_v26 = vld [vmem:[#allocation5 + $0xb98] sm:$0xf0] }
 0x565   :  { %6526 = vmatpush.bf16.msrb.mxu2 %v8904_v62  ;;  %v6522_v62 = vpop.f32.mrf.mxu0  ;;  %v9336_v40 = vor.u32 %v10457_v8, %v9333_v59  ;;  %v9149_v1 = vld [vmem:[#allocation5 + $0xa48] sm:$0xf0]  ;;  %v10513_v8 = vld [vmem:[#allocation5 + $0xd74] sm:$0xf]  ;;  %v9557_v59 = vld [vmem:[#allocation5 + $0xd78] sm:$0xf0] }
 0x566   :  { %v10497_v62 = vld [vmem:[#allocation5 + $0xcf4] sm:$0xf]  ;;  %v9141_v17 = vld [vmem:[#allocation5 + $0xa38] sm:$0xf0] }
 0x567   :  { %6616 = vmatpush.bf16.msra.mxu0 %v9360_v9  ;;  %6604 = vmatpush.bf16.msrb.mxu1 %v9288_v51  ;;  %v6275_v9 = vpop.f32.mrf.mxu2  ;;  %v9165_v51 = vld [vmem:[#allocation5 + $0xa68] sm:$0xf0] }
 0x568   :  { %6593 = vmatpush.bf16.msrb.mxu3 %v9208_v47  ;;  %v9493_v47 = vld [vmem:[#allocation5 + $0xcf8] sm:$0xf0]  ;;  %v9168_v34 = vor.u32 %v10415_v2, %v9165_v51  ;;  %v10529_v2 = vld [vmem:[#allocation5 + $0xdf4] sm:$0xf]  ;;  %v10491_v9 = vld [vmem:[#allocation5 + $0xcc4] sm:$0xf] }
 0x569   :  { %6527 = vmatpush.bf16.msrb.mxu2 %v8896_v56  ;;  %v9200_v56 = vor.u32 %v10423_v49, %v9197_v28  ;;  %v10455_v49 = vld [vmem:[#allocation5 + $0xba4] sm:$0xf]  ;;  %v10413_v28 = vld [vmem:[#allocation5 + $0xa54] sm:$0xf]  ;;  %v9496_v54 = vor.u32 %v10497_v62, %v9493_v47  ;;  %v9549_v51 = vld [vmem:[#allocation5 + $0xd68] sm:$0xf0] }
 0x56a   :  { %v9328_v36 = vor.u32 %v10455_v49, %v9325_v0  ;;  %v10511_v47 = vld [vmem:[#allocation5 + $0xd64] sm:$0xf] }
 0x56b   :  { %6617 = vmatpush.bf16.msra.mxu0 %v9352_v12  ;;  %6605 = vmatpush.bf16.msrb.mxu1 %v9280_v53  ;;  %v9253_v12 = vld [vmem:[#allocation5 + $0xb18] sm:$0xf0]  ;;  %v10453_v53 = vld [vmem:[#allocation5 + $0xb94] sm:$0xf]  ;;  %v10527_v0 = vld [vmem:[#allocation5 + $0xde4] sm:$0xf] }
 0x56c   :  { %6594 = vmatpush.bf16.msrb.mxu3 %v9200_v56  ;;  %v9157_v56 = vld [vmem:[#allocation5 + $0xa58] sm:$0xf0]  ;;  %v9256_v57 = vor.u32 %v10437_v29, %v9253_v12  ;;  %v9320_v16 = vor.u32 %v10453_v53, %v9317_v26  ;;  %v10489_v29 = vld [vmem:[#allocation5 + $0xcb4] sm:$0xf] }
 0x56d   :  { %6528 = vmatpush.bf16.msrb.mxu2 %v8888_v3  ;;  %v9272_v3 = vor.u32 %v10441_v60, %v9269_v22  ;;  %v9488_v60 = vor.u32 %v10495_v4, %v9485_v42  ;;  %v10435_v22 = vld [vmem:[#allocation5 + $0xb04] sm:$0xf]  ;;  %v9160_v41 = vor.u32 %v10413_v28, %v9157_v56  ;;  %v9144_v28 = vor.u32 %v10409_v18, %v9141_v17  ;;  %v10509_v12 = vld [vmem:[#allocation5 + $0xd54] sm:$0xf]  ;;  %v9541_v4 = vld [vmem:[#allocation5 + $0xd58] sm:$0xf0] }
 0x56e   :  { %v10525_v53 = vld [vmem:[#allocation5 + $0xdd4] sm:$0xf]  ;;  %v9605_v26 = vld [vmem:[#allocation5 + $0xdd8] sm:$0xf0] }
 0x56f   :  { %6618 = vmatpush.bf16.msra.mxu0 %v9344_v6  ;;  %6606 = vmatpush.bf16.msrb.mxu1 %v9272_v3  ;;  %v10493_v6 = vld [vmem:[#allocation5 + $0xcd4] sm:$0xf]  ;;  %v9248_v3 = vor.u32 %v10435_v22, %v9245_v5  ;;  %v10487_v22 = vld [vmem:[#allocation5 + $0xca4] sm:$0xf]  ;;  %v9125_v5 = vld [vmem:[#allocation5 + $0xa18] sm:$0xf0] }
 0x570   :  { %6595 = vmatpush.bf16.msrb.mxu3 %v9192_v15  ;;  %v9309_v15 = vld [vmem:[#allocation5 + $0xb88] sm:$0xf0]  ;;  %v9525_v18 = vld [vmem:[#allocation5 + $0xd38] sm:$0xf0]  ;;  %v10521_v17 = vld [vmem:[#allocation5 + $0xdb4] sm:$0xf] }
 0x571   :  { %6529 = vmatpush.bf16.msrb.mxu2 %v8880_v43  ;;  %v9184_v43 = vor.u32 %v10419_v63, %v9181_v19  ;;  %v9621_v63 = vld [vmem:[#allocation5 + $0xdf8] sm:$0xf0] }
 0x573   :  { %6619 = vmatpush.bf16.msra.mxu0 %v9336_v40  ;;  %6607 = vmatpush.bf16.msrb.mxu1 %v9264_v61  ;;  %v9469_v40 = vld [vmem:[#allocation5 + $0xcc8] sm:$0xf0]  ;;  %v10407_v61 = vld [vmem:[#allocation5 + $0xa24] sm:$0xf] }
 0x574   :  { %6596 = vmatpush.bf16.msrb.mxu3 %v9184_v43  ;;  %v9472_v49 = vor.u32 %v10491_v9, %v9469_v40  ;;  %v9613_v43 = vld [vmem:[#allocation5 + $0xde8] sm:$0xf0] }
 0x575   :  { %6530 = vmatpush.bf16.msrb.mxu2 %v8872_v7  ;;  %v10411_v7 = vld [vmem:[#allocation5 + $0xa44] sm:$0xf]  ;;  %v9616_v42 = vor.u32 %v10527_v0, %v9613_v43 }
 0x576   :  { %v9152_v19 = vor.u32 %v10411_v7, %v9149_v1  ;;  %v10503_v0 = vld [vmem:[#allocation5 + $0xd24] sm:$0xf] }
 0x577   :  { %6620 = vmatpush.bf16.msra.mxu0 %v9328_v36  ;;  %6597 = vmatmul.bf16.vlgmr.msrb.gmra.mxu3 %v15062_v31  ;;  %v9624_v31 = vor.u32 %v10529_v2, %v9621_v63  ;;  %v9133_v36 = vld [vmem:[#allocation5 + $0xa28] sm:$0xf0]  ;;  %v9445_v2 = vld [vmem:[#allocation5 + $0xc98] sm:$0xf0] }
 0x578   :  { %6641 = vmatpush.bf16.msra.mxu3 %v9496_v54  ;;  %6608 = vmatpush.bf16.msrb.mxu1 %v9256_v57  ;;  %v9552_v54 = vor.u32 %v10511_v47, %v9549_v51  ;;  %v9136_v7 = vor.u32 %v10407_v61, %v9133_v36  ;;  %v10405_v57 = vld [vmem:[#allocation5 + $0xa14] sm:$0xf]  ;;  %v9117_v63 = vld [vmem:[#allocation5 + $0xa08] sm:$0xf0] }
 0x579   :  { %6531 = vmatpush.bf16.msrb.mxu2 %v8864_v25  ;;  %v9480_v25 = vor.u32 %v10493_v6, %v9477_v13  ;;  %v10507_v6 = vld [vmem:[#allocation5 + $0xd44] sm:$0xf]  ;;  %v9533_v13 = vld [vmem:[#allocation5 + $0xd48] sm:$0xf0] }
 0x57a   :  { %v9517_v61 = vld [vmem:[#allocation5 + $0xd28] sm:$0xf0] }
 0x57b   :  { %6621 = vmatpush.bf16.msra.mxu0 %v9320_v16  ;;  %v9421_v36 = vld [vmem:[#allocation5 + $0xc68] sm:$0xf0] }
 0x57c   :  { %6532 = vmatmul.bf16.vlgmr.msrb.gmra.mxu2 %v15069_v37  ;;  %v10451_v37 = vld [vmem:[#allocation5 + $0xb84] sm:$0xf]  ;;  %6642 = vmatpush.bf16.msra.mxu3 %v9488_v60  ;;  %v9544_v60 = vor.u32 %v10509_v12, %v9541_v4 }
 0x57d   :  { %6576 = vmatpush.bf16.msra.mxu2 %v9176_v48  ;;  %v9560_v48 = vor.u32 %v10513_v8, %v9557_v59  ;;  %v9312_v62 = vor.u32 %v10451_v37, %v9309_v15  ;;  %6609 = vmatpush.bf16.msrb.mxu1 %v9248_v3  ;;  %v10523_v8 = vld [vmem:[#allocation5 + $0xdc4] sm:$0xf]  ;;  %v9597_v59 = vld [vmem:[#allocation5 + $0xdc8] sm:$0xf0]  ;;  %v9128_v37 = vor.u32 %v10405_v57, %v9125_v5 }
 0x57e   :  { %v10403_v15 = vld [vmem:[#allocation5 + $0xa04] sm:$0xf]  ;;  %v9536_v3 = vor.u32 %v10507_v6, %v9533_v13  ;;  %v9600_v9 = vor.u32 %v10523_v8, %v9597_v59  ;;  %v9741_v6 = vld [vmem:[#allocation5 + $0xee8] sm:$0xf0]  ;;  %v10477_v13 = vld [vmem:[#allocation5 + $0xc54] sm:$0xf] }
 0x57f   :  { %6622 = vmatpush.bf16.msra.mxu0 %v9312_v62  ;;  %v14007_v16 = vpop.f32.mrf.mxu2  ;;  %v9589_v62 = vld [vmem:[#allocation5 + $0xdb8] sm:$0xf0]  ;;  %v9120_v47 = vor.u32 %v10403_v15, %v9117_v63  ;;  %v10559_v5 = vld [vmem:[#allocation5 + $0xee4] sm:$0xf]  ;;  %v10517_v8 = vld [vmem:[#allocation5 + $0xd94] sm:$0xf] }
 0x580   :  { %6643 = vmatpush.bf16.msra.mxu3 %v9480_v25  ;;  %6610 = vmatmul.bf16.vlgmr.msrb.gmra.mxu1 %v15060_v50  ;;  %v9608_v50 = vor.u32 %v10525_v53, %v9605_v26  ;;  %v10485_v25 = vld [vmem:[#allocation5 + $0xc94] sm:$0xf]  ;;  %v9592_v12 = vor.u32 %v10521_v17, %v9589_v62  ;;  %v10802_v53 = vld [vmem:[#allocation8] sm:$0x3]  ;;  %v9573_v59 = vld [vmem:[#allocation5 + $0xd98] sm:$0xf0] }
 0x581   :  { %6577 = vmatpush.bf16.msra.mxu2 %v9168_v34  ;;  %6654 = vmatpush.bf16.msra.mxu1 %v9560_v48  ;;  %v9461_v34 = vld [vmem:[#allocation5 + $0xcb8] sm:$0xf0]  ;;  %v10481_v48 = vld [vmem:[#allocation5 + $0xc74] sm:$0xf]  ;;  %v9448_v40 = vor.u32 %v10485_v25, %v9445_v2  ;;  %v3337_v26 = vperm.slane %v10802_v53, 1  ;;  %v15073_v17 = vld [vmem:[#allocation34_spill] sm:$0xff] }
 0x582   :  { %v9464_v56 = vor.u32 %v10489_v29, %v9461_v34  ;;  %6623 = vmatmul.bf16.vlgmr.msra.gmra.mxu0 %v15061_v33  ;;  %v9429_v33 = vld [vmem:[#allocation5 + $0xc78] sm:$0xf0]  ;;  %v10479_v34 = vld [vmem:[#allocation5 + $0xc64] sm:$0xf] }
 0x583   :  { %6667 = vmatpush.bf16.msrb.mxu0 %v9624_v31  ;;  %v10483_v31 = vld [vmem:[#allocation5 + $0xc84] sm:$0xf]  ;;  %v9749_v29 = vld [vmem:[#allocation5 + $0xef8] sm:$0xf0]  ;;  %v6326_v2 = vadd.f32 %v14007_v16, %v3337_v26  ;;  %v9869_v26 = vld [vmem:[#allocation5 + $0xfe8] sm:$0xf0] }
 0x584   :  { %6644 = vmatpush.bf16.msra.mxu3 %v9472_v49  ;;  %v9437_v49 = vld [vmem:[#allocation5 + $0xc88] sm:$0xf0]  ;;  %v10499_v25 = vld [vmem:[#allocation5 + $0xd04] sm:$0xf]  ;;  %v9877_v16 = vld [vmem:[#allocation5 + $0xff8] sm:$0xf0] }
 0x585   :  { %6578 = vmatpush.bf16.msra.mxu2 %v9160_v41  ;;  %6655 = vmatpush.bf16.msra.mxu1 %v9552_v54  ;;  %v9453_v41 = vld [vmem:[#allocation5 + $0xca8] sm:$0xf0]  ;;  %v10561_v54 = vld [vmem:[#allocation5 + $0xef4] sm:$0xf]  ;;  %v9440_v4 = vor.u32 %v10483_v31, %v9437_v49  ;;  %v10515_v62 = vld [vmem:[#allocation5 + $0xd84] sm:$0xf] }
 0x586   :  { %v9456_v1 = vor.u32 %v10487_v22, %v9453_v41  ;;  %v9752_v57 = vor.u32 %v10561_v54, %v9749_v29  ;;  %v9424_v22 = vor.u32 %v10479_v34, %v9421_v36  ;;  %v9509_v41 = vld [vmem:[#allocation5 + $0xd18] sm:$0xf0]  ;;  %v10593_v49 = vld [vmem:[#allocation5 + $0xff4] sm:$0xf]  ;;  %v10555_v54 = vld [vmem:[#allocation5 + $0xec4] sm:$0xf] }
 0x587   :  { %6668 = vmatpush.bf16.msrb.mxu0 %v9616_v42  ;;  %v6327_v43 = vpop.f32.mrf.mxu2  ;;  %v10519_v42 = vld [vmem:[#allocation5 + $0xda4] sm:$0xf]  ;;  %v9725_v29 = vld [vmem:[#allocation5 + $0xec8] sm:$0xf0]  ;;  %v9397_v34 = vld [vmem:[#allocation5 + $0xc38] sm:$0xf0] }
 0x588   :  { %6645 = vmatpush.bf16.msra.mxu3 %v9464_v56  ;;  %v9581_v56 = vld [vmem:[#allocation5 + $0xda8] sm:$0xf0]  ;;  %v10591_v53 = vld [vmem:[#allocation5 + $0xfe4] sm:$0xf] }
 0x589   :  { %6579 = vmatpush.bf16.msra.mxu2 %v9152_v19  ;;  %6656 = vmatpush.bf16.msra.mxu1 %v9544_v60  ;;  %v10505_v19 = vld [vmem:[#allocation5 + $0xd34] sm:$0xf] }
 0x58a   :  { %v9528_v51 = vor.u32 %v10505_v19, %v9525_v18  ;;  %v10501_v60 = vld [vmem:[#allocation5 + $0xd14] sm:$0xf]  ;;  %v9501_v19 = vld [vmem:[#allocation5 + $0xd08] sm:$0xf0] }
 0x58b   :  { %6669 = vmatpush.bf16.msrb.mxu0 %v9608_v50  ;;  %v9413_v50 = vld [vmem:[#allocation5 + $0xc58] sm:$0xf0]  ;;  %v9512_v15 = vor.u32 %v10501_v60, %v9509_v41  ;;  %v10557_v18 = vld [vmem:[#allocation5 + $0xed4] sm:$0xf] }
 0x58c   :  { %6646 = vmatpush.bf16.msra.mxu3 %v9456_v1  ;;  %v9584_v1 = vor.u32 %v10519_v42, %v9581_v56  ;;  %v9416_v63 = vor.u32 %v10477_v13, %v9413_v50  ;;  %v9880_v42 = vor.u32 %v10593_v49, %v9877_v16  ;;  %v9728_v56 = vor.u32 %v10555_v54, %v9725_v29  ;;  %v9717_v41 = vld [vmem:[#allocation5 + $0xeb8] sm:$0xf0]  ;;  %v10549_v49 = vld [vmem:[#allocation5 + $0xe94] sm:$0xf] }
 0x58d   :  { %6580 = vmatpush.bf16.msra.mxu2 %v9144_v28  ;;  %6657 = vmatpush.bf16.msra.mxu1 %v9536_v3  ;;  %v9432_v28 = vor.u32 %v10481_v48, %v9429_v33  ;;  %v9744_v3 = vor.u32 %v10559_v5, %v9741_v6  ;;  %v9733_v48 = vld [vmem:[#allocation5 + $0xed8] sm:$0xf0]  ;;  %v9405_v33 = vld [vmem:[#allocation5 + $0xc48] sm:$0xf0]  ;;  %v10573_v6 = vld [vmem:[#allocation5 + $0xf54] sm:$0xf]  ;;  %v9872_v50 = vor.u32 %v10591_v53, %v9869_v26 }
 0x58e   :  { %v9736_v31 = vor.u32 %v10557_v18, %v9733_v48  ;;  %v9389_v5 = vld [vmem:[#allocation5 + $0xc28] sm:$0xf0]  ;;  %v9797_v13 = vld [vmem:[#allocation5 + $0xf58] sm:$0xf0]  ;;  %v15075_v48 = vld [vmem:[#allocation41_spill] sm:$0xff] }
 0x58f   :  { %6670 = vmatpush.bf16.msrb.mxu0 %v9600_v9  ;;  %v9576_v9 = vor.u32 %v10517_v8, %v9573_v59  ;;  %v10589_v59 = vld [vmem:[#allocation5 + $0xfd4] sm:$0xf]  ;;  %v9381_v18 = vld [vmem:[#allocation5 + $0xc18] sm:$0xf0]  ;;  %v9693_v53 = vld [vmem:[#allocation5 + $0xe88] sm:$0xf0] }
 0x590   :  { %6647 = vmatpush.bf16.msra.mxu3 %v9448_v40  ;;  %v9813_v40 = vld [vmem:[#allocation5 + $0xf78] sm:$0xf0] }
 0x591   :  { %6581 = vmatpush.bf16.msra.mxu2 %v9136_v7  ;;  %6658 = vmatpush.bf16.msra.mxu1 %v9528_v51  ;;  %v9520_v7 = vor.u32 %v10503_v0, %v9517_v61  ;;  %v9504_v51 = vor.u32 %v10499_v25, %v9501_v19  ;;  %v6339_v0 = vadd.f32 %v13963_v39, %v6326_v2  ;;  %v10551_v2 = vld [vmem:[#allocation5 + $0xea4] sm:$0xf]  ;;  %v9701_v16 = vld [vmem:[#allocation5 + $0xe98] sm:$0xf0] }
 0x592   :  { %v9800_v25 = vor.u32 %v10573_v6, %v9797_v13  ;;  %v9685_v54 = vld [vmem:[#allocation5 + $0xe78] sm:$0xf0]  ;;  %v10583_v13 = vld [vmem:[#allocation5 + $0xfa4] sm:$0xf] }
 0x593   :  { %6671 = vmatpush.bf16.msrb.mxu0 %v9592_v12  ;;  %v10575_v12 = vld [vmem:[#allocation5 + $0xf64] sm:$0xf]  ;;  %v6352_v39 = vadd.f32 %v13956_v44, %v6339_v0  ;;  %v9373_v0 = vld [vmem:[#allocation5 + $0xc08] sm:$0xf0] }
 0x594   :  { %6648 = vmatpush.bf16.msra.mxu3 %v9440_v4  ;;  %v9805_v4 = vld [vmem:[#allocation5 + $0xf68] sm:$0xf0] }
 0x595   :  { %6582 = vmatpush.bf16.msra.mxu2 %v9128_v37  ;;  %v10475_v37 = vld [vmem:[#allocation5 + $0xc44] sm:$0xf]  ;;  %6659 = vmatpush.bf16.msra.mxu1 %v9520_v7  ;;  %v9808_v60 = vor.u32 %v10575_v12, %v9805_v4  ;;  %v6365_v44 = vadd.f32 %v13959_v52, %v6352_v39  ;;  %v9853_v52 = vld [vmem:[#allocation5 + $0xfc8] sm:$0xf0]  ;;  %v9845_v12 = vld [vmem:[#allocation5 + $0xfb8] sm:$0xf0] }
 0x596   :  { %v9408_v43 = vor.u32 %v10475_v37, %v9405_v33  ;;  %v9861_v37 = vld [vmem:[#allocation5 + $0xfd8] sm:$0xf0]  ;;  %v10571_v33 = vld [vmem:[#allocation5 + $0xf44] sm:$0xf] }
 0x597   :  { %6672 = vmatpush.bf16.msrb.mxu0 %v9584_v1  ;;  %6649 = vmatmul.bf16.vlgmr.msra.gmra.mxu3 %v15073_v17  ;;  %v15074_v1 = vld [vmem:[#allocation35_spill] sm:$0xff]  ;;  %v10567_v39 = vld [vmem:[#allocation5 + $0xf24] sm:$0xf] }
 0x598   :  { %6693 = vmatpush.bf16.msrb.mxu3 %v9752_v57  ;;  %v10471_v57 = vld [vmem:[#allocation5 + $0xc24] sm:$0xf] }
 0x599   :  { %6583 = vmatpush.bf16.msra.mxu2 %v9120_v47  ;;  %v9565_v47 = vld [vmem:[#allocation5 + $0xd88] sm:$0xf0]  ;;  %6660 = vmatpush.bf16.msra.mxu1 %v9512_v15  ;;  %v9392_v15 = vor.u32 %v10471_v57, %v9389_v5 }
 0x59a   :  { %v9568_v36 = vor.u32 %v10515_v62, %v9565_v47  ;;  %v10587_v62 = vld [vmem:[#allocation5 + $0xfc4] sm:$0xf]  ;;  %v9773_v57 = vld [vmem:[#allocation5 + $0xf28] sm:$0xf0] }
 0x59b   :  { %6673 = vmatpush.bf16.msrb.mxu0 %v9576_v9  ;;  %v9789_v9 = vld [vmem:[#allocation5 + $0xf48] sm:$0xf0]  ;;  %v9856_v29 = vor.u32 %v10587_v62, %v9853_v52  ;;  %v10539_v62 = vld [vmem:[#allocation5 + $0xe44] sm:$0xf] }
 0x59c   :  { %6584 = vmatmul.bf16.vlgmr.msra.gmra.mxu2 %v15070_v11  ;;  %v10577_v11 = vld [vmem:[#allocation5 + $0xf74] sm:$0xf]  ;;  %6694 = vmatpush.bf16.msrb.mxu3 %v9744_v3  ;;  %v9661_v52 = vld [vmem:[#allocation5 + $0xe48] sm:$0xf0] }
 0x59d   :  { %6628 = vmatpush.bf16.msrb.mxu2 %v9432_v28  ;;  %v10473_v28 = vld [vmem:[#allocation5 + $0xc34] sm:$0xf]  ;;  %v9816_v61 = vor.u32 %v10577_v11, %v9813_v40  ;;  %6661 = vmatpush.bf16.msra.mxu1 %v9504_v51  ;;  %v9864_v40 = vor.u32 %v10589_v59, %v9861_v37  ;;  %v10467_v51 = vld [vmem:[#allocation5 + $0xc04] sm:$0xf]  ;;  %v9765_v37 = vld [vmem:[#allocation5 + $0xf18] sm:$0xf0] }
 0x59e   :  { %v9400_v7 = vor.u32 %v10473_v28, %v9397_v34  ;;  %v10469_v3 = vld [vmem:[#allocation5 + $0xc14] sm:$0xf]  ;;  %v9781_v28 = vld [vmem:[#allocation5 + $0xf38] sm:$0xf0]  ;;  %v9704_v34 = vor.u32 %v10549_v49, %v9701_v16  ;;  %v9376_v4 = vor.u32 %v10467_v51, %v9373_v0  ;;  %v9821_v49 = vld [vmem:[#allocation5 + $0xf88] sm:$0xf0] }
 0x59f   :  { %6674 = vmatpush.bf16.msrb.mxu0 %v9568_v36  ;;  %v6377_v19 = vpop.f32.mrf.mxu2  ;;  %v9384_v47 = vor.u32 %v10469_v3, %v9381_v18  ;;  %v10585_v36 = vld [vmem:[#allocation5 + $0xfb4] sm:$0xf]  ;;  %v9669_v3 = vld [vmem:[#allocation5 + $0xe58] sm:$0xf0] }
 0x5a0   :  { %6695 = vmatpush.bf16.msrb.mxu3 %v9736_v31  ;;  %6662 = vmatmul.bf16.vlgmr.msra.gmra.mxu1 %v15074_v1  ;;  %v14018_v11 = vadd.f32 %v6377_v19, %v6365_v44  ;;  %v9792_v31 = vor.u32 %v10571_v33, %v9789_v9  ;;  %v9848_v5 = vor.u32 %v10585_v36, %v9845_v12  ;;  %v10565_v59 = vld [vmem:[#allocation5 + $0xf14] sm:$0xf]  ;;  %v10563_v33 = vld [vmem:[#allocation5 + $0xf04] sm:$0xf]  ;;  %v9757_v9 = vld [vmem:[#allocation5 + $0xf08] sm:$0xf0] }
 0x5a1   :  { %6629 = vmatpush.bf16.msrb.mxu2 %v9424_v22  ;;  %6706 = vmatpush.bf16.msrb.mxu1 %v9816_v61  ;;  %v10553_v22 = vld [vmem:[#allocation5 + $0xeb4] sm:$0xf]  ;;  %v9776_v1 = vor.u32 %v10567_v39, %v9773_v57  ;;  %v9768_v18 = vor.u32 %v10565_v59, %v9765_v37 }
 0x5a2   :  { %v9720_v8 = vor.u32 %v10553_v22, %v9717_v41  ;;  %6675 = vmatmul.bf16.vlgmr.msrb.gmra.mxu0 %v15075_v48  ;;  %v10545_v61 = vld [vmem:[#allocation5 + $0xe74] sm:$0xf]  ;;  %v10543_v22 = vld [vmem:[#allocation5 + $0xe64] sm:$0xf]  ;;  %v9677_v41 = vld [vmem:[#allocation5 + $0xe68] sm:$0xf0] }
 0x5a3   :  { %6719 = vmatpush.bf16.msra.mxu0 %v9880_v42  ;;  %v15078_v16 = vld [vmem:[#allocation151_spill] sm:$0xff] }
 0x5a4   :  { %6696 = vmatpush.bf16.msrb.mxu3 %v9728_v56  ;;  %v10547_v56 = vld [vmem:[#allocation5 + $0xe84] sm:$0xf]  ;;  %v10533_v57 = vld [vmem:[#allocation5 + $0xe14] sm:$0xf] }
 0x5a5   :  { %6630 = vmatpush.bf16.msrb.mxu2 %v9416_v63  ;;  %6707 = vmatpush.bf16.msrb.mxu1 %v9808_v60  ;;  %v9709_v63 = vld [vmem:[#allocation5 + $0xea8] sm:$0xf0]  ;;  %v6287_v60 = vadd.f32 %v13953_v10, %v14002_v32  ;;  %v9696_v6 = vor.u32 %v10547_v56, %v9693_v53  ;;  %v10581_v32 = vld [vmem:[#allocation5 + $0xf94] sm:$0xf] }
 0x5a6   :  { %v9712_v17 = vor.u32 %v10551_v2, %v9709_v63  ;;  %v14024_v2 = vld [vmem:[#allocation7 + $0x1] ss:$2 sm:$0x3]  ;;  %v10803_v63 = vld [vmem:[#allocation7] ss:$2 sm:$0x3] }
 0x5a7   :  { %6720 = vmatpush.bf16.msra.mxu0 %v9872_v50  ;;  %v6379_v26 = vpop.f32.mrf.mxu2  ;;  %v9837_v50 = vld [vmem:[#allocation5 + $0xfa8] sm:$0xf0]  ;;  %v6300_v44 = vadd.f32 %v13946_v30, %v6287_v60  ;;  %v6739_v19 = vperm.slane %v10803_v63, 0  ;;  %v15076_v30 = vld [vmem:[#allocation28_spill] sm:$0xff]  ;;  %v6750_v51 = vperm.slane %v14024_v2, 0 }
 0x5a8   :  { %6697 = vmatpush.bf16.msrb.mxu3 %v9720_v8  ;;  %v9680_v8 = vor.u32 %v10543_v22, %v9677_v41  ;;  %v9840_v10 = vor.u32 %v10583_v13, %v9837_v50  ;;  %v9645_v56 = vld [vmem:[#allocation5 + $0xe28] sm:$0xf0]  ;;  %v9637_v60 = vld [vmem:[#allocation5 + $0xe18] sm:$0xf0] }
 0x5a9   :  { %6631 = vmatpush.bf16.msrb.mxu2 %v9408_v43  ;;  %6708 = vmatpush.bf16.msrb.mxu1 %v9800_v25  ;;  %v10569_v43 = vld [vmem:[#allocation5 + $0xf34] sm:$0xf]  ;;  %v9829_v25 = vld [vmem:[#allocation5 + $0xf98] sm:$0xf0]  ;;  %v6743_v0 = vmul.f32 %v6739_v19, %v15078_v16  ;;  %v15079_v26 = vld [vmem:[#allocation38_spill] sm:$0xff] }
 0x5aa   :  { %v9784_v42 = vor.u32 %v10569_v43, %v9781_v28  ;;  %v9760_v43 = vor.u32 %v10563_v33, %v9757_v9  ;;  %v6391_v28 = vadd.f32 %v13973_v55, %v14018_v11 }
 0x5ab   :  { %6721 = vmatpush.bf16.msra.mxu0 %v9864_v40  ;;  %v14027_v40 = vcvt.s32.f32 %v15076_v30 }
 0x5ac   :  { %6698 = vmatpush.bf16.msrb.mxu3 %v9712_v17  ;;  %v6313_v17 = vadd.f32 %v13949_v24, %v6300_v44 }
 0x5ad   :  { %6632 = vmatpush.bf16.msrb.mxu2 %v9400_v7  ;;  %6709 = vmatpush.bf16.msrb.mxu1 %v9792_v31  ;;  %v9688_v7 = vor.u32 %v10545_v61, %v9685_v54  ;;  %v10579_v31 = vld [vmem:[#allocation5 + $0xf84] sm:$0xf]  ;;  %v9664_v61 = vor.u32 %v10539_v62, %v9661_v52  ;;  %v10537_v54 = vld [vmem:[#allocation5 + $0xe34] sm:$0xf] }
 0x5ae   :  { %v6745_v24 = vadd.f32 %v6743_v0, %v6313_v17  ;;  %v9824_v36 = vor.u32 %v10579_v31, %v9821_v49 }
 0x5af   :  { %6722 = vmatpush.bf16.msra.mxu0 %v9856_v29  ;;  %v9653_v29 = vld [vmem:[#allocation5 + $0xe38] sm:$0xf0] }
 0x5b0   :  { %6699 = vmatpush.bf16.msrb.mxu3 %v9704_v34  ;;  %v6754_v34 = vmul.f32 %v6750_v51, %v14027_v40  ;;  %v9656_v12 = vor.u32 %v10537_v54, %v9653_v29 }
 0x5b1   :  { %6633 = vmatpush.bf16.msrb.mxu2 %v9392_v15  ;;  %6710 = vmatpush.bf16.msrb.mxu1 %v9784_v42  ;;  %v10541_v15 = vld [vmem:[#allocation5 + $0xe54] sm:$0xf]  ;;  %v10535_v42 = vld [vmem:[#allocation5 + $0xe24] sm:$0xf] }
 0x5b2   :  { %v9672_v48 = vor.u32 %v10541_v15, %v9669_v3  ;;  %v6756_v53 = vadd.f32 %v6754_v34, %v6745_v24  ;;  %v9648_v11 = vor.u32 %v10535_v42, %v9645_v56 }
 0x5b3   :  { %6723 = vmatpush.bf16.msra.mxu0 %v9848_v5  ;;  %v10531_v5 = vld [vmem:[#allocation5 + $0xe04] sm:$0xf] }
 0x5b4   :  { %6700 = vmatpush.bf16.msrb.mxu3 %v9696_v6  ;;  %v6760_v22 = vmul.f32 0.01, %v6756_v53  ;;  %vm6758_vm11 = vcmp.ge.f32.partialorder %v6756_v53, 0.0  ;;  %v9629_v6 = vld [vmem:[#allocation5 + $0xe08] sm:$0xf0] }
 0x5b5   :  { %6634 = vmatpush.bf16.msrb.mxu2 %v9384_v47  ;;  %6711 = vmatpush.bf16.msrb.mxu1 %v9776_v1  ;;  %v9832_v47 = vor.u32 %v10581_v32, %v9829_v25  ;;  %v9632_v50 = vor.u32 %v10531_v5, %v9629_v6  ;;  %v6751_v6 = vperm.slane %v14024_v2, 1 }
 0x5b6   :  { %v6762_v13 = vsel %vm6758_vm11, %v6756_v53, %v6760_v22  ;;  %vm15085_vm11 = vmmov %vm15081_vm9 }
 0x5b7   :  { %6724 = vmatpush.bf16.msra.mxu0 %v9840_v10  ;;  %v14040_v1 = vpack.c.bf16 %v6762_v13, %v6762_v13  ;;  %v15082_v10 = vld [vmem:[#allocation36_spill] sm:$0xff] }
 0x5b9   :  { %6635 = vmatpush.bf16.msrb.mxu2 %v9376_v4  ;;  %6712 = vmatpush.bf16.msrb.mxu1 %v9768_v18  ;;  %v6404_v4 = vadd.f32 %v13966_v14, %v6391_v28  ;;  %v9640_v14 = vor.u32 %v10533_v57, %v9637_v60 }
 0x5bb   :  { %6725 = vmatpush.bf16.msra.mxu0 %v9832_v47  ;;  %v6417_v55 = vadd.f32 %v13969_v58, %v6404_v4  ;;  %v6767_v58 = vsel %vm15081_vm9, %v14040_v1, 0 }
 0x5bc   :  { %6636 = vmatmul.bf16.vlgmr.msrb.gmra.mxu2 %v15071_v23  ;;  %v15077_v23 = vld [vmem:[#allocation37_spill] sm:$0xff] }
 0x5bd   :  { %6680 = vmatpush.bf16.msra.mxu2 %v9688_v7  ;;  %6701 = vmatmul.bf16.vlgmr.msrb.gmra.mxu3 %v15077_v23  ;;  %v15080_v7 = vld [vmem:[#allocation42_spill] sm:$0xff] }
 0x5be   :  { %6713 = vmatpush.bf16.msrb.mxu1 %v9760_v43 }
 0x5bf   :  { %6726 = vmatpush.bf16.msra.mxu0 %v9824_v36  ;;  %v6429_v39 = vpop.f32.mrf.mxu2 }
 0x5c0   :  { %v6430_v41 = vadd.f32 %v6429_v39, %v6417_v55 }
 0x5c1   :  { %6681 = vmatpush.bf16.msra.mxu2 %v9680_v8  ;;  %6714 = vmatmul.bf16.vlgmr.msrb.gmra.mxu1 %v15079_v26 }
 0x5c2   :  { %6727 = vmatmul.bf16.vlgmr.msra.gmra.mxu0 %v15080_v7  ;;  %v6443_v59 = vadd.f32 %v13983_v45, %v6430_v41 }
 0x5c4   :  { %v6456_v37 = vadd.f32 %v13976_v35, %v6443_v59  ;;  %v15084_v59 = vld [vmem:[#allocation84_spill] sm:$0xff] }
 0x5c5   :  { %6682 = vmatpush.bf16.msra.mxu2 %v9672_v48 }
 0x5c6   :  { %v6469_v44 = vadd.f32 %v13979_v21, %v6456_v37 }
 0x5c7   :  { %v6431_v8 = vpop.f32.mrf.mxu2 }
 0x5c8   :  { %v6755_v8 = vmul.f32 %v6751_v6, %v14027_v40 }
 0x5c9   :  { %6683 = vmatpush.bf16.msra.mxu2 %v9664_v61 }
 0x5cd   :  { %6684 = vmatpush.bf16.msra.mxu2 %v9656_v12 }
 0x5d1   :  { %6685 = vmatpush.bf16.msra.mxu2 %v9648_v11 }
 0x5d5   :  { %6686 = vmatpush.bf16.msra.mxu2 %v9640_v14  ;;  %v6546_v32 = vpop.f32.mrf.mxu3 }
 0x5d8   :  { %v6559_v25 = vpop.f32.mrf.mxu1 }
 0x5d9   :  { %6687 = vmatpush.bf16.msra.mxu2 %v9632_v50 }
 0x5dc   :  { %6688 = vmatmul.bf16.vlgmr.msra.gmra.mxu2 %v15072_v20 }
 0x5dd   :  { %6779 = vmatpush.bf16.msrb.mxu2 %v6767_v58  ;;  %v6548_v18 = vpop.f32.mrf.mxu3 }
 0x5de   :  { %v15087_v18 = vld [vmem:[#allocation145_spill] sm:$0xff] }
 0x5df   :  { %v6481_v15 = vpop.f32.mrf.mxu2  ;;  %v6572_v19 = vpop.f32.mrf.mxu0  ;;  %vm15088_vm9 = vcmp.eq.s32.totalorder %v15087_v18, 1 }
 0x5e0   :  { %v6482_v3 = vadd.f32 %v6481_v15, %v6469_v44  ;;  %v6561_v48 = vpop.f32.mrf.mxu1 }
 0x5e2   :  { %v6495_v20 = vadd.f32 %v13998_v27, %v6482_v3 }
 0x5e4   :  { %v6508_v45 = vadd.f32 %v13988_v46, %v6495_v20 }
 0x5e6   :  { %v6521_v35 = vadd.f32 %v13992_v38, %v6508_v45 }
 0x5e7   :  { %v6483_v63 = vpop.f32.mrf.mxu2  ;;  %v6574_v33 = vpop.f32.mrf.mxu0 }
 0x5ec   :  { %9881 = vmatmul.msk.bf16.vlgmr.msrb.gmra.mxu2 %vm15083_vm12, %v15082_v10 }
 0x5fa   :  { %v6598_v17 = vpop.f32.mrf.mxu3 }
 0x5fd   :  { %v6611_v52 = vpop.f32.mrf.mxu1 }
 0x5ff   :  { %v6533_v9 = vpop.f32.mrf.mxu2  ;;  %v6624_v51 = vpop.f32.mrf.mxu0 }
 0x600   :  { %v6534_v21 = vadd.f32 %v6533_v9, %v6521_v35 }
 0x602   :  { %v6547_v30 = vadd.f32 %v6546_v32, %v6534_v21  ;;  %v6600_v31 = vpop.f32.mrf.mxu3 }
 0x604   :  { %v6560_v62 = vadd.f32 %v6559_v25, %v6547_v30 }
 0x605   :  { %v6613_v49 = vpop.f32.mrf.mxu1 }
 0x606   :  { %v6573_v23 = vadd.f32 %v6572_v19, %v6560_v62 }
 0x607   :  { %v6535_v47 = vpop.f32.mrf.mxu2  ;;  %v6626_v0 = vpop.f32.mrf.mxu0 }
 0x61a   :  { %v6650_v27 = vpop.f32.mrf.mxu3 }
 0x61d   :  { %v6663_v46 = vpop.f32.mrf.mxu1 }
 0x61f   :  { %v6585_v43 = vpop.f32.mrf.mxu2  ;;  %v6676_v29 = vpop.f32.mrf.mxu0 }
 0x620   :  { %v6586_v28 = vadd.f32 %v6585_v43, %v6573_v23 }
 0x622   :  { %v6599_v61 = vadd.f32 %v6598_v17, %v6586_v28  ;;  %v6652_v34 = vpop.f32.mrf.mxu3 }
 0x624   :  { %v6612_v24 = vadd.f32 %v6611_v52, %v6599_v61 }
 0x625   :  { %v6665_v36 = vpop.f32.mrf.mxu1 }
 0x626   :  { %v6625_v54 = vadd.f32 %v6624_v51, %v6612_v24 }
 0x627   :  { %v6587_v38 = vpop.f32.mrf.mxu2  ;;  %v6678_v12 = vpop.f32.mrf.mxu0 }
 0x628   :  { %v15100_v12 = vld [vmem:[#allocation71_spill] sm:$0xff] }
 0x63e   :  { %v6715_v56 = vpop.f32.mrf.mxu1 }
 0x63f   :  { %v6637_v4 = vpop.f32.mrf.mxu2  ;;  %v6728_v26 = vpop.f32.mrf.mxu0 }
 0x640   :  { %v6702_v42 = vpop.f32.mrf.mxu3  ;;  %v6638_v7 = vadd.f32 %v6637_v4, %v6625_v54  ;;  %v10631_v54 = vld [vmem:[%s14444_s11 + $0x20] sm:$0xff] }
 0x642   :  { %v6651_v57 = vadd.f32 %v6650_v27, %v6638_v7 }
 0x644   :  { %v6664_v60 = vadd.f32 %v6663_v46, %v6651_v57 }
 0x646   :  { %v6717_v11 = vpop.f32.mrf.mxu1  ;;  %v6677_v22 = vadd.f32 %v6676_v29, %v6664_v60  ;;  %v15104_v60 = vld [vmem:[#allocation56_spill] sm:$0xff] }
 0x647   :  { %v6639_v53 = vpop.f32.mrf.mxu2  ;;  %v6730_v39 = vpop.f32.mrf.mxu0 }
 0x648   :  { %v6704_v55 = vpop.f32.mrf.mxu3 }
 0x65f   :  { %v6689_v41 = vpop.f32.mrf.mxu2 }
 0x660   :  { %v6690_v14 = vadd.f32 %v6689_v41, %v6677_v22 }
 0x662   :  { %v6703_v5 = vadd.f32 %v6702_v42, %v6690_v14  ;;  %v15102_v42 = vld [vmem:[#allocation113_spill] sm:$0xff] }
 0x664   :  { %v6716_v13 = vadd.f32 %v6715_v56, %v6703_v5 }
 0x666   :  { %v6729_v50 = vadd.f32 %v6728_v26, %v6716_v13 }
 0x667   :  { %v6691_v58 = vpop.f32.mrf.mxu2 }
 0x668   :  { %v6746_v37 = vadd.f32 %v15084_v59, %v6729_v50 }
 0x66a   :  { %v6757_v44 = vadd.f32 %v6755_v8, %v6746_v37 }
 0x66c   :  { %vm6759_vm5 = vcmp.ge.f32.partialorder %v6757_v44, 0.0  ;;  %v6761_v15 = vmul.f32 0.01, %v6757_v44 }
 0x66e   :  { %v6763_v3 = vsel %vm6759_vm5, %v6757_v44, %v6761_v15  ;;  %vm15101_vm5 = vcmp.eq.s32.totalorder %v15100_v12, 1 }
 0x66f   :  { %v14056_v32 = vpop.f32.mrf.mxu2  ;;  %v14058_v25 = vpack.c.bf16 %v6763_v3, %v6763_v3 }
 0x670   :  { %v6800_v19 = vsel %vm669_vm0, %v14056_v32, -1e+30  ;;  %v6822_v48 = vsel %vm15088_vm9, %v14056_v32, -1e+30  ;;  %v6844_v20 = vsel %vm1045_vm10, %v14056_v32, -1e+30 }
 0x671   :  { %v6770_v63 = vsel %vm15085_vm11, %v14058_v25, 0  ;;  %v6866_v35 = vsel %vm1233_vm8, %v14056_v32, -1e+30  ;;  %v6888_v21 = vsel %vm1421_vm1, %v14056_v32, -1e+30  ;;  %vm15103_vm11 = vcmp.eq.s32.totalorder %v15102_v42, 1 }
 0x672   :  { %6793 = vmatpush.bf16.msra.mxu3 %v6770_v63  ;;  %v6910_v17 = vsel %vm1609_vm3, %v14056_v32, -1e+30  ;;  %v6932_v52 = vsel %vm1797_vm14, %v14056_v32, -1e+30  ;;  %v6954_v51 = vsel %vm1985_vm13, %v14056_v32, -1e+30 }
 0x673   :  { %vm15105_vm9 = vcmp.eq.s32.totalorder %v15104_v60, 1 }
 0x675   :  { %9882 = vmatmul.msk.bf16.vlgmr.msra.gmra.mxu3 %vm15083_vm12, %v15082_v10  ;;  %vm15106_vm12 = vcmp.eq.s32.totalorder %v15087_v18, 1 }
 0x677   :  { %v14085_v23 = vpop.f32.mrf.mxu2 }
 0x678   :  { %v6802_v49 = vsel %vm670_vm15, %v14085_v23, -1e+30  ;;  %v6824_v43 = vsel %vm858_vm2, %v14085_v23, -1e+30  ;;  %v6846_v61 = vsel %vm1046_vm4, %v14085_v23, -1e+30 }
 0x679   :  { %v6804_v27 = vmax.f32 %v6800_v19, %v6802_v49  ;;  %v6826_v24 = vmax.f32 %v6822_v48, %v6824_v43  ;;  %v6848_v46 = vmax.f32 %v6844_v20, %v6846_v61  ;;  %v6868_v38 = vsel %vm1234_vm6, %v14085_v23, -1e+30 }
 0x67a   :  { %v6870_v29 = vmax.f32 %v6866_v35, %v6868_v38  ;;  %v6890_v36 = vsel %vm1422_vm7, %v14085_v23, -1e+30  ;;  %v6912_v4 = vsel %vm15101_vm5, %v14085_v23, -1e+30  ;;  %v6934_v56 = vsel %vm15103_vm11, %v14085_v23, -1e+30 }
 0x67b   :  { %v6805_v53 = vrot.slane %v6804_v27, 4  ;;  %v6827_v26 = vrot.slane %v6826_v24, 4  ;;  %v6849_v55 = vrot.slane %v6848_v46, 4  ;;  %v6892_v11 = vmax.f32 %v6888_v21, %v6890_v36 }
 0x67c   :  { %v6871_v7 = vrot.slane %v6870_v29, 4  ;;  %v6914_v39 = vmax.f32 %v6910_v17, %v6912_v4  ;;  %v6936_v57 = vmax.f32 %v6932_v52, %v6934_v56  ;;  %v6956_v22 = vsel %vm15105_vm9, %v14085_v23, -1e+30 }
 0x67d   :  { %v6806_v41 = vmax.f32 %v6804_v27, %v6805_v53  ;;  %v6828_v14 = vmax.f32 %v6826_v24, %v6827_v26  ;;  %v6850_v5 = vmax.f32 %v6848_v46, %v6849_v55  ;;  %v6893_v6 = vrot.slane %v6892_v11, 4 }
 0x67e   :  { %v6872_v13 = vmax.f32 %v6870_v29, %v6871_v7  ;;  %v6915_v50 = vrot.slane %v6914_v39, 4  ;;  %v6937_v8 = vrot.slane %v6936_v57, 4  ;;  %v6958_v58 = vmax.f32 %v6954_v51, %v6956_v22 }
 0x67f   :  { %v6807_v59 = vrot.slane %v6806_v41, 2  ;;  %v6829_v37 = vrot.slane %v6828_v14, 2  ;;  %v6851_v44 = vrot.slane %v6850_v5, 2  ;;  %v6894_v15 = vmax.f32 %v6892_v11, %v6893_v6 }
 0x680   :  { %v6873_v3 = vrot.slane %v6872_v13, 2  ;;  %v6916_v63 = vmax.f32 %v6914_v39, %v6915_v50  ;;  %v6938_v19 = vmax.f32 %v6936_v57, %v6937_v8  ;;  %v6959_v48 = vrot.slane %v6958_v58, 4 }
 0x681   :  { %v6808_v20 = vmax.f32 %v6806_v41, %v6807_v59  ;;  %v6830_v35 = vmax.f32 %v6828_v14, %v6829_v37  ;;  %v6852_v21 = vmax.f32 %v6850_v5, %v6851_v44  ;;  %v6895_v17 = vrot.slane %v6894_v15, 2 }
 0x682   :  { %v6874_v52 = vmax.f32 %v6872_v13, %v6873_v3  ;;  %v6917_v49 = vrot.slane %v6916_v63, 2  ;;  %v6939_v43 = vrot.slane %v6938_v19, 2  ;;  %v6960_v61 = vmax.f32 %v6958_v58, %v6959_v48 }
 0x683   :  { %v6809_v27 = vrot.slane %v6808_v20, 1  ;;  %v6831_v24 = vrot.slane %v6830_v35, 1  ;;  %v6853_v46 = vrot.slane %v6852_v21, 1  ;;  %v6896_v51 = vmax.f32 %v6894_v15, %v6895_v17 }
 0x684   :  { %v6875_v38 = vrot.slane %v6874_v52, 1  ;;  %v6918_v29 = vmax.f32 %v6916_v63, %v6917_v49  ;;  %v6940_v36 = vmax.f32 %v6938_v19, %v6939_v43  ;;  %v6961_v4 = vrot.slane %v6960_v61, 2 }
 0x685   :  { %v6810_v56 = vmax.f32 %v6808_v20, %v6809_v27  ;;  %v6832_v53 = vmax.f32 %v6830_v35, %v6831_v24  ;;  %v6897_v26 = vrot.slane %v6896_v51, 1  ;;  %v6854_v57 = vmax.f32 %v6852_v21, %v6853_v46  ;;  %v10618_v46 = vld [vmem:[#allocation10 + $0xb8] sm:$0xff] }
 0x686   :  { %v6919_v55 = vrot.slane %v6918_v29, 1  ;;  %v6962_v11 = vmax.f32 %v6960_v61, %v6961_v4  ;;  %v6941_v22 = vrot.slane %v6940_v36, 1  ;;  %v6876_v5 = vmax.f32 %v6874_v52, %v6875_v38  ;;  %v10617_v4 = vld [vmem:[#allocation10 + $0xb0] sm:$0xff] }
 0x687   :  { %v6818_v7 = vsel %vm669_vm0, %v6810_v56, 0.0  ;;  %v6820_v39 = vsel %vm670_vm15, %v6810_v56, 0.0  ;;  %v6898_v50 = vmax.f32 %v6896_v51, %v6897_v26  ;;  %v15107_v56 = vld [vmem:[#allocation147_spill] sm:$0xff]  ;;  %v10615_v26 = vld [vmem:[#allocation10 + $0xa0] sm:$0xff] }
 0x688   :  { %v6840_v41 = vsel %vm15106_vm12, %v6832_v53, %v6818_v7  ;;  %v6842_v14 = vsel %vm858_vm2, %v6832_v53, %v6820_v39  ;;  %v6963_v8 = vrot.slane %v6962_v11, 1  ;;  %v6920_v37 = vmax.f32 %v6918_v29, %v6919_v55  ;;  %v10616_v53 = vld [vmem:[#allocation10 + $0xa8] sm:$0xff]  ;;  %v10613_v55 = vld [vmem:[#allocation10 + $0x90] sm:$0xff] }
 0x689   :  { %v6862_v6 = vsel %vm1045_vm10, %v6854_v57, %v6840_v41  ;;  %v6864_v13 = vsel %vm1046_vm4, %v6854_v57, %v6842_v14  ;;  %v6942_v3 = vmax.f32 %v6940_v36, %v6941_v22  ;;  %vm15108_vm12 = vcmask 130048  }
 0x68a   :  { %v6884_v58 = vsel %vm1233_vm8, %v6876_v5, %v6862_v6  ;;  %v6886_v59 = vsel %vm1234_vm6, %v6876_v5, %v6864_v13  ;;  %v6964_v48 = vmax.f32 %v6962_v11, %v6963_v8  ;;  %v10611_v11 = vld [vmem:[#allocation10 + $0x80] sm:$0xff] }
 0x68b   :  { %v6906_v44 = vsel %vm1421_vm1, %v6898_v50, %v6884_v58  ;;  %v6908_v15 = vsel %vm1422_vm7, %v6898_v50, %v6886_v59 }
 0x68c   :  { %v6928_v63 = vsel %vm1609_vm3, %v6920_v37, %v6906_v44  ;;  %v6930_v19 = vsel %vm15101_vm5, %v6920_v37, %v6908_v15  ;;  %vm15109_vm5 = vmmov %vm15108_vm12 }
 0x68d   :  { %v6950_v20 = vsel %vm1797_vm14, %v6942_v3, %v6928_v63  ;;  %v6952_v35 = vsel %vm15103_vm11, %v6942_v3, %v6930_v19  ;;  %vm15110_vm11 = vcmp.eq.s32.totalorder %v15087_v18, 1 }
 0x68e   :  { %v6972_v21 = vsel %vm1985_vm13, %v6964_v48, %v6950_v20  ;;  %v6974_v17 = vsel %vm15105_vm9, %v6964_v48, %v6952_v35  ;;  %vm15111_vm9 = vcmp.eq.s32.totalorder %v15100_v12, 1 }
 0x68f   :  { %v6976_v52 = vsub.f32 %v14056_v32, %v6972_v21  ;;  %v6978_v49 = vsub.f32 %v14085_v23, %v6974_v17 }
 0x691   :  { %v6980_v43 = vmul.f32 1.442695, %v6976_v52  ;;  %v6984_v61 = vmul.f32 1.442695, %v6978_v49 }
 0x693   :  { %10782 = vpow2.f32 %v6980_v43 }
 0x694   :  { %10784 = vpow2.f32 %v6984_v61 }
 0x699   :  { %v10783_v27 = vpop.eup %10782 }
 0x69a   :  { %v10785_v24 = vpop.eup %10784  ;;  %v6988_v51 = vmul.f32 %v10783_v27, %v14056_v32  ;;  %v10614_v32 = vld [vmem:[#allocation10 + $0x98] sm:$0xff] }
 0x69b   :  { %v6994_v38 = vpack.c.bf16 %v10785_v24, %v10783_v27  ;;  %v6990_v29 = vmul.f32 %v10785_v24, %v14085_v23  ;;  %v10612_v23 = vld [vmem:[#allocation10 + $0x88] sm:$0xff] }
 0x69d   :  { %7029 = vmatpush.bf16.msra.mxu2 %v6994_v38  ;;  %v6992_v36 = vpack.c.bf16 %v6990_v29, %v6988_v51 }
 0x69f   :  { %7003 = vmatpush.bf16.msra.mxu1 %v6992_v36 }
 0x6a0   :  { %9885 = vmatmul.msk.bf16.vlgmr.msra.gmra.mxu2 %vm15108_vm12, %v15107_v56  ;;  %vm15112_vm12 = vcmp.eq.s32.totalorder %v15102_v42, 1 }
 0x6a1   :  { %7344 = vmatpush.bf16.msrb.mxu2 %v10618_v46 }
 0x6a2   :  { %9883 = vmatmul.msk.bf16.vlgmr.msra.gmra.mxu1 %vm15109_vm5, %v15107_v56  ;;  %vm15113_vm5 = vcmp.eq.s32.totalorder %v15104_v60, 1 }
 0x6a5   :  { %7345 = vmatpush.bf16.msrb.mxu2 %v10617_v4 }
 0x6a9   :  { %7346 = vmatpush.bf16.msrb.mxu2 %v10616_v53 }
 0x6ad   :  { %7347 = vmatpush.bf16.msrb.mxu2 %v10615_v26 }
 0x6b1   :  { %7348 = vmatpush.bf16.msrb.mxu2 %v10614_v32 }
 0x6b5   :  { %7349 = vmatpush.bf16.msrb.mxu2 %v10613_v55 }
 0x6b9   :  { %7350 = vmatpush.bf16.msrb.mxu2 %v10612_v23 }
 0x6bd   :  { %7351 = vmatpush.bf16.msrb.mxu2 %v10611_v11 }
 0x6c0   :  { %7352 = vmatmul.bf16.vlgmr.msrb.gmra.mxu2 %v14040_v1 }
 0x6f8   :  { %v14155_v7 = vpop.f32.mrf.mxu3 }
 0x6f9   :  { %v6801_v39 = vsel %vm669_vm0, %v14155_v7, -1e+30  ;;  %v6823_v57 = vsel %vm15110_vm11, %v14155_v7, -1e+30  ;;  %v6845_v22 = vsel %vm1045_vm10, %v14155_v7, -1e+30 }
 0x6fa   :  { %v6867_v41 = vsel %vm1233_vm8, %v14155_v7, -1e+30  ;;  %v6889_v1 = vsel %vm1421_vm1, %v14155_v7, -1e+30  ;;  %v6911_v14 = vsel %vm1609_vm3, %v14155_v7, -1e+30 }
 0x6fb   :  { %v6933_v5 = vsel %vm1797_vm14, %v14155_v7, -1e+30  ;;  %v6955_v13 = vsel %vm1985_vm13, %v14155_v7, -1e+30 }
 0x700   :  { %v14178_v6 = vpop.f32.mrf.mxu3 }
 0x701   :  { %v6803_v50 = vsel %vm670_vm15, %v14178_v6, -1e+30  ;;  %v6825_v8 = vsel %vm858_vm2, %v14178_v6, -1e+30  ;;  %v6847_v58 = vsel %vm1046_vm4, %v14178_v6, -1e+30 }
 0x702   :  { %v6811_v59 = vmax.f32 %v6801_v39, %v6803_v50  ;;  %v6833_v37 = vmax.f32 %v6823_v57, %v6825_v8  ;;  %v6855_v44 = vmax.f32 %v6845_v22, %v6847_v58  ;;  %v6869_v15 = vsel %vm1234_vm6, %v14178_v6, -1e+30 }
 0x703   :  { %v6877_v3 = vmax.f32 %v6867_v41, %v6869_v15  ;;  %v6891_v63 = vsel %vm1422_vm7, %v14178_v6, -1e+30  ;;  %v6913_v19 = vsel %vm15111_vm9, %v14178_v6, -1e+30  ;;  %v6935_v48 = vsel %vm15112_vm12, %v14178_v6, -1e+30 }
 0x704   :  { %v6812_v20 = vrot.slane %v6811_v59, 4  ;;  %v6834_v35 = vrot.slane %v6833_v37, 4  ;;  %v6856_v21 = vrot.slane %v6855_v44, 4  ;;  %v6899_v17 = vmax.f32 %v6889_v1, %v6891_v63 }
 0x705   :  { %v6878_v52 = vrot.slane %v6877_v3, 4  ;;  %v6921_v49 = vmax.f32 %v6911_v14, %v6913_v19  ;;  %v6943_v43 = vmax.f32 %v6933_v5, %v6935_v48  ;;  %v6957_v61 = vsel %vm15113_vm5, %v14178_v6, -1e+30 }
 0x706   :  { %v6813_v27 = vmax.f32 %v6811_v59, %v6812_v20  ;;  %v6835_v24 = vmax.f32 %v6833_v37, %v6834_v35  ;;  %v6857_v46 = vmax.f32 %v6855_v44, %v6856_v21  ;;  %v6900_v51 = vrot.slane %v6899_v17, 4 }
 0x707   :  { %v6879_v38 = vmax.f32 %v6877_v3, %v6878_v52  ;;  %v6922_v29 = vrot.slane %v6921_v49, 4  ;;  %v6944_v36 = vrot.slane %v6943_v43, 4  ;;  %v6965_v4 = vmax.f32 %v6955_v13, %v6957_v61 }
 0x708   :  { %v6814_v53 = vrot.slane %v6813_v27, 2  ;;  %v6836_v26 = vrot.slane %v6835_v24, 2  ;;  %v6858_v32 = vrot.slane %v6857_v46, 2  ;;  %v6901_v55 = vmax.f32 %v6899_v17, %v6900_v51 }
 0x709   :  { %v6880_v23 = vrot.slane %v6879_v38, 2  ;;  %v6923_v11 = vmax.f32 %v6921_v49, %v6922_v29  ;;  %v6945_v39 = vmax.f32 %v6943_v43, %v6944_v36  ;;  %v6966_v57 = vrot.slane %v6965_v4, 4 }
 0x70a   :  { %v6815_v22 = vmax.f32 %v6813_v27, %v6814_v53  ;;  %v6837_v41 = vmax.f32 %v6835_v24, %v6836_v26  ;;  %v6859_v1 = vmax.f32 %v6857_v46, %v6858_v32  ;;  %v6902_v14 = vrot.slane %v6901_v55, 2 }
 0x70b   :  { %v6881_v5 = vmax.f32 %v6879_v38, %v6880_v23  ;;  %v6924_v50 = vrot.slane %v6923_v11, 2  ;;  %v6946_v8 = vrot.slane %v6945_v39, 2  ;;  %v6967_v58 = vmax.f32 %v6965_v4, %v6966_v57 }
 0x70c   :  { %v6816_v59 = vrot.slane %v6815_v22, 1  ;;  %v6838_v37 = vrot.slane %v6837_v41, 1  ;;  %v6860_v44 = vrot.slane %v6859_v1, 1  ;;  %v6903_v13 = vmax.f32 %v6901_v55, %v6902_v14 }
 0x70d   :  { %v6882_v15 = vrot.slane %v6881_v5, 1  ;;  %v6925_v3 = vmax.f32 %v6923_v11, %v6924_v50  ;;  %v6947_v63 = vmax.f32 %v6945_v39, %v6946_v8  ;;  %v6968_v19 = vrot.slane %v6967_v58, 2 }
 0x70e   :  { %v6817_v48 = vmax.f32 %v6815_v22, %v6816_v59  ;;  %v6839_v20 = vmax.f32 %v6837_v41, %v6838_v37  ;;  %v6904_v35 = vrot.slane %v6903_v13, 1  ;;  %v6861_v43 = vmax.f32 %v6859_v1, %v6860_v44 }
 0x70f   :  { %v6926_v21 = vrot.slane %v6925_v3, 1  ;;  %v6969_v17 = vmax.f32 %v6967_v58, %v6968_v19  ;;  %v6948_v61 = vrot.slane %v6947_v63, 1  ;;  %v6883_v46 = vmax.f32 %v6881_v5, %v6882_v15 }
 0x710   :  { %v6819_v52 = vsel %vm669_vm0, %v6817_v48, 0.0  ;;  %v6821_v49 = vsel %vm670_vm15, %v6817_v48, 0.0  ;;  %v6905_v29 = vmax.f32 %v6903_v13, %v6904_v35  ;;  %v10626_v13 = vld [vmem:[#allocation10 + $0xf8] sm:$0xff] }
 0x711   :  { %v6841_v27 = vsel %vm15110_vm11, %v6839_v20, %v6819_v52  ;;  %v6843_v24 = vsel %vm858_vm2, %v6839_v20, %v6821_v49  ;;  %v6970_v36 = vrot.slane %v6969_v17, 1  ;;  %v6927_v26 = vmax.f32 %v6925_v3, %v6926_v21  ;;  %v10625_v20 = vld [vmem:[#allocation10 + $0xf0] sm:$0xff]  ;;  %v10602_v35 = vld [vmem:[#allocation10 + $0x38] sm:$0xff] }
 0x712   :  { %v6863_v51 = vsel %vm1045_vm10, %v6861_v43, %v6841_v27  ;;  %v6865_v38 = vsel %vm1046_vm4, %v6861_v43, %v6843_v24  ;;  %v6949_v23 = vmax.f32 %v6947_v63, %v6948_v61  ;;  %7318 = vmatpush.bf16.msrb.mxu1 %v10602_v35  ;;  %v10601_v52 = vld [vmem:[#allocation10 + $0x30] sm:$0xff]  ;;  %v10600_v27 = vld [vmem:[#allocation10 + $0x28] sm:$0xff] }
 0x713   :  { %v6885_v4 = vsel %vm1233_vm8, %v6883_v46, %v6863_v51  ;;  %v6887_v53 = vsel %vm1234_vm6, %v6883_v46, %v6865_v38  ;;  %v6971_v57 = vmax.f32 %v6969_v17, %v6970_v36  ;;  %v10610_v17 = vld [vmem:[#allocation10 + $0x78] sm:$0xff]  ;;  %v10609_v49 = vld [vmem:[#allocation10 + $0x70] sm:$0xff]  ;;  %v10608_v24 = vld [vmem:[#allocation10 + $0x68] sm:$0xff] }
 0x714   :  { %v6907_v32 = vsel %vm1421_vm1, %v6905_v29, %v6885_v4  ;;  %v6909_v55 = vsel %vm1422_vm7, %v6905_v29, %v6887_v53  ;;  %v10623_v46 = vld [vmem:[#allocation10 + $0xe0] sm:$0xff]  ;;  %v10622_v36 = vld [vmem:[#allocation10 + $0xd8] sm:$0xff] }
 0x715   :  { %v6929_v11 = vsel %vm1609_vm3, %v6927_v26, %v6907_v32  ;;  %v6931_v39 = vsel %vm15111_vm9, %v6927_v26, %v6909_v55  ;;  %vm15114_vm9 = vcmask 130048   ;;  %v10599_v38 = vld [vmem:[#allocation10 + $0x20] sm:$0xff]  ;;  %v10598_v4 = vld [vmem:[#allocation10 + $0x18] sm:$0xff]  ;;  %v10621_v26 = vld [vmem:[#allocation10 + $0xd0] sm:$0xff] }
 0x716   :  { %v6951_v22 = vsel %vm1797_vm14, %v6949_v23, %v6929_v11  ;;  %v6953_v41 = vsel %vm15112_vm12, %v6949_v23, %v6931_v39  ;;  %vm15115_vm12 = vmmov %vm15114_vm9  ;;  %7319 = vmatpush.bf16.msrb.mxu1 %v10601_v52  ;;  %v10607_v29 = vld [vmem:[#allocation10 + $0x60] sm:$0xff]  ;;  %v10606_v53 = vld [vmem:[#allocation10 + $0x58] sm:$0xff] }
 0x717   :  { %v6973_v1 = vsel %vm1985_vm13, %v6971_v57, %v6951_v22  ;;  %v6975_v14 = vsel %vm15113_vm5, %v6971_v57, %v6953_v41  ;;  %v10597_v32 = vld [vmem:[#allocation10 + $0x10] sm:$0xff]  ;;  %v10620_v55 = vld [vmem:[#allocation10 + $0xc8] sm:$0xff]  ;;  %v10619_v39 = vld [vmem:[#allocation10 + $0xc0] sm:$0xff] }
 0x718   :  { %v6977_v5 = vsub.f32 %v14155_v7, %v6973_v1  ;;  %v6979_v50 = vsub.f32 %v14178_v6, %v6975_v14  ;;  %v10596_v23 = vld [vmem:[#allocation10 + $0x8] sm:$0xff]  ;;  %v10595_v22 = vld [vmem:[#allocation10] sm:$0xff]  ;;  %v10605_v1 = vld [vmem:[#allocation10 + $0x50] sm:$0xff] }
 0x719   :  { %v10604_v14 = vld [vmem:[#allocation10 + $0x48] sm:$0xff]  ;;  %v10675_v52 = vld [vmem:[#allocation11 + $0x1] ss:$0 sm:$0xff] }
 0x71a   :  { %v6982_v8 = vmul.f32 1.442695, %v6977_v5  ;;  %v6986_v58 = vmul.f32 1.442695, %v6979_v50  ;;  %7320 = vmatpush.bf16.msrb.mxu1 %v10600_v27  ;;  %v10603_v5 = vld [vmem:[#allocation10 + $0x40] sm:$0xff] }
 0x71c   :  { %10786 = vpow2.f32 %v6982_v8 }
 0x71d   :  { %10788 = vpow2.f32 %v6986_v58 }
 0x71e   :  { %7321 = vmatpush.bf16.msrb.mxu1 %v10599_v38 }
 0x71f   :  { %v7005_v21 = vpop.f32.mrf.mxu1 }
 0x722   :  { %v10787_v59 = vpop.eup %10786  ;;  %7322 = vmatpush.bf16.msrb.mxu1 %v10598_v4  ;;  %v10641_v4 = vld [vmem:[%s14444_s11 + $0x70] sm:$0xff] }
 0x723   :  { %v7031_v37 = vpop.f32.mrf.mxu2  ;;  %v10789_v44 = vpop.eup %10788  ;;  %v6989_v15 = vmul.f32 %v10787_v59, %v14155_v7 }
 0x724   :  { %vm7048_vm11 = vcmp.gt.f32.partialorder %v7031_v37, 0.0  ;;  %v6995_v3 = vpack.c.bf16 %v10789_v44, %v10787_v59  ;;  %v6991_v63 = vmul.f32 %v10789_v44, %v14178_v6  ;;  %v10624_v6 = vld [vmem:[#allocation10 + $0xe8] sm:$0xff] }
 0x725   :  { %v7050_v19 = vsel %vm7048_vm11, %v7031_v37, 1.0 }
 0x726   :  { %10790 = vrcp.f32 %v7050_v19  ;;  %7042 = vmatpush.bf16.msrb.mxu3 %v6995_v3  ;;  %v6993_v48 = vpack.c.bf16 %v6991_v63, %v6989_v15  ;;  %7323 = vmatpush.bf16.msrb.mxu1 %v10597_v32  ;;  %v10638_v32 = vld [vmem:[%s14444_s11 + $0x58] sm:$0xff] }
 0x727   :  { %v7007_v51 = vpop.f32.mrf.mxu1 }
 0x728   :  { %7016 = vmatpush.bf16.msrb.mxu0 %v6993_v48  ;;  %v10674_v48 = vld [vmem:[#allocation13] ss:$0 sm:$0xff] }
 0x729   :  { %9886 = vmatmul.msk.bf16.vlgmr.msrb.gmra.mxu3 %vm15114_vm9, %v15107_v56  ;;  %vm15116_vm9 = vcmask 1043456  }
 0x72a   :  { %7357 = vmatpush.bf16.msra.mxu3 %v10626_v13  ;;  %7324 = vmatpush.bf16.msrb.mxu1 %v10596_v23  ;;  %v10635_v23 = vld [vmem:[%s14444_s11 + $0x40] sm:$0xff] }
 0x72b   :  { %v7033_v7 = vpop.f32.mrf.mxu2  ;;  %9884 = vmatmul.msk.bf16.vlgmr.msrb.gmra.mxu0 %vm15115_vm12, %v15107_v56  ;;  %vm15117_vm12 = vcmask 64512  }
 0x72c   :  { %7331 = vmatpush.bf16.msra.mxu0 %v10610_v17  ;;  %v10791_v43 = vpop.eup %10790 }
 0x72d   :  { %v7054_v61 = vmul.f32 %v10791_v43, %v7005_v21  ;;  %v10672_v21 = vld [vmem:[#allocation11] ss:$0 sm:$0xff] }
 0x72e   :  { %7358 = vmatpush.bf16.msra.mxu3 %v10625_v20  ;;  %7325 = vmatpush.bf16.msrb.mxu1 %v10595_v22 }
 0x72f   :  { %v7056_v41 = vpack.c.bf16 %v7054_v61, %v7054_v61 }
 0x730   :  { %7332 = vmatpush.bf16.msra.mxu0 %v10609_v49  ;;  %v7372_v49 = vmul.f32 %v10672_v21, %v15078_v16 }
 0x731   :  { %7326 = vmatmul.bf16.vlgmr.msrb.gmra.mxu1 %v7056_v41 }
 0x732   :  { %7359 = vmatpush.bf16.msra.mxu3 %v10624_v6  ;;  %v7376_v6 = vmul.f32 %v10675_v52, %v14027_v40 }
 0x734   :  { %7333 = vmatpush.bf16.msra.mxu0 %v10608_v24 }
 0x736   :  { %7360 = vmatpush.bf16.msra.mxu3 %v10623_v46 }
 0x738   :  { %7334 = vmatpush.bf16.msra.mxu0 %v10607_v29  ;;  %v10642_v29 = vld [vmem:[%s14444_s11 + $0x78] sm:$0xff] }
 0x73a   :  { %7361 = vmatpush.bf16.msra.mxu3 %v10622_v36 }
 0x73c   :  { %7335 = vmatpush.bf16.msra.mxu0 %v10606_v53  ;;  %v10640_v53 = vld [vmem:[%s14444_s11 + $0x68] sm:$0xff] }
 0x73e   :  { %7362 = vmatpush.bf16.msra.mxu3 %v10621_v26  ;;  %v10639_v26 = vld [vmem:[%s14444_s11 + $0x60] sm:$0xff] }
 0x740   :  { %7336 = vmatpush.bf16.msra.mxu0 %v10605_v1 }
 0x742   :  { %7363 = vmatpush.bf16.msra.mxu3 %v10620_v55  ;;  %v10636_v55 = vld [vmem:[%s14444_s11 + $0x48] sm:$0xff] }
 0x743   :  { %v7353_v11 = vpop.f32.mrf.mxu2 }
 0x744   :  { %7337 = vmatpush.bf16.msra.mxu0 %v10604_v14 }
 0x746   :  { %7364 = vmatpush.bf16.msra.mxu3 %v10619_v39 }
 0x748   :  { %7338 = vmatpush.bf16.msra.mxu0 %v10603_v5 }
 0x749   :  { %7365 = vmatmul.bf16.vlgmr.msra.gmra.mxu3 %v14058_v25 }
 0x74b   :  { %v7355_v57 = vpop.f32.mrf.mxu2 }
 0x7a8   :  { %v7018_v50 = vpop.f32.mrf.mxu0 }
 0x7ac   :  { %v7044_v8 = vpop.f32.mrf.mxu3 }
 0x7ad   :  { %vm7049_vm5 = vcmp.gt.f32.partialorder %v7044_v8, 0.0 }
 0x7ae   :  { %v7051_v58 = vsel %vm7049_vm5, %v7044_v8, 1.0  ;;  %v7327_v63 = vpop.f32.mrf.mxu1  ;;  %vm15118_vm5 = vcmp.eq.s32.totalorder %v15087_v18, 1 }
 0x7af   :  { %10792 = vrcp.f32 %v7051_v58  ;;  %v7328_v20 = vadd.f32 %v10674_v48, %v7327_v63 }
 0x7b0   :  { %v7020_v59 = vpop.f32.mrf.mxu0 }
 0x7b4   :  { %v7046_v37 = vpop.f32.mrf.mxu3 }
 0x7b5   :  { %v10793_v44 = vpop.eup %10792 }
 0x7b6   :  { %v7055_v25 = vmul.f32 %v10793_v44, %v7018_v50  ;;  %v7329_v19 = vpop.f32.mrf.mxu1 }
 0x7b8   :  { %v7057_v13 = vpack.c.bf16 %v7055_v25, %v7055_v25 }
 0x7ba   :  { %7339 = vmatmul.bf16.vlgmr.msra.gmra.mxu0 %v7057_v13 }
 0x7cc   :  { %v7366_v15 = vpop.f32.mrf.mxu3 }
 0x7d4   :  { %v7368_v3 = vpop.f32.mrf.mxu3 }
 0x837   :  { %v7340_v35 = vpop.f32.mrf.mxu0 }
 0x838   :  { %v7341_v17 = vadd.f32 %v7340_v35, %v7328_v20 }
 0x83a   :  { %v7354_v7 = vadd.f32 %v7353_v11, %v7341_v17 }
 0x83c   :  { %v7367_v43 = vadd.f32 %v7366_v15, %v7354_v7 }
 0x83e   :  { %v7373_v61 = vadd.f32 %v7372_v49, %v7367_v43 }
 0x83f   :  { %v7342_v27 = vpop.f32.mrf.mxu0 }
 0x840   :  { %v7377_v24 = vadd.f32 %v7376_v6, %v7373_v61 }
 0x842   :  { %vm7378_vm11 = vcmp.ge.f32.partialorder %v7377_v24, 0.0  ;;  %v7379_v46 = vmul.f32 0.01, %v7377_v24 }
 0x844   :  { %v7380_v51 = vsel %vm7378_vm11, %v7377_v24, %v7379_v46  ;;  %vm15119_vm11 = vcmp.eq.s32.totalorder %v15100_v12, 1 }
 0x845   :  { %v7381_v38 = vpack.c.bf16 %v7380_v51, %v7380_v51 }
 0x847   :  { %v7383_v36 = vsel %vm15116_vm9, %v7381_v38, 0  ;;  %vm15120_vm9 = vcmp.eq.s32.totalorder %v15102_v42, 1 }
 0x848   :  { %7392 = vmatpush.bf16.msra.mxu1 %v7383_v36 }
 0x84b   :  { %10015 = vmatmul.msk.bf16.vlgmr.msra.gmra.mxu1 %vm15117_vm12, %v15082_v10  ;;  %v10637_v10 = vld [vmem:[%s14444_s11 + $0x50] sm:$0xff]  ;;  %vm15121_vm12 = vcmp.eq.s32.totalorder %v15104_v60, 1 }
 0x84c   :  { %7673 = vmatpush.bf16.msrb.mxu1 %v10642_v29 }
 0x850   :  { %7674 = vmatpush.bf16.msrb.mxu1 %v10641_v4 }
 0x854   :  { %7675 = vmatpush.bf16.msrb.mxu1 %v10640_v53 }
 0x858   :  { %7676 = vmatpush.bf16.msrb.mxu1 %v10639_v26 }
 0x85c   :  { %7677 = vmatpush.bf16.msrb.mxu1 %v10638_v32 }
 0x860   :  { %7678 = vmatpush.bf16.msrb.mxu1 %v10637_v10 }
 0x864   :  { %7679 = vmatpush.bf16.msrb.mxu1 %v10636_v55 }
 0x868   :  { %7680 = vmatpush.bf16.msrb.mxu1 %v10635_v23 }
 0x86b   :  { %7681 = vmatmul.bf16.vlgmr.msrb.gmra.mxu1 %v7381_v38 }
 0x8c8   :  { %v14277_v11 = vpop.f32.mrf.mxu1 }
 0x8c9   :  { %v7399_v39 = vsel %vm669_vm0, %v14277_v11, -1e+30  ;;  %v7410_v57 = vsel %vm15118_vm5, %v14277_v11, -1e+30  ;;  %v7421_v22 = vsel %vm1045_vm10, %v14277_v11, -1e+30 }
 0x8ca   :  { %v7432_v41 = vsel %vm1233_vm8, %v14277_v11, -1e+30  ;;  %v7443_v1 = vsel %vm1421_vm1, %v14277_v11, -1e+30  ;;  %v7454_v14 = vsel %vm1609_vm3, %v14277_v11, -1e+30 }
 0x8cb   :  { %v7465_v5 = vsel %vm1797_vm14, %v14277_v11, -1e+30  ;;  %v7476_v8 = vsel %vm1985_vm13, %v14277_v11, -1e+30 }
 0x8d0   :  { %v14300_v50 = vpop.f32.mrf.mxu1 }
 0x8d1   :  { %v7400_v58 = vsel %vm670_vm15, %v14300_v50, -1e+30  ;;  %v7411_v59 = vsel %vm858_vm2, %v14300_v50, -1e+30  ;;  %v7422_v37 = vsel %vm1046_vm4, %v14300_v50, -1e+30 }
 0x8d2   :  { %v7401_v44 = vmax.f32 %v7399_v39, %v7400_v58  ;;  %v7412_v25 = vmax.f32 %v7410_v57, %v7411_v59  ;;  %v7423_v13 = vmax.f32 %v7421_v22, %v7422_v37  ;;  %v7433_v15 = vsel %vm1234_vm6, %v14300_v50, -1e+30 }
 0x8d3   :  { %v7434_v3 = vmax.f32 %v7432_v41, %v7433_v15  ;;  %v7444_v63 = vsel %vm1422_vm7, %v14300_v50, -1e+30  ;;  %v7455_v19 = vsel %vm15119_vm11, %v14300_v50, -1e+30  ;;  %v7466_v48 = vsel %vm15120_vm9, %v14300_v50, -1e+30 }
 0x8d4   :  { %v7402_v20 = vrot.slane %v7401_v44, 4  ;;  %v7413_v35 = vrot.slane %v7412_v25, 4  ;;  %v7424_v21 = vrot.slane %v7423_v13, 4  ;;  %v7445_v17 = vmax.f32 %v7443_v1, %v7444_v63 }
 0x8d5   :  { %v7435_v52 = vrot.slane %v7434_v3, 4  ;;  %v7456_v7 = vmax.f32 %v7454_v14, %v7455_v19  ;;  %v7467_v49 = vmax.f32 %v7465_v5, %v7466_v48  ;;  %v7477_v43 = vsel %vm15121_vm12, %v14300_v50, -1e+30  ;;  %v10633_v19 = vld [vmem:[%s14444_s11 + $0x30] sm:$0xff] }
 0x8d6   :  { %v7403_v6 = vmax.f32 %v7401_v44, %v7402_v20  ;;  %v7414_v61 = vmax.f32 %v7412_v25, %v7413_v35  ;;  %v7425_v27 = vmax.f32 %v7423_v13, %v7424_v21  ;;  %v7446_v24 = vrot.slane %v7445_v17, 4 }
 0x8d7   :  { %v7436_v46 = vmax.f32 %v7434_v3, %v7435_v52  ;;  %v7457_v51 = vrot.slane %v7456_v7, 4  ;;  %v7468_v38 = vrot.slane %v7467_v49, 4  ;;  %v7478_v29 = vmax.f32 %v7476_v8, %v7477_v43  ;;  %v10634_v8 = vld [vmem:[%s14444_s11 + $0x38] sm:$0xff] }
 0x8d8   :  { %v7404_v36 = vrot.slane %v7403_v6, 2  ;;  %v7415_v4 = vrot.slane %v7414_v61, 2  ;;  %v7426_v53 = vrot.slane %v7425_v27, 2  ;;  %v7447_v26 = vmax.f32 %v7445_v17, %v7446_v24  ;;  %7660 = vmatpush.bf16.msrb.mxu3 %v10634_v8  ;;  %v10632_v24 = vld [vmem:[%s14444_s11 + $0x28] sm:$0xff] }
 0x8d9   :  { %v7437_v32 = vrot.slane %v7436_v46, 2  ;;  %v7458_v10 = vmax.f32 %v7456_v7, %v7457_v51  ;;  %v7469_v55 = vmax.f32 %v7467_v49, %v7468_v38  ;;  %v7479_v23 = vrot.slane %v7478_v29, 4 }
 0x8da   :  { %v7405_v39 = vmax.f32 %v7403_v6, %v7404_v36  ;;  %v7416_v57 = vmax.f32 %v7414_v61, %v7415_v4  ;;  %v7427_v22 = vmax.f32 %v7425_v27, %v7426_v53  ;;  %v7448_v41 = vrot.slane %v7447_v26, 2 }
 0x8db   :  { %v7438_v1 = vmax.f32 %v7436_v46, %v7437_v32  ;;  %v7459_v14 = vrot.slane %v7458_v10, 2  ;;  %v7470_v5 = vrot.slane %v7469_v55, 2  ;;  %v7480_v58 = vmax.f32 %v7478_v29, %v7479_v23 }
 0x8dc   :  { %v7406_v59 = vrot.slane %v7405_v39, 1  ;;  %v7417_v37 = vrot.slane %v7416_v57, 1  ;;  %v7428_v44 = vrot.slane %v7427_v22, 1  ;;  %v7449_v25 = vmax.f32 %v7447_v26, %v7448_v41  ;;  %7661 = vmatpush.bf16.msrb.mxu3 %v10633_v19  ;;  %v10629_v41 = vld [vmem:[%s14444_s11 + $0x10] sm:$0xff]  ;;  %v7698_v19 = vld [vmem:[%s14447_s14 + $0x8] sm:$0xff] }
 0x8dd   :  { %v7439_v13 = vrot.slane %v7438_v1, 1  ;;  %v7460_v15 = vmax.f32 %v7458_v10, %v7459_v14  ;;  %v7471_v3 = vmax.f32 %v7469_v55, %v7470_v5  ;;  %v7481_v63 = vrot.slane %v7480_v58, 2  ;;  %v10630_v10 = vld [vmem:[%s14444_s11 + $0x18] sm:$0xff] }
 0x8de   :  { %v7407_v48 = vmax.f32 %v7405_v39, %v7406_v59  ;;  %v7418_v20 = vmax.f32 %v7416_v57, %v7417_v37  ;;  %v7450_v35 = vrot.slane %v7449_v25, 1  ;;  %v7429_v49 = vmax.f32 %v7427_v22, %v7428_v44 }
 0x8df   :  { %v7461_v21 = vrot.slane %v7460_v15, 1  ;;  %v7482_v17 = vmax.f32 %v7480_v58, %v7481_v63  ;;  %v7472_v43 = vrot.slane %v7471_v3, 1  ;;  %v7440_v27 = vmax.f32 %v7438_v1, %v7439_v13  ;;  %v7704_v1 = vld [vmem:[%s14447_s14 + $0x38] sm:$0xff]  ;;  %v7702_v13 = vld [vmem:[%s14447_s14 + $0x28] sm:$0xff]  ;;  %v7699_v63 = vld [vmem:[%s14447_s14 + $0x10] sm:$0xff] }
 0x8e0   :  { %v7408_v52 = vsel %vm669_vm0, %v7407_v48, 0.0  ;;  %v7409_v7 = vsel %vm670_vm15, %v7407_v48, 0.0  ;;  %v7451_v46 = vmax.f32 %v7449_v25, %v7450_v35  ;;  %vm15122_vm15 = vmmov %vm15119_vm11  ;;  %7662 = vmatpush.bf16.msrb.mxu3 %v10632_v24  ;;  %v7697_v48 = vld [vmem:[%s14447_s14] sm:$0xff]  ;;  %v10673_v35 = vld [vmem:[#allocation14] ss:$0 sm:$0xff]  ;;  %vm7742_vm0 = vcmask 56320  }
 0x8e1   :  { %v7419_v6 = vsel %vm15118_vm5, %v7418_v20, %v7408_v52  ;;  %v7420_v61 = vsel %vm858_vm2, %v7418_v20, %v7409_v7  ;;  %v7483_v51 = vrot.slane %v7482_v17, 1  ;;  %v7462_v38 = vmax.f32 %v7460_v15, %v7461_v21  ;;  %vm15124_vm2 = vmmov %vm15121_vm12  ;;  %v7701_v15 = vld [vmem:[%s14447_s14 + $0x20] sm:$0xff]  ;;  %v10676_v20 = vld [vmem:[#allocation16] ss:$0 sm:$0xff] }
 0x8e2   :  { %v7430_v2 = vsel %vm1045_vm10, %v7429_v49, %v7419_v6  ;;  %v7431_v31 = vsel %vm1046_vm4, %v7429_v49, %v7420_v61  ;;  %v7473_v33 = vmax.f32 %v7471_v3, %v7472_v43  ;;  %v7700_v3 = vld [vmem:[%s14447_s14 + $0x18] sm:$0xff]  ;;  %v10677_v21 = vld [vmem:[#allocation14 + $0x1] ss:$0 sm:$0xff]  ;;  %v7688_v7 = vmul.f32 %v10673_v35, %v15078_v16  ;;  %v15127_v16 = vld [vmem:[#allocation33_spill] sm:$0xff] }
 0x8e3   :  { %v7441_v18 = vsel %vm1233_vm8, %v7440_v27, %v7430_v2  ;;  %v7442_v0 = vsel %vm1234_vm6, %v7440_v27, %v7431_v31  ;;  %v7484_v53 = vmax.f32 %v7482_v17, %v7483_v51  ;;  %v7692_v43 = vmul.f32 %v10677_v21, %v14027_v40  ;;  %v10679_v31 = vld [vmem:[#allocation17] ss:$0 sm:$0xff] }
 0x8e4   :  { %v7452_v29 = vsel %vm1421_vm1, %v7451_v46, %v7441_v18  ;;  %v7453_v36 = vsel %vm1422_vm7, %v7451_v46, %v7442_v0  ;;  %vm15123_vm1 = vmmov %vm15120_vm9  ;;  %7663 = vmatpush.bf16.msrb.mxu3 %v10631_v54  ;;  %vm7709_vm6 = vcmask 523264   ;;  %v10678_v46 = vld [vmem:[#allocation19] ss:$0 sm:$0xff]  ;;  %v7737_v51 = vmul.f32 %v10679_v31, %v14027_v40 }
 0x8e5   :  { %v7463_v28 = vsel %vm1609_vm3, %v7462_v38, %v7452_v29  ;;  %v7464_v45 = vsel %vm15122_vm15, %v7462_v38, %v7453_v36  ;;  %vm7739_vm7 = vcmp.ge.s32.totalorder %v15127_v16, 3 }
 0x8e6   :  { %v7474_v9 = vsel %vm1797_vm14, %v7473_v33, %v7463_v28  ;;  %v7475_v34 = vsel %vm15123_vm1, %v7473_v33, %v7464_v45 }
 0x8e7   :  { %v7485_v26 = vsel %vm1985_vm13, %v7484_v53, %v7474_v9  ;;  %v7486_v30 = vsel %vm15124_vm2, %v7484_v53, %v7475_v34  ;;  %vm15125_vm13 = vcmask 130048  }
 0x8e8   :  { %v14358_v4 = vpop.f32.mrf.mxu1  ;;  %v7487_v12 = vsub.f32 %v14277_v11, %v7485_v26  ;;  %v7488_v32 = vsub.f32 %v14300_v50, %v7486_v30  ;;  %7664 = vmatpush.bf16.msrb.mxu3 %v10630_v10  ;;  %vm15126_vm14 = vmmov %vm15125_vm13 }
 0x8ea   :  { %v7489_v62 = vmul.f32 1.442695, %v7487_v12  ;;  %v7491_v55 = vmul.f32 1.442695, %v7488_v32 }
 0x8ec   :  { %10794 = vpow2.f32 %v7489_v62  ;;  %7665 = vmatpush.bf16.msrb.mxu3 %v10629_v41 }
 0x8ed   :  { %10796 = vpow2.f32 %v7491_v55 }
 0x8f0   :  { %v7684_v42 = vpop.f32.mrf.mxu1 }
 0x8f2   :  { %v10795_v47 = vpop.eup %10794 }
 0x8f3   :  { %v10797_v23 = vpop.eup %10796  ;;  %v7493_v60 = vmul.f32 %v10795_v47, %v14277_v11  ;;  %v10628_v11 = vld [vmem:[%s14444_s11 + $0x8] sm:$0xff] }
 0x8f4   :  { %v7496_v39 = vpack.c.bf16 %v10797_v23, %v10795_v47  ;;  %v7494_v57 = vmul.f32 %v10797_v23, %v14300_v50  ;;  %7666 = vmatpush.bf16.msrb.mxu3 %v10628_v11  ;;  %v10627_v50 = vld [vmem:[%s14444_s11] sm:$0xff] }
 0x8f6   :  { %7517 = vmatpush.bf16.msra.mxu2 %v7496_v39  ;;  %v7495_v22 = vpack.c.bf16 %v7494_v57, %v7493_v60 }
 0x8f8   :  { %7504 = vmatpush.bf16.msrb.mxu0 %v7495_v22  ;;  %7667 = vmatpush.bf16.msrb.mxu3 %v10627_v50 }
 0x8f9   :  { %10017 = vmatmul.msk.bf16.vlgmr.msra.gmra.mxu2 %vm15125_vm13, %v15107_v56 }
 0x8fb   :  { %10016 = vmatmul.msk.bf16.vlgmr.msrb.gmra.mxu0 %vm15126_vm14, %v15107_v56  ;;  %v7703_v56 = vld [vmem:[%s14447_s14 + $0x30] sm:$0xff]  ;;  %s11125_s14 = smov [#allocation20]  }
 0x8fc   :  { %7721 = vmatpush.msra.mxu0 %v7704_v1  ;;  %s7765_s29 = sshll.u32 %s11125_s14, 4  ;;  %s7766_s29 = int_to_ptr.vmem [resolvable:$true] %s7765_s29 }
 0x8fe   :  { %7722 = vmatpush.msra.mxu0 %v7703_v56 }
 0x900   :  { %7723 = vmatpush.msra.mxu0 %v7702_v13 }
 0x902   :  { %7724 = vmatpush.msra.mxu0 %v7701_v15 }
 0x904   :  { %7725 = vmatpush.msra.mxu0 %v7700_v3 }
 0x906   :  { %7726 = vmatpush.msra.mxu0 %v7699_v63 }
 0x908   :  { %7727 = vmatpush.msra.mxu0 %v7698_v19 }
 0x90a   :  { %7728 = vmatpush.msra.mxu0 %v7697_v48 }
 0x978   :  { %v7506_v14 = vpop.f32.mrf.mxu0 }
 0x97c   :  { %v7519_v5 = vpop.f32.mrf.mxu2 }
 0x97d   :  { %vm7523_vm3 = vcmp.gt.f32.partialorder %v7519_v5, 0.0 }
 0x97e   :  { %v7524_v58 = vsel %vm7523_vm3, %v7519_v5, 1.0 }
 0x97f   :  { %10798 = vrcp.f32 %v7524_v58 }
 0x980   :  { %v7508_v8 = vpop.f32.mrf.mxu0 }
 0x984   :  { %v7521_v59 = vpop.f32.mrf.mxu2 }
 0x985   :  { %v10799_v37 = vpop.eup %10798 }
 0x986   :  { %v7526_v44 = vmul.f32 %v10799_v37, %v7506_v14 }
 0x988   :  { %v7527_v25 = vpack.c.bf16 %v7526_v44, %v7526_v44 }
 0x98a   :  { %7668 = vmatmul.bf16.vlgmr.msrb.gmra.mxu3 %v7527_v25 }
 0xa0d   :  { %v7669_v17 = vpop.f32.mrf.mxu3 }
 0xa0e   :  { %v7670_v52 = vadd.f32 %v10676_v20, %v7669_v17 }
 0xa10   :  { %v7683_v49 = vadd.f32 %v14358_v4, %v7670_v52 }
 0xa12   :  { %v7689_v6 = vadd.f32 %v7688_v7, %v7683_v49 }
 0xa14   :  { %v7693_v61 = vadd.f32 %v7692_v43, %v7689_v6 }
 0xa15   :  { %v7671_v27 = vpop.f32.mrf.mxu3 }
 0xa16   :  { %v7695_v24 = vmul.f32 0.01, %v7693_v61  ;;  %vm7694_vm4 = vcmp.ge.f32.partialorder %v7693_v61, 0.0 }
 0xa18   :  { %v7696_v2 = vsel %vm7694_vm4, %v7693_v61, %v7695_v24 }
 0xa19   :  { %10082 = vmatmul.msk.f32.vlgmr.msra.gmra.mxu0 %vm7709_vm6, %v7696_v2 }
 0xa96   :  { %v7730_v18 = vpop.f32.mrf.mxu0 }
 0xa97   :  { %v7731_v0 = vadd.f32 %v10678_v46, %v7730_v18 }
 0xa99   :  { %v7738_v38 = vadd.f32 %v7737_v51, %v7731_v0 }
 0xa9b   :  { %v7740_v29 = vmul.f32 %v7738_v38, %v7738_v38 }
 0xa9d   :  { %v7741_v36 = vsel %vm7739_vm7, %v7740_v29, 0.0 }
 0xa9e   :  { %v7743_v33 = vsel %vm7742_vm0, %v7741_v36, 0.0 }
 0xa9f   :  { %7744 = vadd.xlane.f32.xlu0 %v7743_v33 }
 0xb12   :  { %v7745_v4 = vpop.xlane.xlu0 %7744 }
 0xb13   :  { %v7746_v28 = vmax.f32 %v7745_v4, 1e-24 }
 0xb15   :  { %10800 = vrsqrt.f32 %v7746_v28  ;;  %vm7753_vm8 = vweird.f32 %v7746_v28 }
 0xb1b   :  { %v10801_v45 = vpop.eup %10800 }
 0xb1c   :  { %v7748_v53 = vmul.f32 %v10801_v45, %v7746_v28  ;;  %vm7754_vm10 = vweird.f32 %v10801_v45 }
 0xb1d   :  { %vm7755_vm11 = vmor %vm7753_vm8, %vm7754_vm10 }
 0xb1e   :  { %v7749_v54 = vmul.f32 %v10801_v45, %v7748_v53 }
 0xb20   :  { %v7750_v40 = vmul.f32 0.5, %v7749_v54 }
 0xb22   :  { %v7751_v9 = vsub.f32 1.5, %v7750_v40 }
 0xb24   :  { %v7752_v34 = vmul.f32 %v10801_v45, %v7751_v9 }
 0xb26   :  { %v7756_v26 = vsel %vm7755_vm11, %v10801_v45, %v7752_v34 }
 0xb27   :  { %v7757_v30 = vmul.f32 %v7756_v26, %v7738_v38 }
 0xb29   :  { %v7758_v12 = vsel %vm7739_vm7, %v7757_v30, %v7738_v38 }
 0xb2a   :  { %7759 = vst.msk [vmem:[#allocation20] sm:$0xff] %vm7742_vm0, %v7758_v12 }
 0xb2b   :  { %7770 = dma.vmem_to_hbm [thread:$0]  %s7766_s29, 128, %s7768_s28, [#allocation4]  }
 0xb2c   :  { %11104 = dma.done.wait [#allocation4], 128  }
 0xb2d   :  { %11105 = vsyncadd [#allocation4], 4294967168 }
 0xb2e   :  { %7775 = vsyncpa [#allocation3], 1 }
 0xb2f   :  { %7776 = vsyncpa [#allocation6], 1 }
 0xb30   :  { %7777 = vsyncpa [#allocation9], 1 }
 0xb31   :  { %7778 = vsyncpa [#allocation12], 1 }
 0xb32   :  { %7779 = vsyncpa [#allocation15], 1 }
 0xb33   :  { %7780 = vsyncpa [#allocation18], 1 }
 0xb34   :  { %7781 = vsyncpa [#allocation4], 1 }

</bundles_post_ra>
